<compile_context>
chip_gen: v7x
topology: tpu7x:2x2x1
jax: 0.10.0
libtpu: 0.0.40
codegen_flags: <defaults>
</compile_context>

<pallas_src>
import functools

import jax
import jax.numpy as jnp
import numpy as np
from jax.experimental import pallas as pl
from jax.experimental.pallas import tpu as pltpu

H = 56
W = 56
HW = H * W            # 3136
GROUPS = 2            # reshape groups summed over (torch.sum(..., dim=1))
C12 = 12              # inner channels
K1 = 7                # first unfold kernel size (slides along width)
K2 = 3                # second unfold kernel size (slides along height)
CMID = 21             # intermediate channels (weights[1] output dim)
COUT = 96             # output channels (weights[0] output dim)
CBLK = COUT // 2      # per-grid-step output-channel block (2 blocks -> 2 TCs on v7x)

# Deterministic stand-in for `(random.random() > 0.5) * 2 - 1` in the PyTorch module.
SHIFT = 1


def _shift_lanes(arr, delta, pos, limit):
    """s[:, f] = arr[:, f + delta] where pos[f] + delta lies in [0, limit), else 0.

    `pos` is a (1, HW) int32 per-lane coordinate: q = f % 56 for the width taps
    (zero outside the row), f itself for the height taps (zero outside the map).
    The lane rotation runs on the XLU; the mask is two VPU compares + a select.
    """
    if delta == 0:
        return arr
    s = pltpu.roll(arr, (-delta) % HW, axis=1)
    valid = (pos + delta >= 0) & (pos + delta < limit)
    return jnp.where(valid, s, jnp.zeros_like(s))


def _kernel_fused(idx_ref, x_ref, w2m_ref, w1f_ref, y_ref):
    # idx_ref : (2, 3136) int32   row 0: q = f % 56, row 1: f
    # x_ref   : (12, 3136) bf16   group-summed, width-rolled activation, f = p*56+q
    # w2m_ref : (21, 84)   bf16   w2m[k, j*12+i] = w2[i, j, k]
    # w1f_ref : (48, 63)   bf16   w1f[c, j*21+k] = w1[c, j, k]   (COUT block)
    # y_ref   : (48, 3136) f32
    q = idx_ref[0:1, :]
    f = idx_ref[1:2, :]
    x = x_ref[...]                                                     # (12, 3136) bf16

    # ---- width unfold (7 taps) -> one K=84 matmul --------------------------
    taps = [_shift_lanes(x, j - K1 // 2, q, W) for j in range(K1)]
    u1 = jnp.concatenate(taps, axis=0)                                 # (84, 3136) bf16
    t5 = jnp.dot(w2m_ref[...], u1, preferred_element_type=jnp.float32)  # (21, 3136) f32

    # ---- height unfold (3 taps, +-56 lanes) -> one K=63 matmul -------------
    rows = [_shift_lanes(t5, (j - K2 // 2) * W, f, HW) for j in range(K2)]
    u2 = jnp.concatenate(rows, axis=0).astype(jnp.bfloat16)            # (63, 3136) bf16
    y_ref[...] = jnp.dot(w1f_ref[...], u2, preferred_element_type=jnp.float32)


def _kernel_safe(idx_ref, x_ref, w2m_ref, w1f_ref, y_ref):
    """Conservative fallback: identical math, but only padded lane-slices and
    accumulated f32 dots (patterns already proven on this toolchain)."""
    q = idx_ref[0:1, :]
    x = x_ref[...].astype(jnp.float32)                                 # (12, 3136)

    zx = jnp.zeros((C12, K1 // 2), jnp.float32)
    xp = jnp.concatenate([zx, x, zx], axis=1)                          # (12, 3142)
    t5 = jnp.zeros((CMID, HW), jnp.float32)
    for j in range(K1):
        d = j - K1 // 2
        win = xp[:, K1 // 2 + d: K1 // 2 + d + HW]                     # x[:, f + d]
        valid = (q + d >= 0) & (q + d < W)
        win = jnp.where(valid, win, jnp.zeros_like(win))
        w2j = w2m_ref[:, j * C12:(j + 1) * C12].astype(jnp.float32)
        t5 = t5 + jnp.dot(w2j, win, preferred_element_type=jnp.float32)

    zt = jnp.zeros((CMID, W), jnp.float32)
    tp = jnp.concatenate([zt, t5, zt], axis=1)                         # (21, 3248)
    acc = jnp.zeros((y_ref.shape[0], HW), jnp.float32)
    for j in range(K2):
        win = tp[:, j * W: j * W + HW]                                 # t5[:, f + (j-1)*56]
        w1j = w1f_ref[:, j * CMID:(j + 1) * CMID].astype(jnp.float32)
        acc = acc + jnp.dot(w1j, win, preferred_element_type=jnp.float32)
    y_ref[...] = acc


def _make_forward(fused: bool):
    kernel = _kernel_fused if fused else _kernel_safe

    @jax.jit
    def forward(x, w1, w2):
        # ---- light JAX glue (no im2col materialization) --------------------
        xg = x.reshape(GROUPS, C12, H, W)
        xs = xg[0] + xg[1]                                # torch.sum over the group dim
        xs = jnp.roll(xs, SHIFT, axis=2)                  # torch.roll(..., dim=3)
        x_flat = xs.reshape(C12, HW).astype(jnp.bfloat16)

        fidx = jnp.arange(HW, dtype=jnp.int32)
        idx = jnp.stack([fidx % W, fidx], axis=0)         # (2, 3136) int32

        w2m = jnp.transpose(w2, (2, 1, 0)).reshape(CMID, K1 * C12).astype(jnp.bfloat16)
        w1f = w1.reshape(COUT, K2 * CMID).astype(jnp.bfloat16)

        cost = pl.CostEstimate(
            flops=2 * (CMID * K1 * C12 + COUT * K2 * CMID) * HW,
            transcendentals=0,
            bytes_accessed=(idx.size * 4 + x_flat.size * 2 + w2m.size * 2
                            + w1f.size * 2 + COUT * HW * 4),
        )

        y2d = pl.pallas_call(
            kernel,
            out_shape=jax.ShapeDtypeStruct((COUT, HW), jnp.float32),
            grid=(COUT // CBLK,),
            in_specs=[
                pl.BlockSpec((2, HW), lambda i: (0, 0)),
                pl.BlockSpec((C12, HW), lambda i: (0, 0)),
                pl.BlockSpec((CMID, K1 * C12), lambda i: (0, 0)),
                pl.BlockSpec((CBLK, K2 * CMID), lambda i: (i, 0)),
            ],
            out_specs=pl.BlockSpec((CBLK, HW), lambda i: (i, 0)),
            compiler_params=pltpu.CompilerParams(
                dimension_semantics=("parallel",)),
            cost_estimate=cost,
        )(idx, x_flat, w2m, w1f)
        return y2d.reshape(1, COUT, H, W)

    return forward


def reference(x, w1, w2):
    """Pure-JAX mirror of the PyTorch forward (f32, for verification)."""
    hi = jax.lax.Precision.HIGHEST
    t3 = jnp.reshape(x, (1, 2, 12, 56, 56)).sum(axis=1)                   # (1, 12, 56, 56)
    t4 = jnp.roll(t3, SHIFT, axis=3)
    t4 = jnp.reshape(t4, (1, 672, 56, 1))
    t4p = jnp.pad(t4, ((0, 0), (0, 0), (3, 3), (0, 0)))                   # unfold (7,1), pad (3,0)
    cols = jnp.stack([t4p[0, :, kh:kh + 56, 0] for kh in range(7)], axis=1)
    t4u = jnp.reshape(cols, (1, 12, 56, 7, 56))
    t5 = jnp.einsum('linjm,ijk->lnmk', t4u, w2, precision=hi)             # (1, 56, 56, 21)
    t6 = jnp.reshape(t5, (1, 1, 56, 1176))
    t6p = jnp.pad(t6, ((0, 0), (0, 0), (1, 1), (0, 0)))                   # unfold (3,1), pad (1,0)
    cols2 = jnp.stack([t6p[0, 0, kh:kh + 56, :] for kh in range(3)], axis=0)
    t6u = jnp.reshape(cols2, (1, 3, 56, 56, 21))
    t7 = jnp.einsum('ljmnk,ijk->limn', t6u, w1, precision=hi)             # (1, 96, 56, 56)
    return t7


if __name__ == "__main__":
    key = jax.random.PRNGKey(0)
    kx, k1, k2 = jax.random.split(key, 3)
    # x must reshape to (1, 2, 12, 56, 56) -> NCHW (1, 24, 56, 56)
    x = jax.random.normal(kx, (1, 24, 56, 56), dtype=jnp.float32)
    # deterministic stand-ins for the torch.randn parameters
    w1 = jax.random.normal(k1, (96, 3, 21), dtype=jnp.float32)
    w2 = jax.random.normal(k2, (12, 7, 21), dtype=jnp.float32)

    y_ref = np.asarray(jax.block_until_ready(reference(x, w1, w2)))

    def _run(fused):
        y = jax.block_until_ready(_make_forward(fused)(x, w1, w2))
        assert y.shape == (1, 96, 56, 56)
        # bf16 operands with f32 accumulation: error ~1% of the output scale
        # (output std is ~1e2 for these N(0,1) inputs), so atol=2.0 / rtol=2e-2.
        np.testing.assert_allclose(np.asarray(y), y_ref, rtol=2e-2, atol=2.0)
        return y

    try:
        y = _run(True)           # preferred: pltpu.roll + fused K=84 / K=63 matmuls
    except Exception:
        y = _run(False)          # conservative padded-slice / accumulated-dot kernel

    print("KERNEL_OK")
</pallas_src>

<mosaic_0001>
module attributes {stable_mosaic.version = 11 : i64} {
  func.func @_kernel_fused(%arg0: i32, %arg1: memref<2x3136xi32, #tpu.memory_space<vmem>>, %arg2: memref<12x3136xbf16, #tpu.memory_space<vmem>>, %arg3: memref<21x84xbf16, #tpu.memory_space<vmem>>, %arg4: memref<48x63xbf16, #tpu.memory_space<vmem>>, %arg5: memref<48x3136xf32, #tpu.memory_space<vmem>>) attributes {dimension_semantics = [#tpu.dimension_semantics<parallel>], iteration_bounds = array<i64: 2>, scalar_prefetch = 0 : i64, scratch_operands = 0 : i64, tpu.core_type = #tpu.core_type<tc>, window_params = [{pipeline_mode = #tpu.pipeline_mode<synchronous>, transform_indices = @transform_0, window_bounds = array<i64: 2, 3136>}, {pipeline_mode = #tpu.pipeline_mode<synchronous>, transform_indices = @transform_1, window_bounds = array<i64: 12, 3136>}, {pipeline_mode = #tpu.pipeline_mode<synchronous>, transform_indices = @transform_2, window_bounds = array<i64: 21, 84>}, {transform_indices = @transform_3, window_bounds = array<i64: 48, 63>}, {transform_indices = @transform_4, window_bounds = array<i64: 48, 3136>}]} {
    %c0 = arith.constant 0 : index
    %c0_0 = arith.constant 0 : index
    %0 = vector.load %arg1[%c0, %c0_0] : memref<2x3136xi32, #tpu.memory_space<vmem>>, vector<1x3136xi32>
    %c1 = arith.constant 1 : index
    %c0_1 = arith.constant 0 : index
    %1 = vector.load %arg1[%c1, %c0_1] : memref<2x3136xi32, #tpu.memory_space<vmem>>, vector<1x3136xi32>
    %c0_2 = arith.constant 0 : index
    %c0_3 = arith.constant 0 : index
    %2 = vector.load %arg2[%c0_2, %c0_3] : memref<12x3136xbf16, #tpu.memory_space<vmem>>, vector<12x3136xbf16>
    %c3_i32 = arith.constant 3 : i32
    %3 = tpu.dynamic_rotate %2 by %c3_i32 dim 1 : vector<12x3136xbf16>, i32 -> vector<12x3136xbf16>
    %c-3_i32 = arith.constant -3 : i32
    %4 = vector.broadcast %c-3_i32 : i32 to vector<1x3136xi32>
    %5 = arith.addi %0, %4 : vector<1x3136xi32>
    %c0_i32 = arith.constant 0 : i32
    %6 = vector.broadcast %c0_i32 : i32 to vector<1x3136xi32>
    %7 = arith.cmpi sge, %5, %6 : vector<1x3136xi32>
    %c-3_i32_4 = arith.constant -3 : i32
    %8 = vector.broadcast %c-3_i32_4 : i32 to vector<1x3136xi32>
    %9 = arith.addi %0, %8 : vector<1x3136xi32>
    %c56_i32 = arith.constant 56 : i32
    %10 = vector.broadcast %c56_i32 : i32 to vector<1x3136xi32>
    %11 = arith.cmpi slt, %9, %10 : vector<1x3136xi32>
    %12 = arith.andi %7, %11 : vector<1x3136xi1>
    %cst = arith.constant 0.000000e+00 : bf16
    %13 = vector.broadcast %cst : bf16 to vector<12x3136xbf16>
    %14 = vector.shape_cast %12 : vector<1x3136xi1> to vector<1x3136xi1>
    %15 = vector.broadcast %14 : vector<1x3136xi1> to vector<12x3136xi1>
    %16 = arith.select %15, %3, %13 : vector<12x3136xi1>, vector<12x3136xbf16>
    %c2_i32 = arith.constant 2 : i32
    %17 = tpu.dynamic_rotate %2 by %c2_i32 dim 1 : vector<12x3136xbf16>, i32 -> vector<12x3136xbf16>
    %c-2_i32 = arith.constant -2 : i32
    %18 = vector.broadcast %c-2_i32 : i32 to vector<1x3136xi32>
    %19 = arith.addi %0, %18 : vector<1x3136xi32>
    %c0_i32_5 = arith.constant 0 : i32
    %20 = vector.broadcast %c0_i32_5 : i32 to vector<1x3136xi32>
    %21 = arith.cmpi sge, %19, %20 : vector<1x3136xi32>
    %c-2_i32_6 = arith.constant -2 : i32
    %22 = vector.broadcast %c-2_i32_6 : i32 to vector<1x3136xi32>
    %23 = arith.addi %0, %22 : vector<1x3136xi32>
    %c56_i32_7 = arith.constant 56 : i32
    %24 = vector.broadcast %c56_i32_7 : i32 to vector<1x3136xi32>
    %25 = arith.cmpi slt, %23, %24 : vector<1x3136xi32>
    %26 = arith.andi %21, %25 : vector<1x3136xi1>
    %cst_8 = arith.constant 0.000000e+00 : bf16
    %27 = vector.broadcast %cst_8 : bf16 to vector<12x3136xbf16>
    %28 = vector.shape_cast %26 : vector<1x3136xi1> to vector<1x3136xi1>
    %29 = vector.broadcast %28 : vector<1x3136xi1> to vector<12x3136xi1>
    %30 = arith.select %29, %17, %27 : vector<12x3136xi1>, vector<12x3136xbf16>
    %c1_i32 = arith.constant 1 : i32
    %31 = tpu.dynamic_rotate %2 by %c1_i32 dim 1 : vector<12x3136xbf16>, i32 -> vector<12x3136xbf16>
    %c-1_i32 = arith.constant -1 : i32
    %32 = vector.broadcast %c-1_i32 : i32 to vector<1x3136xi32>
    %33 = arith.addi %0, %32 : vector<1x3136xi32>
    %c0_i32_9 = arith.constant 0 : i32
    %34 = vector.broadcast %c0_i32_9 : i32 to vector<1x3136xi32>
    %35 = arith.cmpi sge, %33, %34 : vector<1x3136xi32>
    %c-1_i32_10 = arith.constant -1 : i32
    %36 = vector.broadcast %c-1_i32_10 : i32 to vector<1x3136xi32>
    %37 = arith.addi %0, %36 : vector<1x3136xi32>
    %c56_i32_11 = arith.constant 56 : i32
    %38 = vector.broadcast %c56_i32_11 : i32 to vector<1x3136xi32>
    %39 = arith.cmpi slt, %37, %38 : vector<1x3136xi32>
    %40 = arith.andi %35, %39 : vector<1x3136xi1>
    %cst_12 = arith.constant 0.000000e+00 : bf16
    %41 = vector.broadcast %cst_12 : bf16 to vector<12x3136xbf16>
    %42 = vector.shape_cast %40 : vector<1x3136xi1> to vector<1x3136xi1>
    %43 = vector.broadcast %42 : vector<1x3136xi1> to vector<12x3136xi1>
    %44 = arith.select %43, %31, %41 : vector<12x3136xi1>, vector<12x3136xbf16>
    %c3135_i32 = arith.constant 3135 : i32
    %45 = tpu.dynamic_rotate %2 by %c3135_i32 dim 1 : vector<12x3136xbf16>, i32 -> vector<12x3136xbf16>
    %c1_i32_13 = arith.constant 1 : i32
    %46 = vector.broadcast %c1_i32_13 : i32 to vector<1x3136xi32>
    %47 = arith.addi %0, %46 : vector<1x3136xi32>
    %c0_i32_14 = arith.constant 0 : i32
    %48 = vector.broadcast %c0_i32_14 : i32 to vector<1x3136xi32>
    %49 = arith.cmpi sge, %47, %48 : vector<1x3136xi32>
    %c1_i32_15 = arith.constant 1 : i32
    %50 = vector.broadcast %c1_i32_15 : i32 to vector<1x3136xi32>
    %51 = arith.addi %0, %50 : vector<1x3136xi32>
    %c56_i32_16 = arith.constant 56 : i32
    %52 = vector.broadcast %c56_i32_16 : i32 to vector<1x3136xi32>
    %53 = arith.cmpi slt, %51, %52 : vector<1x3136xi32>
    %54 = arith.andi %49, %53 : vector<1x3136xi1>
    %cst_17 = arith.constant 0.000000e+00 : bf16
    %55 = vector.broadcast %cst_17 : bf16 to vector<12x3136xbf16>
    %56 = vector.shape_cast %54 : vector<1x3136xi1> to vector<1x3136xi1>
    %57 = vector.broadcast %56 : vector<1x3136xi1> to vector<12x3136xi1>
    %58 = arith.select %57, %45, %55 : vector<12x3136xi1>, vector<12x3136xbf16>
    %c3134_i32 = arith.constant 3134 : i32
    %59 = tpu.dynamic_rotate %2 by %c3134_i32 dim 1 : vector<12x3136xbf16>, i32 -> vector<12x3136xbf16>
    %c2_i32_18 = arith.constant 2 : i32
    %60 = vector.broadcast %c2_i32_18 : i32 to vector<1x3136xi32>
    %61 = arith.addi %0, %60 : vector<1x3136xi32>
    %c0_i32_19 = arith.constant 0 : i32
    %62 = vector.broadcast %c0_i32_19 : i32 to vector<1x3136xi32>
    %63 = arith.cmpi sge, %61, %62 : vector<1x3136xi32>
    %c2_i32_20 = arith.constant 2 : i32
    %64 = vector.broadcast %c2_i32_20 : i32 to vector<1x3136xi32>
    %65 = arith.addi %0, %64 : vector<1x3136xi32>
    %c56_i32_21 = arith.constant 56 : i32
    %66 = vector.broadcast %c56_i32_21 : i32 to vector<1x3136xi32>
    %67 = arith.cmpi slt, %65, %66 : vector<1x3136xi32>
    %68 = arith.andi %63, %67 : vector<1x3136xi1>
    %cst_22 = arith.constant 0.000000e+00 : bf16
    %69 = vector.broadcast %cst_22 : bf16 to vector<12x3136xbf16>
    %70 = vector.shape_cast %68 : vector<1x3136xi1> to vector<1x3136xi1>
    %71 = vector.broadcast %70 : vector<1x3136xi1> to vector<12x3136xi1>
    %72 = arith.select %71, %59, %69 : vector<12x3136xi1>, vector<12x3136xbf16>
    %c3133_i32 = arith.constant 3133 : i32
    %73 = tpu.dynamic_rotate %2 by %c3133_i32 dim 1 : vector<12x3136xbf16>, i32 -> vector<12x3136xbf16>
    %c3_i32_23 = arith.constant 3 : i32
    %74 = vector.broadcast %c3_i32_23 : i32 to vector<1x3136xi32>
    %75 = arith.addi %0, %74 : vector<1x3136xi32>
    %c0_i32_24 = arith.constant 0 : i32
    %76 = vector.broadcast %c0_i32_24 : i32 to vector<1x3136xi32>
    %77 = arith.cmpi sge, %75, %76 : vector<1x3136xi32>
    %c3_i32_25 = arith.constant 3 : i32
    %78 = vector.broadcast %c3_i32_25 : i32 to vector<1x3136xi32>
    %79 = arith.addi %0, %78 : vector<1x3136xi32>
    %c56_i32_26 = arith.constant 56 : i32
    %80 = vector.broadcast %c56_i32_26 : i32 to vector<1x3136xi32>
    %81 = arith.cmpi slt, %79, %80 : vector<1x3136xi32>
    %82 = arith.andi %77, %81 : vector<1x3136xi1>
    %cst_27 = arith.constant 0.000000e+00 : bf16
    %83 = vector.broadcast %cst_27 : bf16 to vector<12x3136xbf16>
    %84 = vector.shape_cast %82 : vector<1x3136xi1> to vector<1x3136xi1>
    %85 = vector.broadcast %84 : vector<1x3136xi1> to vector<12x3136xi1>
    %86 = arith.select %85, %73, %83 : vector<12x3136xi1>, vector<12x3136xbf16>
    %87 = tpu.concatenate %16, %30, %44, %2, %58, %72, %86 in 0 : vector<12x3136xbf16>, vector<12x3136xbf16>, vector<12x3136xbf16>, vector<12x3136xbf16>, vector<12x3136xbf16>, vector<12x3136xbf16>, vector<12x3136xbf16> -> vector<84x3136xbf16>
    %c0_28 = arith.constant 0 : index
    %c0_29 = arith.constant 0 : index
    %88 = vector.load %arg3[%c0_28, %c0_29] : memref<21x84xbf16, #tpu.memory_space<vmem>>, vector<21x84xbf16>
    %cst_30 = arith.constant dense<0.000000e+00> : vector<21x3136xf32>
    %89 = tpu.matmul %88, %87, %cst_30 {dimension_numbers = #tpu.dot_dimension_numbers<[1], [0], [0], [1], [0, 0, 1, 1], [], []>} : vector<21x84xbf16>, vector<84x3136xbf16>, vector<21x3136xf32> -> vector<21x3136xf32>
    %c56_i32_31 = arith.constant 56 : i32
    %90 = tpu.dynamic_rotate %89 by %c56_i32_31 dim 1 : vector<21x3136xf32>, i32 -> vector<21x3136xf32>
    %c-56_i32 = arith.constant -56 : i32
    %91 = vector.broadcast %c-56_i32 : i32 to vector<1x3136xi32>
    %92 = arith.addi %1, %91 : vector<1x3136xi32>
    %c0_i32_32 = arith.constant 0 : i32
    %93 = vector.broadcast %c0_i32_32 : i32 to vector<1x3136xi32>
    %94 = arith.cmpi sge, %92, %93 : vector<1x3136xi32>
    %c-56_i32_33 = arith.constant -56 : i32
    %95 = vector.broadcast %c-56_i32_33 : i32 to vector<1x3136xi32>
    %96 = arith.addi %1, %95 : vector<1x3136xi32>
    %c3136_i32 = arith.constant 3136 : i32
    %97 = vector.broadcast %c3136_i32 : i32 to vector<1x3136xi32>
    %98 = arith.cmpi slt, %96, %97 : vector<1x3136xi32>
    %99 = arith.andi %94, %98 : vector<1x3136xi1>
    %cst_34 = arith.constant 0.000000e+00 : f32
    %100 = vector.broadcast %cst_34 : f32 to vector<21x3136xf32>
    %101 = vector.shape_cast %99 : vector<1x3136xi1> to vector<1x3136xi1>
    %102 = vector.broadcast %101 : vector<1x3136xi1> to vector<21x3136xi1>
    %103 = arith.select %102, %90, %100 : vector<21x3136xi1>, vector<21x3136xf32>
    %c3080_i32 = arith.constant 3080 : i32
    %104 = tpu.dynamic_rotate %89 by %c3080_i32 dim 1 : vector<21x3136xf32>, i32 -> vector<21x3136xf32>
    %c56_i32_35 = arith.constant 56 : i32
    %105 = vector.broadcast %c56_i32_35 : i32 to vector<1x3136xi32>
    %106 = arith.addi %1, %105 : vector<1x3136xi32>
    %c0_i32_36 = arith.constant 0 : i32
    %107 = vector.broadcast %c0_i32_36 : i32 to vector<1x3136xi32>
    %108 = arith.cmpi sge, %106, %107 : vector<1x3136xi32>
    %c56_i32_37 = arith.constant 56 : i32
    %109 = vector.broadcast %c56_i32_37 : i32 to vector<1x3136xi32>
    %110 = arith.addi %1, %109 : vector<1x3136xi32>
    %c3136_i32_38 = arith.constant 3136 : i32
    %111 = vector.broadcast %c3136_i32_38 : i32 to vector<1x3136xi32>
    %112 = arith.cmpi slt, %110, %111 : vector<1x3136xi32>
    %113 = arith.andi %108, %112 : vector<1x3136xi1>
    %cst_39 = arith.constant 0.000000e+00 : f32
    %114 = vector.broadcast %cst_39 : f32 to vector<21x3136xf32>
    %115 = vector.shape_cast %113 : vector<1x3136xi1> to vector<1x3136xi1>
    %116 = vector.broadcast %115 : vector<1x3136xi1> to vector<21x3136xi1>
    %117 = arith.select %116, %104, %114 : vector<21x3136xi1>, vector<21x3136xf32>
    %118 = tpu.concatenate %103, %89, %117 in 0 : vector<21x3136xf32>, vector<21x3136xf32>, vector<21x3136xf32> -> vector<63x3136xf32>
    %119 = arith.truncf %118 : vector<63x3136xf32> to vector<63x3136xbf16>
    %c0_40 = arith.constant 0 : index
    %c0_41 = arith.constant 0 : index
    %120 = vector.load %arg4[%c0_40, %c0_41] : memref<48x63xbf16, #tpu.memory_space<vmem>>, vector<48x63xbf16>
    %cst_42 = arith.constant dense<0.000000e+00> : vector<48x3136xf32>
    %121 = tpu.matmul %120, %119, %cst_42 {dimension_numbers = #tpu.dot_dimension_numbers<[1], [0], [0], [1], [0, 0, 1, 1], [], []>} : vector<48x63xbf16>, vector<63x3136xbf16>, vector<48x3136xf32> -> vector<48x3136xf32>
    %c0_43 = arith.constant 0 : index
    %c0_44 = arith.constant 0 : index
    %122 = vector.load %arg5[%c0_43, %c0_44] : memref<48x3136xf32, #tpu.memory_space<vmem>>, vector<48x3136xf32>
    tpu.vector_store %arg5[%c0_43, %c0_44], %121 {strides = array<i32>} : memref<48x3136xf32, #tpu.memory_space<vmem>>, vector<48x3136xf32>,
    return
  }
  func.func @transform_0(%arg0: i32) -> (i32, i32) {
    %c0_i32 = arith.constant 0 : i32
    %c0_i32_0 = arith.constant 0 : i32
    %c0_i32_1 = arith.constant 0 : i32
    return %c0_i32, %c0_i32_0 : i32, i32
  }
  func.func @transform_1(%arg0: i32) -> (i32, i32) {
    %c0_i32 = arith.constant 0 : i32
    %c0_i32_0 = arith.constant 0 : i32
    %c0_i32_1 = arith.constant 0 : i32
    return %c0_i32, %c0_i32_0 : i32, i32
  }
  func.func @transform_2(%arg0: i32) -> (i32, i32) {
    %c0_i32 = arith.constant 0 : i32
    %c0_i32_0 = arith.constant 0 : i32
    %c0_i32_1 = arith.constant 0 : i32
    return %c0_i32, %c0_i32_0 : i32, i32
  }
  func.func @transform_3(%arg0: i32) -> (i32, i32) {
    %c0_i32 = arith.constant 0 : i32
    %c0_i32_0 = arith.constant 0 : i32
    return %arg0, %c0_i32 : i32, i32
  }
  func.func @transform_4(%arg0: i32) -> (i32, i32) {
    %c0_i32 = arith.constant 0 : i32
    %c0_i32_0 = arith.constant 0 : i32
    return %arg0, %c0_i32 : i32, i32
  }
}

module attributes {stable_mosaic.version = 11 : i64} {
  func.func @_kernel_safe(%arg0: i32, %arg1: memref<2x3136xi32, #tpu.memory_space<vmem>>, %arg2: memref<12x3136xbf16, #tpu.memory_space<vmem>>, %arg3: memref<21x84xbf16, #tpu.memory_space<vmem>>, %arg4: memref<48x63xbf16, #tpu.memory_space<vmem>>, %arg5: memref<48x3136xf32, #tpu.memory_space<vmem>>) attributes {dimension_semantics = [#tpu.dimension_semantics<parallel>], iteration_bounds = array<i64: 2>, scalar_prefetch = 0 : i64, scratch_operands = 0 : i64, tpu.core_type = #tpu.core_type<tc>, window_params = [{pipeline_mode = #tpu.pipeline_mode<synchronous>, transform_indices = @transform_0, window_bounds = array<i64: 2, 3136>}, {pipeline_mode = #tpu.pipeline_mode<synchronous>, transform_indices = @transform_1, window_bounds = array<i64: 12, 3136>}, {pipeline_mode = #tpu.pipeline_mode<synchronous>, transform_indices = @transform_2, window_bounds = array<i64: 21, 84>}, {transform_indices = @transform_3, window_bounds = array<i64: 48, 63>}, {transform_indices = @transform_4, window_bounds = array<i64: 48, 3136>}]} {
    %c0 = arith.constant 0 : index
    %c0_0 = arith.constant 0 : index
    %0 = vector.load %arg1[%c0, %c0_0] : memref<2x3136xi32, #tpu.memory_space<vmem>>, vector<1x3136xi32>
    %c0_1 = arith.constant 0 : index
    %c0_2 = arith.constant 0 : index
    %1 = vector.load %arg2[%c0_1, %c0_2] : memref<12x3136xbf16, #tpu.memory_space<vmem>>, vector<12x3136xbf16>
    %2 = arith.extf %1 : vector<12x3136xbf16> to vector<12x3136xf32>
    %cst = arith.constant 0.000000e+00 : f32
    %3 = vector.broadcast %cst : f32 to vector<12x3xf32>
    %4 = tpu.concatenate %3, %2, %3 in 1 : vector<12x3xf32>, vector<12x3136xf32>, vector<12x3xf32> -> vector<12x3142xf32>
    %cst_3 = arith.constant 0.000000e+00 : f32
    %5 = vector.broadcast %cst_3 : f32 to vector<21x3136xf32>
    %6 = vector.extract_strided_slice %4 {offsets = [0, 0], sizes = [12, 3136], strides = [1, 1]} : vector<12x3142xf32> to vector<12x3136xf32>
    %c-3_i32 = arith.constant -3 : i32
    %7 = vector.broadcast %c-3_i32 : i32 to vector<1x3136xi32>
    %8 = arith.addi %0, %7 : vector<1x3136xi32>
    %c0_i32 = arith.constant 0 : i32
    %9 = vector.broadcast %c0_i32 : i32 to vector<1x3136xi32>
    %10 = arith.cmpi sge, %8, %9 : vector<1x3136xi32>
    %c-3_i32_4 = arith.constant -3 : i32
    %11 = vector.broadcast %c-3_i32_4 : i32 to vector<1x3136xi32>
    %12 = arith.addi %0, %11 : vector<1x3136xi32>
    %c56_i32 = arith.constant 56 : i32
    %13 = vector.broadcast %c56_i32 : i32 to vector<1x3136xi32>
    %14 = arith.cmpi slt, %12, %13 : vector<1x3136xi32>
    %15 = arith.andi %10, %14 : vector<1x3136xi1>
    %cst_5 = arith.constant 0.000000e+00 : f32
    %16 = vector.broadcast %cst_5 : f32 to vector<12x3136xf32>
    %17 = vector.shape_cast %15 : vector<1x3136xi1> to vector<1x3136xi1>
    %18 = vector.broadcast %17 : vector<1x3136xi1> to vector<12x3136xi1>
    %19 = arith.select %18, %6, %16 : vector<12x3136xi1>, vector<12x3136xf32>
    %c0_6 = arith.constant 0 : index
    %c0_7 = arith.constant 0 : index
    %20 = vector.load %arg3[%c0_6, %c0_7] : memref<21x84xbf16, #tpu.memory_space<vmem>>, vector<21x12xbf16>
    %21 = arith.extf %20 : vector<21x12xbf16> to vector<21x12xf32>
    %cst_8 = arith.constant dense<0.000000e+00> : vector<21x3136xf32>
    %22 = tpu.matmul %21, %19, %cst_8 {dimension_numbers = #tpu.dot_dimension_numbers<[1], [0], [0], [1], [0, 0, 1, 1], [], []>} : vector<21x12xf32>, vector<12x3136xf32>, vector<21x3136xf32> -> vector<21x3136xf32>
    %23 = arith.addf %5, %22 : vector<21x3136xf32>
    %24 = vector.extract_strided_slice %4 {offsets = [0, 1], sizes = [12, 3136], strides = [1, 1]} : vector<12x3142xf32> to vector<12x3136xf32>
    %c-2_i32 = arith.constant -2 : i32
    %25 = vector.broadcast %c-2_i32 : i32 to vector<1x3136xi32>
    %26 = arith.addi %0, %25 : vector<1x3136xi32>
    %c0_i32_9 = arith.constant 0 : i32
    %27 = vector.broadcast %c0_i32_9 : i32 to vector<1x3136xi32>
    %28 = arith.cmpi sge, %26, %27 : vector<1x3136xi32>
    %c-2_i32_10 = arith.constant -2 : i32
    %29 = vector.broadcast %c-2_i32_10 : i32 to vector<1x3136xi32>
    %30 = arith.addi %0, %29 : vector<1x3136xi32>
    %c56_i32_11 = arith.constant 56 : i32
    %31 = vector.broadcast %c56_i32_11 : i32 to vector<1x3136xi32>
    %32 = arith.cmpi slt, %30, %31 : vector<1x3136xi32>
    %33 = arith.andi %28, %32 : vector<1x3136xi1>
    %cst_12 = arith.constant 0.000000e+00 : f32
    %34 = vector.broadcast %cst_12 : f32 to vector<12x3136xf32>
    %35 = vector.shape_cast %33 : vector<1x3136xi1> to vector<1x3136xi1>
    %36 = vector.broadcast %35 : vector<1x3136xi1> to vector<12x3136xi1>
    %37 = arith.select %36, %24, %34 : vector<12x3136xi1>, vector<12x3136xf32>
    %c0_13 = arith.constant 0 : index
    %c12 = arith.constant 12 : index
    %38 = vector.load %arg3[%c0_13, %c12] : memref<21x84xbf16, #tpu.memory_space<vmem>>, vector<21x12xbf16>
    %39 = arith.extf %38 : vector<21x12xbf16> to vector<21x12xf32>
    %cst_14 = arith.constant dense<0.000000e+00> : vector<21x3136xf32>
    %40 = tpu.matmul %39, %37, %cst_14 {dimension_numbers = #tpu.dot_dimension_numbers<[1], [0], [0], [1], [0, 0, 1, 1], [], []>} : vector<21x12xf32>, vector<12x3136xf32>, vector<21x3136xf32> -> vector<21x3136xf32>
    %41 = arith.addf %23, %40 : vector<21x3136xf32>
    %42 = vector.extract_strided_slice %4 {offsets = [0, 2], sizes = [12, 3136], strides = [1, 1]} : vector<12x3142xf32> to vector<12x3136xf32>
    %c-1_i32 = arith.constant -1 : i32
    %43 = vector.broadcast %c-1_i32 : i32 to vector<1x3136xi32>
    %44 = arith.addi %0, %43 : vector<1x3136xi32>
    %c0_i32_15 = arith.constant 0 : i32
    %45 = vector.broadcast %c0_i32_15 : i32 to vector<1x3136xi32>
    %46 = arith.cmpi sge, %44, %45 : vector<1x3136xi32>
    %c-1_i32_16 = arith.constant -1 : i32
    %47 = vector.broadcast %c-1_i32_16 : i32 to vector<1x3136xi32>
    %48 = arith.addi %0, %47 : vector<1x3136xi32>
    %c56_i32_17 = arith.constant 56 : i32
    %49 = vector.broadcast %c56_i32_17 : i32 to vector<1x3136xi32>
    %50 = arith.cmpi slt, %48, %49 : vector<1x3136xi32>
    %51 = arith.andi %46, %50 : vector<1x3136xi1>
    %cst_18 = arith.constant 0.000000e+00 : f32
    %52 = vector.broadcast %cst_18 : f32 to vector<12x3136xf32>
    %53 = vector.shape_cast %51 : vector<1x3136xi1> to vector<1x3136xi1>
    %54 = vector.broadcast %53 : vector<1x3136xi1> to vector<12x3136xi1>
    %55 = arith.select %54, %42, %52 : vector<12x3136xi1>, vector<12x3136xf32>
    %c0_19 = arith.constant 0 : index
    %c24 = arith.constant 24 : index
    %56 = vector.load %arg3[%c0_19, %c24] : memref<21x84xbf16, #tpu.memory_space<vmem>>, vector<21x12xbf16>
    %57 = arith.extf %56 : vector<21x12xbf16> to vector<21x12xf32>
    %cst_20 = arith.constant dense<0.000000e+00> : vector<21x3136xf32>
    %58 = tpu.matmul %57, %55, %cst_20 {dimension_numbers = #tpu.dot_dimension_numbers<[1], [0], [0], [1], [0, 0, 1, 1], [], []>} : vector<21x12xf32>, vector<12x3136xf32>, vector<21x3136xf32> -> vector<21x3136xf32>
    %59 = arith.addf %41, %58 : vector<21x3136xf32>
    %60 = vector.extract_strided_slice %4 {offsets = [0, 3], sizes = [12, 3136], strides = [1, 1]} : vector<12x3142xf32> to vector<12x3136xf32>
    %c0_i32_21 = arith.constant 0 : i32
    %61 = vector.broadcast %c0_i32_21 : i32 to vector<1x3136xi32>
    %62 = arith.addi %0, %61 : vector<1x3136xi32>
    %c0_i32_22 = arith.constant 0 : i32
    %63 = vector.broadcast %c0_i32_22 : i32 to vector<1x3136xi32>
    %64 = arith.cmpi sge, %62, %63 : vector<1x3136xi32>
    %c0_i32_23 = arith.constant 0 : i32
    %65 = vector.broadcast %c0_i32_23 : i32 to vector<1x3136xi32>
    %66 = arith.addi %0, %65 : vector<1x3136xi32>
    %c56_i32_24 = arith.constant 56 : i32
    %67 = vector.broadcast %c56_i32_24 : i32 to vector<1x3136xi32>
    %68 = arith.cmpi slt, %66, %67 : vector<1x3136xi32>
    %69 = arith.andi %64, %68 : vector<1x3136xi1>
    %cst_25 = arith.constant 0.000000e+00 : f32
    %70 = vector.broadcast %cst_25 : f32 to vector<12x3136xf32>
    %71 = vector.shape_cast %69 : vector<1x3136xi1> to vector<1x3136xi1>
    %72 = vector.broadcast %71 : vector<1x3136xi1> to vector<12x3136xi1>
    %73 = arith.select %72, %60, %70 : vector<12x3136xi1>, vector<12x3136xf32>
    %c0_26 = arith.constant 0 : index
    %c36 = arith.constant 36 : index
    %74 = vector.load %arg3[%c0_26, %c36] : memref<21x84xbf16, #tpu.memory_space<vmem>>, vector<21x12xbf16>
    %75 = arith.extf %74 : vector<21x12xbf16> to vector<21x12xf32>
    %cst_27 = arith.constant dense<0.000000e+00> : vector<21x3136xf32>
    %76 = tpu.matmul %75, %73, %cst_27 {dimension_numbers = #tpu.dot_dimension_numbers<[1], [0], [0], [1], [0, 0, 1, 1], [], []>} : vector<21x12xf32>, vector<12x3136xf32>, vector<21x3136xf32> -> vector<21x3136xf32>
    %77 = arith.addf %59, %76 : vector<21x3136xf32>
    %78 = vector.extract_strided_slice %4 {offsets = [0, 4], sizes = [12, 3136], strides = [1, 1]} : vector<12x3142xf32> to vector<12x3136xf32>
    %c1_i32 = arith.constant 1 : i32
    %79 = vector.broadcast %c1_i32 : i32 to vector<1x3136xi32>
    %80 = arith.addi %0, %79 : vector<1x3136xi32>
    %c0_i32_28 = arith.constant 0 : i32
    %81 = vector.broadcast %c0_i32_28 : i32 to vector<1x3136xi32>
    %82 = arith.cmpi sge, %80, %81 : vector<1x3136xi32>
    %c1_i32_29 = arith.constant 1 : i32
    %83 = vector.broadcast %c1_i32_29 : i32 to vector<1x3136xi32>
    %84 = arith.addi %0, %83 : vector<1x3136xi32>
    %c56_i32_30 = arith.constant 56 : i32
    %85 = vector.broadcast %c56_i32_30 : i32 to vector<1x3136xi32>
    %86 = arith.cmpi slt, %84, %85 : vector<1x3136xi32>
    %87 = arith.andi %82, %86 : vector<1x3136xi1>
    %cst_31 = arith.constant 0.000000e+00 : f32
    %88 = vector.broadcast %cst_31 : f32 to vector<12x3136xf32>
    %89 = vector.shape_cast %87 : vector<1x3136xi1> to vector<1x3136xi1>
    %90 = vector.broadcast %89 : vector<1x3136xi1> to vector<12x3136xi1>
    %91 = arith.select %90, %78, %88 : vector<12x3136xi1>, vector<12x3136xf32>
    %c0_32 = arith.constant 0 : index
    %c48 = arith.constant 48 : index
    %92 = vector.load %arg3[%c0_32, %c48] : memref<21x84xbf16, #tpu.memory_space<vmem>>, vector<21x12xbf16>
    %93 = arith.extf %92 : vector<21x12xbf16> to vector<21x12xf32>
    %cst_33 = arith.constant dense<0.000000e+00> : vector<21x3136xf32>
    %94 = tpu.matmul %93, %91, %cst_33 {dimension_numbers = #tpu.dot_dimension_numbers<[1], [0], [0], [1], [0, 0, 1, 1], [], []>} : vector<21x12xf32>, vector<12x3136xf32>, vector<21x3136xf32> -> vector<21x3136xf32>
    %95 = arith.addf %77, %94 : vector<21x3136xf32>
    %96 = vector.extract_strided_slice %4 {offsets = [0, 5], sizes = [12, 3136], strides = [1, 1]} : vector<12x3142xf32> to vector<12x3136xf32>
    %c2_i32 = arith.constant 2 : i32
    %97 = vector.broadcast %c2_i32 : i32 to vector<1x3136xi32>
    %98 = arith.addi %0, %97 : vector<1x3136xi32>
    %c0_i32_34 = arith.constant 0 : i32
    %99 = vector.broadcast %c0_i32_34 : i32 to vector<1x3136xi32>
    %100 = arith.cmpi sge, %98, %99 : vector<1x3136xi32>
    %c2_i32_35 = arith.constant 2 : i32
    %101 = vector.broadcast %c2_i32_35 : i32 to vector<1x3136xi32>
    %102 = arith.addi %0, %101 : vector<1x3136xi32>
    %c56_i32_36 = arith.constant 56 : i32
    %103 = vector.broadcast %c56_i32_36 : i32 to vector<1x3136xi32>
    %104 = arith.cmpi slt, %102, %103 : vector<1x3136xi32>
    %105 = arith.andi %100, %104 : vector<1x3136xi1>
    %cst_37 = arith.constant 0.000000e+00 : f32
    %106 = vector.broadcast %cst_37 : f32 to vector<12x3136xf32>
    %107 = vector.shape_cast %105 : vector<1x3136xi1> to vector<1x3136xi1>
    %108 = vector.broadcast %107 : vector<1x3136xi1> to vector<12x3136xi1>
    %109 = arith.select %108, %96, %106 : vector<12x3136xi1>, vector<12x3136xf32>
    %c0_38 = arith.constant 0 : index
    %c60 = arith.constant 60 : index
    %110 = vector.load %arg3[%c0_38, %c60] : memref<21x84xbf16, #tpu.memory_space<vmem>>, vector<21x12xbf16>
    %111 = arith.extf %110 : vector<21x12xbf16> to vector<21x12xf32>
    %cst_39 = arith.constant dense<0.000000e+00> : vector<21x3136xf32>
    %112 = tpu.matmul %111, %109, %cst_39 {dimension_numbers = #tpu.dot_dimension_numbers<[1], [0], [0], [1], [0, 0, 1, 1], [], []>} : vector<21x12xf32>, vector<12x3136xf32>, vector<21x3136xf32> -> vector<21x3136xf32>
    %113 = arith.addf %95, %112 : vector<21x3136xf32>
    %114 = vector.extract_strided_slice %4 {offsets = [0, 6], sizes = [12, 3136], strides = [1, 1]} : vector<12x3142xf32> to vector<12x3136xf32>
    %c3_i32 = arith.constant 3 : i32
    %115 = vector.broadcast %c3_i32 : i32 to vector<1x3136xi32>
    %116 = arith.addi %0, %115 : vector<1x3136xi32>
    %c0_i32_40 = arith.constant 0 : i32
    %117 = vector.broadcast %c0_i32_40 : i32 to vector<1x3136xi32>
    %118 = arith.cmpi sge, %116, %117 : vector<1x3136xi32>
    %c3_i32_41 = arith.constant 3 : i32
    %119 = vector.broadcast %c3_i32_41 : i32 to vector<1x3136xi32>
    %120 = arith.addi %0, %119 : vector<1x3136xi32>
    %c56_i32_42 = arith.constant 56 : i32
    %121 = vector.broadcast %c56_i32_42 : i32 to vector<1x3136xi32>
    %122 = arith.cmpi slt, %120, %121 : vector<1x3136xi32>
    %123 = arith.andi %118, %122 : vector<1x3136xi1>
    %cst_43 = arith.constant 0.000000e+00 : f32
    %124 = vector.broadcast %cst_43 : f32 to vector<12x3136xf32>
    %125 = vector.shape_cast %123 : vector<1x3136xi1> to vector<1x3136xi1>
    %126 = vector.broadcast %125 : vector<1x3136xi1> to vector<12x3136xi1>
    %127 = arith.select %126, %114, %124 : vector<12x3136xi1>, vector<12x3136xf32>
    %c0_44 = arith.constant 0 : index
    %c72 = arith.constant 72 : index
    %128 = vector.load %arg3[%c0_44, %c72] : memref<21x84xbf16, #tpu.memory_space<vmem>>, vector<21x12xbf16>
    %129 = arith.extf %128 : vector<21x12xbf16> to vector<21x12xf32>
    %cst_45 = arith.constant dense<0.000000e+00> : vector<21x3136xf32>
    %130 = tpu.matmul %129, %127, %cst_45 {dimension_numbers = #tpu.dot_dimension_numbers<[1], [0], [0], [1], [0, 0, 1, 1], [], []>} : vector<21x12xf32>, vector<12x3136xf32>, vector<21x3136xf32> -> vector<21x3136xf32>
    %131 = arith.addf %113, %130 : vector<21x3136xf32>
    %cst_46 = arith.constant 0.000000e+00 : f32
    %132 = vector.broadcast %cst_46 : f32 to vector<21x56xf32>
    %133 = tpu.concatenate %132, %131, %132 in 1 : vector<21x56xf32>, vector<21x3136xf32>, vector<21x56xf32> -> vector<21x3248xf32>
    %cst_47 = arith.constant 0.000000e+00 : f32
    %134 = vector.broadcast %cst_47 : f32 to vector<48x3136xf32>
    %135 = vector.extract_strided_slice %133 {offsets = [0, 0], sizes = [21, 3136], strides = [1, 1]} : vector<21x3248xf32> to vector<21x3136xf32>
    %c0_48 = arith.constant 0 : index
    %c0_49 = arith.constant 0 : index
    %136 = vector.load %arg4[%c0_48, %c0_49] : memref<48x63xbf16, #tpu.memory_space<vmem>>, vector<48x21xbf16>
    %137 = arith.extf %136 : vector<48x21xbf16> to vector<48x21xf32>
    %cst_50 = arith.constant dense<0.000000e+00> : vector<48x3136xf32>
    %138 = tpu.matmul %137, %135, %cst_50 {dimension_numbers = #tpu.dot_dimension_numbers<[1], [0], [0], [1], [0, 0, 1, 1], [], []>} : vector<48x21xf32>, vector<21x3136xf32>, vector<48x3136xf32> -> vector<48x3136xf32>
    %139 = arith.addf %134, %138 : vector<48x3136xf32>
    %140 = vector.extract_strided_slice %133 {offsets = [0, 56], sizes = [21, 3136], strides = [1, 1]} : vector<21x3248xf32> to vector<21x3136xf32>
    %c0_51 = arith.constant 0 : index
    %c21 = arith.constant 21 : index
    %141 = vector.load %arg4[%c0_51, %c21] : memref<48x63xbf16, #tpu.memory_space<vmem>>, vector<48x21xbf16>
    %142 = arith.extf %141 : vector<48x21xbf16> to vector<48x21xf32>
    %cst_52 = arith.constant dense<0.000000e+00> : vector<48x3136xf32>
    %143 = tpu.matmul %142, %140, %cst_52 {dimension_numbers = #tpu.dot_dimension_numbers<[1], [0], [0], [1], [0, 0, 1, 1], [], []>} : vector<48x21xf32>, vector<21x3136xf32>, vector<48x3136xf32> -> vector<48x3136xf32>
    %144 = arith.addf %139, %143 : vector<48x3136xf32>
    %145 = vector.extract_strided_slice %133 {offsets = [0, 112], sizes = [21, 3136], strides = [1, 1]} : vector<21x3248xf32> to vector<21x3136xf32>
    %c0_53 = arith.constant 0 : index
    %c42 = arith.constant 42 : index
    %146 = vector.load %arg4[%c0_53, %c42] : memref<48x63xbf16, #tpu.memory_space<vmem>>, vector<48x21xbf16>
    %147 = arith.extf %146 : vector<48x21xbf16> to vector<48x21xf32>
    %cst_54 = arith.constant dense<0.000000e+00> : vector<48x3136xf32>
    %148 = tpu.matmul %147, %145, %cst_54 {dimension_numbers = #tpu.dot_dimension_numbers<[1], [0], [0], [1], [0, 0, 1, 1], [], []>} : vector<48x21xf32>, vector<21x3136xf32>, vector<48x3136xf32> -> vector<48x3136xf32>
    %149 = arith.addf %144, %148 : vector<48x3136xf32>
    %c0_55 = arith.constant 0 : index
    %c0_56 = arith.constant 0 : index
    %150 = vector.load %arg5[%c0_55, %c0_56] : memref<48x3136xf32, #tpu.memory_space<vmem>>, vector<48x3136xf32>
    tpu.vector_store %arg5[%c0_55, %c0_56], %149 {strides = array<i32>} : memref<48x3136xf32, #tpu.memory_space<vmem>>, vector<48x3136xf32>,
    return
  }
  func.func @transform_0(%arg0: i32) -> (i32, i32) {
    %c0_i32 = arith.constant 0 : i32
    %c0_i32_0 = arith.constant 0 : i32
    %c0_i32_1 = arith.constant 0 : i32
    return %c0_i32, %c0_i32_0 : i32, i32
  }
  func.func @transform_1(%arg0: i32) -> (i32, i32) {
    %c0_i32 = arith.constant 0 : i32
    %c0_i32_0 = arith.constant 0 : i32
    %c0_i32_1 = arith.constant 0 : i32
    return %c0_i32, %c0_i32_0 : i32, i32
  }
  func.func @transform_2(%arg0: i32) -> (i32, i32) {
    %c0_i32 = arith.constant 0 : i32
    %c0_i32_0 = arith.constant 0 : i32
    %c0_i32_1 = arith.constant 0 : i32
    return %c0_i32, %c0_i32_0 : i32, i32
  }
  func.func @transform_3(%arg0: i32) -> (i32, i32) {
    %c0_i32 = arith.constant 0 : i32
    %c0_i32_0 = arith.constant 0 : i32
    return %arg0, %c0_i32 : i32, i32
  }
  func.func @transform_4(%arg0: i32) -> (i32, i32) {
    %c0_i32 = arith.constant 0 : i32
    %c0_i32_0 = arith.constant 0 : i32
    return %arg0, %c0_i32 : i32, i32
  }
}

</mosaic_0001>

<bundles_post_ra>
// kernel: forward.1
= control target key start
LH: loop header
LB: loop body
LE: loop exit
PB: predicated region body
PF: predicated region fallthrough
CT: control target
= control target key end

     0   :  { %s21076_s15 = smov 0   ;;  %s29741_s0 = inlined_call_operand.vmem [shape: s32[2,3136], index: 0, kind: input, shape index: {}]   ;;  %s29742_s1 = inlined_call_operand.vmem [shape: bf16[12,3136], index: 1, kind: input, shape index: {}]   ;;  %s29743_s2 = inlined_call_operand.vmem [shape: bf16[21,84], index: 2, kind: input, shape index: {}]   ;;  %s29744_s3 = inlined_call_operand.vmem [shape: bf16[96,63], index: 3, kind: input, shape index: {}]   ;;  %s29745_s4 = inlined_call_operand.vmem [shape: f32[96,3136], index: 4, kind: output, shape index: {}]  }
   0x1 LB: > { %s17045_s16 = sadd.s32 4294967295, %s21028_s15   ;;  %p17049_p0 = scmp.ge.s32.totalorder %s21028_s15, 1  ;;  %s21028_s15 = sphi %s21076_s15, %s14_s15  }
   0x2   : > { %p163_p1 = scmp.lt.s32.totalorder %s21028_s15, 3 }
   0x4   : > { %p164_p2 = pnand %p17049_p0, %p163_p1 }
   0x6   : > { %167 = sbr.rel (%p164_p2) target bundleno = 2241 (0x8c1), region = 36 }
   0xd   : > { %v223_v0 = vld [vmem:[%s29742_s1 + $0x64] sm:$0x33]  ;;  %v224_v7 = vld [vmem:[%s29742_s1 + $0x6c] sm:$0x33]  ;;  %v225_v8 = vld [vmem:[%s29742_s1 + $0x74] sm:$0x33] }
   0xe   : > { %v210_v1 = vld [vmem:[%s29742_s1] sm:$0xff]  ;;  %v211_v2 = vld [vmem:[%s29742_s1 + $0x8] sm:$0xff]  ;;  %v261_v3 = vunpack.c.l.bf16 %v223_v0  ;;  %v262_v4 = vunpack.c.h.bf16 %v223_v0  ;;  %v212_v9 = vld [vmem:[%s29742_s1 + $0x10] sm:$0xff]  ;;  %v264_v11 = vunpack.c.h.bf16 %v224_v7  ;;  %v265_v12 = vunpack.c.l.bf16 %v225_v8  ;;  %s21030_s5 = smov 3   ;;  %s21031_s21 = smov 127  }
   0xf   : > { %v237_v5 = vunpack.c.h.bf16 %v210_v1  ;;  %v238_v6 = vunpack.c.l.bf16 %v211_v2  ;;  %v236_v10 = vunpack.c.l.bf16 %v210_v1  ;;  %v226_v13 = vld [vmem:[%s29742_s1 + $0x7c] sm:$0x33]  ;;  %v263_v16 = vunpack.c.l.bf16 %v224_v7  ;;  %v227_v24 = vld [vmem:[%s29742_s1 + $0x84] sm:$0x33]  ;;  %v228_v30 = vld [vmem:[%s29742_s1 + $0x8c] sm:$0x33] }
  0x10   : > { %v19700_v14 = vpack.i.bf16 %v262_v4, %v261_v3  ;;  %v239_v17 = vunpack.c.h.bf16 %v211_v2  ;;  %v240_v18 = vunpack.c.l.bf16 %v212_v9  ;;  %v19715_v19 = vpack.i.bf16 %v265_v12, %v264_v11  ;;  %v213_v23 = vld [vmem:[%s29742_s1 + $0x18] sm:$0xff]  ;;  %v214_v29 = vld [vmem:[%s29742_s1 + $0x20] sm:$0xff]  ;;  %v215_v33 = vld [vmem:[%s29742_s1 + $0x28] sm:$0xff]  ;;  %s21033_s24 = smov 116   ;;  %s21035_s11 = smov 126  }
  0x11   : > { %v19710_v15 = vpack.i.bf16 %v238_v6, %v237_v5  ;;  %v19705_v20 = vpack.i.bf16 %v236_v10, %v263_v16  ;;  %v266_v21 = vunpack.c.h.bf16 %v225_v8  ;;  %v267_v22 = vunpack.c.l.bf16 %v226_v13  ;;  %v229_v40 = vld [vmem:[%s29742_s1 + $0x94] sm:$0x33]  ;;  %v219_v45 = vld [vmem:[%s29742_s1 + $0x48] sm:$0xff]  ;;  %v230_v49 = vld [vmem:[%s29742_s1 + $0x9c] sm:$0x33]  ;;  %s21036_s12 = smov 104  }
  0x12   : > { %19701 = vrot.lane.b32.xlu0 %v19700_v14, %s21030_s5  ;;  %v19720_v25 = vpack.i.bf16 %v240_v18, %v239_v17  ;;  %v241_v26 = vunpack.c.h.bf16 %v212_v9  ;;  %v242_v28 = vunpack.c.l.bf16 %v213_v23  ;;  %v269_v31 = vunpack.c.l.bf16 %v227_v24  ;;  %v216_v44 = vld [vmem:[%s29742_s1 + $0x30] sm:$0xff]  ;;  %v217_v52 = vld [vmem:[%s29742_s1 + $0x38] sm:$0xff]  ;;  %v218_v61 = vld [vmem:[%s29742_s1 + $0x40] sm:$0xff]  ;;  %s21037_s13 = smov 125   ;;  %s21038_s14 = smov 92  }
  0x13   : > { %19711 = vrot.lane.b32.xlu1 %v19710_v15, %s21030_s5  ;;  %v19725_v27 = vpack.i.bf16 %v267_v22, %v266_v21  ;;  %v270_v32 = vunpack.c.h.bf16 %v227_v24  ;;  %v244_v34 = vunpack.c.l.bf16 %v214_v29  ;;  %v271_v35 = vunpack.c.l.bf16 %v228_v30  ;;  %v232_v50 = vld [vmem:[%s29742_s1 + $0xac] sm:$0x33]  ;;  %v231_v4 = vld [vmem:[%s29742_s1 + $0xa4] sm:$0x33]  ;;  %s21039_s17 = smov 124   ;;  %s21041_s18 = smov 80  }
  0x14   : > { %v19730_v36 = vpack.i.bf16 %v242_v28, %v241_v26  ;;  %v245_v38 = vunpack.c.h.bf16 %v214_v29  ;;  %v246_v39 = vunpack.c.l.bf16 %v215_v33  ;;  %v243_v42 = vunpack.c.h.bf16 %v213_v23  ;;  %v17996_v22 = vld [vmem:[%s29743_s2] sm:$0xff]   ;;  %v233_v28 = vld [vmem:[%s29742_s1 + $0xb4] sm:$0x33]  ;;  %s21043_s19 = smov 123   ;;  %s21044_s20 = smov 68  }
  0x15   : > { %v19735_v37 = vpack.i.bf16 %v270_v32, %v269_v31  ;;  %v19740_v41 = vpack.i.bf16 %v244_v34, %v271_v35  ;;  %v268_v43 = vunpack.c.h.bf16 %v226_v13  ;;  %v273_v47 = vunpack.c.l.bf16 %v229_v40  ;;  %v220_v31 = vld [vmem:[%s29742_s1 + $0x50] sm:$0xff]  ;;  %v21196_v32 = vld [vmem:[%s29742_s1 + $0xbc] sm:$0x33]  ;;  %s21045_s27 = smov 122   ;;  %s21046_s28 = smov 56  }
  0x16   : > { %19706 = vrot.lane.b32.xlu0 %v19705_v20, %s21030_s5  ;;  %v19745_v46 = vpack.i.bf16 %v246_v39, %v245_v38  ;;  %v274_v48 = vunpack.c.h.bf16 %v229_v40  ;;  %v255_v51 = vunpack.c.h.bf16 %v219_v45  ;;  %v280_v53 = vunpack.c.h.bf16 %v232_v50  ;;  %s190_s23 = smul.u32 6, %s17045_s16  ;;  %s21048_s29 = smov 72  }
  0x17   : > { %19716 = vrot.lane.b32.xlu1 %v19715_v19, %s21030_s5  ;;  %v248_v54 = vunpack.c.l.bf16 %v216_v44  ;;  %v275_v55 = vunpack.c.l.bf16 %v230_v49  ;;  %v19750_v57 = vpack.i.bf16 %v243_v42, %v268_v43  ;;  %v249_v59 = vunpack.c.h.bf16 %v216_v44  ;;  %s21050_s30 = smov 86  }
  0x18   : > { %v21146_v56 = vpack.i.bf16 %v255_v51, %v280_v53  ;;  %v19755_v58 = vpack.i.bf16 %v274_v48, %v273_v47  ;;  %v250_v60 = vunpack.c.l.bf16 %v217_v52  ;;  %v247_v63 = vunpack.c.h.bf16 %v215_v33  ;;  %p191_p3 = scmp.lt.s32.totalorder %s190_s23, 11 }
  0x19   : > { %v19760_v62 = vpack.i.bf16 %v248_v54, %v275_v55  ;;  %v272_v1 = vunpack.c.h.bf16 %v228_v30  ;;  %v252_v2 = vunpack.c.l.bf16 %v218_v61  ;;  %v279_v3 = vunpack.c.l.bf16 %v232_v50  ;;  %v737_v50 = vld [vmem:[%s29743_s2 + $0x8] sm:$0x7] }
  0x1a   : > { %19721 = vrot.lane.b32.xlu0 %v19720_v25, %s21030_s5  ;;  %v19765_v0 = vpack.i.bf16 %v250_v60, %v249_v59  ;;  %v277_v5 = vunpack.c.l.bf16 %v231_v4  ;;  %v278_v6 = vunpack.c.h.bf16 %v231_v4  ;;  %v251_v9 = vunpack.c.h.bf16 %v217_v52  ;;  %s31655_s23 = smov (!%p191_p3, %s190_s23), 11 }
  0x1b   : > { %19726 = vrot.lane.b32.xlu1 %v19725_v27, %s21030_s5  ;;  %v19770_v7 = vpack.i.bf16 %v247_v63, %v272_v1  ;;  %v19780_v8 = vpack.i.bf16 %v252_v2, %v279_v3  ;;  %v276_v10 = vunpack.c.h.bf16 %v230_v49  ;;  %v253_v13 = vunpack.c.h.bf16 %v218_v61  ;;  %s17050_s16 = sshll.u32 %s31655_s23, 2  ;;  %s19670_s6 = smul.u32 200, %s31655_s23 }
  0x1c   : > { %v19775_v11 = vpack.i.bf16 %v278_v6, %v277_v5  ;;  %v254_v14 = vunpack.c.l.bf16 %v219_v45  ;;  %vm29790_vm0 = vcmask 23552   ;;  %v21186_v29 = vunpack.c.l.bf16 %v17996_v22  ;;  %v235_v6 = vld [vmem:[%s29742_s1 + $0xc4] sm:$0x3]  ;;  %s26967_s26 = scalar_lea.vmem %s29744_s3, %s17050_s16 }
  0x1d   : > { %v19790_v12 = vpack.i.bf16 %v251_v9, %v276_v10  ;;  %v21188_v30 = vunpack.c.h.bf16 %v17996_v22  ;;  %v282_v42 = vunpack.c.h.bf16 %v233_v28  ;;  %v256_v44 = vunpack.c.l.bf16 %v220_v31  ;;  %s29530_s8 = scalar_lea.vmem %s29745_s4, %s19670_s6 }
  0x1e   : > { %19731 = vrot.lane.b32.xlu0 %v19730_v36, %s21030_s5  ;;  %v19785_v15 = vpack.i.bf16 %v254_v14, %v253_v13  ;;  %30100 = vst [vmem:[#allocation3_spill] sm:$0xff] %v21186_v29  ;;  %v21212_v36 = vld [vmem:[%s29742_s1 + $0x58] sm:$0xff]  ;;  %v283_v45 = vunpack.c.l.bf16 %v21196_v32  ;;  %v29746_v51 = vmov 0.0   ;;  %v284_v1 = vunpack.c.h.bf16 %v21196_v32 }
  0x1f   : > { %19736 = vrot.lane.b32.xlu1 %v19735_v37, %s21030_s5  ;;  %30101 = vst [vmem:[#allocation4_spill] sm:$0xff] %v21188_v30  ;;  %v21234_v47 = vpack.i.bf16 %v21188_v30, %v21186_v29  ;;  %v258_v48 = vunpack.c.l.bf16 %v21212_v36  ;;  %1295 = vmatprep.mubr.f32.mxu0 %v29746_v51 }
  0x20   : > { %1544 = vmatprep.mubr.f32.mxu1 %v29746_v51 }
  0x21   : > { %30108 = vst [vmem:[#allocation11_spill] sm:$0xff] %v21234_v47 }
  0x22   : > { %19741 = vrot.lane.b32.xlu0 %v19740_v41, %s21030_s5  ;;  %v281_v41 = vunpack.c.l.bf16 %v233_v28 }
  0x23   : > { %19746 = vrot.lane.b32.xlu1 %v19745_v46, %s21030_s5  ;;  %v257_v46 = vunpack.c.h.bf16 %v220_v31 }
  0x24   : > { %v19810_v55 = vpack.i.bf16 %v282_v42, %v281_v41 }
  0x25   : > { %v19825_v63 = vpack.i.bf16 %v258_v48, %v257_v46 }
  0x26   : > { %19751 = vrot.lane.b32.xlu0 %v19750_v57, %s21030_s5 }
  0x27   : > { %19756 = vrot.lane.b32.xlu1 %v19755_v58, %s21030_s5 }
  0x2a   : > { %19761 = vrot.lane.b32.xlu0 %v19760_v62, %s21030_s5  ;;  %v19820_v62 = vpack.i.bf16 %v256_v44, %v283_v45 }
  0x2b   : > { %19766 = vrot.lane.b32.xlu1 %v19765_v0, %s21030_s5  ;;  %v21253_v0 = vunpack.c.l.bf16 %v737_v50 }
  0x2e   : > { %19771 = vrot.lane.b32.xlu0 %v19770_v7, %s21030_s5  ;;  %v21270_v7 = vld [vmem:[%s29742_s1 + $0x60] sm:$0xf] }
  0x2f   : > { %19781 = vrot.lane.b32.xlu1 %v19780_v8, %s21030_s5 }
  0x32   : > { %19776 = vrot.lane.b32.xlu0 %v19775_v11, %s21030_s5 }
  0x33   : > { %19791 = vrot.lane.b32.xlu1 %v19790_v12, %s21030_s5 }
  0x36   : > { %19786 = vrot.lane.b32.xlu0 %v19785_v15, %s21030_s5 }
  0x84   : > { %v19702_v16 = vpop.permute.xlu0 %19701 }
  0x85   : > { %v21165_v17 = vpop.permute.xlu1 %19711  ;;  %v19704_v20 = vunpack.i.h.bf16 %v19702_v16  ;;  %v19703_v21 = vunpack.i.l.bf16 %v19702_v16 }
  0x86   : > { %v19714_v18 = vunpack.i.h.bf16 %v21165_v17  ;;  %v19713_v19 = vunpack.i.l.bf16 %v21165_v17 }
  0x87   : > { %v21199_v33 = vsel %vm29790_vm0, %v19703_v21, %v19704_v20  ;;  %v21238_v49 = vsel %vm29790_vm0, 0.0, %v19703_v21 }
  0x88   : > { %v21174_v24 = vpop.permute.xlu0 %19706  ;;  %v21179_v25 = vsel %vm29790_vm0, %v19713_v19, %v19714_v18  ;;  %30102 = vst [vmem:[#allocation5_spill] sm:$0xff] %v21199_v33  ;;  %30109 = vst [vmem:[#allocation12_spill] sm:$0xff] %v21238_v49 }
  0x89   : > { %v21172_v23 = vpop.permute.xlu1 %19716  ;;  %30099 = vst [vmem:[#allocation2_spill] sm:$0xff] %v21179_v25  ;;  %v19709_v26 = vunpack.i.h.bf16 %v21174_v24  ;;  %v19708_v27 = vunpack.i.l.bf16 %v21174_v24 }
  0x8a   : > { %v19719_v2 = vunpack.i.h.bf16 %v21172_v23  ;;  %v19718_v3 = vunpack.i.l.bf16 %v21172_v23 }
  0x8b   : > { %v21202_v34 = vsel %vm29790_vm0, %v19709_v26, %v19713_v19  ;;  %v21207_v35 = vsel %vm29790_vm0, %v19704_v20, %v19708_v27  ;;  %v21225_v43 = vsel %vm29790_vm0, 0.0, %v19709_v26  ;;  %v259_v19 = vunpack.c.h.bf16 %v21212_v36 }
  0x8c   : > { %30103 = vst [vmem:[#allocation6_spill] sm:$0xff] %v21202_v34  ;;  %30104 = vst [vmem:[#allocation7_spill] sm:$0xff] %v21207_v35  ;;  %v19722_v37 = vpop.permute.xlu0 %19721  ;;  %v21216_v38 = vpack.i.bf16 %v21179_v25, %v21202_v34  ;;  %v21220_v39 = vpack.i.bf16 %v21207_v35, %v21199_v33  ;;  %v21246_v53 = vpack.i.bf16 %v21225_v43, %v21238_v49  ;;  %v260_v20 = vunpack.c.l.bf16 %v21270_v7 }
  0x8d   : > { %v21222_v40 = vpop.permute.xlu1 %19726  ;;  %30107 = vst [vmem:[#allocation10_spill] sm:$0xff] %v21225_v43  ;;  %v19723_v52 = vunpack.i.l.bf16 %v19722_v37  ;;  %v19724_v59 = vunpack.i.h.bf16 %v19722_v37  ;;  %v21296_v21 = vsel %vm29790_vm0, %v19718_v3, %v19719_v2  ;;  %v21301_v22 = vsel %vm29790_vm0, %v19708_v27, %v19718_v3 }
  0x8e   : > { %30105 = vst [vmem:[#allocation8_spill] sm:$0xff] %v21216_v38  ;;  %30106 = vst [vmem:[#allocation9_spill] sm:$0xff] %v21220_v39  ;;  %19801 = vrot.lane.b32.xlu0 %v21216_v38, %s21031_s21  ;;  %19796 = vrot.lane.b32.xlu1 %v21220_v39, %s21031_s21  ;;  %v19729_v23 = vunpack.i.h.bf16 %v21222_v40  ;;  %v19728_v28 = vunpack.i.l.bf16 %v21222_v40  ;;  %v30144_v33 = vmov 0 }
  0x8f   : > { %30110 = vst [vmem:[#allocation13_spill] sm:$0xff] %v21246_v53  ;;  %v21275_v8 = vsel %vm29790_vm0, %v19714_v18, %v19723_v52  ;;  %v21286_v13 = vsel %vm29790_vm0, %v19723_v52, %v19724_v59  ;;  %v285_v18 = vunpack.c.l.bf16 %v235_v6  ;;  %30114 = vst [vmem:[#allocation17_spill] sm:$0xff] %v21301_v22 }
  0x90   : > { %v19732_v54 = vpop.permute.xlu0 %19731  ;;  %30113 = vst [vmem:[#allocation16_spill] sm:$0xff] %v21275_v8  ;;  %v21308_v31 = vpack.i.bf16 %v21286_v13, %v21275_v8 }
  0x91   : > { %v19737_v57 = vpop.permute.xlu1 %19736  ;;  %v19734_v60 = vunpack.i.h.bf16 %v19732_v54  ;;  %v19733_v61 = vunpack.i.l.bf16 %v19732_v54 }
  0x92   : > { %19806 = vrot.lane.b32.xlu0 %v21234_v47, %s21033_s24  ;;  %19816 = vrot.lane.b32.xlu1 %v21246_v53, %s21031_s21  ;;  %v19739_v10 = vunpack.i.h.bf16 %v19737_v57  ;;  %v19738_v17 = vunpack.i.l.bf16 %v19737_v57  ;;  %30115 = vst [vmem:[#allocation18_spill] sm:$0xff] %v21308_v31 }
  0x93   : > { %v21259_v4 = vsel %vm29790_vm0, %v19724_v59, %v19733_v61  ;;  %v21262_v5 = vsel %vm29790_vm0, %v19733_v61, %v19734_v60  ;;  %v21352_v59 = vld [vmem:[%s29741_s0] ss:$2 sm:$0xff]  ;;  %v21355_v61 = vsel %vm29790_vm0, %v19728_v28, %v19729_v23 }
  0x94   : > { %30111 = vst [vmem:[#allocation14_spill] sm:$0xff] %v21259_v4  ;;  %30112 = vst [vmem:[#allocation15_spill] sm:$0xff] %v21262_v5  ;;  %v21277_v9 = vpop.permute.xlu0 %19741  ;;  %v21283_v12 = vpack.i.bf16 %v21262_v5, %v21259_v4  ;;  %v21311_v37 = vsel %vm29790_vm0, %v19738_v17, %v19739_v10  ;;  %v29767_v4 = vmov 0  }
  0x95   : > { %v21279_v11 = vpop.permute.xlu1 %19746  ;;  %v19743_v14 = vunpack.i.l.bf16 %v21277_v9  ;;  %v19744_v26 = vunpack.i.h.bf16 %v21277_v9  ;;  %30120 = vst [vmem:[#allocation23_spill] sm:$0xff] %v21355_v61 }
  0x96   : > { %v19749_v15 = vunpack.i.h.bf16 %v21279_v11  ;;  %v19748_v16 = vunpack.i.l.bf16 %v21279_v11  ;;  %19811 = vrot.lane.b32.xlu0 %v19810_v55, %s21030_s5  ;;  %19821 = vrot.lane.b32.xlu1 %v19820_v62, %s21030_s5 }
  0x97   : > { %v21316_v24 = vsel %vm29790_vm0, %v19739_v10, %v19743_v14 }
  0x98   : > { %v19752_v36 = vpop.permute.xlu0 %19751  ;;  %v21319_v44 = vsel %vm29790_vm0, %v19744_v26, %v19748_v16  ;;  %v21324_v40 = vsel %vm29790_vm0, %v19748_v16, %v19749_v15  ;;  %v21335_v50 = vpack.i.bf16 %v21316_v24, %v21311_v37 }
  0x99   : > { %v19757_v27 = vpop.permute.xlu1 %19756  ;;  %v19754_v41 = vunpack.i.h.bf16 %v19752_v36  ;;  %v19753_v42 = vunpack.i.l.bf16 %v19752_v36  ;;  %v21331_v48 = vpack.i.bf16 %v21324_v40, %v21319_v44  ;;  %v540_v36 = vadd.s32 4294967293, %v21352_v59 }
  0x9a   : > { %19836 = vrot.lane.b32.xlu0 %v21308_v31, %s21031_s21  ;;  %19826 = vrot.lane.b32.xlu1 %v19825_v63, %s21030_s5  ;;  %v19759_v45 = vunpack.i.h.bf16 %v19757_v27  ;;  %v19758_v46 = vunpack.i.l.bf16 %v19757_v27 }
  0x9b   : > { %v21338_v52 = vsel %vm29790_vm0, %v19734_v60, %v19754_v41  ;;  %v21341_v54 = vsel %vm29790_vm0, %v19754_v41, %v19744_v26  ;;  %v21344_v55 = vsel %vm29790_vm0, %v19729_v23, %v19753_v42  ;;  %v21347_v57 = vsel %vm29790_vm0, %v19753_v42, %v19738_v17 }
  0x9c   : > { %30116 = vst [vmem:[#allocation19_spill] sm:$0xff] %v21338_v52  ;;  %30117 = vst [vmem:[#allocation20_spill] sm:$0xff] %v21341_v54  ;;  %v21359_v60 = vpack.i.bf16 %v21296_v21, %v21301_v22  ;;  %v19762_v62 = vpop.permute.xlu0 %19761  ;;  %v21363_v3 = vpack.i.bf16 %v21338_v52, %v21344_v55  ;;  %v21367_v6 = vpack.i.bf16 %v21341_v54, %v21347_v57  ;;  %vm544_vm1 = vcmp.ge.s32.totalorder %v540_v36, 0 }
  0x9d   : > { %30118 = vst [vmem:[#allocation21_spill] sm:$0xff] %v21344_v55  ;;  %30119 = vst [vmem:[#allocation22_spill] sm:$0xff] %v21347_v57  ;;  %v19767_v63 = vpop.permute.xlu1 %19766  ;;  %v19764_v7 = vunpack.i.h.bf16 %v19762_v62  ;;  %v19763_v10 = vunpack.i.l.bf16 %v19762_v62  ;;  %v21370_v23 = vsel %vm29790_vm0, %v19719_v2, %v19728_v28  ;;  %v21377_v26 = vsel %vm29790_vm0, %v19758_v46, %v19759_v45 }
  0x9e   : > { %30121 = vst [vmem:[#allocation24_spill] sm:$0xff] %v21359_v60  ;;  %30122 = vst [vmem:[#allocation25_spill] sm:$0xff] %v21367_v6  ;;  %v19769_v16 = vunpack.i.h.bf16 %v19767_v63  ;;  %v19768_v17 = vunpack.i.l.bf16 %v19767_v63  ;;  %19841 = vrot.lane.b32.xlu0 %v21146_v56, %s21030_s5  ;;  %19831 = vrot.lane.b32.xlu1 %v21359_v60, %s21031_s21  ;;  %v21391_v56 = vpack.i.bf16 %v21355_v61, %v21370_v23  ;;  %vm548_vm2 = vcmp.lt.s32.totalorder %v540_v36, 56 }
  0x9f   : > { %30123 = vst [vmem:[#allocation26_spill] sm:$0xff] %v21370_v23  ;;  %v21381_v27 = vsel %vm29790_vm0, %v19759_v45, %v19763_v10  ;;  %v19850_v28 = vpack.i.bf16 %v285_v18, %v284_v1  ;;  %vm552_vm4 = vmand %vm544_vm1, %vm548_vm2  ;;  %v30151_v22 = vmov 0 }
  0xa0   : > { %v21384_v41 = vsel %vm29790_vm0, %v19764_v7, %v19768_v17  ;;  %v21387_v2 = vsel %vm29790_vm0, %v19768_v17, %v19769_v16  ;;  %30124 = vst [vmem:[#allocation27_spill] sm:$0xff] %v21391_v56  ;;  %v19772_v42 = vpop.permute.xlu0 %19771  ;;  %v21399_v45 = vpack.i.bf16 %v21381_v27, %v21377_v26  ;;  %v19860_v17 = vpack.i.bf16 %v260_v20, %v259_v19 }
  0xa1   : > { %v21395_v62 = vpop.permute.xlu1 %19781  ;;  %v21403_v63 = vpack.i.bf16 %v21387_v2, %v21384_v41  ;;  %v19774_v51 = vunpack.i.h.bf16 %v19772_v42  ;;  %v19773_v58 = vunpack.i.l.bf16 %v19772_v42  ;;  %v21516_v43 = vsel %vm552_vm4, 1, %v29767_v4 }
  0xa2   : > { %19846 = vrot.lane.b32.xlu0 %v21391_v56, %s21031_s21  ;;  %1146 = vrot.lane.b32.xlu1 %v21253_v0, %s21033_s24  ;;  %v19784_v32 = vunpack.i.h.bf16 %v21395_v62  ;;  %v30132_v25 = vunpack.i.l.bf16 %v21395_v62  ;;  %30143 = vst [vmem:[#allocation44_spill] sm:$0xff] %v21516_v43 }
  0xa3   : > { %30125 = vst [vmem:[#allocation28_spill] sm:$0xff] %v21403_v63  ;;  %v21413_v1 = vsel %vm29790_vm0, %v19749_v15, %v19774_v51  ;;  %v21416_v18 = vsel %vm29790_vm0, %v19774_v51, %v19764_v7  ;;  %v21421_v19 = vsel %vm29790_vm0, %v19743_v14, %v19773_v58  ;;  %v21424_v20 = vsel %vm29790_vm0, %v19773_v58, %v19758_v46  ;;  %v21434_v51 = vld [vmem:[%s29741_s0 + $0x10] ss:$2 sm:$0xff] }
  0xa4   : > { %30126 = vst [vmem:[#allocation29_spill] sm:$0xff] %v21413_v1  ;;  %30127 = vst [vmem:[#allocation30_spill] sm:$0xff] %v21416_v18  ;;  %v19777_v60 = vpop.permute.xlu0 %19776  ;;  %v21429_v11 = vpack.i.bf16 %v21413_v1, %v21421_v19  ;;  %v21438_v9 = vpack.i.bf16 %v21416_v18, %v21424_v20  ;;  %v30130_v7 = vlaneseq  ;;  %v541_v61 = vadd.s32 4294967293, %v21434_v51 }
  0xa5   : > { %30128 = vst [vmem:[#allocation31_spill] sm:$0xff] %v21421_v19  ;;  %30129 = vst [vmem:[#allocation32_spill] sm:$0xff] %v21424_v20  ;;  %v19792_v31 = vpop.permute.xlu1 %19791  ;;  %v19779_v14 = vunpack.i.h.bf16 %v19777_v60  ;;  %v19778_v58 = vunpack.i.l.bf16 %v19777_v60 }
  0xa6   : > { %v19794_v15 = vunpack.i.h.bf16 %v19792_v31  ;;  %v19793_v46 = vunpack.i.l.bf16 %v19792_v31  ;;  %19851 = vrot.lane.b32.xlu0 %v19850_v28, %s21030_s5  ;;  %19856 = vrot.lane.b32.xlu1 %v21283_v12, %s21031_s21  ;;  %v21444_v42 = vshrl.u32 %v30130_v7, 7  ;;  %vm545_vm3 = vcmp.ge.s32.totalorder %v541_v61, 0 }
  0xa7   : > { %v21453_v60 = vsel %vm29790_vm0, %v19779_v14, %v30132_v25  ;;  %v21456_v31 = vsel %vm29790_vm0, %v19778_v58, %v19779_v14  ;;  %vm549_vm5 = vcmp.lt.s32.totalorder %v541_v61, 56 }
  0xa8   : > { %v21447_v5 = vsel %vm29790_vm0, %v19769_v16, %v19794_v15  ;;  %v21459_v28 = vsel %vm29790_vm0, %v19794_v15, %v19784_v32  ;;  %v21462_v7 = vsel %vm29790_vm0, %v19763_v10, %v19793_v46  ;;  %v21464_v35 = vpop.permute.xlu0 %19786  ;;  %v21467_v16 = vsel %vm29790_vm0, %v19793_v46, %v19778_v58  ;;  %vm553_vm6 = vmand %vm545_vm3, %vm549_vm5 }
  0xa9   : > { %30131 = vst [vmem:[#allocation33_spill] sm:$0xff] %v21447_v5  ;;  %30133 = vst [vmem:[#allocation34_spill] sm:$0xff] %v21459_v28  ;;  %v29758_v30 = vunpack.i.h.bf16 %v21464_v35  ;;  %v19788_v29 = vunpack.i.l.bf16 %v21464_v35  ;;  %v21473_v25 = vpack.i.bf16 %v21447_v5, %v21462_v7  ;;  %v21480_v10 = vpack.i.bf16 %v21453_v60, %v21456_v31 }
  0xaa   : > { %30134 = vst [vmem:[#allocation35_spill] sm:$0xff] %v21462_v7  ;;  %30135 = vst [vmem:[#allocation36_spill] sm:$0xff] %v21467_v16  ;;  %19861 = vrot.lane.b32.xlu1 %v19860_v17, %s21030_s5  ;;  %19866 = vrot.lane.b32.xlu0 %v21335_v50, %s21031_s21  ;;  %v21484_v14 = vpack.i.bf16 %v21459_v28, %v21467_v16  ;;  %v21496_v46 = vsub.s32 7, %v21444_v42  ;;  %v21513_v36 = vsub.s32 4, %v21444_v42  ;;  %v557_v34 = vsel %vm553_vm6, 1, %v29767_v4 }
  0xab   : > { %30136 = vst [vmem:[#allocation37_spill] sm:$0xff] %v21473_v25  ;;  %30137 = vst [vmem:[#allocation38_spill] sm:$0xff] %v21480_v10  ;;  %v453_v58 = vsel %vm29790_vm0, %v19784_v32, %v19788_v29  ;;  %v21490_v15 = vsel %vm29790_vm0, %v19788_v29, %v29758_v30  ;;  %v21504_v32 = vsub.s32 0, %v21444_v42  ;;  %v21507_v29 = vsub.s32 1, %v21444_v42  ;;  %v21539_v4 = vld [vmem:[%s29741_s0 + $0x20] ss:$2 sm:$0xff] }
  0xac   : > { %30138 = vst [vmem:[#allocation39_spill] sm:$0xff] %v21484_v14  ;;  %v21493_v17 = vpack.i.bf16 %v21490_v15, %v453_v58  ;;  %v21510_v30 = vsub.s32 5, %v21444_v42  ;;  %v591_v61 = vrot.slane %v21516_v43, %v21496_v46  ;;  %v30147_v43 = vmov 0 }
  0xad   : > { %30140 = vst [vmem:[#allocation41_spill] sm:$0xff] %v21504_v32  ;;  %30141 = vst [vmem:[#allocation42_spill] sm:$0xff] %v21507_v29  ;;  %v599_v23 = vrot.slane %v557_v34, %v21507_v29  ;;  %v595_v49 = vrot.slane %v557_v34, %v21504_v32 }
  0xae   : > { %30139 = vst [vmem:[#allocation40_spill] sm:$0xff] %v21493_v17  ;;  %19876 = vrot.lane.b32.xlu0 %v21367_v6, %s21031_s21  ;;  %19871 = vrot.lane.b32.xlu1 %v21331_v48, %s21031_s21  ;;  %30142 = vst [vmem:[#allocation43_spill] sm:$0xff] %v21510_v30  ;;  %v615_v8 = vrot.slane %v557_v34, %v21510_v30  ;;  %vm21558_vm10 = vcmp.eq.s32.totalorder %v591_v61, 1  ;;  %v30154_v6 = vmov 0  ;;  %v21588_v61 = vsub.s32 3, %v21444_v42 }
  0xaf   : > { %vm21527_vm7 = vcmp.eq.s32.totalorder %v599_v23, 1  ;;  %vm21544_vm8 = vcmp.eq.s32.totalorder %v595_v49, 1  ;;  %v30155_v6 = vsel %vm21558_vm10, 4294967295, %v30154_v6 }
  0xb0   : > { %v30145_v33 = vsel %vm21527_vm7, 4294967295, %v30144_v33  ;;  %v719_v23 = vsel %vm21527_vm7, %v21311_v37, 0.0  ;;  %v30148_v43 = vsel %vm21544_vm8, 4294967295, %v30147_v43  ;;  %vm21554_vm9 = vcmp.eq.s32.totalorder %v615_v8, 1  ;;  %30156 = vst [vmem:[#allocation49_spill] sm:$0xff] %v30155_v6  ;;  %30162 = vst [vmem:[#allocation53_spill] sm:$0xff] %v21588_v61 }
  0xb1   : > { %30146 = vst [vmem:[#allocation45_spill] sm:$0xff] %v30145_v33  ;;  %30149 = vst [vmem:[#allocation46_spill] sm:$0xff] %v30148_v43  ;;  %v30152_v22 = vsel %vm21554_vm9, 4294967295, %v30151_v22  ;;  %v723_v37 = vsel %vm21554_vm9, %v21377_v26, 0.0  ;;  %v542_v8 = vadd.s32 4294967293, %v21539_v4  ;;  %v717_v26 = vsel %vm21558_vm10, %v21344_v55, 0.0 }
  0xb2   : > { %19881 = vrot.lane.b32.xlu1 %v21399_v45, %s21031_s21  ;;  %19886 = vrot.lane.b32.xlu0 %v21403_v63, %s21031_s21  ;;  %v21549_v63 = vpack.c.bf16 %v719_v23, %v21319_v44  ;;  %30153 = vst [vmem:[#allocation48_spill] sm:$0xff] %v30152_v22  ;;  %v611_v44 = vrot.slane %v557_v34, %v21513_v36  ;;  %v21598_v6 = vsub.s32 2, %v21444_v42  ;;  %v30173_v43 = vmov 0 }
  0xb3   : > { %v21570_v23 = vpack.c.bf16 %v723_v37, %v21384_v41  ;;  %vm546_vm12 = vcmp.ge.s32.totalorder %v542_v8, 0  ;;  %vm550_vm13 = vcmp.lt.s32.totalorder %v542_v8, 56 }
  0xb4   : > { %30150 = vst [vmem:[#allocation47_spill] sm:$0xff] %v21549_v63  ;;  %vm21577_vm11 = vcmp.eq.s32.totalorder %v611_v44, 1  ;;  %v21594_v44 = vpack.c.bf16 %v717_v26, %v21338_v52  ;;  %vm554_vm14 = vmand %vm546_vm12, %vm550_vm13  ;;  %v603_v26 = vrot.slane %v557_v34, %v21598_v6 }
  0xb5   : > { %30158 = vst [vmem:[#allocation51_spill] sm:$0xff] %v21570_v23  ;;  %v722_v41 = vsel %vm21577_vm11, %v21424_v20, 0.0  ;;  %v607_v23 = vrot.slane %v557_v34, %v21588_v61  ;;  %30165 = vst [vmem:[#allocation56_spill] sm:$0xff] %v21598_v6 }
  0xb6   : > { %19891 = vrot.lane.b32.xlu1 %v21438_v9, %s21031_s21  ;;  %19896 = vrot.lane.b32.xlu0 %v21480_v10, %s21031_s21  ;;  %v718_v10 = vsel %vm21544_vm8, %v21347_v57, 0.0  ;;  %v21591_v37 = vpack.c.bf16 %v722_v41, %v21416_v18  ;;  %30164 = vst [vmem:[#allocation55_spill] sm:$0xff] %v21594_v44  ;;  %v30167_v41 = vmov 0  ;;  %v623_v44 = vrot.slane %v557_v34, %v21496_v46 }
  0xb7   : > { %v21563_v49 = vpack.c.bf16 %v718_v10, %v21341_v54  ;;  %v30159_v10 = vmov 0  ;;  %vm21607_vm15 = vcmp.eq.s32.totalorder %v607_v23, 1  ;;  %vm21638_vm3 = vcmp.eq.s32.totalorder %v603_v26, 1 }
  0xb8   : > { %v30160_v10 = vsel %vm21577_vm11, 4294967295, %v30159_v10  ;;  %30163 = vst [vmem:[#allocation54_spill] sm:$0xff] %v21591_v37  ;;  %v30168_v41 = vsel %vm21607_vm15, 4294967295, %v30167_v41  ;;  %v30170_v37 = vmov 0  ;;  %v721_v33 = vsel %vm21607_vm15, %v21421_v19, 0.0 }
  0xb9   : > { %30157 = vst [vmem:[#allocation50_spill] sm:$0xff] %v21563_v49  ;;  %30161 = vst [vmem:[#allocation52_spill] sm:$0xff] %v30160_v10  ;;  %v30166_v49 = vmov 0   ;;  %vm21642_vm4 = vcmp.eq.s32.totalorder %v623_v44, 1  ;;  %vm30206_vm15 = vcmask 23552  }
  0xba   : > { %19906 = vrot.lane.b32.xlu0 %v21484_v14, %s21031_s21  ;;  %19901 = vrot.lane.b32.xlu1 %v21493_v17, %s21031_s21  ;;  %v21601_v10 = vsel %vm554_vm14, 1, %v30166_v49  ;;  %30169 = vst [vmem:[#allocation57_spill] sm:$0xff] %v30168_v41  ;;  %v30179_v17 = vmov 0  ;;  %v720_v41 = vsel %vm21638_vm3, %v21316_v24, 0.0 }
  0xbb   : > { %v631_v8 = vrot.slane %v21601_v10, %v21507_v29  ;;  %v627_v22 = vrot.slane %v21601_v10, %v21504_v32  ;;  %v30180_v17 = vsel %vm21638_vm3, 4294967295, %v30179_v17 }
  0xbc   : > { %30181 = vst [vmem:[#allocation63_spill] sm:$0xff] %v30180_v17 }
  0xbd   : > { %vm21613_vm1 = vcmp.eq.s32.totalorder %v631_v8, 1  ;;  %vm21617_vm2 = vcmp.eq.s32.totalorder %v627_v22, 1  ;;  %v21636_v22 = vpack.c.bf16 %v721_v33, %v21413_v1  ;;  %v21656_v33 = vpack.c.bf16 %v720_v41, %v21324_v40 }
  0xbe   : > { %v30171_v37 = vsel %vm21613_vm1, 4294967295, %v30170_v37  ;;  %v30174_v43 = vsel %vm21617_vm2, 4294967295, %v30173_v43  ;;  %v727_v63 = vsel %vm21613_vm1, %v21456_v31, 0.0  ;;  %v726_v23 = vsel %vm21617_vm2, %v21467_v16, 0.0 }
  0xbf   : > { %30172 = vst [vmem:[#allocation58_spill] sm:$0xff] %v30171_v37  ;;  %30175 = vst [vmem:[#allocation59_spill] sm:$0xff] %v30174_v43  ;;  %v21630_v8 = vpack.c.bf16 %v727_v63, %v453_v58  ;;  %v21633_v14 = vpack.c.bf16 %v726_v23, %v21459_v28  ;;  %v30182_v31 = vmov 0  ;;  %v725_v63 = vsel %vm21642_vm4, %v21462_v7, 0.0 }
  0xc0   : > { %30178 = vst [vmem:[#allocation62_spill] sm:$0xff] %v21636_v22  ;;  %v30183_v31 = vsel %vm21642_vm4, 4294967295, %v30182_v31  ;;  %v21653_v58 = vsub.s32 6, %v21444_v42  ;;  %30186 = vst [vmem:[#allocation66_spill] sm:$0xff] %v21656_v33  ;;  %v21659_v26 = vpack.c.bf16 %v725_v63, %v21447_v5  ;;  %v30188_v23 = vmov 0 }
  0xc1   : > { %30176 = vst [vmem:[#allocation60_spill] sm:$0xff] %v21630_v8  ;;  %30177 = vst [vmem:[#allocation61_spill] sm:$0xff] %v21633_v14  ;;  %v635_v42 = vrot.slane %v21601_v10, %v21598_v6  ;;  %v30192_v40 = vmov 0  ;;  %v742_v7 = vadd.s32 4294967294, %v21434_v51  ;;  %v30218_v22 = vmov 0.0  }
  0xc2   : > { %30184 = vst [vmem:[#allocation64_spill] sm:$0xff] %v30183_v31  ;;  %30185 = vst [vmem:[#allocation65_spill] sm:$0xff] %v21653_v58  ;;  %v619_v44 = vrot.slane %v557_v34, %v21653_v58 }
  0xc3   : > { %30187 = vst [vmem:[#allocation67_spill] sm:$0xff] %v21659_v26  ;;  %vm21674_vm6 = vcmp.eq.s32.totalorder %v635_v42, 1 }
  0xc4   : > { %vm21662_vm5 = vcmp.eq.s32.totalorder %v619_v44, 1  ;;  %v30193_v40 = vsel %vm21674_vm6, 4294967295, %v30192_v40  ;;  %v728_v34 = vsel %vm21674_vm6, %v21453_v60, 0.0  ;;  %vm29806_vm6 = vcmask 1039360  }
  0xc5   : > { %v30189_v23 = vsel %vm21662_vm5, 4294967295, %v30188_v23  ;;  %v724_v24 = vsel %vm21662_vm5, %v21381_v27, 0.0  ;;  %30194 = vst [vmem:[#allocation70_spill] sm:$0xff] %v30193_v40  ;;  %v21682_v41 = vpack.c.bf16 %v728_v34, %v21490_v15  ;;  %v741_v15 = vadd.s32 4294967294, %v21352_v59 }
  0xc6   : > { %30190 = vst [vmem:[#allocation68_spill] sm:$0xff] %v30189_v23  ;;  %v21672_v31 = vpack.c.bf16 %v724_v24, %v21387_v2  ;;  %v651_v24 = vrot.slane %v21601_v10, %v21653_v58 }
  0xc7   : > { %30195 = vst [vmem:[#allocation71_spill] sm:$0xff] %v21682_v41  ;;  %vm745_vm12 = vcmp.ge.s32.totalorder %v741_v15, 0  ;;  %vm749_vm13 = vcmp.lt.s32.totalorder %v741_v15, 56 }
  0xc8   : > { %30191 = vst [vmem:[#allocation69_spill] sm:$0xff] %v21672_v31  ;;  %vm753_vm14 = vmand %vm745_vm12, %vm749_vm13  ;;  %vm29804_vm12 = vcmask 1043456   ;;  %vm21772_vm2 = vcmp.eq.s32.totalorder %v651_v24, 1 }
  0xc9   : > { %v21698_v42 = vsel %vm753_vm14, 1, %v30166_v49 }
  0xca   : > { %30196 = vst [vmem:[#allocation72_spill] sm:$0xff] %v21698_v42  ;;  %v768_v34 = vrot.slane %v21698_v42, %v21507_v29  ;;  %v764_v59 = vrot.slane %v21698_v42, %v21504_v32  ;;  %v772_v19 = vrot.slane %v21698_v42, %v21598_v6 }
  0xcc   : > { %vm21706_vm0 = vcmp.eq.s32.totalorder %v768_v34, 1  ;;  %vm21728_vm14 = vcmp.eq.s32.totalorder %v764_v59, 1 }
  0xcd   : > { %vm18212_vm13 = vmpackc.low %vm29804_vm12, %vm21706_vm0  ;;  %vm750_vm12 = vcmp.lt.s32.totalorder %v742_v7, 56 }
 0x100   : > { %v21702_v2 = vpop.permute.xlu0 %19801  ;;  %v21704_v44 = vpop.permute.xlu1 %19796 }
 0x101   : > { %v29800_v15 = vunpack.i.h.bf16 %v21702_v2  ;;  %v19803_v60 = vunpack.i.l.bf16 %v21702_v2  ;;  %v29801_v63 = vunpack.i.h.bf16 %v21704_v44  ;;  %v19798_v27 = vunpack.i.l.bf16 %v21704_v44 }
 0x103   : > { %v992_v34 = vsel %vm29806_vm6, %v19803_v60, %v29800_v15  ;;  %v1016_v5 = vsel %vm29806_vm6, %v19798_v27, %v29801_v63  ;;  %v776_v63 = vrot.slane %v21698_v42, %v21588_v61 }
 0x104   : > { %v19807_v28 = vpop.permute.xlu0 %19806  ;;  %v19817_v1 = vpop.permute.xlu1 %19816  ;;  %v1115_v18 = vsel %vm21706_vm0, %v1016_v5, 0.0  ;;  %vm746_vm0 = vcmp.ge.s32.totalorder %v742_v7, 0  ;;  %v784_v7 = vrot.slane %v21698_v42, %v21510_v30 }
 0x105   : > { %v19819_v16 = vunpack.i.h.bf16 %v19817_v1  ;;  %v19818_v52 = vunpack.i.l.bf16 %v19817_v1  ;;  %v18211_v15 = vpack.c.bf16 %v1115_v18, %v992_v34  ;;  %v647_v1 = vrot.slane %v21601_v10, %v21510_v30 }
 0x106   : > { %vm21750_vm3 = vcmp.eq.s32.totalorder %v776_v63, 1  ;;  %v30208_v63 = vmov 0  ;;  %v21783_v57 = vunpack.i.l.bf16 %v19807_v28  ;;  %v21796_v41 = vunpack.i.h.bf16 %v19807_v28 }
 0x107   : > { %v991_v5 = vsel %vm29806_vm6, %v19819_v16, %v19803_v60  ;;  %v1015_v51 = vsel %vm29806_vm6, %v19818_v52, %v19798_v27  ;;  %18213 = vmatprep.subr.msk.bf16.mxu0 %vm18212_vm13, %v18211_v15  ;;  %vm30201_vm6 = vcmask 1043456   ;;  %vm21754_vm13 = vcmp.eq.s32.totalorder %v772_v19, 1 }
 0x108   : > { %v19812_v59 = vpop.permute.xlu0 %19811  ;;  %v21742_v20 = vpop.permute.xlu1 %19821  ;;  %v1114_v18 = vsel %vm21728_vm14, %v1015_v51, 0.0  ;;  %vm18215_vm5 = vmpackc.low %vm30201_vm6, %vm21728_vm14  ;;  %v780_v15 = vrot.slane %v21698_v42, %v21513_v36  ;;  %vm21768_vm4 = vcmp.eq.s32.totalorder %v647_v1, 1  ;;  %v30211_v19 = vmov 0 }
 0x109   : > { %v19814_v34 = vunpack.i.h.bf16 %v19812_v59  ;;  %v19813_v55 = vunpack.i.l.bf16 %v19812_v59  ;;  %v29813_v16 = vunpack.i.l.bf16 %v21742_v20  ;;  %v18214_v52 = vpack.c.bf16 %v1114_v18, %v991_v5  ;;  %vm30207_vm6 = vmmov %vm30206_vm15 }
 0x10a   : > { %vm754_vm14 = vmand %vm746_vm0, %vm750_vm12  ;;  %v30209_v63 = vsel %vm21768_vm4, 4294967295, %v30208_v63  ;;  %v30212_v19 = vsel %vm21772_vm2, 4294967295, %v30211_v19  ;;  %vm30217_vm12 = vcmask 97280   ;;  %vm21812_vm0 = vcmp.eq.s32.totalorder %v784_v7, 1 }
 0x10b   : > { %v481_v54 = vsel %vm30206_vm15, %v19813_v55, %v19814_v34  ;;  %v21766_v5 = vsel %vm30207_vm6, %v19814_v34, %v29813_v16  ;;  %30210 = vst [vmem:[#allocation73_spill] sm:$0xff] %v30209_v63  ;;  %30213 = vst [vmem:[#allocation74_spill] sm:$0xff] %v30212_v19  ;;  %18216 = vmatpush1.bf16.msk.msra.mxu0 %vm18215_vm5, %v18214_v52  ;;  %v19824_v34 = vunpack.i.h.bf16 %v21742_v20  ;;  %v21791_v24 = vsel %vm754_vm14, 1, %v30166_v49 }
 0x10c   : > { %v21776_v51 = vpop.permute.xlu0 %19836  ;;  %v21778_v59 = vpop.permute.xlu1 %19826  ;;  %v21781_v18 = vpack.i.bf16 %v21766_v5, %v481_v54  ;;  %vm30215_vm15 = vmmov %vm30207_vm6  ;;  %v800_v7 = vrot.slane %v21791_v24, %v21507_v29  ;;  %vm30226_vm14 = vcmask 1039360   ;;  %v30241_v27 = vunpack.i.h.bf16 %v21464_v35 }
 0x10d   : > { %v29817_v1 = vunpack.i.h.bf16 %v21778_v59  ;;  %v19828_v16 = vunpack.i.l.bf16 %v21778_v59  ;;  %v19838_v40 = vunpack.i.l.bf16 %v21776_v51  ;;  %vm30216_vm5 = vmmov %vm30207_vm6  ;;  %vm21816_vm6 = vcmp.eq.s32.totalorder %v780_v15, 1 }
 0x10e   : > { %30214 = vst [vmem:[#allocation75_spill] sm:$0xff] %v21781_v18  ;;  %19911 = vrot.lane.b32.xlu1 %v21781_v18, %s21031_s21  ;;  %17059 = vmatmul.mubr.msk.f32.vlgmr.msra.gmra.mrb[0].mxu0 %vm30217_vm12, %v21783_v57  ;;  %v30225_v15 = vunpack.i.h.bf16 %v21702_v2  ;;  %v30264_v14 = vunpack.i.l.bf16 %v21742_v20 }
 0x10f   : > { %v457_v31 = vsel %vm30215_vm15, %v19824_v34, %v19828_v16  ;;  %v21803_v23 = vsel %vm30216_vm5, %v19828_v16, %v29817_v1  ;;  %1301 = vmatprep.mubr.f32.mxu0 %v30218_v22  ;;  %v731_v16 = vsel %vm21768_vm4, %v481_v54, 0.0  ;;  %vm30227_vm15 = vmmov %vm30216_vm5 }
 0x110   : > { %v19842_v33 = vpop.permute.xlu0 %19841  ;;  %v19832_v17 = vpop.permute.xlu1 %19831  ;;  %v21810_v28 = vpack.i.bf16 %v21803_v23, %v457_v31  ;;  %v21826_v37 = vpack.c.bf16 %v731_v16, %v457_v31  ;;  %v993_v6 = vsel %vm30226_vm14, %v30225_v15, %v19838_v40  ;;  %vm30231_vm4 = vmmov %vm30226_vm14 }
 0x111   : > { %v19844_v1 = vunpack.i.h.bf16 %v19842_v33  ;;  %v19843_v26 = vunpack.i.l.bf16 %v19842_v33  ;;  %v19834_v43 = vunpack.i.h.bf16 %v19832_v17  ;;  %v19833_v8 = vunpack.i.l.bf16 %v19832_v17  ;;  %vm30235_vm14 = vmmov %vm30231_vm4 }
 0x112   : > { %30219 = vst [vmem:[#allocation76_spill] sm:$0xff] %v21810_v28  ;;  %19916 = vrot.lane.b32.xlu0 %v21810_v28, %s21031_s21  ;;  %30224 = vst [vmem:[#allocation77_spill] sm:$0xff] %v21826_v37  ;;  %17060 = vmatmul.mubr.msk.f32.gmra.mrb[2].mxu0 %vm30217_vm12, %v21796_v41  ;;  %v796_v17 = vrot.slane %v21791_v24, %v21504_v32  ;;  %v30230_v33 = vunpack.i.h.bf16 %v21704_v44 }
 0x113   : > { %v21832_v58 = vsel %vm30227_vm15, %v19844_v1, %v19824_v34  ;;  %v21835_v54 = vsel %vm30216_vm5, %v19843_v26, %v19813_v55  ;;  %1307 = vmatprep.mubr.f32.mxu0 %v30218_v22  ;;  %v30234_v34 = vunpack.i.h.bf16 %v21776_v51  ;;  %vm30236_vm15 = vmmov %vm30231_vm4 }
 0x114   : > { %30228 = vst [vmem:[#allocation78_spill] sm:$0xff] %v21832_v58  ;;  %30229 = vst [vmem:[#allocation79_spill] sm:$0xff] %v21835_v54  ;;  %v1017_v31 = vsel %vm30231_vm4, %v30230_v33, %v19833_v8  ;;  %v21844_v16 = vpop.permute.xlu0 %19846  ;;  %v21846_v2 = vpop.permute.xlu1 %1146  ;;  %v21851_v55 = vpack.i.bf16 %v21832_v58, %v21835_v54  ;;  %v1018_v37 = vsel %vm30236_vm15, %v19833_v8, %v19834_v43  ;;  %vm30237_vm4 = vcmask 1043456  }
 0x115   : > { %30232 = vst [vmem:[#allocation80_spill] sm:$0xff] %v21844_v16  ;;  %v994_v15 = vsel %vm30235_vm14, %v19838_v40, %v30234_v34  ;;  %v19848_v33 = vunpack.i.l.bf16 %v21844_v16  ;;  %v1117_v63 = vsel %vm21750_vm3, %v1018_v37, 0.0  ;;  %vm18218_vm5 = vmpackc.low %vm30237_vm4, %vm21750_vm3  ;;  %v1116_v42 = vsel %vm21754_vm13, %v1017_v31, 0.0 }
 0x116   : > { %30233 = vst [vmem:[#allocation81_spill] sm:$0xff] %v21851_v55  ;;  %19921 = vrot.lane.b32.xlu1 %v21851_v55, %s21031_s21  ;;  %v18217_v40 = vpack.c.bf16 %v1117_v63, %v994_v15  ;;  %v18220_v8 = vpack.c.bf16 %v1116_v42, %v993_v6  ;;  %vm30238_vm14 = vmmov %vm30237_vm4  ;;  %v743_v37 = vadd.s32 4294967294, %v21539_v4  ;;  %vm30242_vm3 = vcmask 23552   ;;  %17061 = vmatmul.mubr.msk.f32.gmra.mrb[4].mxu0 %vm30217_vm12, %v21846_v2  ;;  %v21893_v4 = vld [vmem:[%s29741_s0 + $0x30] ss:$2 sm:$0x1] }
 0x117   : > { %vm21871_vm15 = vmpackc.low %vm30238_vm14, %vm21754_vm13  ;;  %v21879_v44 = vsel %vm30242_vm3, %v30241_v27, %v19844_v1  ;;  %v30244_v31 = vunpack.i.l.bf16 %v21395_v62  ;;  %30247 = vst [vmem:[#allocation84_spill] sm:$0xff] %v21893_v4  ;;  %vm30248_vm13 = vcmask 1039360   ;;  %1378 = vmatprep.mubr.f32.mxu0 %v30218_v22  ;;  %v30250_v62 = vunpack.i.h.bf16 %v21844_v16 }
 0x118   : > { %30243 = vst [vmem:[#allocation82_spill] sm:$0xff] %v21879_v44  ;;  %vm30245_vm4 = vmmov %vm30242_vm3  ;;  %v1019_v35 = vsel %vm30248_vm13, %v19834_v43, %v19848_v33  ;;  %18219 = vmatprep.subr.msk.bf16.mxu0 %vm18218_vm5, %v18217_v40  ;;  %v19852_v42 = vpop.permute.xlu0 %19851  ;;  %v21896_v60 = vpop.permute.xlu1 %19856  ;;  %vm21902_vm12 = vcmp.eq.s32.totalorder %v800_v7, 1  ;;  %vm21912_vm5 = vcmp.eq.s32.totalorder %v796_v17, 1 }
 0x119   : > { %v21884_v55 = vsel %vm30245_vm4, %v30244_v31, %v19843_v26  ;;  %30249 = vst [vmem:[#allocation85_spill] sm:$0xff] %v21896_v60  ;;  %vm30251_vm14 = vmmov %vm30248_vm13  ;;  %v19854_v15 = vunpack.i.h.bf16 %v19852_v42  ;;  %v19853_v27 = vunpack.i.l.bf16 %v19852_v42  ;;  %v29830_v43 = vunpack.i.h.bf16 %v21896_v60  ;;  %18222 = vmatpush1.bf16.msk.msra.mxu0 %vm21871_vm15, %v18220_v8 }
 0x11a   : > { %30246 = vst [vmem:[#allocation83_spill] sm:$0xff] %v21884_v55  ;;  %v1020_v26 = vsel %vm30251_vm14, %v19848_v33, %v30250_v62  ;;  %v19858_v40 = vunpack.i.l.bf16 %v21896_v60  ;;  %19931 = vrot.lane.b32.xlu1 %v21363_v3, %s21031_s21  ;;  %v21920_v7 = vpack.i.bf16 %v21879_v44, %v21884_v55  ;;  %v543_v33 = vadd.s32 4294967293, %v21893_v4  ;;  %vm30257_vm15 = vmmov %vm30248_vm13 }
 0x11b   : > { %v30256_v42 = vunpack.i.h.bf16 %v21776_v51  ;;  %v1119_v8 = vsel %vm21812_vm0, %v1020_v26, 0.0  ;;  %vm30258_vm14 = vcmask 1043456   ;;  %v1118_v1 = vsel %vm21816_vm6, %v1019_v35, 0.0 }
 0x11c   : > { %v996_v17 = vsel %vm30257_vm15, %v19858_v40, %v29830_v43  ;;  %vm21934_vm3 = vmpackc.low %vm30258_vm14, %vm21812_vm0  ;;  %v484_v51 = vsel %vm30245_vm4, %v19853_v27, %v19854_v15  ;;  %v21946_v52 = vpop.permute.xlu0 %19866  ;;  %v643_v26 = vrot.slane %v21601_v10, %v21513_v36 }
 0x11d   : > { %v995_v34 = vsel %vm30248_vm13, %v30256_v42, %v19858_v40  ;;  %vm30261_vm13 = vcmask 97280   ;;  %v19862_v42 = vpop.permute.xlu1 %19861  ;;  %v18223_v40 = vpack.c.bf16 %v1119_v8, %v996_v17  ;;  %vm30262_vm15 = vmmov %vm30258_vm14  ;;  %30263 = vst [vmem:[#allocation86_spill] sm:$0xff] %v21946_v52  ;;  %v29833_v35 = vunpack.i.h.bf16 %v21946_v52 }
 0x11e   : > { %17066 = vmatmul.mubr.msk.f32.vlgmr.msra.gmra.mrb[6].mxu0 %vm30261_vm13, %v21783_v57  ;;  %v18226_v43 = vpack.c.bf16 %v1118_v1, %v995_v34  ;;  %vm18227_vm10 = vmpackc.low %vm30262_vm15, %vm21816_vm6  ;;  %v19864_v6 = vunpack.i.h.bf16 %v19862_v42  ;;  %v19863_v16 = vunpack.i.l.bf16 %v19862_v42  ;;  %v19868_v15 = vunpack.i.l.bf16 %v21946_v52  ;;  %19941 = vrot.lane.b32.xlu1 %v21473_v25, %s21031_s21 }
 0x11f   : > { %1384 = vmatprep.mubr.f32.mxu0 %v30218_v22  ;;  %18225 = vmatprep.subr.msk.bf16.mxu0 %vm21934_vm3, %v18223_v40  ;;  %vm551_vm6 = vcmp.lt.s32.totalorder %v543_v33, 56  ;;  %v21960_v1 = vsel %vm30245_vm4, %v30264_v14, %v19853_v27  ;;  %v30266_v34 = vunpack.i.h.bf16 %v21778_v59  ;;  %vm30267_vm14 = vmmov %vm30245_vm4  ;;  %vm30270_vm15 = vcmask 1039360  }
 0x120   : > { %30265 = vst [vmem:[#allocation87_spill] sm:$0xff] %v21960_v1  ;;  %vm30269_vm13 = vmmov %vm30245_vm4  ;;  %18228 = vmatpush1.bf16.msk.msra.mxu0 %vm18227_vm10, %v18226_v43  ;;  %v1024_v62 = vsel %vm30270_vm15, %v19868_v15, %v29833_v35  ;;  %vm30271_vm3 = vcmask 547840   ;;  %vm30275_vm4 = vcmask 97280   ;;  %v21983_v27 = vpop.permute.xlu0 %19876  ;;  %vm30278_vm10 = vcmp.lt.s32.totalorder %v743_v37, 56 }
 0x121   : > { %v21965_v17 = vsel %vm30267_vm14, %v30266_v34, %v19863_v16  ;;  %v460_v8 = vsel %vm30269_vm13, %v19863_v16, %v19864_v6  ;;  %v21972_v42 = vsel %vm30271_vm3, %v484_v51, 0.0  ;;  %vm30273_vm0 = vmmov %vm30271_vm3  ;;  %30276 = vst [vmem:[#allocation91_spill] sm:$0xff] %v21983_v27  ;;  %v21985_v16 = vpop.permute.xlu1 %19871  ;;  %vm30279_vm14 = vcmp.ge.s32.totalorder %v743_v37, 0 }
 0x122   : > { %30268 = vst [vmem:[#allocation88_spill] sm:$0xff] %v21965_v17  ;;  %30272 = vst [vmem:[#allocation89_spill] sm:$0xff] %v21972_v42  ;;  %v21975_v20 = vsel %vm30273_vm0, %v460_v8, 0.0  ;;  %17067 = vmatmul.mubr.msk.f32.gmra.mrb[8].mxu0 %vm30275_vm4, %v21796_v41  ;;  %v21981_v59 = vpack.i.bf16 %v21965_v17, %v21960_v1  ;;  %v29836_v51 = vunpack.i.l.bf16 %v21983_v27  ;;  %vm30281_vm0 = vcmp.ge.s32.totalorder %v543_v33, 0 }
 0x123   : > { %30274 = vst [vmem:[#allocation90_spill] sm:$0xff] %v21975_v20  ;;  %30277 = vst [vmem:[#allocation92_spill] sm:$0xff] %v21985_v16  ;;  %1390 = vmatprep.mubr.f32.mxu0 %v30218_v22  ;;  %v21992_v6 = vpack.i.bf16 %v21975_v20, %v21972_v42  ;;  %v19873_v37 = vunpack.i.l.bf16 %v21985_v16  ;;  %v1123_v34 = vsel %vm21902_vm12, %v1024_v62, 0.0  ;;  %v30284_v8 = vrot.slane %v21791_v24, %v21510_v30 }
 0x124   : > { %vm755_vm13 = vmand %vm30279_vm14, %vm30278_vm10  ;;  %19951 = vrot.lane.b32.xlu1 %v21981_v59, %s21031_s21  ;;  %vm22023_vm4 = vcmp.eq.s32.totalorder %v643_v26, 1  ;;  %v30288_v43 = vmov 0  ;;  %vm30291_vm10 = vcmask 97280   ;;  %v30292_v62 = vunpack.i.h.bf16 %v21983_v27  ;;  %v22046_v4 = vpop.permute.xlu0 %19886 }
 0x125   : > { %30280 = vst [vmem:[#allocation93_spill] sm:$0xff] %v21992_v6  ;;  %vm21999_vm15 = vmand %vm30281_vm0, %vm551_vm6  ;;  %vm22011_vm3 = vcmp.eq.s32.totalorder %v30284_v8, 1  ;;  %19926 = vrot.lane.b32.xlu0 %v21992_v6, %s21031_s21  ;;  %vm30287_vm6 = vcmask 1039360   ;;  %v22021_v40 = vsel %vm755_vm13, 1, %v30166_v49  ;;  %v30289_v43 = vsel %vm22023_vm4, 4294967295, %v30288_v43 }
 0x126   : > { %v1023_v33 = vsel %vm30287_vm6, %v29836_v51, %v19868_v15  ;;  %30290 = vst [vmem:[#allocation94_spill] sm:$0xff] %v30289_v43  ;;  %17068 = vmatmul.mubr.msk.f32.gmra.mrb[10].mxu0 %vm30291_vm10, %v21846_v2  ;;  %vm30293_vm14 = vmmov %vm30287_vm6  ;;  %v30294_v52 = vunpack.i.h.bf16 %v21985_v16  ;;  %v22044_v51 = vpop.permute.xlu1 %19881  ;;  %v655_v14 = vrot.slane %v21601_v10, %v21496_v46  ;;  %v30310_v43 = vrot.slane %v21791_v24, %v21513_v36 }
 0x127   : > { %v999_v8 = vsel %vm30293_vm14, %v30292_v62, %v19873_v37  ;;  %vm30295_vm0 = vmmov %vm30287_vm6  ;;  %vm30296_vm6 = vcmask 1043456   ;;  %v1122_v26 = vsel %vm21912_vm5, %v1023_v33, 0.0  ;;  %30299 = vst [vmem:[#allocation95_spill] sm:$0xff] %v22046_v4  ;;  %v559_v62 = vsel %vm21999_vm15, 1, %v30166_v49  ;;  %1461 = vmatprep.mubr.f32.mxu0 %v30218_v22 }
 0x128   : > { %v1000_v60 = vsel %vm30295_vm0, %v19873_v37, %v30294_v52  ;;  %vm22038_vm13 = vmpackc.low %vm30296_vm6, %vm21902_vm12  ;;  %v18238_v63 = vpack.c.bf16 %v1122_v26, %v999_v8  ;;  %v29845_v37 = vunpack.i.h.bf16 %v22044_v51  ;;  %v19883_v16 = vunpack.i.l.bf16 %v22044_v51  ;;  %19961 = vrot.lane.b32.xlu1 %v21216_v38, %s21035_s11 }
 0x129   : > { %v18235_v52 = vpack.c.bf16 %v1123_v34, %v1000_v60  ;;  %vm30300_vm12 = vmmov %vm30296_vm6  ;;  %v19888_v60 = vunpack.i.l.bf16 %v22046_v4  ;;  %v832_v34 = vrot.slane %v22021_v40, %v21507_v29  ;;  %v639_v8 = vrot.slane %v21601_v10, %v21588_v61  ;;  %19936 = vrot.lane.b32.xlu0 %v21429_v11, %s21031_s21  ;;  %v22095_v10 = vpop.permute.xlu0 %19896 }
 0x12a   : > { %vm22059_vm10 = vmpackc.low %vm30300_vm12, %vm21912_vm5  ;;  %v659_v26 = vrot.slane %v559_v62, %v21504_v32  ;;  %vm30304_vm15 = vcmask 97280   ;;  %v22081_v27 = vpop.permute.xlu1 %19891  ;;  %v30305_v61 = vunpack.i.h.bf16 %v22046_v4  ;;  %v828_v4 = vrot.slane %v22021_v40, %v21504_v32 }
 0x12b   : > { %18237 = vmatprep.subr.msk.bf16.mxu0 %vm22038_vm13, %v18235_v52  ;;  %vm30303_vm5 = vmmov %vm30295_vm0  ;;  %17073 = vmatmul.mubr.msk.f32.vlgmr.msra.gmra.mrb[12].mxu0 %vm30304_vm15, %v21783_v57  ;;  %v730_v52 = vsel %vm22023_vm4, %v21835_v54, 0.0  ;;  %v29848_v35 = vunpack.i.l.bf16 %v22081_v27  ;;  %vm22116_vm13 = vcmp.eq.s32.totalorder %v832_v34, 1  ;;  %vm29903_vm4 = vmmov 0  }
 0x12c   : > { %v1028_v31 = vsel %vm30303_vm5, %v19883_v16, %v29845_v37  ;;  %vm30306_vm14 = vmmov %vm30295_vm0  ;;  %1467 = vmatprep.mubr.f32.mxu0 %v30218_v22  ;;  %18240 = vmatpush1.bf16.msk.msra.mxu0 %vm22059_vm10, %v18238_v63  ;;  %v29849_v37 = vunpack.i.h.bf16 %v22095_v10  ;;  %v19898_v63 = vunpack.i.l.bf16 %v22095_v10  ;;  %vm22127_vm10 = vcmp.eq.s32.totalorder %v659_v26, 1 }
 0x12d   : > { %v1004_v29 = vsel %vm30306_vm14, %v19888_v60, %v30305_v61  ;;  %v1127_v15 = vsel %vm22011_vm3, %v1028_v31, 0.0  ;;  %vm30307_vm0 = vmmov %vm30296_vm6  ;;  %v29850_v61 = vunpack.i.h.bf16 %v22081_v27  ;;  %19971 = vrot.lane.b32.xlu1 %v21234_v47, %s21036_s12  ;;  %19946 = vrot.lane.b32.xlu0 %v21920_v7, %s21031_s21  ;;  %v22143_v62 = vpack.c.bf16 %v730_v52, %v21832_v58 }
 0x12e   : > { %vm22091_vm6 = vmpackc.low %vm30307_vm0, %vm22011_vm3  ;;  %v18247_v31 = vpack.c.bf16 %v1127_v15, %v1004_v29  ;;  %vm22111_vm3 = vcmp.eq.s32.totalorder %v30310_v43, 1  ;;  %v30316_v43 = vmov 0  ;;  %v30319_v15 = vmov 0  ;;  %v22137_v34 = vpop.permute.xlu1 %19901 }
 0x12f   : > { %vm30315_vm12 = vmmov %vm30303_vm5  ;;  %v30317_v43 = vsel %vm22127_vm10, 4294967295, %v30316_v43  ;;  %vm22131_vm5 = vcmp.eq.s32.totalorder %v639_v8, 1  ;;  %17074 = vmatmul.mubr.msk.f32.gmra.mrb[14].mxu0 %vm30304_vm15, %v21796_v41  ;;  %30323 = vst [vmem:[#allocation98_spill] sm:$0xff] %v22143_v62  ;;  %v19903_v52 = vunpack.i.l.bf16 %v22137_v34 }
 0x130   : > { %v1027_v29 = vsel %vm30315_vm12, %v29848_v35, %v19883_v16  ;;  %18249 = vmatprep.subr.msk.bf16.mxu0 %vm22091_vm6, %v18247_v31  ;;  %30318 = vst [vmem:[#allocation96_spill] sm:$0xff] %v30317_v43  ;;  %v30320_v15 = vsel %vm22131_vm5, 4294967295, %v30319_v15  ;;  %vm30322_vm14 = vmmov %vm30315_vm12  ;;  %1473 = vmatprep.mubr.f32.mxu0 %v30218_v22  ;;  %v29853_v31 = vunpack.i.h.bf16 %v22137_v34  ;;  %vm22152_vm6 = vcmp.eq.s32.totalorder %v655_v14, 1 }
 0x131   : > { %30321 = vst [vmem:[#allocation97_spill] sm:$0xff] %v30320_v15  ;;  %v1032_v16 = vsel %vm30322_vm14, %v19898_v63, %v29849_v37  ;;  %vm30324_vm0 = vmmov %vm30315_vm12  ;;  %v1126_v26 = vsel %vm22111_vm3, %v1027_v29, 0.0  ;;  %v30325_v35 = vmov 0  ;;  %19981 = vrot.lane.b32.xlu1 %v21283_v12, %s21035_s11  ;;  %v729_v29 = vsel %vm22131_vm5, %v21884_v55, 0.0  ;;  %19956 = vrot.lane.b32.xlu0 %v21220_v39, %s21035_s11 }
 0x132   : > { %v1003_v8 = vsel %vm30324_vm0, %v29850_v61, %v19888_v60  ;;  %v30326_v35 = vsel %vm22152_vm6, 4294967295, %v30325_v35  ;;  %v1131_v37 = vsel %vm22116_vm13, %v1032_v16, 0.0  ;;  %v734_v60 = vsel %vm22127_vm10, %v21972_v42, 0.0  ;;  %vm30330_vm12 = vmmov %vm30304_vm15  ;;  %v22177_v16 = vpop.permute.xlu0 %19906 }
 0x133   : > { %30327 = vst [vmem:[#allocation99_spill] sm:$0xff] %v30326_v35  ;;  %v22170_v14 = vpack.c.bf16 %v734_v60, %v21975_v20  ;;  %v22173_v61 = vpack.c.bf16 %v729_v29, %v21879_v44  ;;  %17075 = vmatmul.mubr.msk.f32.gmra.mrb[16].mxu0 %vm30330_vm12, %v21846_v2  ;;  %vm30331_vm15 = vmmov %vm30324_vm0  ;;  %v733_v15 = vsel %vm22152_vm6, %v21960_v1, 0.0  ;;  %v18250_v60 = vpack.c.bf16 %v1126_v26, %v1003_v8  ;;  %v30357_v44 = vld [vmem:[#allocation84_spill] sm:$0xff] }
 0x134   : > { %v1008_v43 = vsel %vm30331_vm15, %v19903_v52, %v29853_v31  ;;  %1627 = vmatprep.mubr.f32.mxu0 %v30218_v22  ;;  %v22187_v29 = vpack.c.bf16 %v733_v15, %v21965_v17  ;;  %vm30333_vm14 = vcmask 1043456   ;;  %v30334_v31 = vsel %vm21772_vm2, %v21766_v5, 0.0  ;;  %v30352_v15 = vld [vmem:[#allocation39_spill] sm:$0xff] }
 0x135   : > { %30328 = vst [vmem:[#allocation100_spill] sm:$0xff] %v22170_v14  ;;  %30329 = vst [vmem:[#allocation101_spill] sm:$0xff] %v22173_v61  ;;  %v18259_v14 = vpack.c.bf16 %v1131_v37, %v1008_v43  ;;  %3862 = vrot.lane.b32.xlu1 %v21253_v0, %s21036_s12  ;;  %v22199_v35 = vpack.c.bf16 %v30334_v31, %v21803_v23  ;;  %19966 = vrot.lane.b32.xlu0 %v21246_v53, %s21035_s11  ;;  %v29856_v43 = vunpack.i.l.bf16 %v22177_v16  ;;  %v30355_v23 = vld [vmem:[#allocation81_spill] sm:$0xff]  ;;  %vm30364_vm6 = vcmask 1043456  }
 0x136   : > { %30332 = vst [vmem:[#allocation102_spill] sm:$0xff] %v22187_v29  ;;  %vm18251_vm0 = vmpackc.low %vm30333_vm14, %vm22111_vm3  ;;  %vm30337_vm3 = vcmask 97280   ;;  %v29855_v33 = vunpack.i.h.bf16 %v22177_v16  ;;  %v22233_v26 = vpack.i.bf16 %v21286_v13, %v21296_v21  ;;  %v848_v37 = vrot.slane %v22021_v40, %v21510_v30 }
 0x137   : > { %30335 = vst [vmem:[#allocation103_spill] sm:$0xff] %v22199_v35  ;;  %vm30336_vm12 = vmmov %vm30333_vm14  ;;  %17087 = vmatmul.mubr.msk.f32.vlgmr.msra.gmra.mrb[18].mxu0 %vm30337_vm3, %v21783_v57  ;;  %vm877_vm14 = vcmp.eq.s32.totalorder %v828_v4, 1  ;;  %v30346_v4 = vld [vmem:[#allocation17_spill] sm:$0xff]  ;;  %v744_v58 = vadd.s32 4294967294, %v30357_v44  ;;  %v844_v55 = vrot.slane %v22021_v40, %v21513_v36  ;;  %v30360_v35 = vld [vmem:[#allocation72_spill] sm:$0xff] }
 0x138   : > { %vm18260_vm15 = vmpackc.low %vm30336_vm12, %vm22116_vm13  ;;  %1633 = vmatprep.mubr.f32.mxu0 %v30218_v22  ;;  %18252 = vmatpush1.bf16.msk.msra.mxu0 %vm18251_vm0, %v18250_v60  ;;  %vm30338_vm13 = vcmask 1039360   ;;  %v30344_v60 = vld [vmem:[#allocation25_spill] sm:$0xff]  ;;  %v792_v19 = vrot.slane %v30360_v35, %v21496_v46 }
 0x139   : > { %19996 = vrot.lane.b32.xlu1 %v21331_v48, %s21035_s11  ;;  %18261 = vmatprep.subr.msk.bf16.mxu0 %vm18260_vm15, %v18259_v14  ;;  %v1031_v8 = vsel %vm30338_vm13, %v29856_v43, %v19898_v63  ;;  %vm30339_vm12 = vmmov %vm30337_vm3  ;;  %vm881_vm2 = vcmp.eq.s32.totalorder %v844_v55, 1 }
 0x13a   : > { %19976 = vrot.lane.b32.xlu0 %v21391_v56, %s21035_s11  ;;  %vm30340_vm0 = vmmov %vm30338_vm13  ;;  %v1130_v14 = vsel %vm877_vm14, %v1031_v8, 0.0  ;;  %v30347_v8 = vld [vmem:[#allocation16_spill] sm:$0xff] }
 0x13b   : > { %17088 = vmatmul.mubr.msk.f32.gmra.mrb[20].mxu0 %vm30339_vm12, %v21796_v41  ;;  %v1007_v31 = vsel %vm30340_vm0, %v29855_v33, %v19903_v52  ;;  %vm30341_vm15 = vmmov %vm30337_vm3  ;;  %vm30342_vm3 = vcmask 1043456   ;;  %v30343_v52 = vld [vmem:[#allocation40_spill] sm:$0xff] }
 0x13c   : > { %1639 = vmatprep.mubr.f32.mxu0 %v30218_v22  ;;  %v18262_v63 = vpack.c.bf16 %v1130_v14, %v1007_v31  ;;  %vm18263_vm13 = vmpackc.low %vm30342_vm3, %vm877_vm14  ;;  %v22261_v31 = vpack.i.bf16 %v30347_v8, %v30346_v4  ;;  %v30348_v14 = vld [vmem:[#allocation28_spill] sm:$0xff] }
 0x13d   : > { %20006 = vrot.lane.b32.xlu1 %v21399_v45, %s21035_s11  ;;  %vm30345_vm0 = vmmov %vm30339_vm12 }
 0x13e   : > { %19986 = vrot.lane.b32.xlu0 %v22233_v26, %s21035_s11  ;;  %vm30349_vm14 = vmmov %vm30345_vm0 }
 0x13f   : > { %17089 = vmatmul.mubr.msk.f32.gmra.mrb[22].mxu0 %vm30341_vm15, %v21846_v2  ;;  %vm30351_vm15 = vmmov %vm30345_vm0 }
 0x140   : > { %1793 = vmatprep.mubr.f32.mxu0 %v30218_v22  ;;  %vm30353_vm3 = vmmov %vm30345_vm0 }
 0x141   : > { %20016 = vrot.lane.b32.xlu1 %v21438_v9, %s21035_s11  ;;  %vm18275_vm5 = vmpackc.low %vm30364_vm6, %vm881_vm2 }
 0x142   : > { %19991 = vrot.lane.b32.xlu0 %v21335_v50, %s21035_s11 }
 0x143   : > { %17101 = vmatmul.mubr.msk.f32.vlgmr.msra.gmra.mrb[24].mxu0 %vm30339_vm12, %v21783_v57  ;;  %vm882_vm12 = vcmp.eq.s32.totalorder %v848_v37, 1 }
 0x144   : > { %1799 = vmatprep.mubr.f32.mxu0 %v30218_v22  ;;  %18264 = vmatpush1.bf16.msk.msra.mxu0 %vm18263_vm13, %v18262_v63  ;;  %v30350_v63 = vld [vmem:[#allocation38_spill] sm:$0xff]  ;;  %vm30354_vm13 = vmmov %vm30345_vm0 }
 0x145   : > { %20026 = vrot.lane.b32.xlu1 %v30343_v52, %s21035_s11 }
 0x146   : > { %20001 = vrot.lane.b32.xlu0 %v30344_v60, %s21035_s11 }
 0x147   : > { %17102 = vmatmul.mubr.msk.f32.gmra.mrb[26].mxu0 %vm30345_vm0, %v21796_v41  ;;  %vm30356_vm0 = vcmask 1039360  }
 0x148   : > { %1805 = vmatprep.mubr.f32.mxu0 %v30218_v22 }
 0x149   : > { %20036 = vrot.lane.b32.xlu1 %v22261_v31, %s21035_s11 }
 0x14a   : > { %20011 = vrot.lane.b32.xlu0 %v30348_v14, %s21035_s11 }
 0x14b   : > { %17103 = vmatmul.mubr.msk.f32.gmra.mrb[28].mxu0 %vm30349_vm14, %v21846_v2  ;;  %vm30358_vm14 = vmmov %vm30356_vm0 }
 0x14c   : > { %1959 = vmatprep.mubr.f32.mxu0 %v30218_v22 }
 0x14d   : > { %20046 = vrot.lane.b32.xlu1 %v21810_v28, %s21035_s11 }
 0x14e   : > { %20021 = vrot.lane.b32.xlu0 %v30350_v63, %s21035_s11 }
 0x14f   : > { %17115 = vmatmul.mubr.msk.f32.vlgmr.msra.gmra.mrb[30].mxu0 %vm30351_vm15, %v21783_v57  ;;  %vm30359_vm15 = vcmask 1043456  }
 0x150   : > { %1965 = vmatprep.mubr.f32.mxu0 %v30218_v22 }
 0x151   : > { %20056 = vrot.lane.b32.xlu1 %v21363_v3, %s21035_s11 }
 0x152   : > { %20031 = vrot.lane.b32.xlu0 %v30352_v15, %s21035_s11 }
 0x153   : > { %17116 = vmatmul.mubr.msk.f32.gmra.mrb[32].mxu0 %vm30353_vm3, %v21796_v41  ;;  %vm18272_vm3 = vmpackc.low %vm30359_vm15, %vm882_vm12 }
 0x154   : > { %1971 = vmatprep.mubr.f32.mxu0 %v30218_v22 }
 0x155   : > { %20066 = vrot.lane.b32.xlu1 %v21429_v11, %s21035_s11 }
 0x156   : > { %20041 = vrot.lane.b32.xlu0 %v21781_v18, %s21035_s11 }
 0x157   : > { %17117 = vmatmul.mubr.msk.f32.gmra.mrb[34].mxu0 %vm30354_vm13, %v21846_v2  ;;  %vm748_vm13 = vcmp.ge.s32.totalorder %v744_v58, 0 }
 0x158   : > { %2125 = vmatprep.mubr.f32.mxu0 %v30218_v22 }
 0x159   : > { %20076 = vrot.lane.b32.xlu1 %v21216_v38, %s21037_s13 }
 0x15a   : > { %20051 = vrot.lane.b32.xlu0 %v30355_v23, %s21035_s11 }
 0x15d   : > { %20086 = vrot.lane.b32.xlu1 %v21234_v47, %s21038_s14 }
 0x15e   : > { %20061 = vrot.lane.b32.xlu0 %v21992_v6, %s21035_s11 }
 0x161   : > { %20096 = vrot.lane.b32.xlu1 %v21391_v56, %s21037_s13 }
 0x162   : > { %20071 = vrot.lane.b32.xlu0 %v21220_v39, %s21037_s13 }
 0x165   : > { %20106 = vrot.lane.b32.xlu1 %v22233_v26, %s21037_s13 }
 0x166   : > { %20081 = vrot.lane.b32.xlu0 %v21246_v53, %s21037_s13 }
 0x169   : > { %20111 = vrot.lane.b32.xlu1 %v21920_v7, %s21035_s11 }
 0x16a   : > { %20091 = vrot.lane.b32.xlu0 %v21473_v25, %s21035_s11 }
 0x16d   : > { %20121 = vrot.lane.b32.xlu1 %v21331_v48, %s21037_s13 }
 0x16e   : > { %20101 = vrot.lane.b32.xlu0 %v21283_v12, %s21037_s13 }
 0x171   : > { %20131 = vrot.lane.b32.xlu1 %v21981_v59, %s21035_s11 }
 0x172   : > { %5490 = vrot.lane.b32.xlu0 %v21253_v0, %s21038_s14 }
 0x175   : > { %20141 = vrot.lane.b32.xlu1 %v30348_v14, %s21037_s13 }
 0x176   : > { %20116 = vrot.lane.b32.xlu0 %v21335_v50, %s21037_s13 }
 0x179   : > { %20151 = vrot.lane.b32.xlu1 %v22261_v31, %s21037_s13 }
 0x17a   : > { %20126 = vrot.lane.b32.xlu0 %v30344_v60, %s21037_s13 }
 0x17d   : > { %20161 = vrot.lane.b32.xlu1 %v30343_v52, %s21037_s13 }
 0x17e   : > { %20136 = vrot.lane.b32.xlu0 %v21399_v45, %s21037_s13 }
 0x180   : > { %v22334_v5 = vpop.permute.xlu1 %19911 }
 0x181   : > { %20171 = vrot.lane.b32.xlu1 %v21363_v3, %s21037_s13  ;;  %v29864_v33 = vunpack.i.h.bf16 %v22334_v5  ;;  %v19913_v43 = vunpack.i.l.bf16 %v22334_v5 }
 0x182   : > { %20146 = vrot.lane.b32.xlu0 %v21438_v9, %s21037_s13 }
 0x183   : > { %v1036_v20 = vsel %vm30356_vm0, %v19913_v43, %v29864_v33  ;;  %vm752_vm0 = vcmp.lt.s32.totalorder %v744_v58, 56 }
 0x184   : > { %v22344_v17 = vpop.permute.xlu0 %19916  ;;  %v1135_v33 = vsel %vm882_vm12, %v1036_v20, 0.0  ;;  %v30361_v20 = vld [vmem:[#allocation65_spill] sm:$0xff]  ;;  %vm30362_vm12 = vmmov %vm30358_vm14 }
 0x185   : > { %20181 = vrot.lane.b32.xlu1 %v21810_v28, %s21037_s13  ;;  %v29868_v1 = vunpack.i.h.bf16 %v22344_v17  ;;  %v19918_v42 = vunpack.i.l.bf16 %v22344_v17  ;;  %vm756_vm15 = vmand %vm748_vm13, %vm752_vm0  ;;  %vm30379_vm0 = vcmask 1043456  }
 0x186   : > { %20156 = vrot.lane.b32.xlu0 %v30350_v63, %s21037_s13 }
 0x187   : > { %v1012_v37 = vsel %vm30358_vm14, %v19918_v42, %v29868_v1  ;;  %v788_v1 = vrot.slane %v30360_v35, %v30361_v20  ;;  %vm30363_vm14 = vmmov %vm30362_vm12 }
 0x188   : > { %v22362_v44 = vpop.permute.xlu1 %19921  ;;  %v18271_v54 = vpack.c.bf16 %v1135_v33, %v1012_v37 }
 0x189   : > { %20191 = vrot.lane.b32.xlu1 %v21429_v11, %s21037_s13  ;;  %v29872_v29 = vunpack.i.h.bf16 %v22362_v44  ;;  %v29873_v61 = vunpack.i.l.bf16 %v22362_v44 }
 0x18a   : > { %20166 = vrot.lane.b32.xlu0 %v30352_v15, %s21037_s13  ;;  %18273 = vmatprep.subr.msk.bf16.mxu0 %vm18272_vm3, %v18271_v54  ;;  %vm22381_vm3 = vcmp.eq.s32.totalorder %v792_v19, 1  ;;  %v30371_v19 = vld [vmem:[#allocation91_spill] sm:$0xff] }
 0x18b   : > { %v1011_v33 = vsel %vm30362_vm12, %v29872_v29, %v19918_v42  ;;  %v1035_v58 = vsel %vm30363_vm14, %v29873_v61, %v19913_v43  ;;  %vm22387_vm12 = vcmp.eq.s32.totalorder %v788_v1, 1  ;;  %v760_v43 = vsel %vm756_vm15, 1, %v30166_v49  ;;  %v30370_v29 = vld [vmem:[#allocation44_spill] sm:$0xff]  ;;  %vm30385_vm15 = vmmov %vm30379_vm0  ;;  %v30431_v42 = vld [vmem:[#allocation14_spill] sm:$0xff] }
 0x18c   : > { %v19932_v55 = vpop.permute.xlu1 %19931  ;;  %v1134_v37 = vsel %vm881_vm2, %v1035_v58, 0.0  ;;  %v30369_v58 = vld [vmem:[#allocation42_spill] sm:$0xff]  ;;  %vm30373_vm2 = vmmov %vm30363_vm14 }
 0x18d   : > { %20201 = vrot.lane.b32.xlu1 %v21473_v25, %s21037_s13  ;;  %v19934_v35 = vunpack.i.h.bf16 %v19932_v55  ;;  %v19933_v62 = vunpack.i.l.bf16 %v19932_v55  ;;  %v18274_v15 = vpack.c.bf16 %v1134_v37, %v1011_v33  ;;  %v567_v61 = vrot.slane %v30370_v29, %v30369_v58  ;;  %vm30375_vm6 = vmmov %vm30373_vm2  ;;  %v30382_v58 = vld [vmem:[#allocation80_spill] sm:$0xff] }
 0x18e   : > { %20176 = vrot.lane.b32.xlu0 %v21781_v18, %s21037_s13  ;;  %v30372_v55 = vunpack.i.h.bf16 %v30371_v19  ;;  %v30374_v37 = vunpack.i.l.bf16 %v30371_v19  ;;  %vm30378_vm13 = vmmov %vm30373_vm2 }
 0x18f   : > { %18276 = vmatpush1.bf16.msk.msra.mxu0 %vm18275_vm5, %v18274_v15  ;;  %vm22410_vm14 = vmpackc.low %vm30379_vm0, %vm22381_vm3  ;;  %v824_v15 = vrot.slane %v21791_v24, %v21496_v46 }
 0x190   : > { %v998_v33 = vsel %vm30373_vm2, %v19934_v35, %v30372_v55  ;;  %v1022_v1 = vsel %vm30375_vm6, %v19933_v62, %v30374_v37  ;;  %v30383_v55 = vunpack.i.h.bf16 %v30382_v58  ;;  %vm30384_vm5 = vmmov %vm30373_vm2  ;;  %v860_v58 = vrot.slane %v760_v43, %v21504_v32 }
 0x191   : > { %20211 = vrot.lane.b32.xlu1 %v21216_v38, %s21039_s17  ;;  %v30376_v38 = vld [vmem:[#allocation85_spill] sm:$0xff]  ;;  %v1121_v49 = vsel %vm22381_vm3, %v1022_v1, 0.0  ;;  %vm18233_vm3 = vmpackc.low %vm30385_vm15, %vm22387_vm12  ;;  %vm30386_vm2 = vcmask 97280   ;;  %vm22432_vm6 = vcmp.eq.s32.totalorder %v567_v61, 1  ;;  %vm22524_vm10 = vcmp.eq.s32.totalorder %v824_v15, 1 }
 0x192   : > { %20186 = vrot.lane.b32.xlu0 %v30355_v23, %s21037_s13  ;;  %v30377_v18 = vunpack.i.h.bf16 %v30376_v38  ;;  %v1021_v19 = vsel %vm30384_vm5, %v30383_v55, %v19933_v62  ;;  %v29882_v23 = vmov 0.0|0.0   ;;  %v563_v38 = vrot.slane %v30370_v29, %v21504_v32  ;;  %17129 = vmatmul.mubr.msk.f32.vlgmr.msra.gmra.mrb[36].mxu0 %vm30386_vm2, %v21783_v57  ;;  %vm30399_vm5 = vmmov %vm30386_vm2  ;;  %v30402_v32 = vld [vmem:[#allocation6_spill] sm:$0xff] }
 0x193   : > { %18283 = vmatprep.subr.bf16.mxu0 %v29882_v23  ;;  %v1120_v54 = vsel %vm22387_vm12, %v1021_v19, 0.0  ;;  %2131 = vmatprep.mubr.f32.mxu0 %v30218_v22  ;;  %vm22453_vm0 = vcmp.eq.s32.totalorder %v860_v58, 1  ;;  %v30397_v19 = vld [vmem:[#allocation53_spill] sm:$0xff]  ;;  %v30400_v58 = vld [vmem:[#allocation12_spill] sm:$0xff] }
 0x194   : > { %v997_v25 = vsel %vm30378_vm13, %v30377_v18, %v19934_v35  ;;  %v583_v18 = vrot.slane %v30370_v29, %v21510_v30  ;;  %v18229_v35 = vpack.c.bf16 %v1121_v49, %v998_v33  ;;  %v22440_v49 = vpop.permute.xlu1 %19941  ;;  %vm22443_vm12 = vcmp.eq.s32.totalorder %v563_v38, 1  ;;  %v30395_v33 = vld [vmem:[#allocation5_spill] sm:$0xff] }
 0x195   : > { %20221 = vrot.lane.b32.xlu1 %v21234_v47, %s21041_s18  ;;  %v18232_v62 = vpack.c.bf16 %v1120_v54, %v997_v25  ;;  %v711_v1 = vsel %vm22432_vm6, %v30395_v33, 0.0  ;;  %v808_v38 = vrot.slane %v21791_v24, %v30397_v19  ;;  %v19943_v54 = vunpack.i.l.bf16 %v22440_v49  ;;  %v30401_v33 = vld [vmem:[#allocation26_spill] sm:$0xff] }
 0x196   : > { %20196 = vrot.lane.b32.xlu0 %v21992_v6, %s21037_s13  ;;  %18231 = vmatprep.subr.msk.bf16.mxu1 %vm22410_vm14, %v18229_v35  ;;  %vm22447_vm13 = vcmp.eq.s32.totalorder %v583_v18, 1  ;;  %vm30396_vm14 = vmmov %vm30386_vm2  ;;  %v30398_v18 = vld [vmem:[#allocation56_spill] sm:$0xff] }
 0x197   : > { %18234 = vmatpush1.bf16.msk.msra.mxu1 %vm18233_vm3, %v18232_v62  ;;  %v22451_v61 = vpop.permute.xlu0 %19926  ;;  %17130 = vmatmul.mubr.msk.f32.gmra.mrb[38].mxu0 %vm30396_vm14, %v21796_v41  ;;  %v804_v35 = vrot.slane %v21791_v24, %v30398_v18  ;;  %v710_v62 = vsel %vm22443_vm12, %v30400_v58, 0.0  ;;  %v715_v23 = vsel %vm22447_vm13, %v30401_v33, 0.0  ;;  %v19944_v58 = vunpack.i.h.bf16 %v22440_v49  ;;  %vm22496_vm3 = vmpackc.low %vm30385_vm15, %vm22453_vm0 }
 0x198   : > { %v29896_v55 = vunpack.i.l.bf16 %v22451_v61  ;;  %2137 = vmatprep.mubr.f32.mxu0 %v30218_v22  ;;  %vm30407_vm14 = vmmov %vm30385_vm15  ;;  %v30416_v49 = vunpack.i.l.bf16 %v22177_v16 }
 0x199   : > { %20231 = vrot.lane.b32.xlu1 %v21391_v56, %s21039_s17  ;;  %v30403_v56 = vunpack.i.h.bf16 %v22451_v61  ;;  %vm22516_vm15 = vcmp.eq.s32.totalorder %v804_v35, 1 }
 0x19a   : > { %20206 = vrot.lane.b32.xlu0 %v21220_v39, %s21039_s17  ;;  %17080 = vmatmul.mubr.msk.f32.vlgmr.msra.gmra.mrb[0].mxu1 %vm30399_vm5, %v21783_v57  ;;  %v1138_v30 = vsel %vm22453_vm0, %v29896_v55, 0.0  ;;  %v18287_v39 = vpack.c.bf16 %v711_v1, %v30402_v32  ;;  %v30406_v55 = vld [vmem:[#allocation10_spill] sm:$0xff]  ;;  %vm22508_vm5 = vmpackc.low %vm30407_vm14, %vm22432_vm6  ;;  %vm22512_vm0 = vcmp.eq.s32.totalorder %v808_v38, 1  ;;  %vm30417_vm6 = vcmask 1039360   ;;  %v30418_v38 = vld [vmem:[#allocation92_spill] sm:$0xff] }
 0x19b   : > { %1550 = vmatprep.mubr.f32.mxu1 %v30218_v22  ;;  %v18284_v6 = vpack.c.bf16 %v1138_v30, %v30403_v56  ;;  %v19937_v33 = vpop.permute.xlu0 %19936  ;;  %v18290_v8 = vpack.c.bf16 %v710_v62, %v30406_v55  ;;  %17131 = vmatmul.mubr.msk.f32.gmra.mrb[40].mxu0 %vm30386_vm2, %v21846_v2  ;;  %v1030_v43 = vsel %vm30417_vm6, %v19943_v54, %v30416_v49  ;;  %v30419_v35 = vunpack.i.h.bf16 %v30418_v38  ;;  %vm30420_vm14 = vmmov %vm30417_vm6 }
 0x19c   : > { %v19939_v4 = vunpack.i.h.bf16 %v19937_v33  ;;  %v19938_v63 = vunpack.i.l.bf16 %v19937_v33  ;;  %v820_v1 = vrot.slane %v21791_v24, %v30361_v20  ;;  %v840_v55 = vrot.slane %v22021_v40, %v30397_v19  ;;  %v30421_v33 = vld [vmem:[#allocation86_spill] sm:$0xff]  ;;  %18079 = vmatprep.mubr.msk.f32.mxu0 %vm29903_vm4, %v30218_v22 }
 0x19d   : > { %20241 = vrot.lane.b32.xlu1 %v22233_v26, %s21039_s17  ;;  %18286 = vmatpush3.bf16.msk.msra.mxu0 %vm22496_vm3, %v18284_v6  ;;  %v30427_v49 = vunpack.i.h.bf16 %v22081_v27  ;;  %v1129_v25 = vsel %vm22524_vm10, %v1030_v43, 0.0  ;;  %v30448_v32 = vunpack.i.l.bf16 %v22362_v44  ;;  %v30454_v24 = vunpack.i.h.bf16 %v22362_v44 }
 0x19e   : > { %20216 = vrot.lane.b32.xlu0 %v21246_v53, %s21039_s17  ;;  %17081 = vmatmul.mubr.msk.f32.gmra.mrb[2].mxu1 %vm30386_vm2, %v21796_v41  ;;  %v1001_v62 = vsel %vm30420_vm14, %v30419_v35, %v19939_v4  ;;  %v30422_v53 = vunpack.i.h.bf16 %v30421_v33  ;;  %vm30423_vm2 = vmmov %vm30417_vm6  ;;  %vm30424_vm6 = vcmask 1043456   ;;  %v18299_v35 = vpack.c.bf16 %v715_v23, %v30431_v42 }
 0x19f   : > { %vm22548_vm1 = vmpackc.low %vm30424_vm6, %vm22443_vm12  ;;  %18289 = vmatprep.subr.msk.bf16.mxu0 %vm22508_vm5, %v18287_v39  ;;  %v22557_v47 = vpop.permute.xlu0 %19946  ;;  %1556 = vmatprep.mubr.f32.mxu1 %v30218_v22  ;;  %vm22608_vm4 = vcmp.eq.s32.totalorder %v840_v55, 1 }
 0x1a0   : > { %v1025_v15 = vsel %vm30423_vm2, %v30422_v53, %v19938_v63  ;;  %vm30428_vm14 = vmmov %vm30423_vm2  ;;  %v30429_v53 = vunpack.i.l.bf16 %v22081_v27  ;;  %v19948_v27 = vunpack.i.l.bf16 %v22557_v47 }
 0x1a1   : > { %v1002_v38 = vsel %vm30428_vm14, %v19939_v4, %v30427_v49  ;;  %vm30430_vm3 = vmmov %vm30423_vm2  ;;  %v1124_v39 = vsel %vm22516_vm15, %v1025_v15, 0.0  ;;  %v30435_v4 = vunpack.i.h.bf16 %v22177_v16  ;;  %20246 = vrot.lane.b32.xlu1 %v21981_v59, %s21037_s13  ;;  %v30438_v16 = vunpack.i.h.bf16 %v22044_v51  ;;  %v30477_v51 = vld [vmem:[#allocation47_spill] sm:$0xff] }
 0x1a2   : > { %v1026_v6 = vsel %vm30430_vm3, %v19938_v63, %v30429_v53  ;;  %vm30432_vm12 = vmmov %vm30424_vm6  ;;  %v18244_v63 = vpack.c.bf16 %v1124_v39, %v1001_v62  ;;  %v19949_v49 = vunpack.i.h.bf16 %v22557_v47  ;;  %20226 = vrot.lane.b32.xlu0 %v21920_v7, %s21037_s13 }
 0x1a3   : > { %vm22567_vm2 = vmpackc.low %vm30432_vm12, %vm22447_vm13  ;;  %v1125_v23 = vsel %vm22512_vm0, %v1026_v6, 0.0 }
 0x1a4   : > { %vm30436_vm5 = vmmov %vm30430_vm3  ;;  %v18241_v53 = vpack.c.bf16 %v1125_v23, %v1002_v38 }
 0x1a5   : > { %v1006_v30 = vsel %vm30436_vm5, %v19944_v58, %v30435_v4  ;;  %vm30437_vm13 = vmmov %vm30424_vm6  ;;  %vm22597_vm5 = vcmp.eq.s32.totalorder %v820_v1, 1  ;;  %v30450_v1 = vld [vmem:[#allocation95_spill] sm:$0xff]  ;;  %20256 = vrot.lane.b32.xlu1 %v21331_v48, %s21039_s17  ;;  %v856_v4 = vrot.slane %v22021_v40, %v21496_v46 }
 0x1a6   : > { %vm18242_vm6 = vmpackc.low %vm30437_vm13, %vm22512_vm0  ;;  %v30451_v37 = vunpack.i.h.bf16 %v30450_v1  ;;  %20236 = vrot.lane.b32.xlu0 %v21283_v12, %s21039_s17  ;;  %v852_v1 = vrot.slane %v22021_v40, %v30361_v20 }
 0x1a7   : > { %vm30439_vm14 = vmmov %vm30430_vm3  ;;  %vm30440_vm3 = vcmask 97280   ;;  %18243 = vmatprep.subr.msk.bf16.mxu1 %vm18242_vm6, %v18241_v53  ;;  %v30475_v53 = vunpack.i.h.bf16 %v22137_v34 }
 0x1a8   : > { %v1029_v15 = vsel %vm30439_vm14, %v30438_v16, %v19943_v54  ;;  %18080 = vmatmul.mubr.msk.f32.vlgmr.msra.gmra.mrb[42].mxu0 %vm30440_vm3, %v21783_v57  ;;  %vm30441_vm0 = vmmov %vm30432_vm12  ;;  %v18253_v54 = vpack.c.bf16 %v1129_v25, %v1006_v30  ;;  %v30517_v16 = vld [vmem:[#allocation54_spill] sm:$0xff] }
 0x1a9   : > { %vm18245_vm12 = vmpackc.low %vm30441_vm0, %vm22516_vm15  ;;  %18292 = vmatpush1.bf16.msk.msra.mxu0 %vm22548_vm1, %v18290_v8  ;;  %vm30449_vm15 = vcmask 1039360   ;;  %v579_v8 = vrot.slane %v30370_v29, %v21513_v36  ;;  %v1128_v55 = vsel %vm22597_vm5, %v1029_v15, 0.0  ;;  %20266 = vrot.lane.b32.xlu1 %v22261_v31, %s21039_s17  ;;  %v30469_v15 = vld [vmem:[#allocation3_spill] sm:$0xff]  ;;  %v30560_v25 = vld [vmem:[#allocation94_spill] sm:$0xff] }
 0x1aa   : > { %vm30444_vm13 = vmmov %vm30440_vm3  ;;  %18301 = vmatprep.subr.msk.bf16.mxu0 %vm22567_vm2, %v18299_v35  ;;  %v1034_v43 = vsel %vm30449_vm15, %v19948_v27, %v30448_v32  ;;  %18246 = vmatpush1.bf16.msk.msra.mxu1 %vm18245_vm12, %v18244_v63  ;;  %v836_v35 = vrot.slane %v22021_v40, %v30398_v18  ;;  %v30478_v32 = vunpack.i.h.bf16 %v22451_v61  ;;  %v575_v40 = vrot.slane %v30370_v29, %v30397_v19 }
 0x1ab   : > { %17082 = vmatmul.mubr.msk.f32.gmra.mrb[4].mxu1 %vm30444_vm13, %v21846_v2  ;;  %vm30445_vm14 = vmmov %vm30441_vm0  ;;  %v1133_v47 = vsel %vm22608_vm4, %v1034_v43, 0.0  ;;  %7122 = vrot.lane.b32.xlu0 %v21253_v0, %s21041_s18 }
 0x1ac   : > { %vm18254_vm3 = vmpackc.low %vm30445_vm14, %vm22524_vm10  ;;  %vm30453_vm10 = vmmov 0   ;;  %1710 = vmatprep.mubr.f32.mxu1 %v30218_v22 }
 0x1ad   : > { %vm30452_vm1 = vmmov %vm30449_vm15  ;;  %18082 = vmatprep.mubr.msk.f32.mxu0 %vm30453_vm10, %v30218_v22  ;;  %18255 = vmatprep.subr.msk.bf16.mxu1 %vm18254_vm3, %v18253_v54  ;;  %vm22648_vm3 = vcmp.eq.s32.totalorder %v579_v8, 1 }
 0x1ae   : > { %v1005_v62 = vsel %vm30452_vm1, %v30451_v37, %v19944_v58  ;;  %vm30455_vm2 = vmmov %vm30452_vm1  ;;  %v22640_v58 = vpop.permute.xlu1 %19951  ;;  %v714_v39 = vsel %vm22648_vm3, %v21296_v21, 0.0  ;;  %v30464_v21 = vunpack.i.h.bf16 %v22095_v10  ;;  %20276 = vrot.lane.b32.xlu1 %v30348_v14, %s21039_s17  ;;  %v30518_v10 = vld [vmem:[#allocation75_spill] sm:$0xff] }
 0x1af   : > { %v1010_v38 = vsel %vm30455_vm2, %v19949_v49, %v30454_v24  ;;  %vm30456_vm6 = vmmov %vm30444_vm13  ;;  %v18256_v44 = vpack.c.bf16 %v1128_v55, %v1005_v62  ;;  %v19953_v33 = vunpack.i.l.bf16 %v22640_v58  ;;  %v19954_v30 = vunpack.i.h.bf16 %v22640_v58  ;;  %20251 = vrot.lane.b32.xlu0 %v21335_v50, %s21039_s17  ;;  %v30496_v58 = vld [vmem:[#allocation51_spill] sm:$0xff]  ;;  %v30539_v24 = vld [vmem:[#allocation73_spill] sm:$0xff] }
 0x1b0   : > { %18083 = vmatmul.mubr.msk.f32.gmra.mrb[44].mxu0 %vm30456_vm6, %v21796_v41  ;;  %vm18257_vm12 = vmpackc.low %vm30441_vm0, %vm22597_vm5  ;;  %v18265_v42 = vpack.c.bf16 %v1133_v47, %v1010_v38  ;;  %v18302_v63 = vpack.c.bf16 %v714_v39, %v21286_v13  ;;  %v30488_v62 = vunpack.i.h.bf16 %v22334_v5  ;;  %v30493_v38 = vld [vmem:[#allocation50_spill] sm:$0xff]  ;;  %v30494_v5 = vunpack.i.h.bf16 %v22344_v17 }
 0x1b1   : > { %18085 = vmatprep.mubr.msk.f32.mxu0 %vm30453_vm10, %v30218_v22  ;;  %vm30457_vm13 = vmmov %vm30441_vm0  ;;  %v30500_v17 = vld [vmem:[#allocation38_spill] sm:$0xff] }
 0x1b2   : > { %vm18266_vm14 = vmpackc.low %vm30457_vm13, %vm22608_vm4  ;;  %vm22686_vm13 = vcmp.eq.s32.totalorder %v836_v35, 1  ;;  %20286 = vrot.lane.b32.xlu1 %v21363_v3, %s21039_s17 }
 0x1b3   : > { %vm30460_vm15 = vmmov %vm30456_vm6  ;;  %20261 = vrot.lane.b32.xlu0 %v30344_v60, %s21039_s17 }
 0x1b4   : > { %17094 = vmatmul.mubr.msk.f32.vlgmr.msra.gmra.mrb[6].mxu1 %vm30460_vm15, %v21783_v57  ;;  %vm30461_vm4 = vmmov %vm30456_vm6  ;;  %vm30465_vm6 = vcmask 1039360  }
 0x1b5   : > { %18258 = vmatpush1.bf16.msk.msra.mxu1 %vm18257_vm12, %v18256_v44  ;;  %18086 = vmatmul.mubr.msk.f32.gmra.mrb[46].mxu0 %vm30461_vm4, %v21846_v2  ;;  %vm30462_vm5 = vmmov %vm30461_vm4  ;;  %v1033_v23 = vsel %vm30465_vm6, %v30464_v21, %v19948_v27  ;;  %v30473_v27 = vunpack.i.l.bf16 %v22451_v61  ;;  %v30507_v21 = vld [vmem:[#allocation39_spill] sm:$0xff] }
 0x1b6   : > { %18267 = vmatprep.subr.msk.bf16.mxu1 %vm18266_vm14, %v18265_v42  ;;  %1716 = vmatprep.mubr.f32.mxu1 %v30218_v22  ;;  %vm30463_vm1 = vmmov %vm30441_vm0  ;;  %v1132_v54 = vsel %vm22686_vm13, %v1033_v23, 0.0  ;;  %v30501_v42 = vld [vmem:[#allocation17_spill] sm:$0xff] }
 0x1b7   : > { %2452 = vmatprep.mubr.f32.mxu0 %v30218_v22  ;;  %vm18303_vm2 = vmpackc.low %vm30463_vm1, %vm22648_vm3  ;;  %vm22692_vm3 = vcmp.eq.s32.totalorder %v856_v4, 1  ;;  %20296 = vrot.lane.b32.xlu1 %v30343_v52, %s21039_s17  ;;  %v30505_v4 = vld [vmem:[#allocation37_spill] sm:$0xff] }
 0x1b8   : > { %17095 = vmatmul.mubr.msk.f32.gmra.mrb[8].mxu1 %vm30462_vm5, %v21796_v41  ;;  %vm18312_vm12 = vmpackc.low %vm30441_vm0, %vm21527_vm7  ;;  %20271 = vrot.lane.b32.xlu0 %v21399_v45, %s21039_s17  ;;  %v30553_v23 = vld [vmem:[#allocation57_spill] sm:$0xff] }
 0x1b9   : > { %1722 = vmatprep.mubr.f32.mxu1 %v30218_v22  ;;  %vm30470_vm14 = vmmov %vm30461_vm4 }
 0x1ba   : > { %17148 = vmatmul.mubr.msk.f32.vlgmr.msra.gmra.mrb[0].mxu0 %vm30470_vm14, %v30469_v15  ;;  %vm30474_vm15 = vmmov %vm30465_vm6 }
 0x1bb   : > { %v1038_v13 = vsel %vm30474_vm15, %v19953_v33, %v30473_v27  ;;  %18304 = vmatpush1.bf16.msk.msra.mxu0 %vm18303_vm2, %v18302_v63  ;;  %vm30476_vm7 = vmmov %vm30465_vm6  ;;  %2458 = vmatprep.mubr.f32.mxu0 %v30218_v22  ;;  %v30511_v63 = vld [vmem:[#allocation58_spill] sm:$0xff]  ;;  %v22813_v27 = vpop.permute.xlu0 %19956 }
 0x1bc   : > { %v1009_v56 = vsel %vm30476_vm7, %v30475_v53, %v19949_v49  ;;  %18313 = vmatprep.subr.msk.bf16.mxu0 %vm18312_vm12, %v30477_v51  ;;  %17096 = vmatmul.mubr.msk.f32.gmra.mrb[10].mxu1 %vm30461_vm4, %v21846_v2  ;;  %vm30479_vm5 = vmmov %vm30465_vm6  ;;  %v1137_v34 = vsel %vm22692_vm3, %v1038_v13, 0.0  ;;  %v30480_v49 = vld [vmem:[#allocation4_spill] sm:$0xff]  ;;  %v30521_v53 = vld [vmem:[#allocation7_spill] sm:$0xff] }
 0x1bd   : > { %v1014_v43 = vsel %vm30479_vm5, %v19954_v30, %v30478_v32  ;;  %vm30481_vm1 = vmmov %vm30461_vm4  ;;  %1876 = vmatprep.mubr.f32.mxu1 %v30218_v22  ;;  %v18268_v8 = vpack.c.bf16 %v1132_v54, %v1009_v56  ;;  %20306 = vrot.lane.b32.xlu1 %v21429_v11, %s21039_s17  ;;  %v30519_v13 = vld [vmem:[#allocation60_spill] sm:$0xff]  ;;  %v22830_v54 = vpop.permute.xlu1 %19961  ;;  %v30525_v32 = vld [vmem:[#allocation81_spill] sm:$0xff] }
 0x1be   : > { %17149 = vmatmul.mubr.msk.f32.gmra.mrb[2].mxu0 %vm30481_vm1, %v30480_v49  ;;  %vm30482_vm2 = vmmov %vm30441_vm0  ;;  %v18277_v61 = vpack.c.bf16 %v1137_v34, %v1014_v43  ;;  %20281 = vrot.lane.b32.xlu0 %v21438_v9, %s21039_s17  ;;  %v30522_v51 = vld [vmem:[#allocation8_spill] sm:$0xff]  ;;  %v30526_v43 = vld [vmem:[#allocation2_spill] sm:$0xff] }
 0x1bf   : > { %vm18269_vm6 = vmpackc.low %vm30482_vm2, %vm22686_vm13  ;;  %2464 = vmatprep.mubr.f32.mxu0 %v30218_v22  ;;  %vm883_vm2 = vcmp.eq.s32.totalorder %v852_v1, 1  ;;  %v587_v1 = vrot.slane %v30370_v29, %v30361_v20  ;;  %v22845_v37 = vpop.permute.xlu0 %19966 }
 0x1c0   : > { %vm18278_vm12 = vmpackc.low %vm30441_vm0, %vm22692_vm3 }
 0x1c1   : > { %vm30483_vm14 = vmmov %vm30481_vm1  ;;  %20316 = vrot.lane.b32.xlu1 %v21810_v28, %s21039_s17 }
 0x1c2   : > { %17108 = vmatmul.mubr.msk.f32.vlgmr.msra.gmra.mrb[12].mxu1 %vm30483_vm14, %v21783_v57  ;;  %vm30484_vm13 = vmmov %vm30481_vm1  ;;  %20291 = vrot.lane.b32.xlu0 %v30500_v17, %s21039_s17 }
 0x1c3   : > { %18270 = vmatpush1.bf16.msk.msra.mxu1 %vm18269_vm6, %v18268_v8  ;;  %17150 = vmatmul.mubr.msk.f32.gmra.mrb[4].mxu0 %vm30484_vm13, %v21253_v0  ;;  %vm30485_vm3 = vmmov %vm30481_vm1  ;;  %v30527_v8 = vld [vmem:[#allocation49_spill] sm:$0xff] }
 0x1c4   : > { %18279 = vmatprep.subr.msk.bf16.mxu1 %vm18278_vm12, %v18277_v61  ;;  %1882 = vmatprep.mubr.f32.mxu1 %v30218_v22  ;;  %vm30487_vm15 = vmmov %vm30441_vm0  ;;  %v30530_v61 = vld [vmem:[#allocation11_spill] sm:$0xff] }
 0x1c5   : > { %2618 = vmatprep.mubr.f32.mxu0 %v30218_v22  ;;  %vm18315_vm7 = vmpackc.low %vm30487_vm15, %vm21544_vm8  ;;  %20326 = vrot.lane.b32.xlu1 %v30505_v4, %s21039_s17 }
 0x1c6   : > { %17109 = vmatmul.mubr.msk.f32.gmra.mrb[14].mxu1 %vm30485_vm3, %v21796_v41  ;;  %vm30489_vm4 = vmmov %vm30479_vm5  ;;  %20301 = vrot.lane.b32.xlu0 %v30507_v21, %s21039_s17 }
 0x1c7   : > { %v1037_v55 = vsel %vm30489_vm4, %v30488_v62, %v19953_v33  ;;  %1888 = vmatprep.mubr.f32.mxu1 %v30218_v22  ;;  %vm30491_vm5 = vmmov %vm30441_vm0  ;;  %v30504_v33 = vld [vmem:[#allocation16_spill] sm:$0xff]  ;;  %v30533_v62 = vld [vmem:[#allocation93_spill] sm:$0xff] }
 0x1c8   : > { %vm18324_vm1 = vmpackc.low %vm30491_vm5, %vm21554_vm9  ;;  %v1136_v44 = vsel %vm883_vm2, %v1037_v55, 0.0  ;;  %vm663_vm9 = vcmp.eq.s32.totalorder %v575_v40, 1  ;;  %v30531_v40 = vld [vmem:[#allocation55_spill] sm:$0xff] }
 0x1c9   : > { %vm30492_vm6 = vmmov %vm30485_vm3  ;;  %v713_v35 = vsel %vm663_vm9, %v30501_v42, 0.0  ;;  %20336 = vrot.lane.b32.xlu1 %v21920_v7, %s21039_s17  ;;  %v30538_v55 = vld [vmem:[#allocation27_spill] sm:$0xff] }
 0x1ca   : > { %17162 = vmatmul.mubr.msk.f32.vlgmr.msra.gmra.mrb[12].mxu0 %vm30492_vm6, %v30469_v15  ;;  %vm30495_vm8 = vmmov %vm30489_vm4  ;;  %v18293_v39 = vpack.c.bf16 %v713_v35, %v30504_v33  ;;  %vm30512_vm6 = vnez %v30511_v63  ;;  %20311 = vrot.lane.b32.xlu0 %v30518_v10, %s21039_s17  ;;  %v30549_v42 = vld [vmem:[#allocation23_spill] sm:$0xff]  ;;  %v30557_v63 = vld [vmem:[#allocation62_spill] sm:$0xff] }
 0x1cb   : > { %18316 = vmatpush1.bf16.msk.msra.mxu0 %vm18315_vm7, %v30493_v38  ;;  %v1013_v47 = vsel %vm30495_vm8, %v30494_v5, %v19954_v30  ;;  %vm30497_vm0 = vmmov %vm30485_vm3  ;;  %2624 = vmatprep.mubr.f32.mxu0 %v30218_v22  ;;  %v571_v30 = vrot.slane %v30370_v29, %v30398_v18  ;;  %v22859_v29 = vpop.permute.xlu1 %19971  ;;  %v30546_v5 = vld [vmem:[#allocation9_spill] sm:$0xff]  ;;  %v30572_v38 = vld [vmem:[#allocation64_spill] sm:$0xff] }
 0x1cc   : > { %18325 = vmatprep.subr.msk.bf16.mxu0 %vm18324_vm1, %v30496_v58  ;;  %17110 = vmatmul.mubr.msk.f32.gmra.mrb[16].mxu1 %vm30497_vm0, %v21846_v2  ;;  %vm30498_vm12 = vmmov %vm30497_vm0  ;;  %v18280_v6 = vpack.c.bf16 %v1136_v44, %v1013_v47  ;;  %v22879_v47 = vld [vmem:[%s29741_s0] ss:$2 sm:$0xff]  ;;  %v22882_v44 = vpop.permute.xlu0 %19976 }
 0x1cd   : > { %2042 = vmatprep.mubr.f32.mxu1 %v30218_v22  ;;  %vm30499_vm14 = vmmov %vm30491_vm5  ;;  %20346 = vrot.lane.b32.xlu1 %v30522_v51, %s21043_s19  ;;  %v3464_v58 = vadd.s32 4294967295, %v22879_v47 }
 0x1ce   : > { %17163 = vmatmul.mubr.msk.f32.gmra.mrb[14].mxu0 %vm30498_vm12, %v30480_v49  ;;  %vm18281_vm13 = vmpackc.low %vm30499_vm14, %vm883_vm2  ;;  %20321 = vrot.lane.b32.xlu0 %v30525_v32, %s21039_s17 }
 0x1cf   : > { %vm30502_vm3 = vmmov %vm30491_vm5  ;;  %2630 = vmatprep.mubr.f32.mxu0 %v30218_v22  ;;  %v22899_v33 = vpop.permute.xlu1 %19981 }
 0x1d0   : > { %vm18294_vm15 = vmpackc.low %vm30502_vm3, %vm663_vm9  ;;  %vm22804_vm9 = vcmp.eq.s32.totalorder %v571_v30, 1 }
 0x1d1   : > { %vm30503_vm7 = vmmov %vm30497_vm0  ;;  %v712_v56 = vsel %vm22804_vm9, %v30521_v53, 0.0  ;;  %20356 = vrot.lane.b32.xlu1 %v30530_v61, %s21044_s20  ;;  %v30565_v53 = vld [vmem:[#allocation98_spill] sm:$0xff] }
 0x1d2   : > { %17122 = vmatmul.mubr.msk.f32.vlgmr.msra.gmra.mrb[18].mxu1 %vm30503_vm7, %v21783_v57  ;;  %vm30506_vm4 = vmmov %vm30497_vm0  ;;  %v18296_v34 = vpack.c.bf16 %v712_v56, %v30526_v43  ;;  %20331 = vrot.lane.b32.xlu0 %v30533_v62, %s21039_s17  ;;  %v29906_v56 = vunpack.i.h.bf16 %v22813_v27  ;;  %v19958_v43 = vunpack.i.l.bf16 %v22813_v27 }
 0x1d3   : > { %18282 = vmatpush1.bf16.msk.msra.mxu1 %vm18281_vm13, %v18280_v6  ;;  %17164 = vmatmul.mubr.msk.f32.gmra.mrb[16].mxu0 %vm30506_vm4, %v21253_v0  ;;  %vm30508_vm5 = vmmov %vm30497_vm0  ;;  %v30547_v6 = vld [vmem:[#allocation77_spill] sm:$0xff] }
 0x1d4   : > { %18295 = vmatprep.subr.msk.bf16.mxu1 %vm18294_vm15, %v18293_v39  ;;  %2048 = vmatprep.mubr.f32.mxu1 %v30218_v22  ;;  %vm30510_vm1 = vmmov %vm30502_vm3  ;;  %vm30528_vm15 = vnez %v30527_v8  ;;  %v30552_v39 = vld [vmem:[#allocation15_spill] sm:$0xff]  ;;  %v30567_v8 = vld [vmem:[#allocation42_spill] sm:$0xff] }
 0x1d5   : > { %2784 = vmatprep.mubr.f32.mxu0 %v30218_v22  ;;  %vm18327_vm2 = vmpackc.low %vm30510_vm1, %vm21577_vm11  ;;  %20366 = vrot.lane.b32.xlu1 %v30538_v55, %s21043_s19 }
 0x1d6   : > { %17123 = vmatmul.mubr.msk.f32.gmra.mrb[20].mxu1 %vm30508_vm5, %v21796_v41  ;;  %vm30513_vm8 = vmmov %vm30510_vm1  ;;  %20341 = vrot.lane.b32.xlu0 %v30546_v5, %s21043_s19 }
 0x1d7   : > { %2054 = vmatprep.mubr.f32.mxu1 %v30218_v22  ;;  %vm18336_vm0 = vmpackc.low %vm30513_vm8, %vm30512_vm6 }
 0x1d8   : > { %vm30516_vm12 = vmmov %vm30506_vm4 }
 0x1d9   : > { %17176 = vmatmul.mubr.msk.f32.vlgmr.msra.gmra.mrb[18].mxu0 %vm30516_vm12, %v30469_v15  ;;  %vm30520_vm11 = vmmov %vm30506_vm4  ;;  %20376 = vrot.lane.b32.xlu1 %v22233_v26, %s21043_s19  ;;  %v22912_v26 = vpop.permute.xlu0 %19986 }
 0x1da   : > { %18328 = vmatpush1.bf16.msk.msra.mxu0 %vm18327_vm2, %v30517_v16  ;;  %17124 = vmatmul.mubr.msk.f32.gmra.mrb[22].mxu1 %vm30520_vm11, %v21846_v2  ;;  %vm30523_vm14 = vmmov %vm30506_vm4  ;;  %v30563_v16 = vmov 0  }
 0x1db   : > { %18337 = vmatprep.subr.msk.bf16.mxu0 %vm18336_vm0, %v30519_v13  ;;  %2790 = vmatprep.mubr.f32.mxu0 %v30218_v22  ;;  %vm30524_vm13 = vmmov %vm30510_vm1 }
 0x1dc   : > { %2208 = vmatprep.mubr.f32.mxu1 %v30218_v22  ;;  %vm18297_vm3 = vmpackc.low %vm30524_vm13, %vm22804_vm9  ;;  %vm30540_vm9 = vnez %v30539_v24 }
 0x1dd   : > { %17177 = vmatmul.mubr.msk.f32.gmra.mrb[20].mxu0 %vm30523_vm14, %v30480_v49  ;;  %vm30529_vm7 = vmmov %vm30510_vm1  ;;  %vm22867_vm14 = vcmp.eq.s32.totalorder %v587_v1, 1  ;;  %20381 = vrot.lane.b32.xlu1 %v22261_v31, %s21043_s19  ;;  %v22926_v31 = vpop.permute.xlu1 %3862 }
 0x1de   : > { %vm18306_vm4 = vmpackc.low %vm30529_vm7, %vm30528_vm15  ;;  %2796 = vmatprep.mubr.f32.mxu0 %v30218_v22  ;;  %17136 = vmatmul.mubr.msk.f32.vlgmr.msra.gmra.mrb[24].mxu1 %vm30508_vm5, %v21783_v57  ;;  %v30535_v57 = vld [vmem:[#allocation59_spill] sm:$0xff]  ;;  %v716_v35 = vsel %vm22867_vm14, %v30549_v42, 0.0  ;;  %v30578_v42 = vld [vmem:[#allocation66_spill] sm:$0xff] }
 0x1df   : > { %18298 = vmatpush1.bf16.msk.msra.mxu1 %vm18297_vm3, %v18296_v34  ;;  %vm30532_vm1 = vmmov %vm30508_vm5  ;;  %2214 = vmatprep.mubr.f32.mxu1 %v30218_v22  ;;  %vm30536_vm6 = vnez %v30535_v57  ;;  %v18308_v30 = vpack.c.bf16 %v716_v35, %v30552_v39  ;;  %vm30554_vm5 = vnez %v30553_v23  ;;  %v22941_v34 = vpop.permute.xlu0 %19991  ;;  %v30571_v57 = vmov 0.0|0.0   ;;  %v30579_v39 = vld [vmem:[#allocation67_spill] sm:$0xff]  ;;  %v30582_v23 = vld [vmem:[#allocation96_spill] sm:$0xff] }
 0x1e0   : > { %18307 = vmatprep.subr.msk.bf16.mxu1 %vm18306_vm4, %v30531_v40  ;;  %vm30534_vm2 = vmmov %vm30532_vm1  ;;  %v30569_v40 = vld [vmem:[#allocation63_spill] sm:$0xff] }
 0x1e1   : > { %17178 = vmatmul.mubr.msk.f32.gmra.mrb[22].mxu0 %vm30532_vm1, %v21253_v0  ;;  %vm30537_vm8 = vmmov %vm30529_vm7  ;;  %20391 = vrot.lane.b32.xlu1 %v21331_v48, %s21043_s19  ;;  %v22957_v24 = vpop.permute.xlu1 %19996 }
 0x1e2   : > { %17137 = vmatmul.mubr.msk.f32.gmra.mrb[26].mxu1 %vm30534_vm2, %v21796_v41  ;;  %2950 = vmatprep.mubr.f32.mxu0 %v30218_v22  ;;  %vm18339_vm0 = vmpackc.low %vm30537_vm8, %vm30536_vm6  ;;  %v30545_v41 = vld [vmem:[#allocation61_spill] sm:$0xff]  ;;  %vm3468_vm6 = vcmp.ge.s32.totalorder %v3464_v58, 0  ;;  %vm3472_vm8 = vcmp.lt.s32.totalorder %v3464_v58, 56  ;;  %v29905_v58 = vunpack.i.h.bf16 %v22830_v54 }
 0x1e3   : > { %2220 = vmatprep.mubr.f32.mxu1 %v30218_v22  ;;  %vm30541_vm12 = vmmov %vm30529_vm7  ;;  %v22979_v35 = vpop.permute.xlu0 %20001 }
 0x1e4   : > { %vm18348_vm11 = vmpackc.low %vm30541_vm12, %vm30540_vm9 }
 0x1e5   : > { %vm30544_vm13 = vmmov %vm30532_vm1  ;;  %20401 = vrot.lane.b32.xlu1 %v21363_v3, %s21043_s19  ;;  %v29911_v3 = vunpack.i.l.bf16 %v22882_v44 }
 0x1e6   : > { %17190 = vmatmul.mubr.msk.f32.vlgmr.msra.gmra.mrb[24].mxu0 %vm30544_vm13, %v30469_v15  ;;  %vm30548_vm3 = vmmov %vm30532_vm1 }
 0x1e7   : > { %18340 = vmatpush1.bf16.msk.msra.mxu0 %vm18339_vm0, %v30545_v41  ;;  %17138 = vmatmul.mubr.msk.f32.gmra.mrb[28].mxu1 %vm30548_vm3, %v21846_v2  ;;  %vm30550_vm15 = vmmov %vm30532_vm1  ;;  %v30551_v2 = vld [vmem:[#allocation13_spill] sm:$0xff] }
 0x1e8   : > { %18349 = vmatprep.subr.msk.bf16.mxu0 %vm18348_vm11, %v30547_v6  ;;  %2956 = vmatprep.mubr.f32.mxu0 %v30218_v22  ;;  %vm18309_vm4 = vmpackc.low %vm30529_vm7, %vm22867_vm14  ;;  %vm30561_vm14 = vnez %v30560_v25  ;;  %v19963_v6 = vunpack.i.l.bf16 %v22830_v54 }
 0x1e9   : > { %2535 = vmatprep.mubr.f32.mxu1 %v30218_v22  ;;  %20351 = vrot.lane.b32.xlu0 %v30551_v2, %s21043_s19  ;;  %vm30555_vm1 = vmmov %vm30529_vm7 }
 0x1ea   : > { %17191 = vmatmul.mubr.msk.f32.gmra.mrb[26].mxu0 %vm30550_vm15, %v30480_v49  ;;  %vm18318_vm2 = vmpackc.low %vm30555_vm1, %vm30554_vm5  ;;  %vm30570_vm5 = vnez %v30569_v40  ;;  %20411 = vrot.lane.b32.xlu1 %v30348_v14, %s21043_s19  ;;  %v30587_v40 = vld [vmem:[#allocation100_spill] sm:$0xff] }
 0x1eb   : > { %2962 = vmatprep.mubr.f32.mxu0 %v30218_v22  ;;  %vm30556_vm0 = vmmov %vm30548_vm3 }
 0x1ec   : > { %17155 = vmatmul.mubr.msk.f32.vlgmr.msra.gmra.mrb[30].mxu1 %vm30556_vm0, %v30469_v15  ;;  %vm30558_vm9 = vmmov %vm30556_vm0 }
 0x1ed   : > { %18310 = vmatpush1.bf16.msk.msra.mxu1 %vm18309_vm4, %v18308_v30  ;;  %vm3476_vm12 = vmand %vm3468_vm6, %vm3472_vm8  ;;  %20361 = vrot.lane.b32.xlu0 %v21981_v59, %s21039_s17  ;;  %vm3709_vm6 = vcmask 1031168   ;;  %vm30573_vm8 = vnez %v30572_v38 }
 0x1ee   : > { %18319 = vmatprep.subr.msk.bf16.mxu1 %vm18318_vm2, %v30557_v63  ;;  %17192 = vmatmul.mubr.msk.f32.gmra.mrb[28].mxu0 %vm30558_vm9, %v21253_v0  ;;  %vm30559_vm11 = vmmov %vm30556_vm0  ;;  %v22932_v13 = vsel %vm3476_vm12, 1, %v30563_v16  ;;  %v3735_v41 = vsel %vm3709_vm6, %v19958_v43, %v29906_v56  ;;  %v22995_v63 = vpop.permute.xlu1 %20006  ;;  %v3711_v25 = vsel %vm3709_vm6, %v19963_v6, %v29905_v58  ;;  %v30596_v56 = vld [vmem:[#allocation97_spill] sm:$0xff] }
 0x1ef   : > { %2541 = vmatprep.mubr.f32.mxu1 %v30218_v22  ;;  %3116 = vmatprep.mubr.f32.mxu0 %v30218_v22  ;;  %vm30562_vm13 = vmmov %vm30555_vm1  ;;  %v3491_v1 = vrot.slane %v22932_v13, %v30567_v8 }
 0x1f0   : > { %17156 = vmatmul.mubr.msk.f32.gmra.mrb[32].mxu1 %vm30559_vm11, %v30480_v49  ;;  %vm18351_vm3 = vmpackc.low %vm30562_vm13, %vm30561_vm14  ;;  %20421 = vrot.lane.b32.xlu1 %v21429_v11, %s21043_s19  ;;  %v30588_v11 = vld [vmem:[#allocation41_spill] sm:$0xff] }
 0x1f1   : > { %2547 = vmatprep.mubr.f32.mxu1 %v30218_v22  ;;  %vm30564_vm15 = vmmov %vm30556_vm0  ;;  %20371 = vrot.lane.b32.xlu0 %v21283_v12, %s21043_s19  ;;  %vm22967_vm11 = vcmp.eq.s32.totalorder %v3491_v1, 1  ;;  %v19968_v1 = vunpack.i.l.bf16 %v22845_v37  ;;  %v3487_v38 = vrot.slane %v22932_v13, %v30588_v11 }
 0x1f2   : > { %17204 = vmatmul.mubr.msk.f32.vlgmr.msra.gmra.mrb[30].mxu0 %vm30564_vm15, %v30469_v15  ;;  %vm30566_vm7 = vmmov %vm30556_vm0  ;;  %v3834_v30 = vsel %vm22967_vm11, %v3735_v41, 0.0  ;;  %v29910_v41 = vunpack.i.h.bf16 %v22882_v44  ;;  %v23039_v58 = vpop.permute.xlu1 %20016 }
 0x1f3   : > { %18352 = vmatpush1.bf16.msk.msra.mxu0 %vm18351_vm3, %v30565_v53  ;;  %3122 = vmatprep.mubr.f32.mxu0 %v30218_v22  ;;  %vm30568_vm4 = vmmov %vm30556_vm0  ;;  %vm30583_vm3 = vnez %v30582_v23  ;;  %v18363_v53 = vpack.c.bf16 %v3834_v30, %v3711_v25  ;;  %v19969_v25 = vunpack.i.h.bf16 %v22845_v37 }
 0x1f4   : > { %17157 = vmatmul.mubr.msk.f32.gmra.mrb[34].mxu1 %vm30566_vm7, %v21253_v0  ;;  %vm18321_vm2 = vmpackc.low %vm30555_vm1, %vm30570_vm5  ;;  %18359 = vmatprep.subr.bf16.mxu0 %v30571_v57 }
 0x1f5   : > { %2701 = vmatprep.mubr.f32.mxu1 %v30218_v22  ;;  %8754 = vrot.lane.b32.xlu0 %v21253_v0, %s21044_s20  ;;  %vm30574_vm0 = vmmov %vm30555_vm1 }
 0x1f6   : > { %17205 = vmatmul.mubr.msk.f32.gmra.mrb[32].mxu0 %vm30568_vm4, %v30480_v49  ;;  %vm18330_vm9 = vmpackc.low %vm30574_vm0, %vm30573_vm8  ;;  %20431 = vrot.lane.b32.xlu1 %v30343_v52, %s21043_s19  ;;  %v30606_v52 = vld [vmem:[#allocation101_spill] sm:$0xff] }
 0x1f7   : > { %3128 = vmatprep.mubr.f32.mxu0 %v30218_v22  ;;  %vm30575_vm12 = vmmov %vm30568_vm4 }
 0x1f8   : > { %17169 = vmatmul.mubr.msk.f32.vlgmr.msra.gmra.mrb[0].mxu1 %vm30575_vm12, %v30469_v15  ;;  %vm30580_vm14 = vmmov %vm30568_vm4 }
 0x1f9   : > { %18322 = vmatpush1.bf16.msk.msra.mxu1 %vm18321_vm2, %v30578_v42  ;;  %20386 = vrot.lane.b32.xlu0 %v21335_v50, %s21043_s19  ;;  %vm30581_vm13 = vmmov %vm30568_vm4  ;;  %v23016_v42 = vpop.permute.xlu0 %20011 }
 0x1fa   : > { %18331 = vmatprep.subr.msk.bf16.mxu1 %vm18330_vm9, %v30579_v39  ;;  %17206 = vmatmul.mubr.msk.f32.gmra.mrb[34].mxu0 %vm30580_vm14, %v21253_v0  ;;  %vm30584_vm15 = vmmov %vm30574_vm0  ;;  %v30590_v39 = vld [vmem:[#allocation43_spill] sm:$0xff] }
 0x1fb   : > { %2707 = vmatprep.mubr.f32.mxu1 %v30218_v22  ;;  %3282 = vmatprep.mubr.f32.mxu0 %v30218_v22  ;;  %vm18361_vm7 = vmpackc.low %vm30584_vm15, %vm30583_vm3  ;;  %v3507_v30 = vrot.slane %v22932_v13, %v30590_v39  ;;  %vm23047_vm3 = vcmp.eq.s32.totalorder %v3487_v38, 1  ;;  %v19983_v38 = vunpack.i.l.bf16 %v22899_v33 }
 0x1fc   : > { %17170 = vmatmul.mubr.msk.f32.gmra.mrb[2].mxu1 %vm30581_vm13, %v30480_v49  ;;  %vm30585_vm4 = vmmov %vm30574_vm0  ;;  %20441 = vrot.lane.b32.xlu1 %v30505_v4, %s21043_s19 }
 0x1fd   : > { %2713 = vmatprep.mubr.f32.mxu1 %v30218_v22  ;;  %vm18364_vm5 = vmpackc.low %vm30585_vm4, %vm22967_vm11  ;;  %20396 = vrot.lane.b32.xlu0 %v30344_v60, %s21043_s19  ;;  %v23025_v60 = vld [vmem:[%s29741_s0 + $0x10] ss:$2 sm:$0xff]  ;;  %vm30597_vm11 = vnez %v30596_v56  ;;  %v3739_v56 = vsel %vm3709_vm6, %v29911_v3, %v29910_v41  ;;  %v23070_v57 = vpop.permute.xlu0 %20021 }
 0x1fe   : > { %vm30586_vm1 = vmmov %vm30575_vm12  ;;  %30591 = vst [vmem:[#allocation25_spill] sm:$0xff] %v23025_v60  ;;  %v3465_v23 = vadd.s32 4294967295, %v23025_v60  ;;  %v3710_v60 = vsel %vm3709_vm6, %v19969_v25, %v19963_v6 }
 0x1ff   : > { %17218 = vmatmul.mubr.msk.f32.vlgmr.msra.gmra.mrb[36].mxu0 %vm30586_vm1, %v30469_v15  ;;  %vm30589_vm2 = vmmov %vm30586_vm1 }
 0x200   : > { %18362 = vmatpush3.bf16.msk.msra.mxu0 %vm18361_vm7, %v30587_v40  ;;  %17171 = vmatmul.mubr.msk.f32.gmra.mrb[4].mxu1 %vm30589_vm2, %v21253_v0  ;;  %vm30592_vm8 = vmmov %vm30586_vm1  ;;  %v3734_v40 = vsel %vm3709_vm6, %v19968_v1, %v19958_v43  ;;  %vm23053_vm7 = vcmp.eq.s32.totalorder %v3507_v30, 1  ;;  %v29912_v1 = vunpack.i.h.bf16 %v22899_v33  ;;  %v23067_v30 = vpop.f32.mrb[6].mxu0 }
 0x201   : > { %18365 = vmatprep.subr.msk.bf16.mxu0 %vm18364_vm5, %v18363_v53  ;;  %3288 = vmatprep.mubr.f32.mxu0 %v30218_v22  ;;  %v30593_v53 = vld [vmem:[#allocation68_spill] sm:$0xff]  ;;  %vm30595_vm9 = vmmov %vm30585_vm4  ;;  %vm3473_vm5 = vcmp.lt.s32.totalorder %v3465_v23, 56  ;;  %30605 = vst [vmem:[#allocation28_spill] sm:$0xff] %v23067_v30  ;;  %v23075_v41 = vpop.f32.mrb[7].mxu0  ;;  %v3833_v3 = vsel %vm23047_vm3, %v3734_v40, 0.0  ;;  %v3838_v4 = vsel %vm23053_vm7, %v3739_v56, 0.0  ;;  %v19988_v56 = vunpack.i.l.bf16 %v22912_v26 }
 0x202   : > { %2867 = vmatprep.mubr.f32.mxu1 %v30218_v22  ;;  %vm30594_vm0 = vnez %v30593_v53  ;;  %20406 = vrot.lane.b32.xlu0 %v21399_v45, %s21043_s19  ;;  %vm30598_vm14 = vmmov %vm30585_vm4  ;;  %vm3469_vm4 = vcmp.ge.s32.totalorder %v3465_v23, 0  ;;  %v30604_v53 = vld [vmem:[#allocation69_spill] sm:$0xff]  ;;  %30607 = vst [vmem:[#allocation84_spill] sm:$0xff] %v23075_v41  ;;  %v23101_v6 = vpop.f32.mrb[8].mxu0  ;;  %v18366_v23 = vpack.c.bf16 %v3833_v3, %v3710_v60  ;;  %v3715_v25 = vsel %vm3709_vm6, %v19983_v38, %v29912_v1  ;;  %v23126_v1 = vpop.permute.xlu0 %20031  ;;  %v30635_v30 = vld [vmem:[#allocation102_spill] sm:$0xff] }
 0x203   : > { %17219 = vmatmul.mubr.msk.f32.gmra.mrb[38].mxu0 %vm30592_vm8, %v30480_v49  ;;  %vm18333_vm12 = vmpackc.low %vm30595_vm9, %vm30594_vm0  ;;  %20451 = vrot.lane.b32.xlu1 %v21810_v28, %s21043_s19  ;;  %30612 = vst [vmem:[#allocation72_spill] sm:$0xff] %v23101_v6  ;;  %v23112_v40 = vpop.f32.mrb[9].mxu0  ;;  %v18375_v37 = vpack.c.bf16 %v3838_v4, %v3715_v25  ;;  %v3503_v3 = vrot.slane %v22932_v13, %v21513_v36 }
 0x204   : > { %vm18342_vm13 = vmpackc.low %vm30598_vm14, %vm30597_vm11  ;;  %3294 = vmatprep.mubr.f32.mxu0 %v30218_v22  ;;  %30615 = vst [vmem:[#allocation65_spill] sm:$0xff] %v23112_v40  ;;  %v30634_v40 = vld [vmem:[#allocation71_spill] sm:$0xff] }
 0x205   : > { %vm30601_vm15 = vmmov %vm30586_vm1 }
 0x206   : > { %17183 = vmatmul.mubr.msk.f32.vlgmr.msra.gmra.mrb[6].mxu1 %vm30601_vm15, %v30469_v15  ;;  %20416 = vrot.lane.b32.xlu0 %v21438_v9, %s21043_s19  ;;  %vm23086_vm2 = vmand %vm3469_vm4, %vm3473_vm5  ;;  %v23097_v9 = vpop.permute.xlu1 %20026  ;;  %v23181_v41 = vpop.permute.xlu0 %20041 }
 0x207   : > { %18334 = vmatpush1.bf16.msk.msra.mxu1 %vm18333_vm12, %v30604_v53  ;;  %17220 = vmatmul.mubr.msk.f32.gmra.mrb[40].mxu0 %vm30586_vm1, %v21253_v0  ;;  %vm30610_vm8 = vmmov %vm30586_vm1  ;;  %v23122_v60 = vsel %vm23086_vm2, 1, %v30563_v16  ;;  %v30623_v53 = vunpack.i.l.bf16 %v22882_v44 }
 0x208   : > { %18343 = vmatprep.subr.msk.bf16.mxu1 %vm18342_vm13, %v30606_v52  ;;  %2873 = vmatprep.mubr.f32.mxu1 %v30218_v22  ;;  %vm30611_vm0 = vmmov %vm30595_vm9  ;;  %v3523_v4 = vrot.slane %v23122_v60, %v30567_v8  ;;  %v23136_v52 = vpop.f32.mrb[10].mxu0 }
 0x209   : > { %18092 = vmatprep.mubr.msk.f32.mxu0 %vm30453_vm10, %v30218_v22  ;;  %vm18367_vm9 = vmpackc.low %vm30611_vm0, %vm23047_vm3  ;;  %20461 = vrot.lane.b32.xlu1 %v21920_v7, %s21043_s19  ;;  %30617 = vst [vmem:[#allocation44_spill] sm:$0xff] %v23136_v52  ;;  %v23141_v25 = vpop.f32.mrb[11].mxu0  ;;  %v3738_v43 = vsel %vm3709_vm6, %v19988_v56, %v30623_v53  ;;  %v29916_v52 = vunpack.i.h.bf16 %v22957_v24  ;;  %v3519_v53 = vrot.slane %v23122_v60, %v30588_v11 }
 0x20a   : > { %17184 = vmatmul.mubr.msk.f32.gmra.mrb[8].mxu1 %vm30610_vm8, %v30480_v49  ;;  %vm30613_vm12 = vmmov %vm30611_vm0  ;;  %20426 = vrot.lane.b32.xlu0 %v30500_v17, %s21043_s19  ;;  %30619 = vst [vmem:[#allocation91_spill] sm:$0xff] %v23141_v25  ;;  %v23150_v7 = vpop.permute.xlu1 %20036  ;;  %vm23159_vm8 = vcmp.eq.s32.totalorder %v3503_v3, 1  ;;  %v19998_v3 = vunpack.i.l.bf16 %v22957_v24 }
 0x20b   : > { %2879 = vmatprep.mubr.f32.mxu1 %v30218_v22  ;;  %vm18376_vm11 = vmpackc.low %vm30613_vm12, %vm23053_vm7 }
 0x20c   : > { %vm30614_vm14 = vmmov %vm30586_vm1  ;;  %v3719_v28 = vsel %vm3709_vm6, %v19998_v3, %v29916_v52 }
 0x20d   : > { %18093 = vmatmul.mubr.msk.f32.vlgmr.msra.gmra.mrb[42].mxu0 %vm30614_vm14, %v30469_v15  ;;  %vm30616_vm13 = vmmov %vm30586_vm1  ;;  %20471 = vrot.lane.b32.xlu1 %v21981_v59, %s21043_s19 }
 0x20e   : > { %18368 = vmatpush1.bf16.msk.msra.mxu0 %vm18367_vm9, %v18366_v23  ;;  %17185 = vmatmul.mubr.msk.f32.gmra.mrb[10].mxu1 %vm30616_vm13, %v21253_v0  ;;  %v19989_v23 = vunpack.i.h.bf16 %v22912_v26  ;;  %vm30618_vm3 = vmmov %vm30586_vm1  ;;  %v30624_v26 = vld [vmem:[#allocation99_spill] sm:$0xff]  ;;  %vm23165_vm9 = vcmp.eq.s32.totalorder %v3523_v4, 1  ;;  %v23215_v6 = vpop.permute.xlu1 %20046 }
 0x20f   : > { %18377 = vmatprep.subr.msk.bf16.mxu0 %vm18376_vm11, %v18375_v37  ;;  %18095 = vmatprep.mubr.msk.f32.mxu0 %vm30453_vm10, %v30218_v22  ;;  %v30620_v37 = vld [vmem:[#allocation70_spill] sm:$0xff]  ;;  %vm30622_vm7 = vmmov %vm30611_vm0  ;;  %vm30625_vm5 = vnez %v30624_v26  ;;  %v30633_v26 = vunpack.i.l.bf16 %v22941_v34 }
 0x210   : > { %3033 = vmatprep.mubr.f32.mxu1 %v30218_v22  ;;  %vm30621_vm15 = vnez %v30620_v37  ;;  %20436 = vrot.lane.b32.xlu0 %v30507_v21, %s21043_s19  ;;  %vm30626_vm1 = vmmov %vm30611_vm0  ;;  %v30632_v21 = vunpack.i.h.bf16 %v22941_v34  ;;  %v3714_v4 = vsel %vm3709_vm6, %v19989_v23, %v19983_v38  ;;  %v23196_v38 = vunpack.i.l.bf16 %v22859_v29 }
 0x211   : > { %18096 = vmatmul.mubr.msk.f32.gmra.mrb[44].mxu0 %vm30618_vm3, %v30480_v49  ;;  %vm18345_vm4 = vmpackc.low %vm30622_vm7, %vm30621_vm15  ;;  %20481 = vrot.lane.b32.xlu1 %v30522_v51, %s21045_s27  ;;  %v30646_v51 = vunpack.i.l.bf16 %v23150_v7 }
 0x212   : > { %vm18354_vm2 = vmpackc.low %vm30626_vm1, %vm30625_vm5  ;;  %18098 = vmatprep.mubr.msk.f32.mxu0 %vm30453_vm10, %v30218_v22  ;;  %v3743_v25 = vsel %vm3709_vm6, %v30633_v26, %v30632_v21  ;;  %v3837_v21 = vsel %vm23159_vm8, %v3738_v43, 0.0  ;;  %v23211_v43 = vld [vmem:[%s29741_s0 + $0x20] ss:$2 sm:$0xff]  ;;  %v23277_v52 = vpop.permute.xlu1 %20056 }
 0x213   : > { %vm30629_vm0 = vmmov %vm30618_vm3  ;;  %v3842_v59 = vsel %vm23165_vm9, %v3743_v25, 0.0  ;;  %30641 = vst [vmem:[#allocation85_spill] sm:$0xff] %v23211_v43  ;;  %v3466_v25 = vadd.s32 4294967295, %v23211_v43  ;;  %v18378_v37 = vpack.c.bf16 %v3837_v21, %v3714_v4  ;;  %v3737_v4 = vsel %vm3709_vm6, %v30646_v51, %v19988_v56 }
 0x214   : > { %17197 = vmatmul.mubr.msk.f32.vlgmr.msra.gmra.mrb[12].mxu1 %vm30629_vm0, %v30469_v15  ;;  %vm30636_vm12 = vmmov %vm30629_vm0  ;;  %20446 = vrot.lane.b32.xlu0 %v30518_v10, %s21043_s19  ;;  %v18387_v26 = vpack.c.bf16 %v3842_v59, %v3719_v28  ;;  %v29917_v21 = vunpack.i.l.bf16 %v22979_v35  ;;  %v23245_v28 = vunpack.i.h.bf16 %v22859_v29  ;;  %v3539_v59 = vrot.slane %v23122_v60, %v30590_v39 }
 0x215   : > { %18346 = vmatpush1.bf16.msk.msra.mxu1 %vm18345_vm4, %v30634_v40  ;;  %18099 = vmatmul.mubr.msk.f32.gmra.mrb[46].mxu0 %vm30636_vm12, %v21253_v0  ;;  %v3499_v40 = vrot.slane %v22932_v13, %v30397_v19  ;;  %vm30637_vm11 = vmmov %vm30629_vm0  ;;  %vm3474_vm12 = vcmp.lt.s32.totalorder %v3466_v25, 56 }
 0x216   : > { %18355 = vmatprep.subr.msk.bf16.mxu1 %vm18354_vm2, %v30635_v30  ;;  %3039 = vmatprep.mubr.f32.mxu1 %v30218_v22  ;;  %vm30638_vm14 = vmmov %vm30626_vm1  ;;  %v29919_v30 = vunpack.i.h.bf16 %v22995_v63 }
 0x217   : > { %4009 = vmatprep.mubr.f32.mxu0 %v30218_v22  ;;  %vm23204_vm13 = vmpackc.low %vm30638_vm14, %vm23159_vm8  ;;  %vm23230_vm4 = vcmp.eq.s32.totalorder %v3499_v40, 1  ;;  %v23247_v40 = vpop.permute.xlu0 %20051  ;;  %20491 = vrot.lane.b32.xlu1 %v30530_v61, %s21046_s28  ;;  %v30650_v61 = vld [vmem:[#allocation74_spill] sm:$0xff] }
 0x218   : > { %17198 = vmatmul.mubr.msk.f32.gmra.mrb[14].mxu1 %vm30637_vm11, %v30480_v49  ;;  %vm30642_vm3 = vmmov %vm30626_vm1  ;;  %20456 = vrot.lane.b32.xlu0 %v30525_v32, %s21043_s19  ;;  %v30648_v32 = vunpack.i.h.bf16 %v23150_v7  ;;  %v3836_v29 = vsel %vm23230_vm4, %v3737_v4, 0.0  ;;  %vm3470_vm1 = vcmp.ge.s32.totalorder %v3466_v25, 0  ;;  %vm30651_vm8 = vnez %v30650_v61 }
 0x219   : > { %3045 = vmatprep.mubr.f32.mxu1 %v30218_v22  ;;  %vm18388_vm15 = vmpackc.low %vm30642_vm3, %vm23165_vm9  ;;  %v29918_v4 = vunpack.i.h.bf16 %v23016_v42 }
 0x21a   : > { %vm30643_vm7 = vmmov %vm30629_vm0  ;;  %v3713_v56 = vsel %vm3709_vm6, %v30648_v32, %v19989_v23  ;;  %v30653_v23 = vunpack.i.l.bf16 %v22941_v34  ;;  %v30658_v32 = vld [vmem:[#allocation103_spill] sm:$0xff] }
 0x21b   : > { %17237 = vmatmul.mubr.msk.f32.vlgmr.msra.gmra.mrb[0].mxu0 %vm30643_vm7, %v23196_v38  ;;  %vm30647_vm5 = vmmov %vm30629_vm0 }
 0x21c   : > { %18380 = vmatpush1.bf16.msk.msra.mxu0 %vm23204_vm13, %v18378_v37  ;;  %17199 = vmatmul.mubr.msk.f32.gmra.mrb[16].mxu1 %vm30647_vm5, %v21253_v0  ;;  %v20004_v37 = vunpack.i.h.bf16 %v22979_v35  ;;  %vm30649_vm2 = vmmov %vm30629_vm0  ;;  %v3742_v51 = vsel %vm3709_vm6, %v29917_v21, %v30653_v23  ;;  %vm23285_vm13 = vcmp.eq.s32.totalorder %v3519_v53, 1  ;;  %v18369_v23 = vpack.c.bf16 %v3836_v29, %v3713_v56 }
 0x21d   : > { %18389 = vmatprep.subr.msk.bf16.mxu0 %vm18388_vm15, %v18387_v26  ;;  %4015 = vmatprep.mubr.f32.mxu0 %v30218_v22  ;;  %v29920_v26 = vunpack.i.l.bf16 %v22995_v63  ;;  %vm30652_vm0 = vmmov %vm30642_vm3  ;;  %v3495_v21 = vrot.slane %v22932_v13, %v30398_v18  ;;  %vm23296_vm15 = vcmp.eq.s32.totalorder %v3539_v59, 1  ;;  %v3515_v53 = vrot.slane %v22932_v13, %v21496_v46 }
 0x21e   : > { %3199 = vmatprep.mubr.f32.mxu1 %v30218_v22  ;;  %vm18357_vm9 = vmpackc.low %vm30652_vm0, %vm30651_vm8  ;;  %20466 = vrot.lane.b32.xlu0 %v30533_v62, %s21043_s19  ;;  %v30659_v62 = vld [vmem:[#allocation18_spill] sm:$0xff]  ;;  %v3718_v56 = vsel %vm3709_vm6, %v20004_v37, %v19998_v3  ;;  %v20058_v29 = vunpack.i.l.bf16 %v23277_v52  ;;  %v3841_v59 = vsel %vm23285_vm13, %v3742_v51, 0.0  ;;  %v30663_v3 = vunpack.i.l.bf16 %v23016_v42 }
 0x21f   : > { %17238 = vmatmul.mubr.msk.f32.gmra.mrb[2].mxu0 %vm30649_vm2, %v23245_v28  ;;  %vm30654_vm11 = vmmov %vm30652_vm0  ;;  %20501 = vrot.lane.b32.xlu1 %v30659_v62, %s21045_s27  ;;  %v3747_v25 = vsel %vm3709_vm6, %v29920_v26, %v29919_v30  ;;  %vm23333_vm8 = vcmp.eq.s32.totalorder %v3495_v21, 1  ;;  %v30668_v62 = vunpack.i.l.bf16 %v23150_v7  ;;  %v20059_v30 = vunpack.i.h.bf16 %v23277_v52  ;;  %v23346_v26 = vpop.permute.xlu1 %20066 }
 0x220   : > { %4021 = vmatprep.mubr.f32.mxu0 %v30218_v22  ;;  %vm18370_vm14 = vmpackc.low %vm30654_vm11, %vm23230_vm4  ;;  %v18390_v21 = vpack.c.bf16 %v3841_v59, %v3718_v56  ;;  %v3846_v61 = vsel %vm23296_vm15, %v3747_v25, 0.0  ;;  %vm23358_vm11 = vcmp.eq.s32.totalorder %v3515_v53, 1  ;;  %v30674_v59 = vunpack.i.h.bf16 %v23150_v7  ;;  %v30678_v7 = vld [vmem:[#allocation21_spill] sm:$0xff] }
 0x221   : > { %vm30657_vm3 = vmmov %vm30649_vm2  ;;  %v30675_v53 = vunpack.i.h.bf16 %v22830_v54  ;;  %v30677_v54 = vld [vmem:[#allocation22_spill] sm:$0xff]  ;;  %v3511_v51 = vrot.slane %v22932_v13, %v30361_v20 }
 0x222   : > { %17211 = vmatmul.mubr.msk.f32.vlgmr.msra.gmra.mrb[18].mxu1 %vm30657_vm3, %v30469_v15  ;;  %vm3478_vm7 = vmand %vm3470_vm1, %vm3474_vm12  ;;  %20476 = vrot.lane.b32.xlu0 %v30546_v5, %s21045_s27 }
 0x223   : > { %18358 = vmatpush1.bf16.msk.msra.mxu1 %vm18357_vm9, %v30658_v32  ;;  %v23308_v32 = vpop.permute.xlu0 %20061  ;;  %vm30662_vm4 = vmmov %vm30649_vm2  ;;  %3205 = vmatprep.mubr.f32.mxu1 %v30218_v22  ;;  %v23338_v5 = vsel %vm3478_vm7, 1, %v30563_v16  ;;  %v3712_v25 = vsel %vm3709_vm6, %v30675_v53, %v30674_v59  ;;  %v3535_v59 = vrot.slane %v23122_v60, %v21513_v36  ;;  %v30682_v53 = vld [vmem:[#allocation24_spill] sm:$0xff] }
 0x224   : > { %18371 = vmatprep.subr.msk.bf16.mxu1 %vm18370_vm14, %v18369_v23  ;;  %17239 = vmatmul.mubr.msk.f32.gmra.mrb[4].mxu0 %vm30662_vm4, %v22926_v31  ;;  %v3723_v23 = vsel %vm3709_vm6, %v30663_v3, %v29918_v4  ;;  %vm30664_vm5 = vmmov %vm30649_vm2  ;;  %v30669_v3 = vunpack.i.h.bf16 %v22813_v27  ;;  %v3555_v43 = vrot.slane %v23338_v5, %v30567_v8 }
 0x225   : > { %4175 = vmatprep.mubr.f32.mxu0 %v30218_v22  ;;  %vm30665_vm1 = vmmov %vm30652_vm0  ;;  %20511 = vrot.lane.b32.xlu1 %v21283_v12, %s21045_s27  ;;  %v18399_v27 = vpack.c.bf16 %v3846_v61, %v3723_v23  ;;  %v30673_v12 = vunpack.i.l.bf16 %v22979_v35  ;;  %v20024_v23 = vunpack.i.h.bf16 %v23070_v57  ;;  %v20023_v35 = vunpack.i.l.bf16 %v23070_v57 }
 0x226   : > { %17212 = vmatmul.mubr.msk.f32.gmra.mrb[20].mxu1 %vm30664_vm5, %v30480_v49  ;;  %vm18391_vm2 = vmpackc.low %vm30665_vm1, %vm23285_vm13  ;;  %v3736_v4 = vsel %vm3709_vm6, %v30669_v3, %v30668_v62  ;;  %20486 = vrot.lane.b32.xlu0 %v30551_v2, %s21045_s27  ;;  %v30679_v61 = vpack.i.bf16 %v30677_v54, %v30678_v7  ;;  %v20019_v54 = vunpack.i.h.bf16 %v23039_v58  ;;  %vm23420_vm1 = vcmp.eq.s32.totalorder %v3555_v43, 1 }
 0x227   : > { %3211 = vmatprep.mubr.f32.mxu1 %v30218_v22  ;;  %vm18400_vm9 = vmpackc.low %vm30652_vm0, %vm23296_vm15  ;;  %v3741_v56 = vsel %vm3709_vm6, %v20058_v29, %v30673_v12  ;;  %v23378_v3 = vpop.permute.xlu0 %20071  ;;  %v3835_v2 = vsel %vm23333_vm8, %v3736_v4, 0.0  ;;  %v3717_v12 = vsel %vm3709_vm6, %v20059_v30, %v20004_v37  ;;  %v23403_v4 = vpop.permute.xlu1 %20076  ;;  %v3751_v62 = vsel %vm3709_vm6, %v20023_v35, %v20024_v23 }
 0x228   : > { %vm30670_vm12 = vmmov %vm30657_vm3  ;;  %v18372_v37 = vpack.c.bf16 %v3835_v2, %v3712_v25  ;;  %v30688_v2 = vunpack.i.l.bf16 %v22995_v63  ;;  %v30691_v43 = vunpack.i.l.bf16 %v23016_v42  ;;  %v3551_v25 = vrot.slane %v23338_v5, %v30588_v11 }
 0x229   : > { %17251 = vmatmul.mubr.msk.f32.vlgmr.msra.gmra.mrb[12].mxu0 %vm30670_vm12, %v23196_v38  ;;  %vm30676_vm14 = vmmov %vm30657_vm3  ;;  %20516 = vrot.lane.b32.xlu1 %v30679_v61, %s21045_s27  ;;  %v20028_v61 = vunpack.i.l.bf16 %v23097_v9 }
 0x22a   : > { %18392 = vmatpush1.bf16.msk.msra.mxu0 %vm18391_vm2, %v18390_v21  ;;  %17213 = vmatmul.mubr.msk.f32.gmra.mrb[22].mxu1 %vm30676_vm14, %v21253_v0  ;;  %v20018_v21 = vunpack.i.l.bf16 %v23039_v58  ;;  %vm30680_vm13 = vmmov %vm30657_vm3  ;;  %v20029_v58 = vunpack.i.h.bf16 %v23097_v9  ;;  %vm23436_vm2 = vcmp.eq.s32.totalorder %v3535_v59, 1  ;;  %v3850_v59 = vsel %vm23420_vm1, %v3751_v62, 0.0 }
 0x22b   : > { %18401 = vmatprep.subr.msk.bf16.mxu0 %vm18400_vm9, %v18399_v27  ;;  %4181 = vmatprep.mubr.f32.mxu0 %v30218_v22  ;;  %v3840_v27 = vsel %vm23358_vm11, %v3741_v56, 0.0  ;;  %vm30681_vm3 = vmmov %vm30652_vm0  ;;  %v23475_v62 = vpop.permute.xlu1 %20086 }
 0x22c   : > { %3365 = vmatprep.mubr.f32.mxu1 %v30218_v22  ;;  %vm18373_vm15 = vmpackc.low %vm30681_vm3, %vm23333_vm8  ;;  %20496 = vrot.lane.b32.xlu0 %v30682_v53, %s21045_s27  ;;  %v18381_v7 = vpack.c.bf16 %v3840_v27, %v3717_v12  ;;  %v3746_v13 = vsel %vm3709_vm6, %v20018_v21, %v30688_v2  ;;  %v3722_v12 = vsel %vm3709_vm6, %v20019_v54, %v30691_v43  ;;  %v20068_v27 = vunpack.i.l.bf16 %v23346_v26  ;;  %v23444_v53 = vpop.permute.xlu0 %20081  ;;  %v30698_v2 = vld [vmem:[#allocation32_spill] sm:$0xff] }
 0x22d   : > { %17252 = vmatmul.mubr.msk.f32.gmra.mrb[14].mxu0 %vm30680_vm13, %v23245_v28  ;;  %vm30683_vm7 = vmmov %vm30652_vm0  ;;  %20526 = vrot.lane.b32.xlu1 %v21335_v50, %s21045_s27  ;;  %v3531_v50 = vrot.slane %v23122_v60, %v30397_v19 }
 0x22e   : > { %4187 = vmatprep.mubr.f32.mxu0 %v30218_v22  ;;  %vm23411_vm4 = vmpackc.low %vm30683_vm7, %vm23358_vm11  ;;  %17225 = vmatmul.mubr.msk.f32.vlgmr.msra.gmra.mrb[24].mxu1 %vm30664_vm5, %v30469_v15  ;;  %vm23465_vm11 = vcmp.eq.s32.totalorder %v3511_v51, 1 }
 0x22f   : > { %18374 = vmatpush1.bf16.msk.msra.mxu1 %vm18373_vm15, %v18372_v37  ;;  %vm30692_vm8 = vmmov %vm30664_vm5  ;;  %3371 = vmatprep.mubr.f32.mxu1 %v30218_v22  ;;  %v3845_v37 = vsel %vm23436_vm2, %v3746_v13, 0.0  ;;  %v30699_v13 = vld [vmem:[#allocation31_spill] sm:$0xff]  ;;  %vm23492_vm15 = vcmp.eq.s32.totalorder %v3531_v50, 1  ;;  %v30705_v50 = vunpack.i.h.bf16 %v22899_v33 }
 0x230   : > { %18383 = vmatprep.subr.msk.bf16.mxu1 %vm23411_vm4, %v18381_v7  ;;  %20506 = vrot.lane.b32.xlu0 %v30538_v55, %s21045_s27  ;;  %vm30693_vm0 = vmmov %vm30664_vm5  ;;  %v30697_v55 = vunpack.i.h.bf16 %v22882_v44  ;;  %v30700_v15 = vpack.i.bf16 %v30698_v2, %v30699_v13  ;;  %v18402_v43 = vpack.c.bf16 %v3845_v37, %v3722_v12  ;;  %v3727_v44 = vsel %vm3709_vm6, %v20028_v61, %v20029_v58  ;;  %v23513_v13 = vpop.permute.xlu0 %20091 }
 0x231   : > { %17253 = vmatmul.mubr.msk.f32.gmra.mrb[16].mxu0 %vm30692_vm8, %v22926_v31  ;;  %vm30694_vm9 = vmmov %vm30681_vm3  ;;  %v3745_v12 = vsel %vm3709_vm6, %v20068_v27, %v20018_v21  ;;  %v20033_v37 = vunpack.i.l.bf16 %v23126_v1  ;;  %v20044_v21 = vunpack.i.h.bf16 %v23181_v41  ;;  %v20043_v2 = vunpack.i.l.bf16 %v23181_v41 }
 0x232   : > { %17226 = vmatmul.mubr.msk.f32.gmra.mrb[26].mxu1 %vm30693_vm0, %v30480_v49  ;;  %4341 = vmatprep.mubr.f32.mxu0 %v30218_v22  ;;  %vm18403_vm12 = vmpackc.low %vm30694_vm9, %vm23436_vm2  ;;  %v3740_v7 = vsel %vm3709_vm6, %v30697_v55, %v20058_v29  ;;  %v20069_v49 = vunpack.i.h.bf16 %v23346_v26  ;;  %v18411_v29 = vpack.c.bf16 %v3850_v59, %v3727_v44  ;;  %v3571_v59 = vrot.slane %v23338_v5, %v30590_v39  ;;  %v30737_v26 = vld [vmem:[#allocation83_spill] sm:$0xff] }
 0x233   : > { %20536 = vrot.lane.b32.xlu1 %v30700_v15, %s21045_s27  ;;  %3377 = vmatprep.mubr.f32.mxu1 %v30218_v22  ;;  %vm30701_vm14 = vmmov %vm30681_vm3  ;;  %v3716_v55 = vsel %vm3709_vm6, %v30705_v50, %v20059_v30  ;;  %v3839_v15 = vsel %vm23465_vm11, %v3740_v7, 0.0  ;;  %v3844_v52 = vsel %vm23492_vm15, %v3745_v12, 0.0  ;;  %v20034_v30 = vunpack.i.h.bf16 %v23126_v1  ;;  %v30710_v7 = vld [vmem:[#allocation19_spill] sm:$0xff] }
 0x234   : > { %vm18412_vm13 = vmpackc.low %vm30701_vm14, %vm23420_vm1  ;;  %10386 = vrot.lane.b32.xlu0 %v21253_v0, %s21046_s28  ;;  %v3721_v33 = vsel %vm3709_vm6, %v20069_v49, %v20019_v54  ;;  %v30709_v54 = vld [vmem:[#allocation20_spill] sm:$0xff]  ;;  %v18384_v44 = vpack.c.bf16 %v3839_v15, %v3716_v55  ;;  %v3755_v51 = vsel %vm3709_vm6, %v20043_v2, %v20044_v21  ;;  %v3527_v12 = vrot.slane %v23122_v60, %v30398_v18 }
 0x235   : > { %vm30702_vm3 = vmmov %vm30693_vm0  ;;  %v20048_v50 = vunpack.i.l.bf16 %v23215_v6  ;;  %v30718_v55 = vld [vmem:[#allocation36_spill] sm:$0xff] }
 0x236   : > { %17265 = vmatmul.mubr.msk.f32.vlgmr.msra.gmra.mrb[18].mxu0 %vm30702_vm3, %v23196_v38  ;;  %vm30706_vm7 = vmmov %vm30693_vm0 }
 0x237   : > { %18404 = vmatpush1.bf16.msk.msra.mxu0 %vm18403_vm12, %v18402_v43  ;;  %17227 = vmatmul.mubr.msk.f32.gmra.mrb[28].mxu1 %vm30706_vm7, %v21253_v0  ;;  %vm30707_vm4 = vmmov %vm30693_vm0  ;;  %v3750_v0 = vsel %vm3709_vm6, %v20033_v37, %v20023_v35  ;;  %v30711_v43 = vpack.i.bf16 %v30709_v54, %v30710_v7  ;;  %vm23549_vm0 = vcmp.eq.s32.totalorder %v3551_v25, 1  ;;  %v18393_v35 = vpack.c.bf16 %v3844_v52, %v3721_v33  ;;  %v23576_v54 = vpop.permute.xlu0 %20101 }
 0x238   : > { %18413 = vmatprep.subr.msk.bf16.mxu0 %vm18412_vm13, %v18411_v29  ;;  %4347 = vmatprep.mubr.f32.mxu0 %v30218_v22  ;;  %vm30708_vm5 = vmmov %vm30694_vm9  ;;  %vm23555_vm12 = vcmp.eq.s32.totalorder %v3571_v59, 1  ;;  %v20049_v25 = vunpack.i.h.bf16 %v23215_v6  ;;  %v30719_v59 = vld [vmem:[#allocation35_spill] sm:$0xff]  ;;  %v3726_v33 = vsel %vm3709_vm6, %v20034_v30, %v20028_v61  ;;  %v20093_v52 = vunpack.i.l.bf16 %v23513_v13  ;;  %v30731_v29 = vld [vmem:[#allocation30_spill] sm:$0xff] }
 0x239   : > { %20546 = vrot.lane.b32.xlu1 %v21399_v45, %s21045_s27  ;;  %4092 = vmatprep.mubr.f32.mxu1 %v30218_v22  ;;  %vm18385_vm1 = vmpackc.low %vm30708_vm5, %vm23465_vm11  ;;  %v23539_v45 = vpop.permute.xlu1 %20096  ;;  %v30720_v15 = vpack.i.bf16 %v30718_v55, %v30719_v59  ;;  %v3849_v7 = vsel %vm23549_vm0, %v3750_v0, 0.0  ;;  %v3854_v61 = vsel %vm23555_vm12, %v3755_v51, 0.0  ;;  %v30726_v0 = vunpack.i.h.bf16 %v22941_v34 }
 0x23a   : > { %17266 = vmatmul.mubr.msk.f32.gmra.mrb[20].mxu0 %vm30707_vm4, %v23245_v28  ;;  %20521 = vrot.lane.b32.xlu0 %v30711_v43, %s21045_s27  ;;  %vm30712_vm2 = vmmov %vm30708_vm5  ;;  %v3547_v43 = vrot.slane %v23122_v60, %v21496_v46  ;;  %v20094_v59 = vunpack.i.h.bf16 %v23513_v13  ;;  %v18414_v56 = vpack.c.bf16 %v3849_v7, %v3726_v33  ;;  %v30732_v33 = vld [vmem:[#allocation29_spill] sm:$0xff] }
 0x23b   : > { %4353 = vmatprep.mubr.f32.mxu0 %v30218_v22  ;;  %vm18394_vm8 = vmpackc.low %vm30712_vm2, %vm23492_vm15  ;;  %vm23601_vm15 = vcmp.eq.s32.totalorder %v3527_v12, 1  ;;  %v3744_v51 = vsel %vm3709_vm6, %v30726_v0, %v20068_v27  ;;  %v3731_v12 = vsel %vm3709_vm6, %v20048_v50, %v20049_v25  ;;  %v30733_v7 = vpack.i.bf16 %v30731_v29, %v30732_v33  ;;  %v23647_v0 = vpop.permute.xlu0 %5490  ;;  %v30748_v33 = vld [vmem:[#allocation33_spill] sm:$0xff] }
 0x23c   : > { %vm30715_vm9 = vmmov %vm30702_vm3  ;;  %v18423_v34 = vpack.c.bf16 %v3854_v61, %v3731_v12  ;;  %v30734_v61 = vunpack.i.h.bf16 %v22957_v24  ;;  %v3725_v24 = vsel %vm3709_vm6, %v20094_v59, %v20034_v30  ;;  %v3543_v27 = vrot.slane %v23122_v60, %v30361_v20 }
 0x23d   : > { %17244 = vmatmul.mubr.msk.f32.vlgmr.msra.gmra.mrb[30].mxu1 %vm30715_vm9, %v23196_v38  ;;  %20556 = vrot.lane.b32.xlu1 %v30720_v15, %s21045_s27  ;;  %vm30721_vm11 = vmmov %vm30702_vm3  ;;  %v23610_v55 = vpop.permute.xlu1 %20106  ;;  %v20053_v15 = vunpack.i.l.bf16 %v23247_v40  ;;  %v3563_v60 = vrot.slane %v23338_v5, %v30397_v19 }
 0x23e   : > { %18386 = vmatpush1.bf16.msk.msra.mxu1 %vm18385_vm1, %v18384_v44  ;;  %17267 = vmatmul.mubr.msk.f32.gmra.mrb[22].mxu0 %vm30721_vm11, %v22926_v31  ;;  %v23592_v44 = vld [vmem:[%s29741_s0 + $0x30] ss:$2 sm:$0x1]  ;;  %vm30722_vm14 = vmmov %vm30702_vm3  ;;  %vm23626_vm1 = vcmp.eq.s32.totalorder %v3547_v43, 1  ;;  %v3567_v43 = vrot.slane %v23338_v5, %v21513_v36  ;;  %v3720_v1 = vsel %vm3709_vm6, %v30734_v61, %v20069_v49 }
 0x23f   : > { %18395 = vmatprep.subr.msk.bf16.mxu1 %vm18394_vm8, %v18393_v35  ;;  %20531 = vrot.lane.b32.xlu0 %v21331_v48, %s21045_s27  ;;  %v3467_v35 = vadd.s32 4294967295, %v23592_v44  ;;  %vm30723_vm13 = vmmov %vm30712_vm2  ;;  %v3754_v30 = vsel %vm3709_vm6, %v20053_v15, %v20043_v2  ;;  %v23705_v29 = vpop.permute.xlu0 %20116  ;;  %v30761_v48 = vld [vmem:[#allocation40_spill] sm:$0xff] }
 0x240   : > { %4098 = vmatprep.mubr.f32.mxu1 %v30218_v22  ;;  %4507 = vmatprep.mubr.f32.mxu0 %v30218_v22  ;;  %vm18415_vm3 = vmpackc.low %vm30723_vm13, %vm23549_vm0  ;;  %vm5100_vm13 = vcmp.lt.s32.totalorder %v22879_v47, 56 }
 0x241   : > { %17245 = vmatmul.mubr.msk.f32.gmra.mrb[32].mxu1 %vm30722_vm14, %v23245_v28  ;;  %20566 = vrot.lane.b32.xlu1 %v30500_v17, %s21045_s27  ;;  %vm30727_vm7 = vmmov %vm30712_vm2  ;;  %v3749_v17 = vsel %vm3709_vm6, %v20093_v52, %v20033_v37  ;;  %v3843_v37 = vsel %vm23601_vm15, %v3744_v51, 0.0  ;;  %vm3471_vm8 = vcmp.ge.s32.totalorder %v3467_v35, 0  ;;  %vm3475_vm0 = vcmp.lt.s32.totalorder %v3467_v35, 56  ;;  %v23675_v51 = vpop.permute.xlu1 %20111 }
 0x242   : > { %4104 = vmatprep.mubr.f32.mxu1 %v30218_v22  ;;  %vm18424_vm4 = vmpackc.low %vm30727_vm7, %vm23555_vm12  ;;  %v3848_v49 = vsel %vm23626_vm1, %v3749_v17, 0.0  ;;  %vm5096_vm14 = vcmp.ge.s32.totalorder %v22879_v47, 0  ;;  %v20113_v17 = vunpack.i.l.bf16 %v23675_v51  ;;  %v30747_v47 = vld [vmem:[#allocation34_spill] sm:$0xff]  ;;  %v20114_v61 = vunpack.i.h.bf16 %v23675_v51 }
 0x243   : > { %vm30728_vm5 = vmmov %vm30715_vm9  ;;  %20541 = vrot.lane.b32.xlu0 %v30733_v7, %s21045_s27  ;;  %v30749_v7 = vpack.i.bf16 %v30747_v47, %v30748_v33  ;;  %v20063_v47 = vunpack.i.l.bf16 %v23308_v32 }
 0x244   : > { %17279 = vmatmul.mubr.msk.f32.vlgmr.msra.gmra.mrb[24].mxu0 %vm30728_vm5, %v23196_v38  ;;  %vm30735_vm2 = vmmov %vm30728_vm5 }
 0x245   : > { %18416 = vmatpush1.bf16.msk.msra.mxu0 %vm18415_vm3, %v18414_v56  ;;  %17246 = vmatmul.mubr.msk.f32.gmra.mrb[34].mxu1 %vm30735_vm2, %v22926_v31  ;;  %v30736_v56 = vld [vmem:[#allocation79_spill] sm:$0xff]  ;;  %vm30739_vm9 = vmmov %vm30735_vm2 }
 0x246   : > { %18425 = vmatprep.subr.msk.bf16.mxu0 %vm18424_vm4, %v18423_v34  ;;  %4513 = vmatprep.mubr.f32.mxu0 %v30218_v22  ;;  %v30738_v12 = vpack.i.bf16 %v30736_v56, %v30737_v26  ;;  %v20054_v34 = vunpack.i.h.bf16 %v23247_v40  ;;  %vm30740_vm12 = vmmov %vm30727_vm7  ;;  %v18396_v40 = vpack.c.bf16 %v3843_v37, %v3720_v1  ;;  %v30752_v1 = vunpack.i.h.bf16 %v22995_v63  ;;  %v23736_v56 = vpop.permute.xlu1 %20121  ;;  %v30753_v26 = vld [vmem:[#allocation89_spill] sm:$0xff] }
 0x247   : > { %4258 = vmatprep.mubr.f32.mxu1 %v30218_v22  ;;  %vm18397_vm11 = vmpackc.low %vm30740_vm12, %vm23601_vm15  ;;  %20551 = vrot.lane.b32.xlu0 %v30348_v14, %s21045_s27  ;;  %v18405_v14 = vpack.c.bf16 %v3848_v49, %v3725_v24  ;;  %vm23743_vm12 = vcmp.eq.s32.totalorder %v3543_v27, 1  ;;  %v20073_v27 = vunpack.i.l.bf16 %v23378_v3  ;;  %v20079_v63 = vunpack.i.h.bf16 %v23403_v4 }
 0x248   : > { %20576 = vrot.lane.b32.xlu1 %v30738_v12, %s21045_s27  ;;  %17280 = vmatmul.mubr.msk.f32.gmra.mrb[26].mxu0 %vm30739_vm9, %v23245_v28  ;;  %vm30741_vm3 = vmmov %vm30727_vm7  ;;  %vm23683_vm7 = vcmp.eq.s32.totalorder %v3567_v43, 1  ;;  %v3730_v35 = vsel %vm3709_vm6, %v20054_v34, %v20048_v50  ;;  %v3748_v37 = vsel %vm3709_vm6, %v30752_v1, %v20093_v52  ;;  %v30754_v12 = vld [vmem:[#allocation87_spill] sm:$0xff]  ;;  %v3753_v52 = vsel %vm3709_vm6, %v20113_v17, %v20053_v15  ;;  %v23768_v15 = vpop.permute.xlu0 %20126  ;;  %v30772_v1 = vld [vmem:[#allocation82_spill] sm:$0xff] }
 0x249   : > { %4519 = vmatprep.mubr.f32.mxu0 %v30218_v22  ;;  %vm18406_vm15 = vmpackc.low %vm30741_vm3, %vm23626_vm1  ;;  %v30755_v24 = vpack.i.bf16 %v30753_v26, %v30754_v12  ;;  %v3729_v13 = vsel %vm3709_vm6, %v20114_v61, %v20054_v34 }
 0x24a   : > { %vm23689_vm4 = vmand %vm3471_vm8, %vm3475_vm0  ;;  %v23796_v34 = vpop.permute.xlu1 %20131 }
 0x24b   : > { %vm30746_vm5 = vmmov %vm30735_vm2  ;;  %20561 = vrot.lane.b32.xlu0 %v30749_v7, %s21045_s27  ;;  %v3483_v50 = vsel %vm23689_vm4, 1, %v30563_v16 }
 0x24c   : > { %17258 = vmatmul.mubr.msk.f32.vlgmr.msra.gmra.mrb[0].mxu1 %vm30746_vm5, %v23196_v38  ;;  %20586 = vrot.lane.b32.xlu1 %v30518_v10, %s21045_s27  ;;  %vm5104_vm1 = vmand %vm5096_vm14, %vm5100_vm13  ;;  %v3853_v10 = vsel %vm23683_vm7, %v3754_v30, 0.0  ;;  %vm23749_vm14 = vcmp.eq.s32.totalorder %v3563_v60, 1  ;;  %v3847_v60 = vsel %vm23743_vm12, %v3748_v37, 0.0  ;;  %vm5337_vm5 = vcmask 1022976  }
 0x24d   : > { %18398 = vmatpush1.bf16.msk.msra.mxu1 %vm18397_vm11, %v18396_v40  ;;  %17281 = vmatmul.mubr.msk.f32.gmra.mrb[28].mxu0 %vm30735_vm2, %v22926_v31  ;;  %vm30750_vm8 = vmmov %vm30735_vm2  ;;  %v23728_v43 = vsel %vm5104_vm1, 1, %v30563_v16  ;;  %v18426_v49 = vpack.c.bf16 %v3853_v10, %v3730_v35  ;;  %v3583_v40 = vrot.slane %v3483_v50, %v30588_v11  ;;  %v30762_v35 = vunpack.i.h.bf16 %v23016_v42  ;;  %v30771_v50 = vld [vmem:[#allocation78_spill] sm:$0xff] }
 0x24e   : > { %18407 = vmatprep.subr.msk.bf16.mxu1 %vm18406_vm15, %v18405_v14  ;;  %4264 = vmatprep.mubr.f32.mxu1 %v30218_v22  ;;  %vm30751_vm0 = vmmov %vm30741_vm3  ;;  %v5119_v2 = vrot.slane %v23728_v43, %v30567_v8  ;;  %v20074_v14 = vunpack.i.h.bf16 %v23378_v3  ;;  %v3852_v42 = vsel %vm23749_vm14, %v3753_v52, 0.0  ;;  %v30773_v37 = vpack.i.bf16 %v30771_v50, %v30772_v1 }
 0x24f   : > { %4673 = vmatprep.mubr.f32.mxu0 %v30218_v22  ;;  %vm18427_vm9 = vmpackc.low %vm30751_vm0, %vm23683_vm7  ;;  %20571 = vrot.lane.b32.xlu0 %v30761_v48, %s21045_s27  ;;  %v3724_v10 = vsel %vm3709_vm6, %v30762_v35, %v20094_v59  ;;  %v30764_v59 = vmov 0.0|0.0   ;;  %vm23792_vm4 = vcmp.eq.s32.totalorder %v3583_v40, 1  ;;  %v18417_v12 = vpack.c.bf16 %v3852_v42, %v3729_v13  ;;  %v23828_v35 = vpop.permute.xlu0 %20136 }
 0x250   : > { %17259 = vmatmul.mubr.msk.f32.gmra.mrb[2].mxu1 %vm30750_vm8, %v23245_v28  ;;  %20596 = vrot.lane.b32.xlu1 %v30755_v24, %s21045_s27  ;;  %vm30758_vm11 = vmmov %vm30735_vm2  ;;  %v18408_v26 = vpack.c.bf16 %v3847_v60, %v3724_v10  ;;  %v3559_v30 = vrot.slane %v23338_v5, %v30398_v18  ;;  %v20078_v52 = vunpack.i.l.bf16 %v23403_v4  ;;  %v20064_v40 = vunpack.i.h.bf16 %v23308_v32  ;;  %v30779_v32 = vld [vmem:[#allocation76_spill] sm:$0xff] }
 0x251   : > { %4270 = vmatprep.mubr.f32.mxu1 %v30218_v22  ;;  %17293 = vmatmul.mubr.msk.f32.vlgmr.msra.gmra.mrb[30].mxu0 %vm30758_vm11, %v23196_v38  ;;  %vm30763_vm13 = vmmov %vm30735_vm2  ;;  %v3857_v48 = vsel %vm23792_vm4, %v20063_v47, 0.0  ;;  %v3579_v10 = vrot.slane %v23338_v5, %v21496_v46  ;;  %v5115_v42 = vrot.slane %v23728_v43, %v30588_v11  ;;  %v3752_v50 = vsel %vm3709_vm6, %v20024_v23, %v20113_v17  ;;  %v30789_v24 = vld [vmem:[#allocation88_spill] sm:$0xff] }
 0x252   : > { %18428 = vmatpush1.bf16.msk.msra.mxu0 %vm18427_vm9, %v18426_v49  ;;  %4679 = vmatprep.mubr.f32.mxu0 %v30218_v22  ;;  %vm30765_vm3 = vmmov %vm30735_vm2  ;;  %v5363_v49 = vsel %vm5337_vm5, %v20073_v27, %v20074_v14  ;;  %v18436_v33 = vpack.c.bf16 %v3857_v48, %v20064_v40  ;;  %v20134_v1 = vunpack.i.h.bf16 %v23796_v34  ;;  %v5339_v7 = vsel %vm5337_vm5, %v20078_v52, %v20079_v63 }
 0x253   : > { %18435 = vmatprep.subr.bf16.mxu0 %v30764_v59  ;;  %vm30766_vm15 = vmmov %vm30751_vm0  ;;  %20581 = vrot.lane.b32.xlu0 %v30773_v37, %s21045_s27  ;;  %v23856_v37 = vpop.permute.xlu1 %20141  ;;  %v23886_v48 = vpop.permute.xlu0 %20146 }
 0x254   : > { %17260 = vmatmul.mubr.msk.f32.gmra.mrb[4].mxu1 %vm30763_vm13, %v22926_v31  ;;  %vm23788_vm7 = vmpackc.low %vm30766_vm15, %vm23743_vm12  ;;  %vm23844_vm13 = vcmp.eq.s32.totalorder %v3559_v30, 1  ;;  %v3728_v30 = vsel %vm3709_vm6, %v20029_v58, %v20114_v61  ;;  %v3733_v9 = vsel %vm3709_vm6, %v20134_v1, %v20064_v40  ;;  %v30794_v61 = vld [vmem:[#allocation25_spill] sm:$0xff] }
 0x255   : > { %4424 = vmatprep.mubr.f32.mxu1 %v30218_v22  ;;  %17294 = vmatmul.mubr.msk.f32.gmra.mrb[32].mxu0 %vm30765_vm3, %v23245_v28  ;;  %vm30774_vm1 = vmmov %vm30751_vm0  ;;  %vm23808_vm0 = vcmp.eq.s32.totalorder %v5119_v2, 1  ;;  %v20133_v2 = vunpack.i.l.bf16 %v23796_v34  ;;  %v5131_v34 = vrot.slane %v23728_v43, %v21513_v36 }
 0x256   : > { %4685 = vmatprep.mubr.f32.mxu0 %v30218_v22  ;;  %vm18418_vm2 = vmpackc.low %vm30774_vm1, %vm23749_vm14  ;;  %v5462_v60 = vsel %vm23808_vm0, %v5363_v49, 0.0 }
 0x257   : > { %vm30775_vm8 = vmmov %vm30765_vm3  ;;  %20591 = vrot.lane.b32.xlu0 %v30779_v32, %s21045_s27  ;;  %v18439_v57 = vpack.c.bf16 %v5462_v60, %v5339_v7  ;;  %v3757_v17 = vsel %vm3709_vm6, %v20133_v2, %v20063_v47  ;;  %v3851_v47 = vsel %vm23844_vm13, %v3752_v50, 0.0  ;;  %v20099_v32 = vunpack.i.h.bf16 %v23539_v45  ;;  %v23920_v7 = vpop.permute.xlu1 %20151 }
 0x258   : > { %17272 = vmatmul.mubr.msk.f32.vlgmr.msra.gmra.mrb[6].mxu1 %vm30775_vm8, %v23196_v38  ;;  %vm30778_vm9 = vmmov %vm30765_vm3  ;;  %v20098_v60 = vunpack.i.l.bf16 %v23539_v45  ;;  %v20103_v50 = vunpack.i.l.bf16 %v23576_v54 }
 0x259   : > { %18410 = vmatpush1.bf16.msk.msra.mxu1 %vm23788_vm7, %v18408_v26  ;;  %4430 = vmatprep.mubr.f32.mxu1 %v30218_v22  ;;  %vm30780_vm12 = vmmov %vm30765_vm3  ;;  %v20083_v26 = vunpack.i.l.bf16 %v23444_v53 }
 0x25a   : > { %18419 = vmatprep.subr.msk.bf16.mxu1 %vm18418_vm2, %v18417_v12  ;;  %17295 = vmatmul.mubr.msk.f32.gmra.mrb[34].mxu0 %vm30778_vm9, %v22926_v31  ;;  %vm30781_vm11 = vmmov %vm30774_vm1  ;;  %v30788_v12 = vld [vmem:[#allocation90_spill] sm:$0xff]  ;;  %vm23901_vm2 = vcmp.eq.s32.totalorder %v5115_v42, 1  ;;  %v20104_v42 = vunpack.i.h.bf16 %v23576_v54 }
 0x25b   : > { %4839 = vmatprep.mubr.f32.mxu0 %v30218_v22  ;;  %vm18437_vm14 = vmpackc.low %vm30781_vm11, %vm23792_vm4  ;;  %vm23869_vm4 = vcmp.eq.s32.totalorder %v3579_v10, 1  ;;  %v30790_v49 = vpack.i.bf16 %v30788_v12, %v30789_v24  ;;  %v5135_v10 = vrot.slane %v23728_v43, %v30590_v39  ;;  %vm5101_vm11 = vcmp.lt.s32.totalorder %v30794_v61, 56 }
 0x25c   : > { %17273 = vmatmul.mubr.msk.f32.gmra.mrb[8].mxu1 %vm30780_vm12, %v23245_v28  ;;  %vm30784_vm3 = vmmov %vm30774_vm1  ;;  %v3856_v58 = vsel %vm23869_vm4, %v3757_v17, 0.0  ;;  %v5362_v40 = vsel %vm5337_vm5, %v20083_v26, %v20073_v27  ;;  %v3575_v27 = vrot.slane %v23338_v5, %v30361_v20  ;;  %v5127_v17 = vrot.slane %v23728_v43, %v30397_v19  ;;  %v23945_v26 = vpop.permute.xlu0 %20156 }
 0x25d   : > { %4436 = vmatprep.mubr.f32.mxu1 %v30218_v22  ;;  %vm18440_vm15 = vmpackc.low %vm30784_vm3, %vm23808_vm0  ;;  %20601 = vrot.lane.b32.xlu0 %v30790_v49, %s21045_s27  ;;  %v18429_v13 = vpack.c.bf16 %v3856_v58, %v3733_v9  ;;  %v20153_v5 = vunpack.i.l.bf16 %v23920_v7  ;;  %v5461_v12 = vsel %vm23901_vm2, %v5362_v40, 0.0  ;;  %v5367_v24 = vsel %vm5337_vm5, %v20098_v60, %v20099_v32  ;;  %v23982_v58 = vpop.permute.xlu1 %20161  ;;  %s21047_s27 = smov 107  }
 0x25e   : > { %vm30785_vm7 = vmmov %vm30775_vm8  ;;  %vm5097_vm8 = vcmp.ge.s32.totalorder %v30794_v61, 0  ;;  %v20108_v49 = vunpack.i.l.bf16 %v23610_v55  ;;  %v20154_v9 = vunpack.i.h.bf16 %v23920_v7 }
 0x25f   : > { %17307 = vmatmul.mubr.msk.f32.vlgmr.msra.gmra.mrb[36].mxu0 %vm30785_vm7, %v23196_v38  ;;  %vm30791_vm1 = vmmov %vm30785_vm7 }
 0x260   : > { %18438 = vmatpush3.bf16.msk.msra.mxu0 %vm18437_vm14, %v18436_v33  ;;  %17274 = vmatmul.mubr.msk.f32.gmra.mrb[10].mxu1 %vm30791_vm1, %v22926_v31  ;;  %v20084_v33 = vunpack.i.h.bf16 %v23444_v53  ;;  %vm30795_vm0 = vmmov %vm30791_vm1  ;;  %v18420_v53 = vpack.c.bf16 %v3851_v47, %v3728_v30  ;;  %v5366_v30 = vsel %vm5337_vm5, %v20108_v49, %v20098_v60  ;;  %v5143_v60 = vrot.slane %v23728_v43, %v21496_v46 }
 0x261   : > { %18441 = vmatprep.subr.msk.bf16.mxu0 %vm18440_vm15, %v18439_v57  ;;  %4845 = vmatprep.mubr.f32.mxu0 %v30218_v22  ;;  %vm30796_vm9 = vmmov %vm30784_vm3  ;;  %vm23931_vm15 = vcmp.eq.s32.totalorder %v5135_v10, 1  ;;  %v3756_v10 = vsel %vm3709_vm6, %v20044_v21, %v20133_v2  ;;  %v5365_v2 = vsel %vm5337_vm5, %v20153_v5, %v20108_v49  ;;  %v24011_v57 = vpop.permute.xlu0 %20166 }
 0x262   : > { %4590 = vmatprep.mubr.f32.mxu1 %v30218_v22  ;;  %vm18421_vm12 = vmpackc.low %vm30796_vm9, %vm23844_vm13  ;;  %v5338_v23 = vsel %vm5337_vm5, %v20084_v33, %v20078_v52  ;;  %v5343_v52 = vsel %vm5337_vm5, %v20103_v50, %v20104_v42  ;;  %v5466_v61 = vsel %vm23931_vm15, %v5367_v24, 0.0  ;;  %v20109_v33 = vunpack.i.h.bf16 %v23610_v55 }
 0x263   : > { %17308 = vmatmul.mubr.msk.f32.gmra.mrb[38].mxu0 %vm30795_vm0, %v23245_v28  ;;  %vm30797_vm14 = vmmov %vm30784_vm3  ;;  %v18442_v51 = vpack.c.bf16 %v5461_v12, %v5338_v23  ;;  %v18451_v41 = vpack.c.bf16 %v5466_v61, %v5343_v52  ;;  %v5123_v52 = vrot.slane %v23728_v43, %v30398_v18  ;;  %v20138_v61 = vunpack.i.l.bf16 %v23828_v35 }
 0x264   : > { %4851 = vmatprep.mubr.f32.mxu0 %v30218_v22  ;;  %vm18430_vm3 = vmpackc.low %vm30797_vm14, %vm23869_vm4  ;;  %vm23992_vm14 = vcmp.eq.s32.totalorder %v5127_v17, 1  ;;  %v5341_v6 = vsel %vm5337_vm5, %v20154_v9, %v20109_v33 }
 0x265   : > { %vm30798_vm13 = vmmov %vm30795_vm0 }
 0x266   : > { %17286 = vmatmul.mubr.msk.f32.vlgmr.msra.gmra.mrb[12].mxu1 %vm30798_vm13, %v23196_v38  ;;  %vm5105_vm7 = vmand %vm5097_vm8, %vm5101_vm11 }
 0x267   : > { %18422 = vmatpush1.bf16.msk.msra.mxu1 %vm18421_vm12, %v18420_v53  ;;  %4596 = vmatprep.mubr.f32.mxu1 %v30218_v22  ;;  %vm30801_vm4 = vmmov %vm30795_vm0  ;;  %v23974_v47 = vsel %vm5105_vm7, 1, %v30563_v16  ;;  %v3732_v53 = vsel %vm3709_vm6, %v20049_v25, %v20134_v1  ;;  %v5464_v25 = vsel %vm23992_vm14, %v5365_v2, 0.0  ;;  %v24030_v1 = vpop.permute.xlu1 %20171  ;;  %v24064_v2 = vpop.permute.xlu0 %20176 }
 0x268   : > { %18431 = vmatprep.subr.msk.bf16.mxu1 %vm18430_vm3, %v18429_v13  ;;  %17309 = vmatmul.mubr.msk.f32.gmra.mrb[40].mxu0 %vm30801_vm4, %v22926_v31  ;;  %vm30802_vm1 = vmmov %vm30795_vm0  ;;  %v5151_v40 = vrot.slane %v23974_v47, %v30567_v8  ;;  %v20119_v13 = vunpack.i.h.bf16 %v23705_v29  ;;  %v18445_v23 = vpack.c.bf16 %v5464_v25, %v5341_v6  ;;  %v20173_v21 = vunpack.i.l.bf16 %v24030_v1 }
 0x269   : > { %18105 = vmatprep.mubr.msk.f32.mxu0 %vm30453_vm10, %v30218_v22  ;;  %vm30803_vm8 = vmmov %vm30796_vm9  ;;  %vm23969_vm9 = vcmp.eq.s32.totalorder %v3575_v27, 1  ;;  %v20118_v27 = vunpack.i.l.bf16 %v23705_v29  ;;  %v20174_v6 = vunpack.i.h.bf16 %v24030_v1  ;;  %v5147_v12 = vrot.slane %v23974_v47, %v30588_v11 }
 0x26a   : > { %17287 = vmatmul.mubr.msk.f32.gmra.mrb[14].mxu1 %vm30802_vm1, %v23245_v28  ;;  %vm18443_vm0 = vmpackc.low %vm30803_vm8, %vm23901_vm2  ;;  %v3855_v55 = vsel %vm23969_vm9, %v3756_v10, 0.0  ;;  %v20124_v10 = vunpack.i.h.bf16 %v23736_v56 }
 0x26b   : > { %4602 = vmatprep.mubr.f32.mxu1 %v30218_v22  ;;  %vm30806_vm2 = vmmov %vm30803_vm8  ;;  %v18432_v17 = vpack.c.bf16 %v3855_v55, %v3732_v53  ;;  %vm24039_vm8 = vcmp.eq.s32.totalorder %v5151_v40, 1  ;;  %v5371_v24 = vsel %vm5337_vm5, %v20118_v27, %v20119_v13  ;;  %v24074_v40 = vunpack.i.l.bf16 %v23475_v62  ;;  %v24094_v25 = vpop.permute.xlu1 %20181 }
 0x26c   : > { %vm18452_vm12 = vmpackc.low %vm30806_vm2, %vm23931_vm15  ;;  %v5470_v49 = vsel %vm24039_vm8, %v5371_v24, 0.0  ;;  %v5364_v55 = vsel %vm5337_vm5, %v20074_v14, %v20153_v5  ;;  %v20129_v24 = vunpack.i.h.bf16 %v23768_v15  ;;  %v5344_v53 = vsel %vm5337_vm5, %v20104_v42, %v20174_v6 }
 0x26d   : > { %vm30807_vm11 = vmmov %vm30802_vm1 }
 0x26e   : > { %18106 = vmatmul.mubr.msk.f32.vlgmr.msra.gmra.mrb[42].mxu0 %vm30807_vm11, %v23196_v38  ;;  %vm30810_vm3 = vmmov %vm30802_vm1  ;;  %v5345_v4 = vsel %vm5337_vm5, %v20174_v6, %v20129_v24 }
 0x26f   : > { %18444 = vmatpush1.bf16.msk.msra.mxu0 %vm18443_vm0, %v18442_v51  ;;  %18108 = vmatprep.mubr.msk.f32.mxu0 %vm30453_vm10, %v30218_v22  ;;  %vm30811_vm6 = vmmov %vm30802_vm1  ;;  %v20123_v51 = vunpack.i.l.bf16 %v23736_v56  ;;  %vm24056_vm0 = vcmp.eq.s32.totalorder %v5131_v34, 1 }
 0x270   : > { %18453 = vmatprep.subr.msk.bf16.mxu0 %vm18452_vm12, %v18451_v41  ;;  %17288 = vmatmul.mubr.msk.f32.gmra.mrb[16].mxu1 %vm30810_vm3, %v22926_v31  ;;  %vm30812_vm13 = vmmov %vm30806_vm2  ;;  %v5342_v41 = vsel %vm5337_vm5, %v20109_v33, %v20103_v50  ;;  %v20128_v50 = vunpack.i.l.bf16 %v23768_v15  ;;  %v5465_v33 = vsel %vm24056_vm0, %v5366_v30, 0.0  ;;  %v5340_v30 = vsel %vm5337_vm5, %v20079_v63, %v20154_v9  ;;  %v24130_v15 = vpop.permute.xlu0 %20186  ;;  %v30832_v9 = vld [vmem:[#allocation85_spill] sm:$0xff] }
 0x271   : > { %4756 = vmatprep.mubr.f32.mxu1 %v30218_v22  ;;  %vm18433_vm15 = vmpackc.low %vm30812_vm13, %vm23969_vm9  ;;  %v18454_v34 = vpack.c.bf16 %v5465_v33, %v5342_v41 }
 0x272   : > { %18109 = vmatmul.mubr.msk.f32.gmra.mrb[44].mxu0 %vm30811_vm6, %v23245_v28  ;;  %vm30813_vm7 = vmmov %vm30806_vm2  ;;  %v5369_v5 = vsel %vm5337_vm5, %v20173_v21, %v20128_v50 }
 0x273   : > { %18111 = vmatprep.mubr.msk.f32.mxu0 %vm30453_vm10, %v30218_v22  ;;  %vm18446_vm4 = vmpackc.low %vm30813_vm7, %vm23992_vm14  ;;  %vm24084_vm14 = vcmp.eq.s32.totalorder %v5123_v52, 1  ;;  %v5167_v52 = vrot.slane %v23974_v47, %v30590_v39 }
 0x274   : > { %17300 = vmatmul.mubr.msk.f32.vlgmr.msra.gmra.mrb[18].mxu1 %vm30802_vm1, %v23196_v38  ;;  %vm30818_vm9 = vmmov %vm30802_vm1  ;;  %v5463_v41 = vsel %vm24084_vm14, %v5364_v55, 0.0  ;;  %v24192_v14 = vpop.permute.xlu0 %20196 }
 0x275   : > { %18434 = vmatpush1.bf16.msk.msra.mxu1 %vm18433_vm15, %v18432_v17  ;;  %4762 = vmatprep.mubr.f32.mxu1 %v30218_v22  ;;  %vm30819_vm2 = vmmov %vm30802_vm1  ;;  %v5347_v17 = vsel %vm5337_vm5, %v20123_v51, %v20124_v10  ;;  %vm24107_vm15 = vcmp.eq.s32.totalorder %v5143_v60, 1  ;;  %v5370_v60 = vsel %vm5337_vm5, %v20128_v50, %v20118_v27  ;;  %v18448_v33 = vpack.c.bf16 %v5463_v41, %v5340_v30 }
 0x276   : > { %18447 = vmatprep.subr.msk.bf16.mxu1 %vm18446_vm4, %v18445_v23  ;;  %18112 = vmatmul.mubr.msk.f32.gmra.mrb[46].mxu0 %vm30818_vm9, %v22926_v31  ;;  %vm30820_vm12 = vmmov %vm30813_vm7  ;;  %v18463_v3 = vpack.c.bf16 %v5470_v49, %v5347_v17  ;;  %v24115_v23 = vunpack.i.h.bf16 %v23475_v62  ;;  %v20139_v62 = vunpack.i.h.bf16 %v23828_v35  ;;  %v5468_v63 = vsel %vm24107_vm15, %v5369_v5, 0.0  ;;  %v24156_v49 = vpop.permute.xlu1 %20191 }
 0x277   : > { %5637 = vmatprep.mubr.f32.mxu0 %v30218_v22  ;;  %vm18455_vm11 = vmpackc.low %vm30820_vm12, %vm24056_vm0  ;;  %vm5098_vm0 = vcmp.ge.s32.totalorder %v30832_v9, 0  ;;  %vm5102_vm9 = vcmp.lt.s32.totalorder %v30832_v9, 56  ;;  %v18457_v55 = vpack.c.bf16 %v5468_v63, %v5345_v4  ;;  %v5139_v50 = vrot.slane %v23728_v43, %v30361_v20 }
 0x278   : > { %17301 = vmatmul.mubr.msk.f32.gmra.mrb[20].mxu1 %vm30819_vm2, %v23245_v28  ;;  %vm30823_vm3 = vmmov %vm30813_vm7  ;;  %v5375_v27 = vsel %vm5337_vm5, %v20138_v61, %v20139_v62  ;;  %v20144_v17 = vunpack.i.h.bf16 %v23856_v37  ;;  %v20193_v43 = vunpack.i.l.bf16 %v24156_v49  ;;  %v5368_v41 = vsel %vm5337_vm5, %v20099_v32, %v20173_v21 }
 0x279   : > { %4768 = vmatprep.mubr.f32.mxu1 %v30218_v22  ;;  %vm18464_vm6 = vmpackc.low %vm30823_vm3, %vm24039_vm8  ;;  %v20194_v4 = vunpack.i.h.bf16 %v24156_v49  ;;  %v20149_v9 = vunpack.i.h.bf16 %v23886_v48 }
 0x27a   : > { %vm30824_vm13 = vmmov %vm30802_vm1 }
 0x27b   : > { %17326 = vmatmul.mubr.msk.f32.vlgmr.msra.gmra.mrb[0].mxu0 %vm30824_vm13, %v24074_v40  ;;  %vm30827_vm7 = vmmov %vm30802_vm1  ;;  %v5349_v54 = vsel %vm5337_vm5, %v20194_v4, %v20149_v9 }
 0x27c   : > { %18456 = vmatpush1.bf16.msk.msra.mxu0 %vm18455_vm11, %v18454_v34  ;;  %5643 = vmatprep.mubr.f32.mxu0 %v30218_v22  ;;  %vm30828_vm4 = vmmov %vm30802_vm1  ;;  %vm24162_vm11 = vcmp.eq.s32.totalorder %v5147_v12, 1  ;;  %v5159_v12 = vrot.slane %v23974_v47, %v30397_v19  ;;  %v20158_v34 = vunpack.i.l.bf16 %v23945_v26 }
 0x27d   : > { %18465 = vmatprep.subr.msk.bf16.mxu0 %vm18464_vm6, %v18463_v3  ;;  %17302 = vmatmul.mubr.msk.f32.gmra.mrb[22].mxu1 %vm30827_vm7, %v22926_v31  ;;  %vm30829_vm1 = vmmov %vm30823_vm3  ;;  %vm24168_vm3 = vcmp.eq.s32.totalorder %v5167_v52, 1  ;;  %v20143_v3 = vunpack.i.l.bf16 %v23856_v37  ;;  %v5469_v5 = vsel %vm24162_vm11, %v5370_v60, 0.0  ;;  %v5163_v60 = vrot.slane %v23974_v47, %v21513_v36 }
 0x27e   : > { %4922 = vmatprep.mubr.f32.mxu1 %v30218_v22  ;;  %vm24147_vm8 = vmpackc.low %vm30829_vm1, %vm24084_vm14  ;;  %v5474_v52 = vsel %vm24168_vm3, %v5375_v27, 0.0 }
 0x27f   : > { %17327 = vmatmul.mubr.msk.f32.gmra.mrb[2].mxu0 %vm30828_vm4, %v24115_v23  ;;  %vm30833_vm2 = vmmov %vm30829_vm1  ;;  %v5351_v7 = vsel %vm5337_vm5, %v20143_v3, %v20144_v17 }
 0x280   : > { %5649 = vmatprep.mubr.f32.mxu0 %v30218_v22  ;;  %vm18458_vm12 = vmpackc.low %vm30833_vm2, %vm24107_vm15  ;;  %v18475_v45 = vpack.c.bf16 %v5474_v52, %v5351_v7  ;;  %v20164_v52 = vunpack.i.h.bf16 %v23982_v58 }
 0x281   : > { %vm30836_vm14 = vmmov %vm30828_vm4 }
 0x282   : > { %17314 = vmatmul.mubr.msk.f32.vlgmr.msra.gmra.mrb[24].mxu1 %vm30836_vm14, %v23196_v38  ;;  %vm5106_vm6 = vmand %vm5098_vm0, %vm5102_vm9  ;;  %v5346_v38 = vsel %vm5337_vm5, %v20129_v24, %v20123_v51  ;;  %v20148_v51 = vunpack.i.l.bf16 %v23886_v48  ;;  %v24253_v48 = vpop.permute.xlu0 %20206  ;;  %v5350_v24 = vsel %vm5337_vm5, %v20149_v9, %v20143_v3  ;;  %v20168_v3 = vunpack.i.l.bf16 %v24011_v57 }
 0x283   : > { %18450 = vmatpush1.bf16.msk.msra.mxu1 %vm24147_vm8, %v18448_v33  ;;  %4928 = vmatprep.mubr.f32.mxu1 %v30218_v22  ;;  %vm30839_vm13 = vmmov %vm30828_vm4  ;;  %v24214_v30 = vsel %vm5106_vm6, 1, %v30563_v16  ;;  %v18466_v63 = vpack.c.bf16 %v5469_v5, %v5346_v38  ;;  %v5372_v9 = vsel %vm5337_vm5, %v20119_v13, %v20193_v43  ;;  %v20198_v13 = vunpack.i.l.bf16 %v24192_v14 }
 0x284   : > { %18459 = vmatprep.subr.msk.bf16.mxu1 %vm18458_vm12, %v18457_v55  ;;  %17328 = vmatmul.mubr.msk.f32.gmra.mrb[4].mxu0 %vm30839_vm13, %v23647_v0  ;;  %vm30840_vm15 = vmmov %vm30828_vm4  ;;  %v5373_v21 = vsel %vm5337_vm5, %v20193_v43, %v20148_v51  ;;  %v5183_v33 = vrot.slane %v24214_v30, %v30567_v8  ;;  %v20159_v55 = vunpack.i.h.bf16 %v23945_v26  ;;  %v5378_v49 = vsel %vm5337_vm5, %v20168_v3, %v20158_v34 }
 0x285   : > { %5803 = vmatprep.mubr.f32.mxu0 %v30218_v22  ;;  %vm30841_vm7 = vmmov %vm30829_vm1  ;;  %vm24209_vm1 = vcmp.eq.s32.totalorder %v5139_v50, 1  ;;  %v20179_v50 = vunpack.i.h.bf16 %v24064_v2 }
 0x286   : > { %17315 = vmatmul.mubr.msk.f32.gmra.mrb[26].mxu1 %vm30840_vm15, %v23245_v28  ;;  %vm18467_vm4 = vmpackc.low %vm30841_vm7, %vm24162_vm11  ;;  %v24222_v28 = vpop.permute.xlu1 %20201  ;;  %v5467_v27 = vsel %vm24209_vm1, %v5368_v41, 0.0  ;;  %vm24279_vm15 = vcmp.eq.s32.totalorder %v5163_v60, 1 }
 0x287   : > { %4934 = vmatprep.mubr.f32.mxu1 %v30218_v22  ;;  %vm30844_vm8 = vmmov %vm30833_vm2  ;;  %vm24233_vm2 = vcmp.eq.s32.totalorder %v5159_v12, 1  ;;  %v18460_v6 = vpack.c.bf16 %v5467_v27, %v5344_v53  ;;  %v5155_v12 = vrot.slane %v23974_v47, %v30398_v18  ;;  %v20203_v41 = vunpack.i.l.bf16 %v24222_v28 }
 0x288   : > { %vm18476_vm0 = vmpackc.low %vm30844_vm8, %vm24168_vm3  ;;  %v5472_v42 = vsel %vm24233_vm2, %v5373_v21, 0.0  ;;  %v20204_v60 = vunpack.i.h.bf16 %v24222_v28 }
 0x289   : > { %vm30845_vm9 = vmmov %vm30839_vm13  ;;  %v18469_v38 = vpack.c.bf16 %v5472_v42, %v5349_v54  ;;  %v5377_v43 = vsel %vm5337_vm5, %v20203_v41, %v20168_v3  ;;  %v20169_v54 = vunpack.i.h.bf16 %v24011_v57  ;;  %v5179_v42 = vrot.slane %v24214_v30, %v30588_v11 }
 0x28a   : > { %17340 = vmatmul.mubr.msk.f32.vlgmr.msra.gmra.mrb[12].mxu0 %vm30845_vm9, %v24074_v40  ;;  %vm30848_vm12 = vmmov %vm30845_vm9  ;;  %v24273_v1 = vpop.permute.xlu1 %20211  ;;  %v20183_v3 = vunpack.i.l.bf16 %v24094_v25 }
 0x28b   : > { %18468 = vmatpush1.bf16.msk.msra.mxu0 %vm18467_vm4, %v18466_v63  ;;  %5809 = vmatprep.mubr.f32.mxu0 %v30218_v22  ;;  %vm30849_vm11 = vmmov %vm30845_vm9  ;;  %vm24285_vm4 = vcmp.eq.s32.totalorder %v5183_v33, 1  ;;  %v24301_v63 = vpop.permute.xlu0 %20216  ;;  %v5353_v56 = vsel %vm5337_vm5, %v20204_v60, %v20169_v54 }
 0x28c   : > { %18477 = vmatprep.subr.msk.bf16.mxu0 %vm18476_vm0, %v18475_v45  ;;  %17316 = vmatmul.mubr.msk.f32.gmra.mrb[28].mxu1 %vm30848_vm12, %v22926_v31  ;;  %vm30850_vm14 = vmmov %vm30841_vm7  ;;  %v5374_v31 = vsel %vm5337_vm5, %v20148_v51, %v20138_v61  ;;  %v5379_v61 = vsel %vm5337_vm5, %v20158_v34, %v20159_v55  ;;  %v20163_v51 = vunpack.i.l.bf16 %v23982_v58  ;;  %v5175_v45 = vrot.slane %v23974_v47, %v21496_v46 }
 0x28d   : > { %5720 = vmatprep.mubr.f32.mxu1 %v30218_v22  ;;  %vm18461_vm3 = vmpackc.low %vm30850_vm14, %vm24209_vm1  ;;  %v5473_v7 = vsel %vm24279_vm15, %v5374_v31, 0.0  ;;  %v5478_v32 = vsel %vm24285_vm4, %v5379_v61, 0.0  ;;  %v5199_v31 = vrot.slane %v24214_v30, %v30590_v39 }
 0x28e   : > { %17341 = vmatmul.mubr.msk.f32.gmra.mrb[14].mxu0 %vm30849_vm11, %v24115_v23  ;;  %vm30851_vm6 = vmmov %vm30841_vm7  ;;  %v24328_v33 = vpop.permute.xlu1 %20221  ;;  %v18478_v53 = vpack.c.bf16 %v5473_v7, %v5350_v24  ;;  %v5355_v27 = vsel %vm5337_vm5, %v20163_v51, %v20164_v52  ;;  %v5354_v21 = vsel %vm5337_vm5, %v20169_v54, %v20163_v51  ;;  %v20188_v51 = vunpack.i.l.bf16 %v24130_v15 }
 0x28f   : > { %5815 = vmatprep.mubr.f32.mxu0 %v30218_v22  ;;  %vm18470_vm13 = vmpackc.low %vm30851_vm6, %vm24233_vm2  ;;  %vm24318_vm2 = vcmp.eq.s32.totalorder %v5155_v12, 1  ;;  %v18487_v29 = vpack.c.bf16 %v5478_v32, %v5355_v27  ;;  %v24359_v57 = vpop.permute.xlu0 %20226  ;;  %v20184_v32 = vunpack.i.h.bf16 %v24094_v25  ;;  %v5191_v27 = vrot.slane %v24214_v30, %v30397_v19 }
 0x290   : > { %vm30854_vm7 = vmmov %vm30845_vm9  ;;  %v5471_v5 = vsel %vm24318_vm2, %v5372_v9, 0.0  ;;  %v20228_v9 = vunpack.i.l.bf16 %v24359_v57  ;;  %v5376_v54 = vsel %vm5337_vm5, %v20139_v62, %v20203_v41  ;;  %v5352_v12 = vsel %vm5337_vm5, %v20144_v17, %v20204_v60 }
 0x291   : > { %17333 = vmatmul.mubr.msk.f32.vlgmr.msra.gmra.mrb[30].mxu1 %vm30854_vm7, %v24074_v40  ;;  %vm30857_vm1 = vmmov %vm30854_vm7 }
 0x292   : > { %18462 = vmatpush1.bf16.msk.msra.mxu1 %vm18461_vm3, %v18460_v6  ;;  %5726 = vmatprep.mubr.f32.mxu1 %v30218_v22  ;;  %vm30858_vm8 = vmmov %vm30857_vm1  ;;  %vm24339_vm3 = vcmp.eq.s32.totalorder %v5175_v45, 1  ;;  %v5348_v6 = vsel %vm5337_vm5, %v20124_v10, %v20194_v4  ;;  %v24379_v4 = vpop.permute.xlu1 %20231  ;;  %v5171_v45 = vrot.slane %v23974_v47, %v30361_v20  ;;  %v5381_v41 = vsel %vm5337_vm5, %v20228_v9, %v20188_v51 }
 0x293   : > { %18471 = vmatprep.subr.msk.bf16.mxu1 %vm18470_vm13, %v18469_v38  ;;  %17342 = vmatmul.mubr.msk.f32.gmra.mrb[16].mxu0 %vm30857_vm1, %v23647_v0  ;;  %vm30859_vm0 = vmmov %vm30851_vm6  ;;  %v20178_v38 = vunpack.i.l.bf16 %v24064_v2  ;;  %v5476_v10 = vsel %vm24339_vm3, %v5377_v43, 0.0  ;;  %v18472_v61 = vpack.c.bf16 %v5471_v5, %v5348_v6  ;;  %v5359_v5 = vsel %vm5337_vm5, %v20183_v3, %v20184_v32 }
 0x294   : > { %5969 = vmatprep.mubr.f32.mxu0 %v30218_v22  ;;  %vm18479_vm9 = vmpackc.low %vm30859_vm0, %vm24279_vm15  ;;  %v18481_v24 = vpack.c.bf16 %v5476_v10, %v5353_v56  ;;  %v24459_v56 = vld [vmem:[%s29741_s0] ss:$2 sm:$0xff] }
 0x295   : > { %17334 = vmatmul.mubr.msk.f32.gmra.mrb[32].mxu1 %vm30858_vm8, %v24115_v23  ;;  %vm30862_vm12 = vmmov %vm30859_vm0  ;;  %vm24385_vm8 = vcmp.eq.s32.totalorder %v5179_v42, 1  ;;  %v5383_v34 = vsel %vm5337_vm5, %v20178_v38, %v20179_v50  ;;  %v6724_v10 = vadd.s32 1, %v24459_v56  ;;  %v5382_v28 = vsel %vm5337_vm5, %v20188_v51, %v20178_v38 }
 0x296   : > { %5732 = vmatprep.mubr.f32.mxu1 %v30218_v22  ;;  %vm18488_vm11 = vmpackc.low %vm30862_vm12, %vm24285_vm4  ;;  %v5477_v47 = vsel %vm24385_vm8, %v5378_v49, 0.0  ;;  %v24437_v42 = vpop.permute.xlu1 %20241  ;;  %v20189_v49 = vunpack.i.h.bf16 %v24130_v15  ;;  %v5207_v51 = vrot.slane %v24214_v30, %v21496_v46 }
 0x297   : > { %vm30863_vm14 = vmmov %vm30857_vm1  ;;  %v18490_v6 = vpack.c.bf16 %v5477_v47, %v5354_v21  ;;  %v5187_v21 = vrot.slane %v24214_v30, %v30398_v18 }
 0x298   : > { %17354 = vmatmul.mubr.msk.f32.vlgmr.msra.gmra.mrb[18].mxu0 %vm30863_vm14, %v24074_v40  ;;  %vm30866_vm6 = vmmov %vm30857_vm1  ;;  %v5358_v47 = vsel %vm5337_vm5, %v20189_v49, %v20183_v3 }
 0x299   : > { %18480 = vmatpush1.bf16.msk.msra.mxu0 %vm18479_vm9, %v18478_v53  ;;  %5975 = vmatprep.mubr.f32.mxu0 %v30218_v22  ;;  %vm30867_vm13 = vmmov %vm30857_vm1  ;;  %vm24391_vm9 = vcmp.eq.s32.totalorder %v5199_v31, 1  ;;  %v24407_v53 = vpop.permute.xlu0 %20236  ;;  %v20229_v31 = vunpack.i.h.bf16 %v24359_v57 }
 0x29a   : > { %18489 = vmatprep.subr.msk.bf16.mxu0 %vm18488_vm11, %v18487_v29  ;;  %17335 = vmatmul.mubr.msk.f32.gmra.mrb[34].mxu1 %vm30866_vm6, %v23647_v0  ;;  %vm30868_vm15 = vmmov %vm30859_vm0  ;;  %v5482_v29 = vsel %vm24391_vm9, %v5383_v34, 0.0  ;;  %v24495_v60 = vpop.permute.xlu1 %20246  ;;  %v5203_v34 = vrot.slane %v24214_v30, %v30361_v20 }
 0x29b   : > { %5886 = vmatprep.mubr.f32.mxu1 %v30218_v22  ;;  %vm18473_vm7 = vmpackc.low %vm30868_vm15, %vm24318_vm2  ;;  %v18499_v35 = vpack.c.bf16 %v5482_v29, %v5359_v5  ;;  %v5357_v37 = vsel %vm5337_vm5, %v20229_v31, %v20189_v49  ;;  %v20209_v49 = vunpack.i.h.bf16 %v24253_v48 }
 0x29c   : > { %17355 = vmatmul.mubr.msk.f32.gmra.mrb[20].mxu0 %vm30867_vm13, %v24115_v23  ;;  %vm30869_vm4 = vmmov %vm30859_vm0 }
 0x29d   : > { %5981 = vmatprep.mubr.f32.mxu0 %v30218_v22  ;;  %vm18482_vm1 = vmpackc.low %vm30869_vm4, %vm24339_vm3  ;;  %vm24428_vm3 = vcmp.eq.s32.totalorder %v5171_v45, 1  ;;  %v20214_v45 = vunpack.i.h.bf16 %v24273_v1 }
 0x29e   : > { %vm30872_vm0 = vmmov %vm30866_vm6  ;;  %v5475_v15 = vsel %vm24428_vm3, %v5376_v54, 0.0  ;;  %v20249_v54 = vunpack.i.h.bf16 %v24495_v60  ;;  %v24545_v5 = vpop.permute.xlu1 %20256 }
 0x29f   : > { %17347 = vmatmul.mubr.msk.f32.vlgmr.msra.gmra.mrb[0].mxu1 %vm30872_vm0, %v24074_v40  ;;  %vm30875_vm2 = vmmov %vm30872_vm0  ;;  %v18484_v7 = vpack.c.bf16 %v5475_v15, %v5352_v12  ;;  %v5356_v12 = vsel %vm5337_vm5, %v20164_v52, %v20229_v31 }
 0x2a0   : > { %18474 = vmatpush1.bf16.msk.msra.mxu1 %vm18473_vm7, %v18472_v61  ;;  %5892 = vmatprep.mubr.f32.mxu1 %v30218_v22  ;;  %vm30876_vm12 = vmmov %vm30872_vm0  ;;  %vm24449_vm7 = vcmp.eq.s32.totalorder %v5191_v27, 1  ;;  %v5195_v61 = vrot.slane %v24214_v30, %v21513_v36  ;;  %v20248_v27 = vunpack.i.l.bf16 %v24495_v60  ;;  %v20233_v60 = vunpack.i.l.bf16 %v24379_v4 }
 0x2a1   : > { %18483 = vmatprep.subr.msk.bf16.mxu1 %vm18482_vm1, %v18481_v24  ;;  %17356 = vmatmul.mubr.msk.f32.gmra.mrb[22].mxu0 %vm30875_vm2, %v23647_v0  ;;  %vm30877_vm11 = vmmov %vm30869_vm4  ;;  %v24473_v24 = vpop.permute.xlu0 %7122  ;;  %vm5099_vm1 = vcmp.ge.s32.totalorder %v23592_v44, 0  ;;  %v5480_v17 = vsel %vm24449_vm7, %v5381_v41, 0.0 }
 0x2a2   : > { %6135 = vmatprep.mubr.f32.mxu0 %v30218_v22  ;;  %vm24424_vm14 = vmpackc.low %vm30877_vm11, %vm24385_vm8  ;;  %vm5103_vm8 = vcmp.lt.s32.totalorder %v23592_v44, 56  ;;  %vm6732_vm11 = vcmp.lt.s32.totalorder %v6724_v10, 56  ;;  %v18493_v38 = vpack.c.bf16 %v5480_v17, %v5357_v37  ;;  %v5385_v26 = vsel %vm5337_vm5, %v20248_v27, %v20198_v13  ;;  %v24595_v31 = vpop.permute.xlu1 %20266 }
 0x2a3   : > { %17348 = vmatmul.mubr.msk.f32.gmra.mrb[2].mxu1 %vm30876_vm12, %v24115_v23  ;;  %vm30882_vm6 = vmmov %vm30869_vm4  ;;  %vm6728_vm12 = vcmp.ge.s32.totalorder %v6724_v10, 0  ;;  %v5384_v41 = vsel %vm5337_vm5, %v20179_v50, %v20248_v27 }
 0x2a4   : > { %5898 = vmatprep.mubr.f32.mxu1 %v30218_v22  ;;  %vm18500_vm13 = vmpackc.low %vm30882_vm6, %vm24391_vm9 }
 0x2a5   : > { %vm30883_vm15 = vmmov %vm30872_vm0  ;;  %v24518_v44 = vpop.permute.xlu0 %20251 }
 0x2a6   : > { %17368 = vmatmul.mubr.msk.f32.vlgmr.msra.gmra.mrb[24].mxu0 %vm30883_vm15, %v24074_v40  ;;  %vm30886_vm4 = vmmov %vm30872_vm0 }
 0x2a7   : > { %18492 = vmatpush1.bf16.msk.msra.mxu0 %vm24424_vm14, %v18490_v6  ;;  %6141 = vmatprep.mubr.f32.mxu0 %v30218_v22  ;;  %vm30887_vm9 = vmmov %vm30882_vm6  ;;  %v5380_v6 = vsel %vm5337_vm5, %v20159_v55, %v20228_v9  ;;  %v20199_v55 = vunpack.i.h.bf16 %v24192_v14 }
 0x2a8   : > { %18501 = vmatprep.subr.msk.bf16.mxu0 %vm18500_vm13, %v18499_v35  ;;  %17349 = vmatmul.mubr.msk.f32.gmra.mrb[4].mxu1 %vm30886_vm4, %v23647_v0  ;;  %vm18485_vm2 = vmpackc.low %vm30887_vm9, %vm24428_vm3  ;;  %vm24501_vm13 = vcmp.eq.s32.totalorder %v5195_v61, 1  ;;  %v20208_v61 = vunpack.i.l.bf16 %v24253_v48 }
 0x2a9   : > { %6052 = vmatprep.mubr.f32.mxu1 %v30218_v22  ;;  %vm30888_vm14 = vmmov %vm30882_vm6  ;;  %v5481_v29 = vsel %vm24501_vm13, %v5382_v28, 0.0  ;;  %v24573_v15 = vpop.permute.xlu0 %20261  ;;  %v5361_v57 = vsel %vm5337_vm5, %v20249_v54, %v20199_v55  ;;  %v20234_v28 = vunpack.i.h.bf16 %v24379_v4 }
 0x2aa   : > { %17369 = vmatmul.mubr.msk.f32.gmra.mrb[26].mxu0 %vm30872_vm0, %v24115_v23  ;;  %vm18494_vm6 = vmpackc.low %vm30888_vm14, %vm24449_vm7  ;;  %v18502_v35 = vpack.c.bf16 %v5481_v29, %v5358_v47  ;;  %v20268_v47 = vunpack.i.l.bf16 %v24595_v31 }
 0x2ab   : > { %6147 = vmatprep.mubr.f32.mxu0 %v30218_v22  ;;  %vm24507_vm3 = vmand %vm5099_vm1, %vm5103_vm8 }
 0x2ac   : > { %vm30893_vm15 = vmmov %vm30872_vm0  ;;  %v5111_v3 = vsel %vm24507_vm3, 1, %v30563_v16 }
 0x2ad   : > { %17361 = vmatmul.mubr.msk.f32.vlgmr.msra.gmra.mrb[6].mxu1 %vm30893_vm15, %v24074_v40  ;;  %vm6736_vm7 = vmand %vm6728_vm12, %vm6732_vm11  ;;  %vm24554_vm12 = vcmp.eq.s32.totalorder %v5207_v51, 1  ;;  %v5211_v9 = vrot.slane %v5111_v3, %v30588_v11  ;;  %vm6969_vm15 = vcmask 1014784   ;;  %v24620_v29 = vpop.permute.xlu0 %20271  ;;  %v20243_v3 = vunpack.i.l.bf16 %v24437_v42 }
 0x2ae   : > { %18486 = vmatpush1.bf16.msk.msra.mxu1 %vm18485_vm2, %v18484_v7  ;;  %6058 = vmatprep.mubr.f32.mxu1 %v30218_v22  ;;  %vm30894_vm4 = vmmov %vm30872_vm0  ;;  %v24537_v43 = vsel %vm6736_vm7, 1, %v30563_v16  ;;  %v5484_v58 = vsel %vm24554_vm12, %v5385_v26, 0.0  ;;  %v6995_v7 = vsel %vm6969_vm15, %v20208_v61, %v20209_v49  ;;  %v20269_v26 = vunpack.i.h.bf16 %v24595_v31 }
 0x2af   : > { %18495 = vmatprep.subr.msk.bf16.mxu1 %vm18494_vm6, %v18493_v38  ;;  %17370 = vmatmul.mubr.msk.f32.gmra.mrb[28].mxu0 %vm30894_vm4, %v23647_v0  ;;  %vm30895_vm1 = vmmov %vm30872_vm0  ;;  %v6751_v10 = vrot.slane %v24537_v43, %v30567_v8  ;;  %vm24591_vm3 = vcmp.eq.s32.totalorder %v5211_v9, 1  ;;  %v18505_v17 = vpack.c.bf16 %v5484_v58, %v5361_v57  ;;  %v20213_v38 = vunpack.i.l.bf16 %v24273_v1  ;;  %v24651_v9 = vpop.permute.xlu1 %20276 }
 0x2b0   : > { %6301 = vmatprep.mubr.f32.mxu0 %v30218_v22  ;;  %vm30896_vm8 = vmmov %vm30887_vm9  ;;  %vm24548_vm9 = vcmp.eq.s32.totalorder %v5187_v21, 1  ;;  %v5485_v21 = vsel %vm24591_vm3, %v20198_v13, 0.0  ;;  %v6759_v30 = vrot.slane %v24537_v43, %v30397_v19  ;;  %v6997_v27 = vsel %vm6969_vm15, %v20268_v47, %v20243_v3 }
 0x2b1   : > { %17362 = vmatmul.mubr.msk.f32.gmra.mrb[8].mxu1 %vm30895_vm1, %v24115_v23  ;;  %vm18503_vm0 = vmpackc.low %vm30896_vm8, %vm24501_vm13  ;;  %v5479_v14 = vsel %vm24548_vm9, %v5380_v6, 0.0  ;;  %v18512_v62 = vpack.c.bf16 %v5485_v21, %v20199_v55  ;;  %v24676_v55 = vld [vmem:[%s29741_s0 + $0x10] ss:$2 sm:$0xff]  ;;  %v20218_v57 = vunpack.i.l.bf16 %v24301_v63  ;;  %v5360_v58 = vsel %vm5337_vm5, %v20184_v32, %v20249_v54  ;;  %v24689_v52 = vpop.permute.xlu0 %20281 }
 0x2b2   : > { %6064 = vmatprep.mubr.f32.mxu1 %v30218_v22  ;;  %vm30899_vm2 = vmmov %vm30895_vm1  ;;  %v18496_v37 = vpack.c.bf16 %v5479_v14, %v5356_v12  ;;  %v6725_v12 = vadd.s32 1, %v24676_v55  ;;  %v20244_v14 = vunpack.i.h.bf16 %v24437_v42  ;;  %v20219_v54 = vunpack.i.h.bf16 %v24301_v63 }
 0x2b3   : > { %17382 = vmatmul.mubr.msk.f32.vlgmr.msra.gmra.mrb[30].mxu0 %vm30899_vm2, %v24074_v40  ;;  %vm30902_vm11 = vmmov %vm30895_vm1  ;;  %v20239_v21 = vunpack.i.h.bf16 %v24407_v53  ;;  %v20238_v63 = vunpack.i.l.bf16 %v24407_v53  ;;  %v20283_v48 = vunpack.i.l.bf16 %v24689_v52 }
 0x2b4   : > { %18504 = vmatpush1.bf16.msk.msra.mxu0 %vm18503_vm0, %v18502_v35  ;;  %6307 = vmatprep.mubr.f32.mxu0 %v30218_v22  ;;  %vm30903_vm14 = vmmov %vm30895_vm1  ;;  %v6747_v35 = vrot.slane %v24537_v43, %v30588_v11  ;;  %v6973_v25 = vsel %vm6969_vm15, %v20269_v26, %v20244_v14 }
 0x2b5   : > { %17363 = vmatmul.mubr.msk.f32.gmra.mrb[10].mxu1 %vm30902_vm11, %v23647_v0  ;;  %18511 = vmatprep.subr.bf16.mxu0 %v30764_v59  ;;  %vm30904_vm6 = vmmov %vm30896_vm8  ;;  %vm24603_vm8 = vcmp.eq.s32.totalorder %v6751_v10, 1  ;;  %vm24639_vm11 = vcmp.eq.s32.totalorder %v5203_v34, 1  ;;  %v6971_v10 = vsel %vm6969_vm15, %v20213_v38, %v20214_v45  ;;  %v6994_v34 = vsel %vm6969_vm15, %v20218_v57, %v20208_v61  ;;  %v24751_v50 = vpop.permute.xlu0 %20291 }
 0x2b6   : > { %6218 = vmatprep.mubr.f32.mxu1 %v30218_v22  ;;  %vm18497_vm13 = vmpackc.low %vm30904_vm6, %vm24548_vm9  ;;  %v7094_v51 = vsel %vm24603_vm8, %v6995_v7, 0.0  ;;  %v6755_v61 = vrot.slane %v24537_v43, %v30398_v18 }
 0x2b7   : > { %17383 = vmatmul.mubr.msk.f32.gmra.mrb[32].mxu0 %vm30903_vm14, %v24115_v23  ;;  %vm30907_vm7 = vmmov %vm30904_vm6  ;;  %v18515_v2 = vpack.c.bf16 %v7094_v51, %v6971_v10 }
 0x2b8   : > { %6313 = vmatprep.mubr.f32.mxu0 %v30218_v22  ;;  %vm18506_vm4 = vmpackc.low %vm30907_vm7, %vm24554_vm12 }
 0x2b9   : > { %17375 = vmatmul.mubr.msk.f32.vlgmr.msra.gmra.mrb[12].mxu1 %vm30895_vm1, %v24074_v40  ;;  %vm30910_vm0 = vmmov %vm30895_vm1 }
 0x2ba   : > { %18498 = vmatpush1.bf16.msk.msra.mxu1 %vm18497_vm13, %v18496_v37  ;;  %6224 = vmatprep.mubr.f32.mxu1 %v30218_v22  ;;  %vm30911_vm9 = vmmov %vm30910_vm0  ;;  %v5483_v37 = vsel %vm24639_vm11, %v5384_v41, 0.0  ;;  %v6970_v41 = vsel %vm6969_vm15, %v20219_v54, %v20213_v38  ;;  %v6975_v38 = vsel %vm6969_vm15, %v20238_v63, %v20239_v21 }
 0x2bb   : > { %18507 = vmatprep.subr.msk.bf16.mxu1 %vm18506_vm4, %v18505_v17  ;;  %17384 = vmatmul.mubr.msk.f32.gmra.mrb[34].mxu0 %vm30910_vm0, %v23647_v0  ;;  %vm30912_vm2 = vmmov %vm30904_vm6  ;;  %v6767_v17 = vrot.slane %v24537_v43, %v30590_v39  ;;  %v18508_v51 = vpack.c.bf16 %v5483_v37, %v5360_v58  ;;  %v6996_v37 = vsel %vm6969_vm15, %v20209_v49, %v20268_v47 }
 0x2bc   : > { %6467 = vmatprep.mubr.f32.mxu0 %v30218_v22  ;;  %vm24635_vm12 = vmpackc.low %vm30912_vm2, %vm24591_vm3  ;;  %vm24664_vm3 = vcmp.eq.s32.totalorder %v6759_v30, 1  ;;  %v24722_v30 = vpop.permute.xlu1 %20286 }
 0x2bd   : > { %17376 = vmatmul.mubr.msk.f32.gmra.mrb[14].mxu1 %vm30911_vm9, %v24115_v23  ;;  %vm30917_vm14 = vmmov %vm30912_vm2  ;;  %v7096_v32 = vsel %vm24664_vm3, %v6997_v27, 0.0  ;;  %vm6733_vm9 = vcmp.lt.s32.totalorder %v6725_v12, 56  ;;  %v20288_v10 = vunpack.i.l.bf16 %v24722_v30 }
 0x2be   : > { %6230 = vmatprep.mubr.f32.mxu1 %v30218_v22  ;;  %vm18516_vm6 = vmpackc.low %vm30917_vm14, %vm24603_vm8  ;;  %vm24713_vm8 = vcmp.eq.s32.totalorder %v6747_v35, 1  ;;  %v18521_v13 = vpack.c.bf16 %v7096_v32, %v6973_v25  ;;  %vm24733_vm14 = vcmp.eq.s32.totalorder %v6767_v17, 1  ;;  %v6999_v35 = vsel %vm6969_vm15, %v20233_v60, %v20234_v28 }
 0x2bf   : > { %vm30918_vm13 = vmmov %vm30910_vm0  ;;  %v7093_v27 = vsel %vm24713_vm8, %v6994_v34, 0.0  ;;  %v20289_v17 = vunpack.i.h.bf16 %v24722_v30  ;;  %v20264_v25 = vunpack.i.h.bf16 %v24573_v15  ;;  %v6972_v34 = vsel %vm6969_vm15, %v20214_v45, %v20269_v26 }
 0x2c0   : > { %17396 = vmatmul.mubr.msk.f32.vlgmr.msra.gmra.mrb[36].mxu0 %vm30918_vm13, %v24074_v40  ;;  %vm30921_vm7 = vmmov %vm30910_vm0  ;;  %v24785_v32 = vpop.permute.xlu1 %20296  ;;  %v18518_v54 = vpack.c.bf16 %v7093_v27, %v6970_v41  ;;  %v6763_v45 = vrot.slane %v24537_v43, %v21513_v36  ;;  %v6771_v27 = vrot.slane %v24537_v43, %v30361_v20 }
 0x2c1   : > { %18514 = vmatpush3.bf16.msk.msra.mxu0 %vm24635_vm12, %v18512_v62  ;;  %6473 = vmatprep.mubr.f32.mxu0 %v30218_v22  ;;  %vm30922_vm5 = vmmov %vm30910_vm0  ;;  %vm6729_vm0 = vcmp.ge.s32.totalorder %v6725_v12, 0  ;;  %v6775_v62 = vrot.slane %v24537_v43, %v21496_v46  ;;  %v7098_v12 = vsel %vm24733_vm14, %v6999_v35, 0.0  ;;  %v6977_v1 = vsel %vm6969_vm15, %v20289_v17, %v20264_v25 }
 0x2c2   : > { %18517 = vmatprep.subr.msk.bf16.mxu0 %vm18516_vm6, %v18515_v2  ;;  %17377 = vmatmul.mubr.msk.f32.gmra.mrb[16].mxu1 %vm30921_vm7, %v23647_v0  ;;  %vm30923_vm4 = vmmov %vm30912_vm2  ;;  %v20263_v2 = vunpack.i.l.bf16 %v24573_v15  ;;  %v18527_v7 = vpack.c.bf16 %v7098_v12, %v6975_v38  ;;  %v20259_v38 = vunpack.i.h.bf16 %v24545_v5  ;;  %v20258_v12 = vunpack.i.l.bf16 %v24545_v5 }
 0x2c3   : > { %6384 = vmatprep.mubr.f32.mxu1 %v30218_v22  ;;  %vm18509_vm1 = vmpackc.low %vm30923_vm4, %vm24639_vm11  ;;  %vm24771_vm4 = vcmp.eq.s32.totalorder %v6755_v61, 1  ;;  %v24813_v61 = vpop.permute.xlu0 %20301  ;;  %v6998_v43 = vsel %vm6969_vm15, %v20243_v3, %v20233_v60 }
 0x2c4   : > { %17397 = vmatmul.mubr.msk.f32.gmra.mrb[38].mxu0 %vm30922_vm5, %v24115_v23  ;;  %vm18522_vm12 = vmpackc.low %vm30912_vm2, %vm24664_vm3  ;;  %v7001_v49 = vsel %vm6969_vm15, %v20288_v10, %v20263_v2  ;;  %v7095_v6 = vsel %vm24771_vm4, %v6996_v37, 0.0  ;;  %v24834_v26 = vpop.permute.xlu1 %20306 }
 0x2c5   : > { %6479 = vmatprep.mubr.f32.mxu0 %v30218_v22  ;;  %vm30926_vm11 = vmmov %vm30922_vm5  ;;  %v18524_v35 = vpack.c.bf16 %v7095_v6, %v6972_v34  ;;  %v20309_v6 = vunpack.i.h.bf16 %v24834_v26 }
 0x2c6   : > { %17389 = vmatmul.mubr.msk.f32.vlgmr.msra.gmra.mrb[18].mxu1 %vm30926_vm11, %v24074_v40  ;;  %vm6737_vm6 = vmand %vm6729_vm0, %vm6733_vm9  ;;  %vm24793_vm9 = vcmp.eq.s32.totalorder %v6775_v62, 1  ;;  %v24942_v62 = vld [vmem:[%s29741_s0 + $0x20] ss:$2 sm:$0xff] }
 0x2c7   : > { %18510 = vmatpush1.bf16.msk.msra.mxu1 %vm18509_vm1, %v18508_v51  ;;  %6390 = vmatprep.mubr.f32.mxu1 %v30218_v22  ;;  %vm30929_vm13 = vmmov %vm30922_vm5  ;;  %v24776_v58 = vsel %vm6737_vm6, 1, %v30563_v16  ;;  %v20254_v51 = vunpack.i.h.bf16 %v24518_v44  ;;  %v7100_v31 = vsel %vm24793_vm9, %v7001_v49, 0.0  ;;  %v24877_v49 = vpop.permute.xlu0 %20311  ;;  %v6726_v41 = vadd.s32 1, %v24942_v62 }
 0x2c8   : > { %18523 = vmatprep.subr.msk.bf16.mxu1 %vm18522_vm12, %v18521_v13  ;;  %17398 = vmatmul.mubr.msk.f32.gmra.mrb[40].mxu0 %vm30929_vm13, %v23647_v0  ;;  %vm30930_vm3 = vmmov %vm30922_vm5  ;;  %v6783_v47 = vrot.slane %v24776_v58, %v30567_v8  ;;  %v20253_v13 = vunpack.i.l.bf16 %v24518_v44  ;;  %v18533_v57 = vpack.c.bf16 %v7100_v31, %v6977_v1  ;;  %v6791_v3 = vrot.slane %v24776_v58, %v30397_v19  ;;  %v24918_v31 = vpop.permute.xlu1 %20316 }
 0x2c9   : > { %18118 = vmatprep.mubr.msk.f32.mxu0 %vm30453_vm10, %v30218_v22  ;;  %vm30931_vm7 = vmmov %vm30912_vm2  ;;  %v20284_v1 = vunpack.i.h.bf16 %v24689_v52  ;;  %v6787_v30 = vrot.slane %v24776_v58, %v30398_v18 }
 0x2ca   : > { %17390 = vmatmul.mubr.msk.f32.gmra.mrb[20].mxu1 %vm30930_vm3, %v24115_v23  ;;  %vm18519_vm5 = vmpackc.low %vm30931_vm7, %vm24713_vm8  ;;  %v7003_v37 = vsel %vm6969_vm15, %v20253_v13, %v20254_v51 }
 0x2cb   : > { %6396 = vmatprep.mubr.f32.mxu1 %v30218_v22  ;;  %vm30934_vm1 = vmmov %vm30912_vm2  ;;  %v6981_v53 = vsel %vm6969_vm15, %v20309_v6, %v20284_v1 }
 0x2cc   : > { %vm18528_vm8 = vmpackc.low %vm30934_vm1, %vm24733_vm14 }
 0x2cd   : > { %vm30935_vm0 = vmmov %vm30930_vm3  ;;  %vm24845_vm3 = vcmp.eq.s32.totalorder %v6783_v47, 1  ;;  %v6979_v47 = vsel %vm6969_vm15, %v20258_v12, %v20259_v38 }
 0x2ce   : > { %18119 = vmatmul.mubr.msk.f32.vlgmr.msra.gmra.mrb[42].mxu0 %vm30935_vm0, %v24074_v40  ;;  %vm30938_vm2 = vmmov %vm30935_vm0  ;;  %v7102_v42 = vsel %vm24845_vm3, %v7003_v37, 0.0  ;;  %v6799_v37 = vrot.slane %v24776_v58, %v30590_v39 }
 0x2cf   : > { %18520 = vmatpush1.bf16.msk.msra.mxu0 %vm18519_vm5, %v18518_v54  ;;  %18121 = vmatprep.mubr.msk.f32.mxu0 %vm30453_vm10, %v30218_v22  ;;  %vm30939_vm12 = vmmov %vm30935_vm0  ;;  %vm24866_vm5 = vcmp.eq.s32.totalorder %v6763_v45, 1  ;;  %v18539_v4 = vpack.c.bf16 %v7102_v42, %v6979_v47  ;;  %v20273_v54 = vunpack.i.l.bf16 %v24620_v29  ;;  %v24994_v42 = vpop.permute.xlu1 %20326  ;;  %v20293_v47 = vunpack.i.l.bf16 %v24751_v50 }
 0x2d0   : > { %18529 = vmatprep.subr.msk.bf16.mxu0 %vm18528_vm8, %v18527_v7  ;;  %17391 = vmatmul.mubr.msk.f32.gmra.mrb[22].mxu1 %vm30938_vm2, %v23647_v0  ;;  %vm30940_vm11 = vmmov %vm30934_vm1  ;;  %v20308_v7 = vunpack.i.l.bf16 %v24834_v26  ;;  %v7097_v60 = vsel %vm24866_vm5, %v6998_v43, 0.0  ;;  %v6976_v43 = vsel %vm6969_vm15, %v20239_v21, %v20289_v17  ;;  %v7002_v17 = vsel %vm6969_vm15, %v20263_v2, %v20253_v13 }
 0x2d1   : > { %6550 = vmatprep.mubr.f32.mxu1 %v30218_v22  ;;  %vm18525_vm14 = vmpackc.low %vm30940_vm11, %vm24771_vm4  ;;  %v20279_v2 = vunpack.i.h.bf16 %v24651_v9  ;;  %v20278_v13 = vunpack.i.l.bf16 %v24651_v9 }
 0x2d2   : > { %18122 = vmatmul.mubr.msk.f32.gmra.mrb[44].mxu0 %vm30939_vm12, %v24115_v23  ;;  %vm30941_vm6 = vmmov %vm30934_vm1 }
 0x2d3   : > { %18124 = vmatprep.mubr.msk.f32.mxu0 %vm30453_vm10, %v30218_v22  ;;  %vm24841_vm13 = vmpackc.low %vm30941_vm6, %vm24793_vm9  ;;  %vm24907_vm9 = vcmp.eq.s32.totalorder %v6771_v27, 1  ;;  %v24946_v27 = vunpack.i.h.bf16 %v24328_v33 }
 0x2d4   : > { %vm30946_vm7 = vmmov %vm30935_vm0 }
 0x2d5   : > { %17403 = vmatmul.mubr.msk.f32.vlgmr.msra.gmra.mrb[24].mxu1 %vm30946_vm7, %v24074_v40  ;;  %v6974_v40 = vsel %vm6969_vm15, %v20244_v14, %v20238_v63  ;;  %vm30949_vm4 = vmmov %vm30935_vm0  ;;  %v24889_v14 = vunpack.i.l.bf16 %v24328_v33  ;;  %v20274_v33 = vunpack.i.h.bf16 %v24620_v29  ;;  %v20294_v63 = vunpack.i.h.bf16 %v24751_v50 }
 0x2d6   : > { %18526 = vmatpush1.bf16.msk.msra.mxu1 %vm18525_vm14, %v18524_v35  ;;  %6556 = vmatprep.mubr.f32.mxu1 %v30218_v22  ;;  %vm30950_vm1 = vmmov %vm30935_vm0  ;;  %v18530_v45 = vpack.c.bf16 %v7097_v60, %v6974_v40  ;;  %vm24930_vm14 = vcmp.eq.s32.totalorder %v6791_v3, 1  ;;  %v24962_v40 = vpop.permute.xlu0 %20321  ;;  %v6807_v35 = vrot.slane %v24776_v58, %v21496_v46 }
 0x2d7   : > { %18535 = vmatprep.subr.msk.bf16.mxu1 %vm24841_vm13, %v18533_v57  ;;  %18125 = vmatmul.mubr.msk.f32.gmra.mrb[46].mxu0 %vm30949_vm4, %v23647_v0  ;;  %vm30951_vm8 = vmmov %vm30941_vm6  ;;  %v6779_v57 = vrot.slane %v24776_v58, %v30588_v11  ;;  %vm6734_vm4 = vcmp.lt.s32.totalorder %v6726_v41, 56 }
 0x2d8   : > { %7269 = vmatprep.mubr.f32.mxu0 %v30218_v22  ;;  %vm24898_vm0 = vmpackc.low %vm30951_vm8, %vm24866_vm5  ;;  %vm6730_vm5 = vcmp.ge.s32.totalorder %v6726_v41, 0 }
 0x2d9   : > { %17404 = vmatmul.mubr.msk.f32.gmra.mrb[26].mxu1 %vm30950_vm1, %v24115_v23  ;;  %v7000_v23 = vsel %vm6969_vm15, %v20234_v28, %v20288_v10  ;;  %vm30956_vm2 = vmmov %vm30941_vm6  ;;  %v7005_v10 = vsel %vm6969_vm15, %v20308_v7, %v20283_v48  ;;  %v20328_v28 = vunpack.i.l.bf16 %v24994_v42 }
 0x2da   : > { %6562 = vmatprep.mubr.f32.mxu1 %v30218_v22  ;;  %vm24924_vm12 = vmpackc.low %vm30956_vm2, %vm24845_vm3  ;;  %v7099_v3 = vsel %vm24907_vm9, %v7000_v23, 0.0  ;;  %v7104_v21 = vsel %vm24930_vm14, %v7005_v10, 0.0  ;;  %v20303_v10 = vunpack.i.l.bf16 %v24813_v61 }
 0x2db   : > { %vm30959_vm11 = vmmov %vm30950_vm1  ;;  %v18536_v60 = vpack.c.bf16 %v7099_v3, %v6976_v43  ;;  %v18545_v23 = vpack.c.bf16 %v7104_v21, %v6981_v53  ;;  %v7004_v43 = vsel %vm6969_vm15, %v20254_v51, %v20308_v7  ;;  %v20329_v3 = vunpack.i.h.bf16 %v24994_v42  ;;  %v25070_v21 = vpop.permute.xlu1 %20336 }
 0x2dc   : > { %17415 = vmatmul.mubr.msk.f32.vlgmr.msra.gmra.mrb[0].mxu0 %vm30959_vm11, %v24889_v14  ;;  %vm30962_vm6 = vmmov %vm30950_vm1  ;;  %v20304_v53 = vunpack.i.h.bf16 %v24813_v61  ;;  %v7009_v51 = vsel %vm6969_vm15, %v20328_v28, %v20303_v10  ;;  %v6795_v7 = vrot.slane %v24776_v58, %v21513_v36  ;;  %v7008_v44 = vsel %vm6969_vm15, %v20274_v33, %v20328_v28 }
 0x2dd   : > { %18532 = vmatpush1.bf16.msk.msra.mxu0 %vm24898_vm0, %v18530_v45  ;;  %7275 = vmatprep.mubr.f32.mxu0 %v30218_v22  ;;  %vm30963_vm13 = vmmov %vm30950_vm1  ;;  %vm25004_vm0 = vcmp.eq.s32.totalorder %v6779_v57, 1  ;;  %v7007_v45 = vsel %vm6969_vm15, %v20273_v54, %v20274_v33  ;;  %v25035_v57 = vpop.permute.xlu0 %20331 }
 0x2de   : > { %18541 = vmatprep.subr.msk.bf16.mxu0 %vm24924_vm12, %v18539_v4  ;;  %17405 = vmatmul.mubr.msk.f32.gmra.mrb[28].mxu1 %vm30962_vm6, %v23647_v0  ;;  %vm30964_vm3 = vmmov %vm30956_vm2  ;;  %v6978_v4 = vsel %vm6969_vm15, %v20264_v25, %v20258_v12  ;;  %v7101_v41 = vsel %vm25004_vm0, %v7002_v17, 0.0  ;;  %v6983_v25 = vsel %vm6969_vm15, %v20278_v13, %v20279_v2  ;;  %v6985_v5 = vsel %vm6969_vm15, %v20329_v3, %v20304_v53 }
 0x2df   : > { %7352 = vmatprep.mubr.f32.mxu1 %v30218_v22  ;;  %vm24983_vm7 = vmpackc.low %vm30964_vm3, %vm24907_vm9  ;;  %vm25008_vm9 = vcmp.eq.s32.totalorder %v6799_v37, 1  ;;  %vm25056_vm3 = vcmp.eq.s32.totalorder %v6787_v30, 1  ;;  %v18542_v0 = vpack.c.bf16 %v7101_v41, %v6978_v4  ;;  %v6982_v12 = vsel %vm6969_vm15, %v20284_v1, %v20278_v13 }
 0x2e0   : > { %17416 = vmatmul.mubr.msk.f32.gmra.mrb[2].mxu0 %vm30963_vm13, %v24946_v27  ;;  %vm30967_vm1 = vmmov %vm30956_vm2  ;;  %v7106_v15 = vsel %vm25008_vm9, %v7007_v45, 0.0  ;;  %v20338_v1 = vunpack.i.l.bf16 %v25070_v21 }
 0x2e1   : > { %7281 = vmatprep.mubr.f32.mxu0 %v30218_v22  ;;  %vm25000_vm8 = vmpackc.low %vm30967_vm1, %vm24930_vm14  ;;  %v18551_v30 = vpack.c.bf16 %v7106_v15, %v6983_v25  ;;  %v25099_v34 = vpop.permute.xlu0 %20341  ;;  %v20299_v15 = vunpack.i.h.bf16 %v24785_v32  ;;  %v20298_v25 = vunpack.i.l.bf16 %v24785_v32 }
 0x2e2   : > { %vm30974_vm2 = vmmov %vm30962_vm6 }
 0x2e3   : > { %17422 = vmatmul.mubr.msk.f32.vlgmr.msra.gmra.mrb[30].mxu1 %vm30974_vm2, %v24889_v14  ;;  %vm6738_vm12 = vmand %vm6730_vm5, %vm6734_vm4  ;;  %v6986_v13 = vsel %vm6969_vm15, %v20304_v53, %v20298_v25  ;;  %v20333_v53 = vunpack.i.l.bf16 %v25035_v57 }
 0x2e4   : > { %18538 = vmatpush1.bf16.msk.msra.mxu1 %vm24983_vm7, %v18536_v60  ;;  %7358 = vmatprep.mubr.f32.mxu1 %v30218_v22  ;;  %vm30975_vm11 = vmmov %vm30974_vm2  ;;  %v25061_v37 = vsel %vm6738_vm12, 1, %v30563_v16  ;;  %v6980_v60 = vsel %vm6969_vm15, %v20259_v38, %v20309_v6  ;;  %v7006_v38 = vsel %vm6969_vm15, %v20283_v48, %v20273_v54  ;;  %v25123_v6 = vpop.permute.xlu1 %20346  ;;  %v7011_v48 = vsel %vm6969_vm15, %v20293_v47, %v20294_v63 }
 0x2e5   : > { %18547 = vmatprep.subr.msk.bf16.mxu1 %vm25000_vm8, %v18545_v23  ;;  %17417 = vmatmul.mubr.msk.f32.gmra.mrb[4].mxu0 %vm30975_vm11, %v24473_v24  ;;  %vm30976_vm14 = vmmov %vm30974_vm2  ;;  %v6815_v17 = vrot.slane %v25061_v37, %v30567_v8  ;;  %v7103_v23 = vsel %vm25056_vm3, %v7004_v43, 0.0  ;;  %v6803_v54 = vrot.slane %v24776_v58, %v30361_v20  ;;  %v20323_v43 = vunpack.i.l.bf16 %v24962_v40 }
 0x2e6   : > { %7435 = vmatprep.mubr.f32.mxu0 %v30218_v22  ;;  %vm30977_vm6 = vmmov %vm30967_vm1  ;;  %v18548_v45 = vpack.c.bf16 %v7103_v23, %v6980_v60  ;;  %v6987_v60 = vsel %vm6969_vm15, %v20298_v25, %v20299_v15  ;;  %v20339_v23 = vunpack.i.h.bf16 %v25070_v21  ;;  %v25285_v25 = vld [vmem:[%s29741_s0 + $0x30] ss:$2 sm:$0x1] }
 0x2e7   : > { %17423 = vmatmul.mubr.msk.f32.gmra.mrb[32].mxu1 %vm30976_vm14, %v24946_v27  ;;  %vm18543_vm13 = vmpackc.low %vm30977_vm6, %vm25004_vm0  ;;  %vm25129_vm14 = vcmp.eq.s32.totalorder %v6795_v7, 1  ;;  %v7013_v28 = vsel %vm6969_vm15, %v20338_v1, %v20323_v43  ;;  %v6727_v33 = vadd.s32 1, %v25285_v25 }
 0x2e8   : > { %7364 = vmatprep.mubr.f32.mxu1 %v30218_v22  ;;  %vm30980_vm7 = vmmov %vm30967_vm1  ;;  %vm25078_vm1 = vcmp.eq.s32.totalorder %v6807_v35, 1  ;;  %v7105_v58 = vsel %vm25129_vm14, %v7006_v38, 0.0  ;;  %v25182_v7 = vpop.permute.xlu1 %20356  ;;  %v6984_v38 = vsel %vm6969_vm15, %v20279_v2, %v20329_v3  ;;  %v20313_v35 = vunpack.i.l.bf16 %v24877_v49 }
 0x2e9   : > { %vm18552_vm5 = vmpackc.low %vm30980_vm7, %vm25008_vm9  ;;  %v7108_v26 = vsel %vm25078_vm1, %v7009_v51, 0.0  ;;  %v20324_v51 = vunpack.i.h.bf16 %v24962_v40  ;;  %v7010_v2 = vsel %vm6969_vm15, %v20303_v10, %v20293_v47 }
 0x2ea   : > { %vm30981_vm4 = vmmov %vm30974_vm2  ;;  %v18557_v4 = vpack.c.bf16 %v7108_v26, %v6985_v5  ;;  %v6811_v5 = vrot.slane %v25061_v37, %v30588_v11  ;;  %v6831_v26 = vrot.slane %v25061_v37, %v30590_v39 }
 0x2eb   : > { %17429 = vmatmul.mubr.msk.f32.vlgmr.msra.gmra.mrb[12].mxu0 %vm30981_vm4, %v24889_v14  ;;  %vm30984_vm8 = vmmov %vm30974_vm2  ;;  %v6989_v9 = vsel %vm6969_vm15, %v20339_v23, %v20324_v51 }
 0x2ec   : > { %18544 = vmatpush1.bf16.msk.msra.mxu0 %vm18543_vm13, %v18542_v0  ;;  %7441 = vmatprep.mubr.f32.mxu0 %v30218_v22  ;;  %vm30985_vm0 = vmmov %vm30974_vm2  ;;  %vm25135_vm13 = vcmp.eq.s32.totalorder %v6815_v17, 1  ;;  %v25155_v0 = vpop.permute.xlu0 %20351  ;;  %v18554_v17 = vpack.c.bf16 %v7105_v58, %v6982_v12  ;;  %v25239_v3 = vpop.permute.xlu1 %20366  ;;  %v8356_v12 = vadd.s32 2, %v24459_v56  ;;  %v20318_v56 = vunpack.i.l.bf16 %v24918_v31 }
 0x2ed   : > { %18553 = vmatprep.subr.msk.bf16.mxu0 %vm18552_vm5, %v18551_v30  ;;  %17424 = vmatmul.mubr.msk.f32.gmra.mrb[34].mxu1 %vm30984_vm8, %v24473_v24  ;;  %vm30986_vm9 = vmmov %vm30977_vm6  ;;  %v6823_v30 = vrot.slane %v25061_v37, %v30397_v19  ;;  %v7110_v52 = vsel %vm25135_vm13, %v7011_v48, 0.0 }
 0x2ee   : > { %7518 = vmatprep.mubr.f32.mxu1 %v30218_v22  ;;  %vm18549_vm2 = vmpackc.low %vm30986_vm9, %vm25056_vm3  ;;  %v18563_v29 = vpack.c.bf16 %v7110_v52, %v6987_v60  ;;  %v20319_v52 = vunpack.i.h.bf16 %v24918_v31 }
 0x2ef   : > { %17430 = vmatmul.mubr.msk.f32.gmra.mrb[14].mxu0 %vm30985_vm0, %v24946_v27  ;;  %vm30987_vm12 = vmmov %vm30977_vm6 }
 0x2f0   : > { %7447 = vmatprep.mubr.f32.mxu0 %v30218_v22  ;;  %vm18558_vm11 = vmpackc.low %vm30987_vm12, %vm25078_vm1  ;;  %vm25172_vm1 = vcmp.eq.s32.totalorder %v6803_v54, 1  ;;  %v6988_v54 = vsel %vm6969_vm15, %v20299_v15, %v20339_v23  ;;  %v7014_v23 = vsel %vm6969_vm15, %v20323_v43, %v20313_v35  ;;  %v6835_v43 = vrot.slane %v25061_v37, %v30361_v20 }
 0x2f1   : > { %vm30990_vm6 = vmmov %vm30985_vm0  ;;  %v7107_v41 = vsel %vm25172_vm1, %v7008_v44, 0.0  ;;  %v20369_v15 = vunpack.i.h.bf16 %v25239_v3 }
 0x2f2   : > { %17436 = vmatmul.mubr.msk.f32.vlgmr.msra.gmra.mrb[0].mxu1 %vm30990_vm6, %v24889_v14  ;;  %vm30993_vm3 = vmmov %vm30985_vm0  ;;  %v18560_v48 = vpack.c.bf16 %v7107_v41, %v6984_v38  ;;  %v25306_v38 = vpop.permute.xlu1 %20376 }
 0x2f3   : > { %18550 = vmatpush1.bf16.msk.msra.mxu1 %vm18549_vm2, %v18548_v45  ;;  %7524 = vmatprep.mubr.f32.mxu1 %v30218_v22  ;;  %vm30994_vm7 = vmmov %vm30985_vm0  ;;  %vm25193_vm2 = vcmp.eq.s32.totalorder %v6823_v30, 1  ;;  %v20314_v45 = vunpack.i.h.bf16 %v24877_v49  ;;  %v6819_v30 = vrot.slane %v25061_v37, %v30398_v18 }
 0x2f4   : > { %18559 = vmatprep.subr.msk.bf16.mxu1 %vm18558_vm11, %v18557_v4  ;;  %17431 = vmatmul.mubr.msk.f32.gmra.mrb[16].mxu0 %vm30993_vm3, %v24473_v24  ;;  %vm30995_vm5 = vmmov %vm30986_vm9  ;;  %v25215_v4 = vpop.permute.xlu0 %20361  ;;  %v7112_v42 = vsel %vm25193_vm2, %v7013_v28, 0.0 }
 0x2f5   : > { %7601 = vmatprep.mubr.f32.mxu0 %v30218_v22  ;;  %vm18555_vm4 = vmpackc.low %vm30995_vm5, %vm25129_vm14  ;;  %v18569_v58 = vpack.c.bf16 %v7112_v42, %v6989_v9  ;;  %v7015_v47 = vsel %vm6969_vm15, %v20313_v35, %v20314_v45  ;;  %v20363_v44 = vunpack.i.l.bf16 %v25215_v4  ;;  %v20364_v41 = vunpack.i.h.bf16 %v25215_v4 }
 0x2f6   : > { %17437 = vmatmul.mubr.msk.f32.gmra.mrb[2].mxu1 %vm30994_vm7, %v24946_v27  ;;  %vm30998_vm8 = vmmov %vm30995_vm5  ;;  %vm25245_vm7 = vcmp.eq.s32.totalorder %v6811_v5, 1  ;;  %v6991_v42 = vsel %vm6969_vm15, %v20318_v56, %v20319_v52 }
 0x2f7   : > { %7530 = vmatprep.mubr.f32.mxu1 %v30218_v22  ;;  %vm18564_vm0 = vmpackc.low %vm30998_vm8, %vm25135_vm13  ;;  %v7109_v60 = vsel %vm25245_vm7, %v7010_v2, 0.0  ;;  %v20334_v2 = vunpack.i.h.bf16 %v25035_v57  ;;  %v7016_v28 = vsel %vm6969_vm15, %v20314_v45, %v20363_v44 }
 0x2f8   : > { %vm30999_vm9 = vmmov %vm30993_vm3  ;;  %v18566_v9 = vpack.c.bf16 %v7109_v60, %v6986_v13  ;;  %v6990_v60 = vsel %vm6969_vm15, %v20324_v51, %v20318_v56  ;;  %v20378_v51 = vunpack.i.l.bf16 %v25306_v38 }
 0x2f9   : > { %17443 = vmatmul.mubr.msk.f32.vlgmr.msra.gmra.mrb[18].mxu0 %vm30999_vm9, %v24889_v14  ;;  %vm31002_vm12 = vmmov %vm30993_vm3  ;;  %v6993_v21 = vsel %vm6969_vm15, %v20364_v41, %v20334_v2 }
 0x2fa   : > { %18556 = vmatpush1.bf16.msk.msra.mxu0 %vm18555_vm4, %v18554_v17  ;;  %7607 = vmatprep.mubr.f32.mxu0 %v30218_v22  ;;  %vm31003_vm11 = vmmov %vm30993_vm3  ;;  %vm25252_vm4 = vcmp.eq.s32.totalorder %v6831_v26, 1  ;;  %v25270_v17 = vpop.permute.xlu0 %20371  ;;  %v7012_v26 = vsel %vm6969_vm15, %v20294_v63, %v20338_v1  ;;  %v7017_v1 = vsel %vm6969_vm15, %v20363_v44, %v20333_v53  ;;  %v20379_v44 = vunpack.i.h.bf16 %v25306_v38 }
 0x2fb   : > { %18565 = vmatprep.subr.msk.bf16.mxu0 %vm18564_vm0, %v18563_v29  ;;  %17438 = vmatmul.mubr.msk.f32.gmra.mrb[4].mxu1 %vm31002_vm12, %v24473_v24  ;;  %vm31004_vm14 = vmmov %vm30995_vm5  ;;  %v6839_v29 = vrot.slane %v25061_v37, %v21496_v46  ;;  %v7114_v61 = vsel %vm25252_vm4, %v7015_v47, 0.0  ;;  %vm8360_vm12 = vcmp.ge.s32.totalorder %v8356_v12, 0  ;;  %v20344_v63 = vunpack.i.h.bf16 %v25099_v34 }
 0x2fc   : > { %7684 = vmatprep.mubr.f32.mxu1 %v30218_v22  ;;  %vm18561_vm6 = vmpackc.low %vm31004_vm14, %vm25172_vm1  ;;  %v18575_v50 = vpack.c.bf16 %v7114_v61, %v6991_v42 }
 0x2fd   : > { %17444 = vmatmul.mubr.msk.f32.gmra.mrb[20].mxu0 %vm31003_vm11, %v24946_v27  ;;  %vm31005_vm13 = vmmov %vm30995_vm5 }
 0x2fe   : > { %7613 = vmatprep.mubr.f32.mxu0 %v30218_v22  ;;  %vm18570_vm3 = vmpackc.low %vm31005_vm13, %vm25193_vm2  ;;  %vm25297_vm2 = vcmp.eq.s32.totalorder %v6819_v30, 1  ;;  %v20349_v30 = vunpack.i.h.bf16 %v25123_v6 }
 0x2ff   : > { %vm31008_vm5 = vmmov %vm30999_vm9  ;;  %v7111_v10 = vsel %vm25297_vm2, %v7012_v26, 0.0 }
 0x300   : > { %17450 = vmatmul.mubr.msk.f32.vlgmr.msra.gmra.mrb[6].mxu1 %vm31008_vm5, %v24889_v14  ;;  %vm31011_vm1 = vmmov %vm31008_vm5  ;;  %v18572_v47 = vpack.c.bf16 %v7111_v10, %v6988_v54 }
 0x301   : > { %18562 = vmatpush1.bf16.msk.msra.mxu1 %vm18561_vm6, %v18560_v48  ;;  %7690 = vmatprep.mubr.f32.mxu1 %v30218_v22  ;;  %vm31012_vm8 = vmmov %vm31011_vm1  ;;  %v6827_v48 = vrot.slane %v25061_v37, %v21513_v36 }
 0x302   : > { %18571 = vmatprep.subr.msk.bf16.mxu1 %vm18570_vm3, %v18569_v58  ;;  %17445 = vmatmul.mubr.msk.f32.gmra.mrb[22].mxu0 %vm31011_vm1, %v24473_v24  ;;  %vm31013_vm0 = vmmov %vm31005_vm13  ;;  %vm25318_vm13 = vcmp.eq.s32.totalorder %v6839_v29, 1  ;;  %vm8364_vm3 = vcmp.lt.s32.totalorder %v8356_v12, 56  ;;  %v25338_v58 = vpop.permute.xlu0 %8754  ;;  %v25367_v12 = vpop.permute.xlu1 %20381 }
 0x303   : > { %7767 = vmatprep.mubr.f32.mxu0 %v30218_v22  ;;  %vm25293_vm9 = vmpackc.low %vm31013_vm0, %vm25245_vm7  ;;  %v7116_v32 = vsel %vm25318_vm13, %v7017_v1, 0.0  ;;  %v20383_v29 = vunpack.i.l.bf16 %v25367_v12  ;;  %v20384_v56 = vunpack.i.h.bf16 %v25367_v12  ;;  %v20343_v1 = vunpack.i.l.bf16 %v25099_v34 }
 0x304   : > { %17451 = vmatmul.mubr.msk.f32.gmra.mrb[8].mxu1 %vm31012_vm8, %v24946_v27  ;;  %vm31018_vm11 = vmmov %vm31013_vm0  ;;  %v18581_v13 = vpack.c.bf16 %v7116_v32, %v6993_v21  ;;  %v8357_v21 = vadd.s32 2, %v24676_v55 }
 0x305   : > { %7696 = vmatprep.mubr.f32.mxu1 %v30218_v22  ;;  %vm18576_vm14 = vmpackc.low %vm31018_vm11, %vm25252_vm4  ;;  %vm6731_vm4 = vcmp.ge.s32.totalorder %v6727_v33, 0 }
 0x306   : > { %vm31019_vm6 = vmmov %vm31011_vm1  ;;  %v25391_v61 = vpop.permute.xlu0 %20386  ;;  %v25431_v42 = vpop.permute.xlu1 %20391 }
 0x307   : > { %17457 = vmatmul.mubr.msk.f32.vlgmr.msra.gmra.mrb[24].mxu0 %vm31019_vm6, %v24889_v14  ;;  %vm31022_vm7 = vmmov %vm31011_vm1  ;;  %vm6735_vm1 = vcmp.lt.s32.totalorder %v6727_v33, 56 }
 0x308   : > { %18568 = vmatpush1.bf16.msk.msra.mxu0 %vm25293_vm9, %v18566_v9  ;;  %7773 = vmatprep.mubr.f32.mxu0 %v30218_v22  ;;  %vm25353_vm5 = vmand %vm8360_vm12, %vm8364_vm3  ;;  %vm8601_vm3 = vcmask 1006592  }
 0x309   : > { %18577 = vmatprep.subr.msk.bf16.mxu0 %vm18576_vm14, %v18575_v50  ;;  %17452 = vmatmul.mubr.msk.f32.gmra.mrb[10].mxu1 %vm31022_vm7, %v24473_v24  ;;  %vm31025_vm8 = vmmov %vm31019_vm6  ;;  %vm25373_vm14 = vcmp.eq.s32.totalorder %v6827_v48, 1  ;;  %v25385_v35 = vsel %vm25353_vm5, 1, %v30563_v16  ;;  %v8629_v49 = vsel %vm8601_vm3, %v20383_v29, %v20378_v51  ;;  %v6992_v48 = vsel %vm6969_vm15, %v20319_v52, %v20364_v41 }
 0x30a   : > { %7850 = vmatprep.mubr.f32.mxu1 %v30218_v22  ;;  %vm18573_vm9 = vmpackc.low %vm31013_vm0, %vm25297_vm2  ;;  %v7113_v37 = vsel %vm25373_vm14, %v7014_v23, 0.0  ;;  %v8391_v33 = vrot.slane %v25385_v35, %v30397_v19  ;;  %v8383_v50 = vrot.slane %v25385_v35, %v30567_v8  ;;  %v25443_v54 = vpop.permute.xlu0 %20396  ;;  %v8605_v31 = vsel %vm8601_vm3, %v20384_v56, %v20379_v44  ;;  %v25485_v55 = vpop.permute.xlu1 %20401 }
 0x30b   : > { %17458 = vmatmul.mubr.msk.f32.gmra.mrb[26].mxu0 %vm31025_vm8, %v24946_v27  ;;  %vm31026_vm12 = vmmov %vm31013_vm0  ;;  %v18578_v5 = vpack.c.bf16 %v7113_v37, %v6990_v60  ;;  %v8627_v23 = vsel %vm8601_vm3, %v20343_v1, %v20344_v63  ;;  %v20398_v60 = vunpack.i.l.bf16 %v25443_v54  ;;  %v8628_v9 = vsel %vm8601_vm3, %v20344_v63, %v20383_v29 }
 0x30c   : > { %7779 = vmatprep.mubr.f32.mxu0 %v30218_v22  ;;  %vm18582_vm11 = vmpackc.low %vm31026_vm12, %vm25318_vm13  ;;  %v20353_v63 = vunpack.i.l.bf16 %v25155_v0  ;;  %v8403_v34 = vrot.slane %v25385_v35, %v30361_v20 }
 0x30d   : > { %vm31029_vm2 = vmmov %vm31019_vm6 }
 0x30e   : > { %17464 = vmatmul.mubr.msk.f32.vlgmr.msra.gmra.mrb[12].mxu1 %vm31029_vm2, %v24889_v14  ;;  %vm6739_vm6 = vmand %vm6731_vm4, %vm6735_vm1  ;;  %vm25414_vm1 = vcmp.eq.s32.totalorder %v6835_v43, 1  ;;  %v25493_v37 = vpop.permute.xlu0 %20406 }
 0x30f   : > { %18574 = vmatpush1.bf16.msk.msra.mxu1 %vm18573_vm9, %v18572_v47  ;;  %7856 = vmatprep.mubr.f32.mxu1 %v30218_v22  ;;  %vm31030_vm13 = vmmov %vm31029_vm2  ;;  %v6743_v40 = vsel %vm6739_vm6, 1, %v30563_v16  ;;  %v7115_v10 = vsel %vm25414_vm1, %v7016_v28, 0.0  ;;  %v8387_v47 = vrot.slane %v25385_v35, %v30398_v18  ;;  %v20403_v28 = vunpack.i.l.bf16 %v25485_v55 }
 0x310   : > { %18583 = vmatprep.subr.msk.bf16.mxu1 %vm18582_vm11, %v18581_v13  ;;  %17459 = vmatmul.mubr.msk.f32.gmra.mrb[28].mxu0 %vm31030_vm13, %v24473_v24  ;;  %vm31031_vm7 = vmmov %vm31029_vm2  ;;  %v6843_v45 = vrot.slane %v6743_v40, %v30588_v11  ;;  %v18584_v41 = vpack.c.bf16 %v7115_v10, %v6992_v48  ;;  %v20348_v13 = vunpack.i.l.bf16 %v25123_v6  ;;  %v20404_v48 = vunpack.i.h.bf16 %v25485_v55  ;;  %v25544_v10 = vpop.permute.xlu1 %20411 }
 0x311   : > { %7933 = vmatprep.mubr.f32.mxu0 %v30218_v22  ;;  %vm31032_vm5 = vmmov %vm31013_vm0  ;;  %vm25420_vm0 = vcmp.eq.s32.totalorder %v8391_v33, 1  ;;  %v8407_v33 = vrot.slane %v25385_v35, %v21496_v46  ;;  %v8633_v29 = vsel %vm8601_vm3, %v20403_v28, %v20398_v60 }
 0x312   : > { %17465 = vmatmul.mubr.msk.f32.gmra.mrb[14].mxu1 %vm31031_vm7, %v24946_v27  ;;  %vm18579_vm4 = vmpackc.low %vm31032_vm5, %vm25373_vm14  ;;  %v8728_v4 = vsel %vm25420_vm0, %v8629_v49, 0.0  ;;  %vm25463_vm14 = vcmp.eq.s32.totalorder %v6843_v45, 1  ;;  %v20399_v49 = vunpack.i.h.bf16 %v25443_v54  ;;  %v8603_v45 = vsel %vm8601_vm3, %v20348_v13, %v20349_v30 }
 0x313   : > { %7862 = vmatprep.mubr.f32.mxu1 %v30218_v22  ;;  %vm31035_vm8 = vmmov %vm31029_vm2  ;;  %v18597_v32 = vpack.c.bf16 %v8728_v4, %v8605_v31  ;;  %v7117_v43 = vsel %vm25463_vm14, %v20333_v53, 0.0  ;;  %v8604_v31 = vsel %vm8601_vm3, %v20349_v30, %v20384_v56  ;;  %v25552_v4 = vpop.permute.xlu0 %20416  ;;  %v8399_v56 = vrot.slane %v25385_v35, %v30590_v39 }
 0x314   : > { %17471 = vmatmul.mubr.msk.f32.vlgmr.msra.gmra.mrb[30].mxu0 %vm31035_vm8, %v24889_v14  ;;  %vm31038_vm9 = vmmov %vm31029_vm2  ;;  %v18588_v26 = vpack.c.bf16 %v7117_v43, %v20334_v2  ;;  %v20374_v43 = vunpack.i.h.bf16 %v25270_v17  ;;  %v25604_v53 = vpop.permute.xlu1 %20421  ;;  %v20389_v30 = vunpack.i.h.bf16 %v25391_v61 }
 0x315   : > { %18580 = vmatpush1.bf16.msk.msra.mxu0 %vm18579_vm4, %v18578_v5  ;;  %7939 = vmatprep.mubr.f32.mxu0 %v30218_v22  ;;  %vm31039_vm15 = vmmov %vm31029_vm2 }
 0x316   : > { %17466 = vmatmul.mubr.msk.f32.gmra.mrb[16].mxu1 %vm31038_vm9, %v24473_v24  ;;  %18587 = vmatprep.subr.bf16.mxu0 %v30764_v59  ;;  %vm31040_vm12 = vmmov %vm31032_vm5  ;;  %vm8361_vm9 = vcmp.ge.s32.totalorder %v8357_v21, 0 }
 0x317   : > { %8016 = vmatprep.mubr.f32.mxu1 %v30218_v22  ;;  %vm18585_vm11 = vmpackc.low %vm31040_vm12, %vm25414_vm1 }
 0x318   : > { %17472 = vmatmul.mubr.msk.f32.gmra.mrb[32].mxu0 %vm31039_vm15, %v24946_v27  ;;  %vm31043_vm2 = vmmov %vm31032_vm5  ;;  %vm8365_vm15 = vcmp.lt.s32.totalorder %v8357_v21, 56  ;;  %v8626_v21 = vsel %vm8601_vm3, %v20353_v63, %v20343_v1  ;;  %v8632_v63 = vsel %vm8601_vm3, %v20369_v15, %v20403_v28 }
 0x319   : > { %7945 = vmatprep.mubr.f32.mxu0 %v30218_v22  ;;  %vm18598_vm6 = vmpackc.low %vm31043_vm2, %vm25420_vm0  ;;  %vm25512_vm0 = vcmp.eq.s32.totalorder %v8387_v47, 1  ;;  %v20354_v47 = vunpack.i.h.bf16 %v25155_v0 }
 0x31a   : > { %vm31044_vm13 = vmmov %vm31031_vm7  ;;  %vm25474_vm7 = vcmp.eq.s32.totalorder %v8383_v50, 1  ;;  %v8379_v50 = vrot.slane %v25385_v35, %v30588_v11  ;;  %v8727_v52 = vsel %vm25512_vm0, %v8628_v9, 0.0 }
 0x31b   : > { %17478 = vmatmul.mubr.msk.f32.vlgmr.msra.gmra.mrb[18].mxu1 %vm31044_vm13, %v24889_v14  ;;  %vm31047_vm5 = vmmov %vm31035_vm8  ;;  %v8726_v40 = vsel %vm25474_vm7, %v8627_v23, 0.0  ;;  %v20368_v23 = vunpack.i.l.bf16 %v25239_v3  ;;  %v18600_v0 = vpack.c.bf16 %v8727_v52, %v8604_v31  ;;  %v8602_v9 = vsel %vm8601_vm3, %v20354_v47, %v20348_v13 }
 0x31c   : > { %18586 = vmatpush1.bf16.msk.msra.mxu1 %vm18585_vm11, %v18584_v41  ;;  %8022 = vmatprep.mubr.f32.mxu1 %v30218_v22  ;;  %vm31048_vm4 = vmmov %vm31047_vm5  ;;  %v18591_v57 = vpack.c.bf16 %v8726_v40, %v8603_v45  ;;  %v8609_v41 = vsel %vm8601_vm3, %v20404_v48, %v20399_v49  ;;  %v20418_v45 = vunpack.i.l.bf16 %v25552_v4  ;;  %v20423_v13 = vunpack.i.l.bf16 %v25604_v53 }
 0x31d   : > { %18599 = vmatprep.subr.msk.bf16.mxu1 %vm18598_vm6, %v18597_v32  ;;  %17473 = vmatmul.mubr.msk.f32.gmra.mrb[34].mxu0 %vm31047_vm5, %v24473_v24  ;;  %vm31049_vm1 = vmmov %vm31043_vm2  ;;  %vm25531_vm2 = vcmp.eq.s32.totalorder %v8407_v33, 1  ;;  %v20373_v33 = vunpack.i.l.bf16 %v25270_v17  ;;  %v20419_v31 = vunpack.i.h.bf16 %v25552_v4  ;;  %v20424_v32 = vunpack.i.h.bf16 %v25604_v53 }
 0x31e   : > { %8099 = vmatprep.mubr.f32.mxu0 %v30218_v22  ;;  %vm25508_vm8 = vmpackc.low %vm31049_vm1, %vm25463_vm14  ;;  %v8732_v12 = vsel %vm25531_vm2, %v8633_v29, 0.0  ;;  %v8631_v29 = vsel %vm8601_vm3, %v20368_v23, %v20369_v15  ;;  %v8637_v28 = vsel %vm8601_vm3, %v20423_v13, %v20418_v45  ;;  %v25663_v15 = vpop.permute.xlu1 %20431  ;;  %v8608_v47 = vsel %vm8601_vm3, %v20374_v43, %v20404_v48 }
 0x31f   : > { %17479 = vmatmul.mubr.msk.f32.gmra.mrb[20].mxu1 %vm31048_vm4, %v24946_v27  ;;  %vm31054_vm12 = vmmov %vm31049_vm1  ;;  %v18609_v40 = vpack.c.bf16 %v8732_v12, %v8609_v41  ;;  %v8607_v6 = vsel %vm8601_vm3, %v20373_v33, %v20374_v43  ;;  %v8613_v55 = vsel %vm8601_vm3, %v20424_v32, %v20419_v31  ;;  %v8395_v43 = vrot.slane %v25385_v35, %v21513_v36 }
 0x320   : > { %8028 = vmatprep.mubr.f32.mxu1 %v30218_v22  ;;  %vm18592_vm11 = vmpackc.low %vm31054_vm12, %vm25474_vm7  ;;  %v8358_v35 = vadd.s32 2, %v24942_v62  ;;  %v8630_v62 = vsel %vm8601_vm3, %v20378_v51, %v20368_v23  ;;  %v8606_v3 = vsel %vm8601_vm3, %v20379_v44, %v20373_v33 }
 0x321   : > { %vm31055_vm14 = vmmov %vm31048_vm4 }
 0x322   : > { %17485 = vmatmul.mubr.msk.f32.vlgmr.msra.gmra.mrb[36].mxu0 %vm31055_vm14, %v24889_v14  ;;  %vm31058_vm6 = vmmov %vm31048_vm4 }
 0x323   : > { %18590 = vmatpush3.bf16.msk.msra.mxu0 %vm25508_vm8, %v18588_v26  ;;  %8105 = vmatprep.mubr.f32.mxu0 %v30218_v22  ;;  %vm25570_vm13 = vmand %vm8361_vm9, %vm8365_vm15  ;;  %vm25607_vm15 = vcmp.eq.s32.totalorder %v8399_v56, 1 }
 0x324   : > { %18593 = vmatprep.subr.msk.bf16.mxu0 %vm18592_vm11, %v18591_v57  ;;  %17480 = vmatmul.mubr.msk.f32.gmra.mrb[22].mxu1 %vm31058_vm6, %v24473_v24  ;;  %vm31061_vm7 = vmmov %vm31048_vm4  ;;  %v25602_v1 = vsel %vm25570_vm13, 1, %v30563_v16  ;;  %v25617_v57 = vpop.permute.xlu0 %20426  ;;  %v8730_v41 = vsel %vm25607_vm15, %v8631_v29, 0.0 }
 0x325   : > { %8182 = vmatprep.mubr.f32.mxu1 %v30218_v22  ;;  %vm31062_vm5 = vmmov %vm31049_vm1  ;;  %vm25582_vm1 = vcmp.eq.s32.totalorder %v8379_v50, 1  ;;  %v8423_v26 = vrot.slane %v25602_v1, %v30397_v19  ;;  %v18603_v12 = vpack.c.bf16 %v8730_v41, %v8607_v6  ;;  %v8419_v29 = vrot.slane %v25602_v1, %v30398_v18 }
 0x326   : > { %17486 = vmatmul.mubr.msk.f32.gmra.mrb[38].mxu0 %vm31061_vm7, %v24946_v27  ;;  %vm18601_vm4 = vmpackc.low %vm31062_vm5, %vm25512_vm0  ;;  %v8725_v2 = vsel %vm25582_vm1, %v8626_v21, 0.0  ;;  %v20388_v21 = vunpack.i.l.bf16 %v25391_v61  ;;  %v20394_v6 = vunpack.i.h.bf16 %v25431_v42  ;;  %v20393_v50 = vunpack.i.l.bf16 %v25431_v42 }
 0x327   : > { %8111 = vmatprep.mubr.f32.mxu0 %v30218_v22  ;;  %vm31065_vm8 = vmmov %vm31062_vm5  ;;  %v18594_v52 = vpack.c.bf16 %v8725_v2, %v8602_v9  ;;  %v25734_v41 = vunpack.i.h.bf16 %v25182_v7  ;;  %v20408_v9 = vunpack.i.l.bf16 %v25493_v37 }
 0x328   : > { %vm18610_vm9 = vmpackc.low %vm31065_vm8, %vm25531_vm2  ;;  %v8635_v2 = vsel %vm8601_vm3, %v20388_v21, %v20389_v30 }
 0x329   : > { %vm31066_vm0 = vmmov %vm31058_vm6  ;;  %vm25637_vm6 = vcmp.eq.s32.totalorder %v8403_v34, 1  ;;  %v25691_v34 = vunpack.i.l.bf16 %v25182_v7  ;;  %v8439_v7 = vrot.slane %v25602_v1, %v21496_v46 }
 0x32a   : > { %17492 = vmatmul.mubr.msk.f32.vlgmr.msra.gmra.mrb[24].mxu1 %vm31066_vm0, %v24889_v14  ;;  %vm31069_vm12 = vmmov %vm31066_vm0 }
 0x32b   : > { %18602 = vmatpush1.bf16.msk.msra.mxu1 %vm18601_vm4, %v18600_v0  ;;  %8188 = vmatprep.mubr.f32.mxu1 %v30218_v22  ;;  %vm31070_vm11 = vmmov %vm31066_vm0  ;;  %vm25653_vm4 = vcmp.eq.s32.totalorder %v8423_v26, 1  ;;  %v25674_v0 = vpop.permute.xlu0 %20436  ;;  %v8612_v26 = vsel %vm8601_vm3, %v20394_v6, %v20424_v32 }
 0x32c   : > { %18611 = vmatprep.subr.msk.bf16.mxu1 %vm18610_vm9, %v18609_v40  ;;  %17487 = vmatmul.mubr.msk.f32.gmra.mrb[40].mxu0 %vm31069_vm12, %v24473_v24  ;;  %vm31071_vm14 = vmmov %vm31062_vm5  ;;  %v8731_v40 = vsel %vm25637_vm6, %v8632_v63, 0.0  ;;  %v8736_v48 = vsel %vm25653_vm4, %v8637_v28, 0.0  ;;  %v25726_v63 = vpop.permute.xlu1 %20441  ;;  %v20438_v51 = vunpack.i.l.bf16 %v25674_v0  ;;  %v20439_v56 = vunpack.i.h.bf16 %v25674_v0 }
 0x32d   : > { %18131 = vmatprep.mubr.msk.f32.mxu0 %vm30453_vm10, %v30218_v22  ;;  %vm18595_vm2 = vmpackc.low %vm31071_vm14, %vm25582_vm1  ;;  %v18612_v5 = vpack.c.bf16 %v8731_v40, %v8608_v47  ;;  %v20443_v38 = vunpack.i.l.bf16 %v25726_v63  ;;  %v8359_v0 = vadd.s32 2, %v25285_v25 }
 0x32e   : > { %17493 = vmatmul.mubr.msk.f32.gmra.mrb[26].mxu1 %vm31070_vm11, %v24946_v27  ;;  %vm31074_vm13 = vmmov %vm31062_vm5 }
 0x32f   : > { %8194 = vmatprep.mubr.f32.mxu1 %v30218_v22  ;;  %vm18604_vm7 = vmpackc.low %vm31074_vm13, %vm25607_vm15  ;;  %v25742_v23 = vpop.permute.xlu0 %20446  ;;  %v8641_v40 = vsel %vm8601_vm3, %v20443_v38, %v20438_v51 }
 0x330   : > { %vm31075_vm5 = vmmov %vm31066_vm0 }
 0x331   : > { %18132 = vmatmul.mubr.msk.f32.vlgmr.msra.gmra.mrb[42].mxu0 %vm31075_vm5, %v24889_v14  ;;  %v8415_v14 = vrot.slane %v25602_v1, %v30567_v8  ;;  %vm31078_vm1 = vmmov %vm31066_vm0 }
 0x332   : > { %18596 = vmatpush1.bf16.msk.msra.mxu0 %vm18595_vm2, %v18594_v52  ;;  %18134 = vmatprep.mubr.msk.f32.mxu0 %vm30453_vm10, %v30218_v22  ;;  %vm31079_vm8 = vmmov %vm31066_vm0  ;;  %vm25729_vm2 = vcmp.eq.s32.totalorder %v8395_v43, 1  ;;  %v8411_v43 = vrot.slane %v25602_v1, %v30588_v11 }
 0x333   : > { %18605 = vmatprep.subr.msk.bf16.mxu0 %vm18604_vm7, %v18603_v12  ;;  %17494 = vmatmul.mubr.msk.f32.gmra.mrb[28].mxu1 %vm31078_vm1, %v24473_v24  ;;  %vm31080_vm9 = vmmov %vm31074_vm13  ;;  %vm25710_vm14 = vcmp.eq.s32.totalorder %v8415_v14, 1  ;;  %v8729_v44 = vsel %vm25729_vm2, %v8630_v62, 0.0  ;;  %v8636_v12 = vsel %vm8601_vm3, %v20389_v30, %v20423_v13  ;;  %v8611_v14 = vsel %vm8601_vm3, %v20393_v50, %v20394_v6 }
 0x334   : > { %8984 = vmatprep.mubr.f32.mxu1 %v30218_v22  ;;  %vm18613_vm0 = vmpackc.low %vm31080_vm9, %vm25637_vm6  ;;  %v8734_v17 = vsel %vm25710_vm14, %v8635_v2, 0.0  ;;  %v18606_v28 = vpack.c.bf16 %v8729_v44, %v8606_v3  ;;  %v25810_v2 = vpop.permute.xlu0 %20456  ;;  %v8634_v6 = vsel %vm8601_vm3, %v20398_v60, %v20388_v21  ;;  %v20413_v44 = vunpack.i.l.bf16 %v25544_v10 }
 0x335   : > { %18135 = vmatmul.mubr.msk.f32.gmra.mrb[44].mxu0 %vm31079_vm8, %v24946_v27  ;;  %vm31081_vm15 = vmmov %vm31080_vm9  ;;  %v18621_v27 = vpack.c.bf16 %v8736_v48, %v8613_v55  ;;  %v18615_v13 = vpack.c.bf16 %v8734_v17, %v8611_v14  ;;  %v20444_v55 = vunpack.i.h.bf16 %v25726_v63  ;;  %v25796_v48 = vpop.permute.xlu1 %20451  ;;  %v20414_v17 = vunpack.i.h.bf16 %v25544_v10 }
 0x336   : > { %18137 = vmatprep.mubr.msk.f32.mxu0 %vm30453_vm10, %v30218_v22  ;;  %vm25703_vm12 = vmpackc.low %vm31081_vm15, %vm25653_vm4  ;;  %vm25765_vm4 = vcmp.eq.s32.totalorder %v8419_v29, 1  ;;  %vm25786_vm15 = vcmp.eq.s32.totalorder %v8439_v7, 1  ;;  %v8435_v7 = vrot.slane %v25602_v1, %v30361_v20  ;;  %v20459_v30 = vunpack.i.h.bf16 %v25810_v2 }
 0x337   : > { %vm31084_vm11 = vmmov %vm31078_vm1  ;;  %v8735_v29 = vsel %vm25765_vm4, %v8636_v12, 0.0  ;;  %v8617_v53 = vsel %vm8601_vm3, %v20444_v55, %v20439_v56  ;;  %v8740_v32 = vsel %vm25786_vm15, %v8641_v40, 0.0  ;;  %v8610_v12 = vsel %vm8601_vm3, %v20399_v49, %v20393_v50 }
 0x338   : > { %17511 = vmatmul.mubr.msk.f32.vlgmr.msra.gmra.mrb[30].mxu1 %vm31084_vm11, %v25691_v34  ;;  %vm31089_vm6 = vmmov %vm31078_vm1  ;;  %v18624_v52 = vpack.c.bf16 %v8735_v29, %v8612_v26  ;;  %v18633_v61 = vpack.c.bf16 %v8740_v32, %v8617_v53  ;;  %v25881_v14 = vpop.permute.xlu0 %20466  ;;  %v8427_v53 = vrot.slane %v25602_v1, %v21513_v36  ;;  %v8616_v62 = vsel %vm8601_vm3, %v20414_v17, %v20444_v55 }
 0x339   : > { %18614 = vmatpush1.bf16.msk.msra.mxu1 %vm18613_vm0, %v18612_v5  ;;  %8990 = vmatprep.mubr.f32.mxu1 %v30218_v22  ;;  %vm31090_vm13 = vmmov %vm31078_vm1  ;;  %vm8362_vm1 = vcmp.ge.s32.totalorder %v8358_v35, 0  ;;  %v8431_v5 = vrot.slane %v25602_v1, %v30590_v39 }
 0x33a   : > { %18623 = vmatprep.subr.msk.bf16.mxu1 %vm25703_vm12, %v18621_v27  ;;  %18138 = vmatmul.mubr.msk.f32.gmra.mrb[46].mxu0 %vm31089_vm6, %v24473_v24  ;;  %vm31091_vm7 = vmmov %vm31080_vm9  ;;  %vm8366_vm12 = vcmp.lt.s32.totalorder %v8358_v35, 56  ;;  %v20409_v27 = vunpack.i.h.bf16 %v25493_v37  ;;  %v25867_v24 = vpop.permute.xlu1 %20461  ;;  %v21018_v37 = vld [vmem:[%s29741_s0] ss:$2 sm:$0xff] }
 0x33b   : > { %8901 = vmatprep.mubr.f32.mxu0 %v30218_v22  ;;  %vm25761_vm5 = vmpackc.low %vm31091_vm7, %vm25729_vm2  ;;  %v20463_v49 = vunpack.i.l.bf16 %v25867_v24 }
 0x33c   : > { %17512 = vmatmul.mubr.msk.f32.gmra.mrb[32].mxu1 %vm31090_vm13, %v25734_v41  ;;  %vm31096_vm8 = vmmov %vm31091_vm7  ;;  %v8639_v21 = vsel %vm8601_vm3, %v20408_v9, %v20409_v27  ;;  %v25939_v35 = vpop.permute.xlu0 %20476 }
 0x33d   : > { %8996 = vmatprep.mubr.f32.mxu1 %v30218_v22  ;;  %vm25780_vm9 = vmpackc.low %vm31096_vm8, %vm25710_vm14  ;;  %vm25856_vm8 = vcmp.eq.s32.totalorder %v8431_v5, 1 }
 0x33e   : > { %vm31099_vm0 = vmmov %vm31089_vm6  ;;  %v8738_v54 = vsel %vm25856_vm8, %v8639_v21, 0.0  ;;  %v25927_v29 = vpop.permute.xlu1 %20471 }
 0x33f   : > { %17504 = vmatmul.mubr.msk.f32.vlgmr.msra.gmra.mrb[0].mxu0 %vm31099_vm0, %v25691_v34  ;;  %vm31102_vm11 = vmmov %vm31099_vm0 }
 0x340   : > { %18608 = vmatpush1.bf16.msk.msra.mxu0 %vm25761_vm5, %v18606_v28  ;;  %8907 = vmatprep.mubr.f32.mxu0 %v30218_v22  ;;  %vm25828_vm14 = vmand %vm8362_vm1, %vm8366_vm12  ;;  %vm25850_vm1 = vcmp.eq.s32.totalorder %v8411_v43, 1  ;;  %v20458_v28 = vunpack.i.l.bf16 %v25810_v2  ;;  %v8615_v43 = vsel %vm8601_vm3, %v20413_v44, %v20414_v17  ;;  %v9988_v17 = vadd.s32 3, %v21018_v37 }
 0x341   : > { %18617 = vmatprep.subr.msk.bf16.mxu0 %vm25780_vm9, %v18615_v13  ;;  %17513 = vmatmul.mubr.msk.f32.gmra.mrb[34].mxu1 %vm31102_vm11, %v25338_v58  ;;  %vm31105_vm2 = vmmov %vm31099_vm0  ;;  %v25873_v33 = vsel %vm25828_vm14, 1, %v30563_v16  ;;  %v8733_v47 = vsel %vm25850_vm1, %v8634_v6, 0.0  ;;  %vm25900_vm11 = vcmp.eq.s32.totalorder %v8435_v7, 1  ;;  %v8640_v13 = vsel %vm8601_vm3, %v20409_v27, %v20443_v38 }
 0x342   : > { %9150 = vmatprep.mubr.f32.mxu1 %v30218_v22  ;;  %vm31106_vm6 = vmmov %vm31091_vm7  ;;  %v8455_v42 = vrot.slane %v25873_v33, %v30397_v19  ;;  %v18618_v40 = vpack.c.bf16 %v8733_v47, %v8610_v12  ;;  %v18627_v5 = vpack.c.bf16 %v8738_v54, %v8615_v43  ;;  %v8645_v38 = vsel %vm8601_vm3, %v20463_v49, %v20458_v28  ;;  %v25995_v50 = vpop.permute.xlu1 %20481  ;;  %v26006_v43 = vpop.permute.xlu0 %20486 }
 0x343   : > { %17505 = vmatmul.mubr.msk.f32.gmra.mrb[2].mxu0 %vm31105_vm2, %v25734_v41  ;;  %vm18625_vm13 = vmpackc.low %vm31106_vm6, %vm25765_vm4  ;;  %v20464_v27 = vunpack.i.h.bf16 %v25867_v24  ;;  %v8447_v32 = vrot.slane %v25873_v33, %v30567_v8  ;;  %v20429_v6 = vunpack.i.h.bf16 %v25617_v57  ;;  %v8739_v1 = vsel %vm25900_vm11, %v8640_v13, 0.0 }
 0x344   : > { %8913 = vmatprep.mubr.f32.mxu0 %v30218_v22  ;;  %vm31107_vm7 = vmmov %vm31106_vm6  ;;  %v18636_v60 = vpack.c.bf16 %v8739_v1, %v8616_v62  ;;  %v8451_v47 = vrot.slane %v25873_v33, %v30398_v18  ;;  %v20433_v54 = vunpack.i.l.bf16 %v25663_v15  ;;  %v8614_v13 = vsel %vm8601_vm3, %v20419_v31, %v20413_v44 }
 0x345   : > { %vm25846_vm5 = vmpackc.low %vm31107_vm7, %vm25786_vm15  ;;  %v8621_v63 = vsel %vm8601_vm3, %v20464_v27, %v20459_v30  ;;  %v8471_v10 = vrot.slane %v25873_v33, %v21496_v46  ;;  %v20473_v31 = vunpack.i.l.bf16 %v25927_v29  ;;  %v20449_v7 = vunpack.i.h.bf16 %v25742_v23 }
 0x346   : > { %vm31112_vm4 = vmmov %vm31099_vm0  ;;  %v26060_v3 = vpop.permute.xlu1 %20491  ;;  %v20448_v37 = vunpack.i.l.bf16 %v25742_v23  ;;  %v8467_v44 = vrot.slane %v25873_v33, %v30361_v20  ;;  %v20484_v25 = vunpack.i.h.bf16 %v25995_v50 }
 0x347   : > { %17525 = vmatmul.mubr.msk.f32.vlgmr.msra.gmra.mrb[0].mxu1 %vm31112_vm4, %v25691_v34  ;;  %vm31115_vm9 = vmmov %vm31099_vm0 }
 0x348   : > { %18626 = vmatpush1.bf16.msk.msra.mxu1 %vm18625_vm13, %v18624_v52  ;;  %9156 = vmatprep.mubr.f32.mxu1 %v30218_v22  ;;  %vm31116_vm15 = vmmov %vm31106_vm6  ;;  %vm25917_vm13 = vcmp.eq.s32.totalorder %v8455_v42, 1  ;;  %v20428_v52 = vunpack.i.l.bf16 %v25617_v57  ;;  %v20434_v42 = vunpack.i.h.bf16 %v25663_v15 }
 0x349   : > { %18635 = vmatprep.subr.msk.bf16.mxu1 %vm25846_vm5, %v18633_v61  ;;  %17506 = vmatmul.mubr.msk.f32.gmra.mrb[4].mxu0 %vm31115_vm9, %v25338_v58  ;;  %vm18619_vm12 = vmpackc.low %vm31116_vm15, %vm25850_vm1  ;;  %v8744_v55 = vsel %vm25917_vm13, %v8645_v38, 0.0  ;;  %v8638_v61 = vsel %vm8601_vm3, %v20418_v45, %v20408_v9  ;;  %v8644_v38 = vsel %vm8601_vm3, %v20429_v6, %v20463_v49 }
 0x34a   : > { %9067 = vmatprep.mubr.f32.mxu0 %v30218_v22  ;;  %vm31119_vm14 = vmmov %vm31106_vm6  ;;  %v18645_v45 = vpack.c.bf16 %v8744_v55, %v8621_v63  ;;  %v8643_v12 = vsel %vm8601_vm3, %v20428_v52, %v20429_v6  ;;  %v8619_v62 = vsel %vm8601_vm3, %v20433_v54, %v20434_v42  ;;  %v20474_v55 = vunpack.i.h.bf16 %v25927_v29 }
 0x34b   : > { %17526 = vmatmul.mubr.msk.f32.gmra.mrb[2].mxu1 %vm31099_vm0, %v25734_v41  ;;  %vm18628_vm2 = vmpackc.low %vm31119_vm14, %vm25856_vm8  ;;  %v8620_v21 = vsel %vm8601_vm3, %v20434_v42, %v20464_v27 }
 0x34c   : > { %9162 = vmatprep.mubr.f32.mxu1 %v30218_v22  ;;  %vm31120_vm6 = vmmov %vm31099_vm0 }
 0x34d   : > { %17518 = vmatmul.mubr.msk.f32.vlgmr.msra.gmra.mrb[12].mxu0 %vm31120_vm6, %v25691_v34  ;;  %vm31123_vm7 = vmmov %vm31099_vm0 }
 0x34e   : > { %18620 = vmatpush1.bf16.msk.msra.mxu0 %vm18619_vm12, %v18618_v40  ;;  %9073 = vmatprep.mubr.f32.mxu0 %v30218_v22  ;;  %vm31124_vm5 = vmmov %vm31099_vm0  ;;  %vm25975_vm0 = vcmp.eq.s32.totalorder %v8427_v53, 1  ;;  %vm25984_vm12 = vcmp.eq.s32.totalorder %v8447_v32, 1  ;;  %v20468_v40 = vunpack.i.l.bf16 %v25881_v14  ;;  %v20469_v53 = vunpack.i.h.bf16 %v25881_v14 }
 0x34f   : > { %18629 = vmatprep.subr.msk.bf16.mxu0 %vm18628_vm2, %v18627_v5  ;;  %17527 = vmatmul.mubr.msk.f32.gmra.mrb[4].mxu1 %vm31123_vm7, %v25338_v58  ;;  %vm31125_vm1 = vmmov %vm31119_vm14  ;;  %v8737_v5 = vsel %vm25975_vm0, %v8638_v61, 0.0  ;;  %v8742_v4 = vsel %vm25984_vm12, %v8643_v12, 0.0  ;;  %vm9992_vm7 = vcmp.ge.s32.totalorder %v9988_v17, 0  ;;  %v8443_v61 = vrot.slane %v25873_v33, %v30588_v11 }
 0x350   : > { %9316 = vmatprep.mubr.f32.mxu1 %v30218_v22  ;;  %vm25958_vm4 = vmpackc.low %vm31125_vm1, %vm25900_vm11  ;;  %v18630_v32 = vpack.c.bf16 %v8737_v5, %v8614_v13  ;;  %v18639_v49 = vpack.c.bf16 %v8742_v4, %v8619_v62  ;;  %v8649_v63 = vsel %vm8601_vm3, %v20473_v31, %v20468_v40  ;;  %v8625_v24 = vsel %vm8601_vm3, %v20474_v55, %v20469_v53  ;;  %v26128_v4 = vpop.permute.xlu1 %20501 }
 0x351   : > { %17519 = vmatmul.mubr.msk.f32.gmra.mrb[14].mxu0 %vm31124_vm5, %v25734_v41  ;;  %vm31128_vm8 = vmmov %vm31125_vm1  ;;  %v8642_v12 = vsel %vm8601_vm3, %v20438_v51, %v20428_v52  ;;  %v8647_v52 = vsel %vm8601_vm3, %v20448_v37, %v20449_v7  ;;  %v20454_v5 = vunpack.i.h.bf16 %v25796_v48 }
 0x352   : > { %9079 = vmatprep.mubr.f32.mxu0 %v30218_v22  ;;  %vm25971_vm9 = vmpackc.low %vm31128_vm8, %vm25917_vm13  ;;  %vm26029_vm13 = vcmp.eq.s32.totalorder %v8451_v47, 1  ;;  %vm26050_vm8 = vcmp.eq.s32.totalorder %v8471_v10, 1  ;;  %v20453_v10 = vunpack.i.l.bf16 %v25796_v48 }
 0x353   : > { %vm31133_vm15 = vmmov %vm31124_vm5  ;;  %v8743_v9 = vsel %vm26029_vm13, %v8644_v38, 0.0  ;;  %v8748_v27 = vsel %vm26050_vm8, %v8649_v63, 0.0  ;;  %v8618_v38 = vsel %vm8601_vm3, %v20439_v56, %v20433_v54  ;;  %v8648_v56 = vsel %vm8601_vm3, %v20449_v7, %v20473_v31 }
 0x354   : > { %17539 = vmatmul.mubr.msk.f32.vlgmr.msra.gmra.mrb[6].mxu1 %vm31133_vm15, %v25691_v34  ;;  %vm31136_vm11 = vmmov %vm31124_vm5  ;;  %v18648_v47 = vpack.c.bf16 %v8743_v9, %v8620_v21  ;;  %v18657_v57 = vpack.c.bf16 %v8748_v27, %v8625_v24  ;;  %v26184_v21 = vpop.permute.xlu1 %20511  ;;  %v8459_v7 = vrot.slane %v25873_v33, %v21513_v36 }
 0x355   : > { %18638 = vmatpush1.bf16.msk.msra.mxu1 %vm25958_vm4, %v18636_v60  ;;  %9322 = vmatprep.mubr.f32.mxu1 %v30218_v22  ;;  %vm31137_vm14 = vmmov %vm31124_vm5  ;;  %v8463_v60 = vrot.slane %v25873_v33, %v30590_v39  ;;  %v8624_v33 = vsel %vm8601_vm3, %v20454_v5, %v20474_v55 }
 0x356   : > { %18647 = vmatprep.subr.msk.bf16.mxu1 %vm25971_vm9, %v18645_v45  ;;  %17520 = vmatmul.mubr.msk.f32.gmra.mrb[16].mxu0 %vm31136_vm11, %v25338_v58  ;;  %vm31138_vm2 = vmmov %vm31125_vm1  ;;  %vm9996_vm9 = vcmp.lt.s32.totalorder %v9988_v17, 56  ;;  %v26074_v45 = vpop.permute.xlu0 %20496  ;;  %v8622_v17 = vsel %vm8601_vm3, %v20459_v30, %v20453_v10 }
 0x357   : > { %9233 = vmatprep.mubr.f32.mxu0 %v30218_v22  ;;  %vm26025_vm6 = vmpackc.low %vm31138_vm2, %vm25975_vm0  ;;  %v20498_v48 = vunpack.i.l.bf16 %v26074_v45 }
 0x358   : > { %17540 = vmatmul.mubr.msk.f32.gmra.mrb[8].mxu1 %vm31137_vm14, %v25734_v41  ;;  %vm31143_vm5 = vmmov %vm31125_vm1 }
 0x359   : > { %9328 = vmatprep.mubr.f32.mxu1 %v30218_v22  ;;  %vm26044_vm1 = vmpackc.low %vm31143_vm5, %vm25984_vm12  ;;  %vm26116_vm5 = vcmp.eq.s32.totalorder %v8463_v60, 1  ;;  %v20503_v60 = vunpack.i.l.bf16 %v26128_v4 }
 0x35a   : > { %vm31146_vm4 = vmmov %vm31136_vm11  ;;  %v26142_v62 = vpop.permute.xlu0 %20506  ;;  %v8746_v15 = vsel %vm26116_vm5, %v8647_v52, 0.0  ;;  %v20479_v52 = vunpack.i.h.bf16 %v25939_v35 }
 0x35b   : > { %17532 = vmatmul.mubr.msk.f32.vlgmr.msra.gmra.mrb[18].mxu0 %vm31146_vm4, %v25691_v34  ;;  %vm31149_vm0 = vmmov %vm31146_vm4  ;;  %vm10233_vm4 = vcmask 998400  }
 0x35c   : > { %18632 = vmatpush1.bf16.msk.msra.mxu0 %vm26025_vm6, %v18630_v32  ;;  %9239 = vmatprep.mubr.f32.mxu0 %v30218_v22  ;;  %vm10000_vm15 = vmand %vm9992_vm7, %vm9996_vm9  ;;  %vm26110_vm7 = vcmp.eq.s32.totalorder %v8443_v61, 1  ;;  %v20499_v32 = vunpack.i.h.bf16 %v26074_v45  ;;  %v20504_v61 = vunpack.i.h.bf16 %v26128_v4 }
 0x35d   : > { %18641 = vmatprep.subr.msk.bf16.mxu0 %vm26044_vm1, %v18639_v49  ;;  %17541 = vmatmul.mubr.msk.f32.gmra.mrb[10].mxu1 %vm31149_vm0, %v25338_v58  ;;  %vm31150_vm12 = vmmov %vm31149_vm0  ;;  %v26124_v13 = vsel %vm10000_vm15, 1, %v30563_v16  ;;  %v8741_v1 = vsel %vm26110_vm7, %v8642_v12, 0.0  ;;  %v8623_v49 = vsel %vm8601_vm3, %v20453_v10, %v20454_v5  ;;  %v8646_v12 = vsel %vm8601_vm3, %v20458_v28, %v20448_v37  ;;  %v26228_v37 = vpop.permute.xlu1 %20516 }
 0x35e   : > { %9482 = vmatprep.mubr.f32.mxu1 %v30218_v22  ;;  %vm31151_vm11 = vmmov %vm31138_vm2  ;;  %v10023_v26 = vrot.slane %v26124_v13, %v30397_v19  ;;  %v18642_v54 = vpack.c.bf16 %v8741_v1, %v8618_v38  ;;  %v18651_v6 = vpack.c.bf16 %v8746_v15, %v8623_v49  ;;  %v10261_v31 = vsel %vm10233_vm4, %v20498_v48, %v20499_v32  ;;  %v26189_v9 = vpop.permute.xlu0 %10386 }
 0x35f   : > { %17533 = vmatmul.mubr.msk.f32.gmra.mrb[20].mxu0 %vm31150_vm12, %v25734_v41  ;;  %vm18649_vm14 = vmpackc.low %vm31151_vm11, %vm26029_vm13  ;;  %vm26167_vm11 = vcmp.eq.s32.totalorder %v8467_v44, 1  ;;  %v10237_v29 = vsel %vm10233_vm4, %v20503_v60, %v20504_v61  ;;  %v10019_v28 = vrot.slane %v26124_v13, %v30398_v18  ;;  %v10039_v2 = vrot.slane %v26124_v13, %v21496_v46  ;;  %v21019_v44 = vld [vmem:[%s29741_s0 + $0x10] ss:$2 sm:$0xff] }
 0x360   : > { %9245 = vmatprep.mubr.f32.mxu0 %v30218_v22  ;;  %vm26106_vm6 = vmpackc.low %vm31138_vm2, %vm26050_vm8  ;;  %v8747_v24 = vsel %vm26167_vm11, %v8648_v56, 0.0  ;;  %v20519_v30 = vunpack.i.h.bf16 %v26228_v37  ;;  %v20518_v5 = vunpack.i.l.bf16 %v26228_v37  ;;  %v10260_v38 = vsel %vm10233_vm4, %v20479_v52, %v20498_v48 }
 0x361   : > { %vm31156_vm13 = vmmov %vm31149_vm0  ;;  %v10015_v48 = vrot.slane %v26124_v13, %v30567_v8 }
 0x362   : > { %17553 = vmatmul.mubr.msk.f32.vlgmr.msra.gmra.mrb[12].mxu1 %vm31156_vm13, %v25691_v34  ;;  %vm31159_vm1 = vmmov %vm31149_vm0  ;;  %vm8367_vm13 = vcmp.lt.s32.totalorder %v8359_v0, 56  ;;  %v26234_v42 = vpop.permute.xlu0 %20521 }
 0x363   : > { %18650 = vmatpush1.bf16.msk.msra.mxu1 %vm18649_vm14, %v18648_v47  ;;  %9488 = vmatprep.mubr.f32.mxu1 %v30218_v22  ;;  %vm31160_vm8 = vmmov %vm31149_vm0  ;;  %v18660_v47 = vpack.c.bf16 %v8747_v24, %v8624_v33  ;;  %v20524_v1 = vunpack.i.h.bf16 %v26234_v42  ;;  %v20523_v15 = vunpack.i.l.bf16 %v26234_v42  ;;  %v20508_v33 = vunpack.i.l.bf16 %v26142_v62 }
 0x364   : > { %18659 = vmatprep.subr.msk.bf16.mxu1 %vm26106_vm6, %v18657_v57  ;;  %17534 = vmatmul.mubr.msk.f32.gmra.mrb[22].mxu0 %vm31159_vm1, %v25338_v58  ;;  %vm31161_vm9 = vmmov %vm31138_vm2 }
 0x365   : > { %9399 = vmatprep.mubr.f32.mxu0 %v30218_v22  ;;  %vm18643_vm0 = vmpackc.low %vm31161_vm9, %vm26110_vm7  ;;  %vm8363_vm7 = vcmp.ge.s32.totalorder %v8359_v0, 0  ;;  %v10241_v24 = vsel %vm10233_vm4, %v20523_v15, %v20524_v1 }
 0x366   : > { %17554 = vmatmul.mubr.msk.f32.gmra.mrb[14].mxu1 %vm31160_vm8, %v25734_v41  ;;  %vm31162_vm15 = vmmov %vm31138_vm2  ;;  %vm26173_vm2 = vcmp.eq.s32.totalorder %v10023_v26, 1  ;;  %v9989_v26 = vadd.s32 3, %v21019_v44  ;;  %v26279_v63 = vpop.permute.xlu0 %20531 }
 0x367   : > { %9494 = vmatprep.mubr.f32.mxu1 %v30218_v22  ;;  %vm18652_vm12 = vmpackc.low %vm31162_vm15, %vm26116_vm5  ;;  %v10360_v27 = vsel %vm26173_vm2, %v10261_v31, 0.0  ;;  %vm26220_vm15 = vcmp.eq.s32.totalorder %v8459_v7, 1  ;;  %v10265_v7 = vsel %vm10233_vm4, %v20518_v5, %v20519_v30 }
 0x368   : > { %vm31165_vm14 = vmmov %vm31159_vm1  ;;  %v18673_v23 = vpack.c.bf16 %v10360_v27, %v10237_v29  ;;  %v8745_v57 = vsel %vm26220_vm15, %v8646_v12, 0.0  ;;  %v10236_v27 = vsel %vm10233_vm4, %v20484_v25, %v20503_v60  ;;  %v26407_v29 = vunpack.i.l.bf16 %v26060_v3 }
 0x369   : > { %17546 = vmatmul.mubr.msk.f32.vlgmr.msra.gmra.mrb[24].mxu0 %vm31165_vm14, %v25691_v34  ;;  %vm31168_vm6 = vmmov %vm31159_vm1  ;;  %v18654_v0 = vpack.c.bf16 %v8745_v57, %v8622_v17 }
 0x36a   : > { %18644 = vmatpush1.bf16.msk.msra.mxu0 %vm18643_vm0, %v18642_v54  ;;  %9405 = vmatprep.mubr.f32.mxu0 %v30218_v22  ;;  %vm31169_vm5 = vmmov %vm31159_vm1  ;;  %v26268_v54 = vpop.permute.xlu1 %20526  ;;  %v26332_v57 = vpop.permute.xlu0 %20541 }
 0x36b   : > { %18653 = vmatprep.subr.msk.bf16.mxu0 %vm18652_vm12, %v18651_v6  ;;  %17555 = vmatmul.mubr.msk.f32.gmra.mrb[16].mxu1 %vm31168_vm6, %v25338_v58  ;;  %vm31170_vm1 = vmmov %vm31161_vm9  ;;  %v20478_v6 = vunpack.i.l.bf16 %v25939_v35 }
 0x36c   : > { %9648 = vmatprep.mubr.f32.mxu1 %v30218_v22  ;;  %vm18661_vm8 = vmpackc.low %vm31170_vm1, %vm26167_vm11 }
 0x36d   : > { %17547 = vmatmul.mubr.msk.f32.gmra.mrb[26].mxu0 %vm31169_vm5, %v25734_v41  ;;  %vm31171_vm9 = vmmov %vm31170_vm1  ;;  %v10259_v55 = vsel %vm10233_vm4, %v20478_v6, %v20479_v52  ;;  %v20509_v52 = vunpack.i.h.bf16 %v26142_v62 }
 0x36e   : > { %9411 = vmatprep.mubr.f32.mxu0 %v30218_v22  ;;  %vm18674_vm0 = vmpackc.low %vm31171_vm9, %vm26173_vm2  ;;  %vm9997_vm9 = vcmp.lt.s32.totalorder %v9989_v26, 56 }
 0x36f   : > { %vm8371_vm12 = vmand %vm8363_vm7, %vm8367_vm13  ;;  %vm26252_vm7 = vcmp.eq.s32.totalorder %v10019_v28, 1  ;;  %v26325_v28 = vpop.permute.xlu1 %20536 }
 0x370   : > { %vm31174_vm11 = vmmov %vm31169_vm5  ;;  %v8375_v51 = vsel %vm8371_vm12, 1, %v30563_v16  ;;  %v10359_v31 = vsel %vm26252_vm7, %v10260_v38, 0.0  ;;  %v20538_v44 = vunpack.i.l.bf16 %v26325_v28 }
 0x371   : > { %17567 = vmatmul.mubr.msk.f32.vlgmr.msra.gmra.mrb[18].mxu1 %vm31174_vm11, %v25691_v34  ;;  %vm31175_vm14 = vmmov %vm31169_vm5  ;;  %v8475_v56 = vrot.slane %v8375_v51, %v30588_v11  ;;  %v18676_v12 = vpack.c.bf16 %v10359_v31, %v10236_v27  ;;  %v10035_v51 = vrot.slane %v26124_v13, %v30361_v20  ;;  %v20488_v31 = vunpack.i.l.bf16 %v26006_v43 }
 0x372   : > { %18662 = vmatpush1.bf16.msk.msra.mxu1 %vm18661_vm8, %v18660_v47  ;;  %9654 = vmatprep.mubr.f32.mxu1 %v30218_v22  ;;  %vm31176_vm3 = vmmov %vm31169_vm5  ;;  %vm26271_vm5 = vcmp.eq.s32.totalorder %v10039_v2, 1  ;;  %vm9993_vm8 = vcmp.ge.s32.totalorder %v9989_v26, 0  ;;  %v10031_v27 = vrot.slane %v26124_v13, %v30590_v39 }
 0x373   : > { %18675 = vmatprep.subr.msk.bf16.mxu1 %vm18674_vm0, %v18673_v23  ;;  %17548 = vmatmul.mubr.msk.f32.gmra.mrb[28].mxu0 %vm31175_vm14, %v25338_v58  ;;  %vm31177_vm2 = vmmov %vm31170_vm1  ;;  %vm26305_vm11 = vcmp.eq.s32.totalorder %v8475_v56, 1  ;;  %v10364_v47 = vsel %vm26271_vm5, %v10265_v7, 0.0  ;;  %v20483_v23 = vunpack.i.l.bf16 %v25995_v50  ;;  %v20543_v56 = vunpack.i.l.bf16 %v26332_v57  ;;  %v26376_v7 = vpop.permute.xlu1 %20546 }
 0x374   : > { %9565 = vmatprep.mubr.f32.mxu0 %v30218_v22  ;;  %vm18655_vm6 = vmpackc.low %vm31177_vm2, %vm26220_vm15  ;;  %v18685_v60 = vpack.c.bf16 %v10364_v47, %v10241_v24  ;;  %v8749_v17 = vsel %vm26305_vm11, %v20468_v40, 0.0  ;;  %v20539_v40 = vunpack.i.h.bf16 %v26325_v28  ;;  %v10011_v24 = vrot.slane %v26124_v13, %v30588_v11  ;;  %v26387_v47 = vpop.permute.xlu0 %20551 }
 0x375   : > { %17568 = vmatmul.mubr.msk.f32.gmra.mrb[20].mxu1 %vm31176_vm3, %v25734_v41  ;;  %vm31180_vm13 = vmmov %vm31176_vm3  ;;  %v18664_v38 = vpack.c.bf16 %v8749_v17, %v20469_v53  ;;  %v10235_v49 = vsel %vm10233_vm4, %v20483_v23, %v20484_v25  ;;  %v10264_v25 = vsel %vm10233_vm4, %v20509_v52, %v20518_v5  ;;  %v26444_v53 = vunpack.i.h.bf16 %v26060_v3 }
 0x376   : > { %9660 = vmatprep.mubr.f32.mxu1 %v30218_v22  ;;  %vm31183_vm1 = vmmov %vm31176_vm3 }
 0x377   : > { %17560 = vmatmul.mubr.msk.f32.vlgmr.msra.gmra.mrb[30].mxu0 %vm31180_vm13, %v25691_v34  ;;  %vm31184_vm0 = vmmov %vm31183_vm1 }
 0x378   : > { %18656 = vmatpush1.bf16.msk.msra.mxu0 %vm18655_vm6, %v18654_v0  ;;  %9571 = vmatprep.mubr.f32.mxu0 %v30218_v22  ;;  %vm31185_vm15 = vmmov %vm31177_vm2  ;;  %vm26317_vm6 = vcmp.eq.s32.totalorder %v10015_v48, 1  ;;  %v20544_v0 = vunpack.i.h.bf16 %v26332_v57  ;;  %v20514_v48 = vunpack.i.h.bf16 %v26184_v21 }
 0x379   : > { %17569 = vmatmul.mubr.msk.f32.gmra.mrb[22].mxu1 %vm31183_vm1, %v25338_v58  ;;  %18663 = vmatprep.subr.bf16.mxu0 %v30764_v59  ;;  %vm18677_vm12 = vmpackc.low %vm31185_vm15, %vm26252_vm7  ;;  %v10358_v2 = vsel %vm26317_vm6, %v10259_v55, 0.0  ;;  %v20489_v55 = vunpack.i.h.bf16 %v26006_v43 }
 0x37a   : > { %9814 = vmatprep.mubr.f32.mxu1 %v30218_v22  ;;  %vm31188_vm14 = vmmov %vm31177_vm2  ;;  %v18667_v14 = vpack.c.bf16 %v10358_v2, %v10235_v49  ;;  %v10263_v49 = vsel %vm10233_vm4, %v20508_v33, %v20509_v52 }
 0x37b   : > { %17561 = vmatmul.mubr.msk.f32.gmra.mrb[32].mxu0 %vm31184_vm0, %v25734_v41  ;;  %vm18686_vm3 = vmpackc.low %vm31188_vm14, %vm26271_vm5 }
 0x37c   : > { %9577 = vmatprep.mubr.f32.mxu0 %v30218_v22  ;;  %vm31189_vm2 = vmmov %vm31184_vm0 }
 0x37d   : > { %17581 = vmatmul.mubr.msk.f32.vlgmr.msra.gmra.mrb[24].mxu1 %vm31189_vm2, %v25691_v34  ;;  %vm10001_vm7 = vmand %vm9993_vm8, %vm9997_vm9 }
 0x37e   : > { %18678 = vmatpush1.bf16.msk.msra.mxu1 %vm18677_vm12, %v18676_v12  ;;  %9820 = vmatprep.mubr.f32.mxu1 %v30218_v22  ;;  %vm31192_vm13 = vmmov %vm31184_vm0  ;;  %v26343_v10 = vsel %vm10001_vm7, 1, %v30563_v16  ;;  %vm26368_vm12 = vcmp.eq.s32.totalorder %v10035_v51, 1  ;;  %v10240_v12 = vsel %vm10233_vm4, %v20514_v48, %v20523_v15  ;;  %v10245_v15 = vsel %vm10233_vm4, %v20543_v56, %v20544_v0 }
 0x37f   : > { %18687 = vmatprep.subr.msk.bf16.mxu1 %vm18686_vm3, %v18685_v60  ;;  %17562 = vmatmul.mubr.msk.f32.gmra.mrb[34].mxu0 %vm31192_vm13, %v25338_v58  ;;  %vm31193_vm5 = vmmov %vm31184_vm0  ;;  %v10055_v26 = vrot.slane %v26343_v10, %v30397_v19  ;;  %v10269_v60 = vsel %vm10233_vm4, %v20538_v44, %v20539_v40  ;;  %v10363_v17 = vsel %vm26368_vm12, %v10264_v25, 0.0  ;;  %v10258_v51 = vsel %vm10233_vm4, %v20488_v31, %v20478_v6  ;;  %v26449_v25 = vpop.permute.xlu0 %20561 }
 0x380   : > { %9731 = vmatprep.mubr.f32.mxu0 %v30218_v22  ;;  %vm31194_vm1 = vmmov %vm31188_vm14  ;;  %v18688_v2 = vpack.c.bf16 %v10363_v17, %v10240_v12  ;;  %v10234_v31 = vsel %vm10233_vm4, %v20489_v55, %v20483_v23  ;;  %v10051_v3 = vrot.slane %v26343_v10, %v30398_v18  ;;  %v10027_v23 = vrot.slane %v26124_v13, %v21513_v36 }
 0x381   : > { %17582 = vmatmul.mubr.msk.f32.gmra.mrb[26].mxu1 %vm31193_vm5, %v25734_v41  ;;  %vm18665_vm8 = vmpackc.low %vm31194_vm1, %vm26305_vm11  ;;  %vm26391_vm14 = vcmp.eq.s32.totalorder %v10055_v26, 1  ;;  %vm26426_vm5 = vcmp.eq.s32.totalorder %v10011_v24, 1  ;;  %v21020_v24 = vld [vmem:[%s29741_s0 + $0x20] ss:$2 sm:$0xff]  ;;  %v10071_v13 = vrot.slane %v26343_v10, %v21496_v46  ;;  %v20529_v55 = vunpack.i.h.bf16 %v26268_v54 }
 0x382   : > { %9826 = vmatprep.mubr.f32.mxu1 %v30218_v22  ;;  %vm31195_vm9 = vmmov %vm31194_vm1  ;;  %v10368_v43 = vsel %vm26391_vm14, %v10269_v60, 0.0  ;;  %v10357_v52 = vsel %vm26426_vm5, %v10258_v51, 0.0  ;;  %v20564_v17 = vunpack.i.h.bf16 %v26449_v25  ;;  %v20563_v51 = vunpack.i.l.bf16 %v26449_v25 }
 0x383   : > { %vm18668_vm0 = vmpackc.low %vm31195_vm9, %vm26317_vm6  ;;  %v18697_v35 = vpack.c.bf16 %v10368_v43, %v10245_v15  ;;  %v20534_v43 = vunpack.i.h.bf16 %v26279_v63  ;;  %v10268_v26 = vsel %vm10233_vm4, %v20529_v55, %v20538_v44 }
 0x384   : > { %vm31196_vm15 = vmmov %vm31189_vm2 }
 0x385   : > { %17574 = vmatmul.mubr.msk.f32.vlgmr.msra.gmra.mrb[36].mxu0 %vm31196_vm15, %v25691_v34  ;;  %vm31199_vm11 = vmmov %vm31189_vm2 }
 0x386   : > { %18666 = vmatpush3.bf16.msk.msra.mxu0 %vm18665_vm8, %v18664_v38  ;;  %9737 = vmatprep.mubr.f32.mxu0 %v30218_v22  ;;  %vm31202_vm3 = vmmov %vm31189_vm2  ;;  %v20513_v38 = vunpack.i.l.bf16 %v26184_v21  ;;  %vm26433_vm8 = vcmp.eq.s32.totalorder %v10031_v27, 1  ;;  %v9990_v27 = vadd.s32 3, %v21020_v24  ;;  %v10047_v24 = vrot.slane %v26343_v10, %v30567_v8 }
 0x387   : > { %18669 = vmatprep.subr.msk.bf16.mxu0 %vm18668_vm0, %v18667_v14  ;;  %17583 = vmatmul.mubr.msk.f32.gmra.mrb[28].mxu1 %vm31199_vm11, %v25338_v58  ;;  %vm31203_vm2 = vmmov %vm31194_vm1  ;;  %v26440_v14 = vpop.permute.xlu1 %20556  ;;  %v10362_v50 = vsel %vm26433_vm8, %v10263_v49, 0.0  ;;  %v26508_v49 = vpop.permute.xlu0 %20571  ;;  %v20549_v21 = vunpack.i.h.bf16 %v26376_v7 }
 0x388   : > { %10616 = vmatprep.mubr.f32.mxu1 %v30218_v22  ;;  %vm18689_vm6 = vmpackc.low %vm31203_vm2, %vm26368_vm12  ;;  %v20559_v12 = vunpack.i.h.bf16 %v26440_v14  ;;  %v20558_v5 = vunpack.i.l.bf16 %v26440_v14  ;;  %v10239_v15 = vsel %vm10233_vm4, %v20513_v38, %v20514_v48  ;;  %v10238_v6 = vsel %vm10233_vm4, %v20504_v61, %v20513_v38 }
 0x389   : > { %17575 = vmatmul.mubr.msk.f32.gmra.mrb[38].mxu0 %vm31202_vm3, %v25734_v41  ;;  %vm31204_vm7 = vmmov %vm31194_vm1  ;;  %v18679_v48 = vpack.c.bf16 %v10362_v50, %v10239_v15  ;;  %v20533_v15 = vunpack.i.l.bf16 %v26279_v63  ;;  %v20574_v50 = vunpack.i.h.bf16 %v26508_v49 }
 0x38a   : > { %9743 = vmatprep.mubr.f32.mxu0 %v30218_v22  ;;  %vm18698_vm13 = vmpackc.low %vm31204_vm7, %vm26391_vm14  ;;  %vm26501_vm7 = vcmp.eq.s32.totalorder %v10051_v3, 1 }
 0x38b   : > { %vm31207_vm1 = vmmov %vm31202_vm3  ;;  %v10367_v3 = vsel %vm26501_vm7, %v10268_v26, 0.0  ;;  %v10067_v26 = vrot.slane %v26343_v10, %v30361_v20  ;;  %v10242_v37 = vsel %vm10233_vm4, %v20524_v1, %v20533_v15 }
 0x38c   : > { %17600 = vmatmul.mubr.msk.f32.vlgmr.msra.gmra.mrb[30].mxu1 %vm31207_vm1, %v26407_v29  ;;  %vm31210_vm9 = vmmov %vm31207_vm1 }
 0x38d   : > { %18690 = vmatpush1.bf16.msk.msra.mxu1 %vm18689_vm6, %v18688_v2  ;;  %10622 = vmatprep.mubr.f32.mxu1 %v30218_v22  ;;  %vm31211_vm0 = vmmov %vm31207_vm1  ;;  %v18670_v2 = vpack.c.bf16 %v10357_v52, %v10234_v31  ;;  %vm9998_vm6 = vcmp.lt.s32.totalorder %v9990_v27, 56  ;;  %v10273_v31 = vsel %vm10233_vm4, %v20558_v5, %v20559_v12  ;;  %v20528_v52 = vunpack.i.l.bf16 %v26268_v54 }
 0x38e   : > { %18699 = vmatprep.subr.msk.bf16.mxu1 %vm18698_vm13, %v18697_v35  ;;  %17576 = vmatmul.mubr.msk.f32.gmra.mrb[40].mxu0 %vm31210_vm9, %v25338_v58  ;;  %vm31212_vm15 = vmmov %vm31203_vm2  ;;  %v26495_v35 = vpop.permute.xlu1 %20566 }
 0x38f   : > { %18144 = vmatprep.mubr.msk.f32.mxu0 %vm30453_vm10, %v30218_v22  ;;  %vm26473_vm12 = vmpackc.low %vm31212_vm15, %vm26426_vm5  ;;  %vm26512_vm5 = vcmp.eq.s32.totalorder %v10071_v13, 1  ;;  %vm26543_vm15 = vcmp.eq.s32.totalorder %v10027_v23, 1  ;;  %v26572_v23 = vpop.permute.xlu0 %20581 }
 0x390   : > { %17601 = vmatmul.mubr.msk.f32.gmra.mrb[32].mxu1 %vm31211_vm0, %v26444_v53  ;;  %vm31215_vm11 = vmmov %vm31203_vm2  ;;  %vm9994_vm2 = vcmp.ge.s32.totalorder %v9990_v27, 0  ;;  %v10262_v27 = vsel %vm10233_vm4, %v20499_v32, %v20508_v33  ;;  %v10372_v13 = vsel %vm26512_vm5, %v10273_v31, 0.0  ;;  %v10267_v33 = vsel %vm10233_vm4, %v20528_v52, %v20529_v55 }
 0x391   : > { %10628 = vmatprep.mubr.f32.mxu1 %v30218_v22  ;;  %vm18680_vm14 = vmpackc.low %vm31215_vm11, %vm26433_vm8  ;;  %v10243_v55 = vsel %vm10233_vm4, %v20533_v15, %v20534_v43  ;;  %v20584_v4 = vunpack.i.h.bf16 %v26572_v23  ;;  %v20583_v61 = vunpack.i.l.bf16 %v26572_v23 }
 0x392   : > { %vm31216_vm3 = vmmov %vm31211_vm0  ;;  %v26562_v45 = vpop.permute.xlu1 %20576 }
 0x393   : > { %18145 = vmatmul.mubr.msk.f32.vlgmr.msra.gmra.mrb[42].mxu0 %vm31216_vm3, %v25691_v34  ;;  %v10244_v34 = vsel %vm10233_vm4, %v20534_v43, %v20543_v56  ;;  %vm31219_vm13 = vmmov %vm31211_vm0  ;;  %v10249_v56 = vsel %vm10233_vm4, %v20563_v51, %v20564_v17  ;;  %v20578_v44 = vunpack.i.l.bf16 %v26562_v45  ;;  %v20554_v43 = vunpack.i.h.bf16 %v26387_v47  ;;  %v26628_v60 = vpop.permute.xlu0 %20591 }
 0x394   : > { %18672 = vmatpush1.bf16.msk.msra.mxu0 %vm26473_vm12, %v18670_v2  ;;  %18147 = vmatprep.mubr.msk.f32.mxu0 %vm30453_vm10, %v30218_v22  ;;  %vm26532_vm1 = vmand %vm9994_vm2, %vm9998_vm6  ;;  %v18709_v62 = vpack.c.bf16 %v10372_v13, %v10249_v56  ;;  %v10361_v2 = vsel %vm26543_vm15, %v10262_v27, 0.0  ;;  %v10272_v56 = vsel %vm10233_vm4, %v20549_v21, %v20558_v5  ;;  %v10043_v13 = vrot.slane %v26343_v10, %v30588_v11 }
 0x395   : > { %18681 = vmatprep.subr.msk.bf16.mxu0 %vm18680_vm14, %v18679_v48  ;;  %17602 = vmatmul.mubr.msk.f32.gmra.mrb[34].mxu1 %vm31219_vm13, %v26189_v9  ;;  %vm31224_vm8 = vmmov %vm31211_vm0  ;;  %v26581_v48 = vsel %vm26532_vm1, 1, %v30563_v16  ;;  %v18682_v38 = vpack.c.bf16 %v10361_v2, %v10238_v6 }
 0x396   : > { %10782 = vmatprep.mubr.f32.mxu1 %v30218_v22  ;;  %vm31225_vm9 = vmmov %vm31215_vm11  ;;  %v10103_v42 = vrot.slane %v26581_v48, %v21496_v46 }
 0x397   : > { %18148 = vmatmul.mubr.msk.f32.gmra.mrb[44].mxu0 %vm31224_vm8, %v25734_v41  ;;  %vm18701_vm0 = vmpackc.low %vm31225_vm9, %vm26501_vm7  ;;  %v18700_v41 = vpack.c.bf16 %v10367_v3, %v10244_v34  ;;  %v20579_v34 = vunpack.i.h.bf16 %v26562_v45  ;;  %v10248_v3 = vsel %vm10233_vm4, %v20554_v43, %v20563_v51  ;;  %v10253_v51 = vsel %vm10233_vm4, %v20583_v61, %v20584_v4 }
 0x398   : > { %18150 = vmatprep.mubr.msk.f32.mxu0 %vm30453_vm10, %v30218_v22  ;;  %vm31228_vm12 = vmmov %vm31225_vm9 }
 0x399   : > { %vm18710_vm11 = vmpackc.low %vm31228_vm12, %vm26512_vm5  ;;  %v10277_v27 = vsel %vm10233_vm4, %v20578_v44, %v20579_v34 }
 0x39a   : > { %vm31229_vm14 = vmmov %vm31216_vm3  ;;  %vm26565_vm3 = vcmp.eq.s32.totalorder %v10047_v24, 1  ;;  %v26618_v24 = vpop.permute.xlu1 %20586 }
 0x39b   : > { %17614 = vmatmul.mubr.msk.f32.vlgmr.msra.gmra.mrb[0].mxu1 %vm31229_vm14, %v26407_v29  ;;  %vm31232_vm2 = vmmov %vm31224_vm8 }
 0x39c   : > { %18702 = vmatpush1.bf16.msk.msra.mxu1 %vm18701_vm0, %v18700_v41  ;;  %10788 = vmatprep.mubr.f32.mxu1 %v30218_v22  ;;  %vm31233_vm6 = vmmov %vm31232_vm2  ;;  %v20548_v41 = vunpack.i.l.bf16 %v26376_v7 }
 0x39d   : > { %18711 = vmatprep.subr.msk.bf16.mxu1 %vm18710_vm11, %v18709_v62  ;;  %18151 = vmatmul.mubr.msk.f32.gmra.mrb[46].mxu0 %vm31232_vm2, %v25338_v58  ;;  %v10087_v58 = vrot.slane %v26581_v48, %v30397_v19  ;;  %vm31234_vm7 = vmmov %vm31225_vm9  ;;  %v10366_v19 = vsel %vm26565_vm3, %v10267_v33, 0.0  ;;  %vm26621_vm9 = vcmp.eq.s32.totalorder %v10067_v26, 1  ;;  %v10063_v62 = vrot.slane %v26343_v10, %v30590_v39 }
 0x39e   : > { %10533 = vmatprep.mubr.f32.mxu0 %v30218_v22  ;;  %vm18683_vm13 = vmpackc.low %vm31234_vm7, %vm26543_vm15  ;;  %v18691_v31 = vpack.c.bf16 %v10366_v19, %v10243_v55  ;;  %v10371_v32 = vsel %vm26621_vm9, %v10272_v56, 0.0  ;;  %v20553_v33 = vunpack.i.l.bf16 %v26387_v47  ;;  %v26673_v6 = vpop.permute.xlu1 %20596  ;;  %v10271_v54 = vsel %vm10233_vm4, %v20548_v41, %v20549_v21 }
 0x39f   : > { %17615 = vmatmul.mubr.msk.f32.gmra.mrb[2].mxu1 %vm31233_vm6, %v26444_v53  ;;  %vm31235_vm5 = vmmov %vm31234_vm7  ;;  %vm26632_vm15 = vcmp.eq.s32.totalorder %v10087_v58, 1  ;;  %v18712_v2 = vpack.c.bf16 %v10371_v32, %v10248_v3  ;;  %v10266_v58 = vsel %vm10233_vm4, %v20519_v30, %v20528_v52  ;;  %vm26676_vm7 = vcmp.eq.s32.totalorder %v10043_v13, 1  ;;  %v26692_v30 = vpop.permute.xlu0 %20601 }
 0x3a0   : > { %10794 = vmatprep.mubr.f32.mxu1 %v30218_v22  ;;  %vm18692_vm1 = vmpackc.low %vm31235_vm5, %vm26565_vm3  ;;  %v10376_v55 = vsel %vm26632_vm15, %v10277_v27, 0.0  ;;  %v10247_v52 = vsel %vm10233_vm4, %v20553_v33, %v20554_v43  ;;  %v10083_v21 = vrot.slane %v26581_v48, %v30398_v18  ;;  %v20599_v1 = vunpack.i.h.bf16 %v26673_v6 }
 0x3a1   : > { %vm31236_vm8 = vmmov %vm31232_vm2  ;;  %v18721_v26 = vpack.c.bf16 %v10376_v55, %v10253_v51  ;;  %v20598_v63 = vunpack.i.l.bf16 %v26673_v6  ;;  %v10365_v15 = vsel %vm26676_vm7, %v10266_v58, 0.0  ;;  %v20569_v43 = vunpack.i.h.bf16 %v26495_v35 }
 0x3a2   : > { %17593 = vmatmul.mubr.msk.f32.vlgmr.msra.gmra.mrb[0].mxu0 %vm31236_vm8, %v26407_v29  ;;  %vm31239_vm0 = vmmov %vm31232_vm2  ;;  %v20604_v46 = vunpack.i.h.bf16 %v26692_v30  ;;  %v18694_v56 = vpack.c.bf16 %v10365_v15, %v10242_v37  ;;  %v10252_v27 = vsel %vm10233_vm4, %v20574_v50, %v20583_v61  ;;  %v10059_v61 = vrot.slane %v26343_v10, %v21513_v36  ;;  %v21021_v15 = vld [vmem:[%s29741_s0 + $0x30] ss:$2 sm:$0x1] }
 0x3a3   : > { %18684 = vmatpush1.bf16.msk.msra.mxu0 %vm18683_vm13, %v18682_v38  ;;  %10539 = vmatprep.mubr.f32.mxu0 %v30218_v22  ;;  %vm31242_vm12 = vmmov %vm31239_vm0  ;;  %vm26680_vm13 = vcmp.eq.s32.totalorder %v10063_v62, 1  ;;  %v10276_v5 = vsel %vm10233_vm4, %v20569_v43, %v20578_v44  ;;  %v10281_v44 = vsel %vm10233_vm4, %v20598_v63, %v20599_v1  ;;  %v20568_v62 = vunpack.i.l.bf16 %v26495_v35 }
 0x3a4   : > { %18693 = vmatprep.subr.msk.bf16.mxu0 %vm18692_vm1, %v18691_v31  ;;  %17616 = vmatmul.mubr.msk.f32.gmra.mrb[4].mxu1 %vm31239_vm0, %v26189_v9  ;;  %vm31243_vm11 = vmmov %vm31235_vm5  ;;  %v10370_v18 = vsel %vm26680_vm13, %v10271_v54, 0.0  ;;  %v20603_v31 = vunpack.i.l.bf16 %v26692_v30  ;;  %v20573_v55 = vunpack.i.l.bf16 %v26508_v49  ;;  %v10246_v35 = vsel %vm10233_vm4, %v20544_v0, %v20553_v33 }
 0x3a5   : > { %10948 = vmatprep.mubr.f32.mxu1 %v30218_v22  ;;  %vm18713_vm14 = vmpackc.low %vm31243_vm11, %vm26621_vm9  ;;  %v18703_v3 = vpack.c.bf16 %v10370_v18, %v10247_v52  ;;  %vm10126_vm11 = vcmp.eq.s32.totalorder %v10083_v21, 1  ;;  %v10275_v7 = vsel %vm10233_vm4, %v20568_v62, %v20569_v43  ;;  %v20589_v0 = vunpack.i.h.bf16 %v26618_v24 }
 0x3a6   : > { %17594 = vmatmul.mubr.msk.f32.gmra.mrb[2].mxu0 %vm31242_vm12, %v26444_v53  ;;  %vm31244_vm3 = vmmov %vm31235_vm5  ;;  %v10257_v13 = vsel %vm10233_vm4, %v20603_v31, %v20604_v46  ;;  %v10375_v32 = vsel %vm10126_vm11, %v10276_v5, 0.0  ;;  %v10251_v28 = vsel %vm10233_vm4, %v20573_v55, %v20574_v50  ;;  %v10075_v38 = vrot.slane %v26581_v48, %v30588_v11 }
 0x3a7   : > { %10545 = vmatprep.mubr.f32.mxu0 %v30218_v22  ;;  %vm18722_vm2 = vmpackc.low %vm31244_vm3, %vm26632_vm15  ;;  %v10280_v33 = vsel %vm10233_vm4, %v20589_v0, %v20598_v63  ;;  %v20588_v54 = vunpack.i.l.bf16 %v26618_v24  ;;  %v10095_v52 = vrot.slane %v26581_v48, %v30590_v39  ;;  %v20593_v21 = vunpack.i.l.bf16 %v26628_v60 }
 0x3a8   : > { %vm31245_vm6 = vmmov %vm31239_vm0  ;;  %v10274_v24 = vsel %vm10233_vm4, %v20559_v12, %v20568_v62  ;;  %v10250_v39 = vsel %vm10233_vm4, %v20564_v17, %v20573_v55  ;;  %v9991_v18 = vadd.s32 3, %v21021_v15  ;;  %v10091_v43 = vrot.slane %v26581_v48, %v21513_v36 }
 0x3a9   : > { %17628 = vmatmul.mubr.msk.f32.vlgmr.msra.gmra.mrb[6].mxu1 %vm31245_vm6, %v26407_v29  ;;  %vm31250_vm5 = vmmov %vm31239_vm0  ;;  %v10254_v36 = vsel %vm10233_vm4, %v20584_v4, %v20593_v21  ;;  %v31290_v4 = vld [vmem:[#allocation28_spill] sm:$0xff] }
 0x3aa   : > { %18714 = vmatpush1.bf16.msk.msra.mxu1 %vm18713_vm14, %v18712_v2  ;;  %10954 = vmatprep.mubr.f32.mxu1 %v30218_v22  ;;  %vm31251_vm1 = vmmov %vm31239_vm0  ;;  %v10079_v2 = vrot.slane %v26581_v48, %v30567_v8  ;;  %v10270_v8 = vsel %vm10233_vm4, %v20539_v40, %v20548_v41  ;;  %v10099_v40 = vrot.slane %v26581_v48, %v30361_v20  ;;  %v20594_v41 = vunpack.i.h.bf16 %v26628_v60 }
 0x3ab   : > { %18723 = vmatprep.subr.msk.bf16.mxu1 %vm18722_vm2, %v18721_v26  ;;  %17595 = vmatmul.mubr.msk.f32.gmra.mrb[4].mxu0 %vm31250_vm5, %v26189_v9  ;;  %vm31252_vm8 = vmmov %vm31244_vm3  ;;  %v18724_v26 = vpack.c.bf16 %v10375_v32, %v10252_v27  ;;  %v10279_v60 = vsel %vm10233_vm4, %v20588_v54, %v20589_v0 }
 0x3ac   : > { %10699 = vmatprep.mubr.f32.mxu0 %v30218_v22  ;;  %vm18695_vm9 = vmpackc.low %vm31252_vm8, %vm26676_vm7  ;;  %vm10120_vm8 = vcmp.eq.s32.totalorder %v10059_v61, 1  ;;  %v10256_v19 = vsel %vm10233_vm4, %v20594_v41, %v20603_v31  ;;  %v10255_v14 = vsel %vm10233_vm4, %v20593_v21, %v20594_v41  ;;  %v10278_v31 = vsel %vm10233_vm4, %v20579_v34, %v20588_v54 }
 0x3ad   : > { %17629 = vmatmul.mubr.msk.f32.gmra.mrb[8].mxu1 %vm31251_vm1, %v26444_v53  ;;  %vm31253_vm0 = vmmov %vm31244_vm3  ;;  %vm26734_vm3 = vcmp.eq.s32.totalorder %v10103_v42, 1  ;;  %v10369_v57 = vsel %vm10120_vm8, %v10270_v8, 0.0 }
 0x3ae   : > { %10960 = vmatprep.mubr.f32.mxu1 %v30218_v22  ;;  %vm18704_vm15 = vmpackc.low %vm31253_vm0, %vm26680_vm13  ;;  %v10380_v58 = vsel %vm26734_vm3, %v10281_v44, 0.0  ;;  %v18706_v47 = vpack.c.bf16 %v10369_v57, %v10246_v35 }
 0x3af   : > { %vm31254_vm12 = vmmov %vm31251_vm1  ;;  %v18733_v10 = vpack.c.bf16 %v10380_v58, %v10257_v13  ;;  %v31295_v13 = vld [vmem:[#allocation91_spill] sm:$0xff] }
 0x3b0   : > { %17607 = vmatmul.mubr.msk.f32.vlgmr.msra.gmra.mrb[12].mxu0 %vm31254_vm12, %v26407_v29  ;;  %vm31255_vm14 = vmmov %vm31251_vm1 }
 0x3b1   : > { %18696 = vmatpush1.bf16.msk.msra.mxu0 %vm18695_vm9, %v18694_v56  ;;  %10705 = vmatprep.mubr.f32.mxu0 %v30218_v22  ;;  %vm31258_vm2 = vmmov %vm31251_vm1  ;;  %v31292_v56 = vld [vmem:[#allocation72_spill] sm:$0xff] }
 0x3b2   : > { %18705 = vmatprep.subr.msk.bf16.mxu0 %vm18704_vm15, %v18703_v3  ;;  %17630 = vmatmul.mubr.msk.f32.gmra.mrb[10].mxu1 %vm31255_vm14, %v26189_v9  ;;  %vm31259_vm6 = vmmov %vm31253_vm0  ;;  %v31293_v3 = vld [vmem:[#allocation65_spill] sm:$0xff] }
 0x3b3   : > { %11114 = vmatprep.mubr.f32.mxu1 %v30218_v22  ;;  %vm18725_vm7 = vmpackc.low %vm31259_vm6, %vm10126_vm11 }
 0x3b4   : > { %17608 = vmatmul.mubr.msk.f32.gmra.mrb[14].mxu0 %vm31258_vm2, %v26444_v53  ;;  %vm31260_vm13 = vmmov %vm31253_vm0  ;;  %vm10125_vm0 = vcmp.eq.s32.totalorder %v10079_v2, 1 }
 0x3b5   : > { %10711 = vmatprep.mubr.f32.mxu0 %v30218_v22  ;;  %vm18734_vm5 = vmpackc.low %vm31260_vm13, %vm26734_vm3  ;;  %v10374_v49 = vsel %vm10125_vm0, %v10275_v7, 0.0 }
 0x3b6   : > { %17642 = vmatmul.mubr.msk.f32.vlgmr.msra.gmra.mrb[12].mxu1 %vm31251_vm1, %v26407_v29  ;;  %vm31261_vm9 = vmmov %vm31251_vm1  ;;  %v18715_v20 = vpack.c.bf16 %v10374_v49, %v10251_v28 }
 0x3b7   : > { %18726 = vmatpush1.bf16.msk.msra.mxu1 %vm18725_vm7, %v18724_v26  ;;  %11120 = vmatprep.mubr.f32.mxu1 %v30218_v22  ;;  %vm31262_vm15 = vmmov %vm31251_vm1 }
 0x3b8   : > { %18735 = vmatprep.subr.msk.bf16.mxu1 %vm18734_vm5, %v18733_v10  ;;  %17609 = vmatmul.mubr.msk.f32.gmra.mrb[16].mxu0 %vm31261_vm9, %v26189_v9  ;;  %vm31263_vm12 = vmmov %vm31259_vm6  ;;  %vm10124_vm9 = vcmp.eq.s32.totalorder %v10075_v38, 1 }
 0x3b9   : > { %10865 = vmatprep.mubr.f32.mxu0 %v30218_v22  ;;  %vm18707_vm11 = vmpackc.low %vm31263_vm12, %vm10120_vm8  ;;  %v10373_v12 = vsel %vm10124_vm9, %v10274_v24, 0.0 }
 0x3ba   : > { %17643 = vmatmul.mubr.msk.f32.gmra.mrb[14].mxu1 %vm31262_vm15, %v26444_v53  ;;  %vm31264_vm14 = vmmov %vm31259_vm6  ;;  %vm10130_vm6 = vcmp.eq.s32.totalorder %v10099_v40, 1  ;;  %vm10129_vm15 = vcmp.eq.s32.totalorder %v10095_v52, 1  ;;  %v18718_v63 = vpack.c.bf16 %v10373_v12, %v10250_v39 }
 0x3bb   : > { %11126 = vmatprep.mubr.f32.mxu1 %v30218_v22  ;;  %vm18716_vm3 = vmpackc.low %vm31264_vm14, %vm10125_vm0  ;;  %v10379_v37 = vsel %vm10130_vm6, %v10280_v33, 0.0  ;;  %v10378_v25 = vsel %vm10129_vm15, %v10279_v60, 0.0 }
 0x3bc   : > { %vm31265_vm2 = vmmov %vm31251_vm1  ;;  %v18736_v42 = vpack.c.bf16 %v10379_v37, %v10256_v19  ;;  %v18727_v17 = vpack.c.bf16 %v10378_v25, %v10255_v14 }
 0x3bd   : > { %17621 = vmatmul.mubr.msk.f32.vlgmr.msra.gmra.mrb[18].mxu0 %vm31265_vm2, %v26407_v29  ;;  %vm31266_vm7 = vmmov %vm31251_vm1 }
 0x3be   : > { %18708 = vmatpush1.bf16.msk.msra.mxu0 %vm18707_vm11, %v18706_v47  ;;  %10871 = vmatprep.mubr.f32.mxu0 %v30218_v22  ;;  %vm31267_vm13 = vmmov %vm31251_vm1 }
 0x3bf   : > { %18717 = vmatprep.subr.msk.bf16.mxu0 %vm18716_vm3, %v18715_v20  ;;  %17644 = vmatmul.mubr.msk.f32.gmra.mrb[16].mxu1 %vm31266_vm7, %v26189_v9  ;;  %vm31268_vm5 = vmmov %vm31263_vm12 }
 0x3c0   : > { %11280 = vmatprep.mubr.f32.mxu1 %v30218_v22  ;;  %vm18737_vm1 = vmpackc.low %vm31268_vm5, %vm10130_vm6 }
 0x3c1   : > { %17622 = vmatmul.mubr.msk.f32.gmra.mrb[20].mxu0 %vm31267_vm13, %v26444_v53  ;;  %vm31269_vm8 = vmmov %vm31265_vm2 }
 0x3c2   : > { %10877 = vmatprep.mubr.f32.mxu0 %v30218_v22  ;;  %vm31270_vm0 = vmmov %vm31265_vm2 }
 0x3c3   : > { %17656 = vmatmul.mubr.msk.f32.vlgmr.msra.gmra.mrb[18].mxu1 %vm31269_vm8, %v26407_v29  ;;  %vm31271_vm12 = vmmov %vm31270_vm0 }
 0x3c4   : > { %18738 = vmatpush1.bf16.msk.msra.mxu1 %vm18737_vm1, %v18736_v42  ;;  %11286 = vmatprep.mubr.f32.mxu1 %v30218_v22  ;;  %vm31272_vm11 = vmmov %vm31268_vm5  ;;  %vm9999_vm1 = vcmp.lt.s32.totalorder %v9991_v18, 56 }
 0x3c5   : > { %17623 = vmatmul.mubr.msk.f32.gmra.mrb[22].mxu0 %vm31270_vm0, %v26189_v9  ;;  %vm18719_vm14 = vmpackc.low %vm31272_vm11, %vm10124_vm9  ;;  %vm10128_vm9 = vcmp.eq.s32.totalorder %v10091_v43, 1 }
 0x3c6   : > { %11031 = vmatprep.mubr.f32.mxu0 %v30218_v22  ;;  %vm31273_vm3 = vmmov %vm31268_vm5  ;;  %vm9995_vm5 = vcmp.ge.s32.totalorder %v9991_v18, 0  ;;  %v10377_v48 = vsel %vm10128_vm9, %v10278_v31, 0.0 }
 0x3c7   : > { %17657 = vmatmul.mubr.msk.f32.gmra.mrb[20].mxu1 %vm31271_vm12, %v26444_v53  ;;  %vm18728_vm2 = vmpackc.low %vm31273_vm3, %vm10129_vm15  ;;  %v18730_v45 = vpack.c.bf16 %v10377_v48, %v10254_v36 }
 0x3c8   : > { %11292 = vmatprep.mubr.f32.mxu1 %v30218_v22  ;;  %vm31274_vm6 = vmmov %vm31270_vm0 }
 0x3c9   : > { %17635 = vmatmul.mubr.msk.f32.vlgmr.msra.gmra.mrb[24].mxu0 %vm31274_vm6, %v26407_v29  ;;  %vm31275_vm7 = vmmov %vm31270_vm0 }
 0x3ca   : > { %18720 = vmatpush1.bf16.msk.msra.mxu0 %vm18719_vm14, %v18718_v63  ;;  %11037 = vmatprep.mubr.f32.mxu0 %v30218_v22  ;;  %vm31276_vm13 = vmmov %vm31270_vm0 }
 0x3cb   : > { %18729 = vmatprep.subr.msk.bf16.mxu0 %vm18728_vm2, %v18727_v17  ;;  %17658 = vmatmul.mubr.msk.f32.gmra.mrb[22].mxu1 %vm31275_vm7, %v26189_v9  ;;  %vm31277_vm8 = vmmov %vm31270_vm0 }
 0x3cc   : > { %11446 = vmatprep.mubr.f32.mxu1 %v30218_v22  ;;  %vm10003_vm15 = vmand %vm9995_vm5, %vm9999_vm1 }
 0x3cd   : > { %17636 = vmatmul.mubr.msk.f32.gmra.mrb[26].mxu0 %vm31276_vm13, %v26444_v53  ;;  %vm31278_vm12 = vmmov %vm31270_vm0  ;;  %v10007_v34 = vsel %vm10003_vm15, 1, %v30563_v16 }
 0x3ce   : > { %11043 = vmatprep.mubr.f32.mxu0 %v30218_v22  ;;  %vm31279_vm11 = vmmov %vm31273_vm3  ;;  %v10107_v23 = vrot.slane %v10007_v34, %v30588_v11 }
 0x3cf   : > { %17670 = vmatmul.mubr.msk.f32.vlgmr.msra.gmra.mrb[24].mxu1 %vm31277_vm8, %v26407_v29  ;;  %vm18731_vm14 = vmpackc.low %vm31279_vm11, %vm10128_vm9 }
 0x3d0   : > { %11452 = vmatprep.mubr.f32.mxu1 %v30218_v22  ;;  %vm31280_vm3 = vmmov %vm31270_vm0  ;;  %vm10132_vm6 = vcmp.eq.s32.totalorder %v10107_v23, 1 }
 0x3d1   : > { %17637 = vmatmul.mubr.msk.f32.gmra.mrb[28].mxu0 %vm31270_vm0, %v26189_v9  ;;  %vm31281_vm4 = vmmov %vm31270_vm0  ;;  %v10381_v16 = vsel %vm10132_vm6, %v20599_v1, 0.0 }
 0x3d2   : > { %11197 = vmatprep.mubr.f32.mxu0 %v30218_v22  ;;  %vm31282_vm2 = vmmov %vm31270_vm0  ;;  %v18740_v11 = vpack.c.bf16 %v10381_v16, %v20604_v46 }
 0x3d3   : > { %17671 = vmatmul.mubr.msk.f32.gmra.mrb[26].mxu1 %vm31278_vm12, %v26444_v53  ;;  %vm31283_vm7 = vmmov %vm31270_vm0 }
 0x3d4   : > { %11458 = vmatprep.mubr.f32.mxu1 %v30218_v22  ;;  %vm31284_vm13 = vmmov %vm31279_vm11  ;;  %vm12163_vm11 = vcmask 588800  }
 0x3d5   : > { %17649 = vmatmul.mubr.msk.f32.vlgmr.msra.gmra.mrb[30].mxu0 %vm31280_vm3, %v26407_v29  ;;  %vm18741_vm5 = vmpackc.low %vm31284_vm13, %vm10132_vm6  ;;  %vm12286_vm3 = vcmask 171008  }
 0x3d6   : > { %18732 = vmatpush1.bf16.msk.msra.mxu0 %vm18731_vm14, %v18730_v45  ;;  %11203 = vmatprep.mubr.f32.mxu0 %v30218_v22  ;;  %vm31285_vm1 = vmmov %vm31270_vm0  ;;  %vm12299_vm14 = vcmask 1044480  }
 0x3d7   : > { %17672 = vmatmul.mubr.msk.f32.gmra.mrb[28].mxu1 %vm31281_vm4, %v26189_v9  ;;  %18739 = vmatprep.subr.bf16.mxu0 %v30764_v59  ;;  %vm31286_vm8 = vmmov %vm31270_vm0  ;;  %vm11973_vm4 = vcmask 982016  }
 0x3d8   : > { %12717 = vmatprep.mubr.f32.mxu1 %v30218_v22  ;;  %vm31287_vm9 = vmmov %vm31270_vm0 }
 0x3d9   : > { %17650 = vmatmul.mubr.msk.f32.gmra.mrb[32].mxu0 %vm31282_vm2, %v26444_v53  ;;  %vm31288_vm15 = vmmov %vm31270_vm0 }
 0x3da   : > { %11209 = vmatprep.mubr.f32.mxu0 %v30218_v22  ;;  %vm31289_vm12 = vmmov %vm31270_vm0 }
 0x3db   : > { %vm29113_vm13 = vmpackc.low %vm11973_vm4, %vm11973_vm4 }
 0x3dd   : > { %17651 = vmatmul.mubr.msk.f32.gmra.mrb[34].mxu0 %vm31283_vm7, %v26189_v9  ;;  %vm15191_vm7 = vcmask 130048  }
 0x3de   : > { %11363 = vmatprep.mubr.f32.mxu0 %v30218_v22 }
 0x3e1   : > { %17663 = vmatmul.mubr.msk.f32.vlgmr.msra.gmra.mrb[36].mxu0 %vm31285_vm1, %v26407_v29 }
 0x3e2   : > { %18742 = vmatpush3.bf16.msk.msra.mxu0 %vm18741_vm5, %v18740_v11  ;;  %11369 = vmatprep.mubr.f32.mxu0 %v30218_v22  ;;  %vm16860_vm5 = vcmask 523264  }
 0x3e5   : > { %17664 = vmatmul.mubr.msk.f32.gmra.mrb[38].mxu0 %vm31286_vm8, %v26444_v53 }
 0x3e6   : > { %11375 = vmatprep.mubr.f32.mxu0 %v30218_v22 }
 0x3e9   : > { %17665 = vmatmul.mubr.msk.f32.gmra.mrb[40].mxu0 %vm31287_vm9, %v26189_v9 }
 0x3ea   : > { %18157 = vmatprep.mubr.msk.f32.mxu0 %vm30453_vm10, %v30218_v22 }
 0x3ed   : > { %18158 = vmatmul.mubr.msk.f32.vlgmr.msra.gmra.mrb[42].mxu0 %vm31270_vm0, %v26407_v29  ;;  %v31291_v29 = vld [vmem:[#allocation84_spill] sm:$0xff] }
 0x3ee   : > { %18160 = vmatprep.mubr.msk.f32.mxu0 %vm30453_vm10, %v30218_v22 }
 0x3f1   : > { %18161 = vmatmul.mubr.msk.f32.gmra.mrb[44].mxu0 %vm31288_vm15, %v26444_v53 }
 0x3f2   : > { %18163 = vmatprep.mubr.msk.f32.mxu0 %vm30453_vm10, %v30218_v22  ;;  %vm11845_vm10 = vcmask 457728  }
 0x3f3   : > { %vm17781_vm2 = vmneg %vm11845_vm10 }
 0x3f4   : > { %vm18798_vm6 = vmpackc.low %vm17781_vm2, %vm17781_vm2 }
 0x3f5   : > { %18164 = vmatmul.mubr.msk.f32.gmra.mrb[46].mxu0 %vm31289_vm12, %v26189_v9  ;;  %v31294_v9 = vld [vmem:[#allocation44_spill] sm:$0xff] }
 0x3f6   : > { %12414 = vmatprep.mubr.f32.mxu0 %v30218_v22 }
 0x45f   : > { %v10618_v59 = vpop.f32.mrb[30].mxu1 }
 0x460   : > { %v26896_v6 = vadd.f32 %v10618_v59, %v31290_v4  ;;  %v10620_v30 = vpop.f32.mrb[31].mxu1 }
 0x461   : > { %v26899_v1 = vadd.f32 %v10620_v30, %v31291_v29 }
 0x463   : > { %v10624_v46 = vpop.f32.mrb[32].mxu1 }
 0x464   : > { %v26902_v50 = vadd.f32 %v10624_v46, %v31292_v56  ;;  %v10626_v53 = vpop.f32.mrb[33].mxu1 }
 0x465   : > { %v26905_v5 = vadd.f32 %v10626_v53, %v31293_v3 }
 0x468   : > { %v10630_v27 = vpop.f32.mrb[34].mxu1 }
 0x469   : > { %v26908_v51 = vadd.f32 %v10630_v27, %v31294_v9  ;;  %v10632_v44 = vpop.f32.mrb[35].mxu1  ;;  %v18000_v9 = vld [vmem:[%s26967_s26] sm:$0xff]  }
 0x46a   : > { %v26911_v61 = vadd.f32 %v10632_v44, %v31295_v13 }
 0x46e   : > { %v10784_v62 = vpop.f32.mrb[0].mxu1 }
 0x46f   : > { %v10786_v32 = vpop.f32.mrb[1].mxu1 }
 0x470   : > { %v20605_v2 = vpack.i.bf16 %v10786_v32, %v10784_v62 }
 0x472   : > { %20606 = vrot.lane.b32.xlu1 %v20605_v2, %s21046_s28  ;;  %v10790_v55 = vpop.f32.mrb[2].mxu1  ;;  %v26978_v2 = vunpack.c.l.bf16 %v18000_v9 }
 0x473   : > { %v10792_v26 = vpop.f32.mrb[3].mxu1 }
 0x474   : > { %31296 = vst [vmem:[#allocation80_spill] sm:$0xff] %v26978_v2 }
 0x475   : > { %v26914_v58 = vpop.f32.mrb[0].mxu0 }
 0x476   : > { %v26916_v10 = vpop.f32.mrb[1].mxu0 }
 0x477   : > { %v10796_v35 = vpop.f32.mrb[4].mxu1 }
 0x478   : > { %11807 = vrot.lane.b32.xlu1 %v10796_v35, %s21046_s28  ;;  %v10798_v7 = vpop.f32.mrb[5].mxu1 }
 0x479   : > { %11809 = vrot.lane.b32.xlu0 %v10798_v7, %s21046_s28  ;;  %v26922_v28 = vpop.f32.mrb[2].mxu0 }
 0x47a   : > { %v26926_v57 = vpop.f32.mrb[3].mxu0 }
 0x47c   : > { %v10950_v47 = vpop.f32.mrb[6].mxu1 }
 0x47d   : > { %v10952_v49 = vpop.f32.mrb[7].mxu1 }
 0x47e   : > { %v20610_v41 = vpack.i.bf16 %v10952_v49, %v10950_v47  ;;  %v26930_v20 = vpop.f32.mrb[4].mxu0 }
 0x47f   : > { %v26932_v33 = vpop.f32.mrb[5].mxu0 }
 0x480   : > { %20611 = vrot.lane.b32.xlu1 %v20610_v41, %s21046_s28  ;;  %v26935_v19 = vpop.f32.mrb[8].mxu1 }
 0x481   : > { %v26937_v38 = vpop.f32.mrb[9].mxu1 }
 0x483   : > { %v26939_v54 = vpop.f32.mrb[12].mxu0 }
 0x484   : > { %v10703_v52 = vpop.f32.mrb[13].mxu0 }
 0x485   : > { %v10962_v21 = vpop.f32.mrb[10].mxu1 }
 0x486   : > { %11815 = vrot.lane.b32.xlu1 %v10962_v21, %s21046_s28  ;;  %v10964_v42 = vpop.f32.mrb[11].mxu1 }
 0x487   : > { %v26944_v24 = vpop.f32.mrb[14].mxu0 }
 0x488   : > { %v10709_v60 = vpop.f32.mrb[15].mxu0 }
 0x489   : > { %v20615_v14 = vpack.i.bf16 %v10709_v60, %v10703_v52  ;;  %v11116_v12 = vpop.f32.mrb[12].mxu1 }
 0x48a   : > { %v11118_v63 = vpop.f32.mrb[13].mxu1 }
 0x48b   : > { %v20630_v25 = vpack.i.bf16 %v11118_v63, %v11116_v12  ;;  %20616 = vrot.lane.b32.xlu0 %v20615_v14, %s21046_s28  ;;  %v26951_v17 = vpop.f32.mrb[16].mxu0 }
 0x48c   : > { %v10715_v15 = vpop.f32.mrb[17].mxu0 }
 0x48d   : > { %v26953_v18 = vpop.f32.mrb[14].mxu1 }
 0x48e   : > { %v26955_v43 = vpop.f32.mrb[15].mxu1 }
 0x48f   : > { %11805 = vrot.lane.b32.xlu0 %v10715_v15, %s21046_s28 }
 0x490   : > { %v10867_v31 = vpop.f32.mrb[18].mxu0 }
 0x491   : > { %v20620_v36 = vpack.i.bf16 %v10790_v55, %v10867_v31  ;;  %v10869_v48 = vpop.f32.mrb[19].mxu0  ;;  %v26980_v55 = vunpack.c.h.bf16 %v18000_v9 }
 0x492   : > { %v11128_v45 = vpop.f32.mrb[16].mxu1 }
 0x493   : > { %v11130_v34 = vpop.f32.mrb[17].mxu1  ;;  %20621 = vrot.lane.b32.xlu0 %v20620_v36, %s21046_s28  ;;  %31297 = vst [vmem:[#allocation5_spill] sm:$0xff] %v26980_v55 }
 0x494   : > { %v10873_v23 = vpop.f32.mrb[20].mxu0 }
 0x495   : > { %v20625_v16 = vpack.i.bf16 %v10873_v23, %v10792_v26  ;;  %v10875_v11 = vpop.f32.mrb[21].mxu0 }
 0x496   : > { %v20635_v59 = vpack.i.bf16 %v10875_v11, %v10869_v48  ;;  %v11282_v4 = vpop.f32.mrb[18].mxu1 }
 0x497   : > { %v11284_v30 = vpop.f32.mrb[19].mxu1  ;;  %20626 = vrot.lane.b32.xlu1 %v20625_v16, %s21046_s28  ;;  %11817 = vrot.lane.b32.xlu0 %v10964_v42, %s21046_s28  ;;  %v18011_v42 = vld [vmem:[%s26967_s26 + $0x8] sm:$0xff]  }
 0x498   : > { %v20645_v29 = vpack.i.bf16 %v11284_v30, %v11282_v4  ;;  %v10879_v46 = vpop.f32.mrb[22].mxu0  ;;  %v27004_v63 = vunpack.c.l.bf16 %v18011_v42 }
 0x499   : > { %v10881_v56 = vpop.f32.mrb[23].mxu0 }
 0x49a   : > { %v26969_v53 = vpop.f32.mrb[20].mxu1  ;;  %31298 = vst [vmem:[#allocation53_spill] sm:$0xff] %v27004_v63 }
 0x49b   : > { %v26971_v3 = vpop.f32.mrb[21].mxu1  ;;  %20631 = vrot.lane.b32.xlu1 %v20630_v25, %s21046_s28  ;;  %20636 = vrot.lane.b32.xlu0 %v20635_v59, %s21046_s28  ;;  %v27006_v25 = vunpack.c.h.bf16 %v18011_v42 }
 0x49c   : > { %v11033_v27 = vpop.f32.mrb[24].mxu0 }
 0x49d   : > { %v20650_v44 = vpack.i.bf16 %v26935_v19, %v11033_v27  ;;  %v11035_v13 = vpop.f32.mrb[25].mxu0  ;;  %v26991_v19 = vpack.i.bf16 %v26980_v55, %v26978_v2  ;;  %31299 = vst [vmem:[#allocation56_spill] sm:$0xff] %v27006_v25 }
 0x49e   : > { %v11294_v62 = vpop.f32.mrb[22].mxu1 }
 0x49f   : > { %v11296_v32 = vpop.f32.mrb[23].mxu1  ;;  %11811 = vrot.lane.b32.xlu1 %v10879_v46, %s21046_s28  ;;  %11825 = vrot.lane.b32.xlu0 %v11130_v34, %s21046_s28  ;;  %v27017_v34 = vpack.i.bf16 %v27006_v25, %v27004_v63 }
 0x4a0   : > { %v11039_v26 = vpop.f32.mrb[26].mxu0 }
 0x4a1   : > { %v20660_v35 = vpack.i.bf16 %v11039_v26, %v26937_v38  ;;  %v11041_v7 = vpop.f32.mrb[27].mxu0 }
 0x4a2   : > { %v20665_v47 = vpack.i.bf16 %v11041_v7, %v11035_v13  ;;  %v26984_v49 = vpop.f32.mrb[24].mxu1 }
 0x4a3   : > { %v26986_v41 = vpop.f32.mrb[25].mxu1  ;;  %11823 = vrot.lane.b32.xlu1 %v11128_v45, %s21046_s28  ;;  %20646 = vrot.lane.b32.xlu0 %v20645_v29, %s21046_s28 }
 0x4a4   : > { %v11045_v52 = vpop.f32.mrb[28].mxu0 }
 0x4a5   : > { %v11047_v21 = vpop.f32.mrb[29].mxu0 }
 0x4a6   : > { %v26995_v60 = vpop.f32.mrb[26].mxu1 }
 0x4a7   : > { %v26999_v14 = vpop.f32.mrb[27].mxu1  ;;  %20641 = vrot.lane.b32.xlu1 %v26991_v19, %s21047_s27  ;;  %11813 = vrot.lane.b32.xlu0 %v10881_v56, %s21046_s28 }
 0x4a8   : > { %v11199_v12 = vpop.f32.mrb[30].mxu0 }
 0x4a9   : > { %v20670_v15 = vpack.i.bf16 %v26953_v18, %v11199_v12  ;;  %v11201_v31 = vpop.f32.mrb[31].mxu0 }
 0x4aa   : > { %v27009_v36 = vpop.f32.mrb[28].mxu1 }
 0x4ab   : > { %v27011_v48 = vpop.f32.mrb[29].mxu1  ;;  %11831 = vrot.lane.b32.xlu1 %v11294_v62, %s21046_s28  ;;  %20651 = vrot.lane.b32.xlu0 %v20650_v44, %s21046_s28 }
 0x4ac   : > { %v11205_v45 = vpop.f32.mrb[32].mxu0 }
 0x4ad   : > { %v20675_v23 = vpack.i.bf16 %v11205_v45, %v26955_v43  ;;  %v11207_v16 = vpop.f32.mrb[33].mxu0 }
 0x4ae   : > { %v20680_v11 = vpack.i.bf16 %v11207_v16, %v11201_v31 }
 0x4af   : > { %20661 = vrot.lane.b32.xlu1 %v20660_v35, %s21046_s28  ;;  %20656 = vrot.lane.b32.xlu0 %v27017_v34, %s21047_s27 }
 0x4b0   : > { %v11211_v18 = vpop.f32.mrb[34].mxu0 }
 0x4b1   : > { %v27023_v59 = vpop.f32.mrb[35].mxu0 }
 0x4b3   : > { %11819 = vrot.lane.b32.xlu1 %v11045_v52, %s21046_s28  ;;  %11833 = vrot.lane.b32.xlu0 %v11296_v32, %s21046_s28 }
 0x4b4   : > { %v11365_v4 = vpop.f32.mrb[36].mxu0 }
 0x4b5   : > { %v20685_v30 = vpack.i.bf16 %v26969_v53, %v11365_v4  ;;  %v27028_v29 = vpop.f32.mrb[37].mxu0 }
 0x4b7   : > { %20676 = vrot.lane.b32.xlu1 %v20675_v23, %s21046_s28  ;;  %20666 = vrot.lane.b32.xlu0 %v20665_v47, %s21046_s28 }
 0x4b8   : > { %v11371_v43 = vpop.f32.mrb[38].mxu0 }
 0x4b9   : > { %v20690_v46 = vpack.i.bf16 %v11371_v43, %v26971_v3  ;;  %v27033_v56 = vpop.f32.mrb[39].mxu0 }
 0x4bb   : > { %20681 = vrot.lane.b32.xlu1 %v20680_v11, %s21046_s28 }
 0x4bc   : > { %v11377_v9 = vpop.f32.mrb[40].mxu0 }
 0x4bd   : > { %v27038_v44 = vpop.f32.mrb[41].mxu0 }
 0x4bf   : > { %11827 = vrot.lane.b32.xlu1 %v11211_v18, %s21046_s28 }
 0x4c0   : > { %v27041_v53 = vpop.f32.mrb[42].mxu0 }
 0x4c1   : > { %v18159_v62 = vpop.f32.mrb[43].mxu0 }
 0x4c3   : > { %20686 = vrot.lane.b32.xlu1 %v20685_v30, %s21046_s28 }
 0x4c4   : > { %v27046_v3 = vpop.f32.mrb[44].mxu0 }
 0x4c5   : > { %v18162_v26 = vpop.f32.mrb[45].mxu0  ;;  %v31314_v63 = vpack.i.bf16 %v27046_v3, %v26999_v14 }
 0x4c7   : > { %11835 = vrot.lane.b32.xlu1 %v11377_v9, %s21046_s28 }
 0x4c8   : > { %v27051_v35 = vpop.f32.mrb[46].mxu0 }
 0x4c9   : > { %v18165_v7 = vpop.f32.mrb[47].mxu0 }
 0x4e4   : > { %v20607_v47 = vpop.permute.xlu1 %20606 }
 0x4e5   : > { %v20608_v18 = vunpack.i.l.bf16 %v20607_v47 }
 0x4ea   : > { %v11808_v52 = vpop.permute.xlu1 %11807 }
 0x4eb   : > { %v11810_v42 = vpop.permute.xlu0 %11809 }
 0x4ec   : > { %v27054_v12 = vsel %vm11845_vm10, %v11808_v52, %v11810_v42 }
 0x4ed   : > { %31300 = vst [vmem:[#allocation12_spill] sm:$0xff] %v27054_v12  ;;  %12127 = vrot.lane.b32.xlu0 %v27054_v12, %s21048_s29 }
 0x4f1   : > { %11821 = vrot.lane.b32.xlu0 %v11047_v21, %s21046_s28 }
 0x4f2   : > { %v27063_v45 = vpop.permute.xlu1 %20611 }
 0x4f3   : > { %v20613_v13 = vunpack.i.l.bf16 %v27063_v45 }
 0x4f5   : > { %20671 = vrot.lane.b32.xlu0 %v20670_v15, %s21046_s28  ;;  %v20609_v15 = vunpack.i.h.bf16 %v20607_v47  ;;  %v18012_v47 = vld [vmem:[%s26967_s26 + $0x10] sm:$0xff]  }
 0x4f8   : > { %v27073_v11 = vpop.permute.xlu1 %11815 }
 0x4f9   : > { %20691 = vrot.lane.b32.xlu0 %v20690_v46, %s21046_s28 }
 0x4fd   : > { %v27061_v31 = vpop.permute.xlu0 %20616 }
 0x4fe   : > { %v29921_v21 = vunpack.i.l.bf16 %v27061_v31  ;;  %v29922_v30 = vunpack.i.h.bf16 %v27061_v31 }
 0x500   : > { %v27080_v9 = vsel %vm11845_vm10, %v29921_v21, %v20608_v18 }
 0x501   : > { %v27065_v23 = vpop.permute.xlu0 %11805 }
 0x502   : > { %v27069_v16 = vsel %vm11845_vm10, %v27065_v23, %v11808_v52  ;;  %v27092_v52 = vsel %vm11845_vm10, %v20608_v18, %v20609_v15  ;;  %v27111_v18 = vunpack.c.h.bf16 %v18012_v47 }
 0x503   : > { %31301 = vst [vmem:[#allocation26_spill] sm:$0xff] %v27069_v16  ;;  %12125 = vrot.lane.b32.xlu0 %v27069_v16, %s21048_s29  ;;  %31304 = vst [vmem:[#allocation92_spill] sm:$0xff] %v27092_v52 }
 0x504   : > { %31309 = vst [vmem:[#allocation3_spill] sm:$0xff] %v27111_v18 }
 0x505   : > { %v20622_v4 = vpop.permute.xlu0 %20621 }
 0x506   : > { %v20624_v43 = vunpack.i.h.bf16 %v20622_v4  ;;  %v20623_v46 = vunpack.i.l.bf16 %v20622_v4 }
 0x508   : > { %v27085_v62 = vsel %vm11845_vm10, %v29922_v30, %v20624_v43  ;;  %v27088_v26 = vsel %vm11845_vm10, %v20609_v15, %v20623_v46  ;;  %v27109_v15 = vunpack.c.l.bf16 %v18012_v47 }
 0x509   : > { %31302 = vst [vmem:[#allocation6_spill] sm:$0xff] %v27085_v62  ;;  %31303 = vst [vmem:[#allocation10_spill] sm:$0xff] %v27088_v26  ;;  %v20627_v7 = vpop.permute.xlu1 %20626  ;;  %v27094_v37 = vpop.permute.xlu0 %11817  ;;  %v20695_v21 = vpack.i.bf16 %v27085_v62, %v27080_v9  ;;  %v27100_v0 = vpack.i.bf16 %v27088_v26, %v27092_v52 }
 0x50a   : > { %v20629_v39 = vunpack.i.h.bf16 %v20627_v7  ;;  %v20628_v4 = vunpack.i.l.bf16 %v20627_v7  ;;  %31308 = vst [vmem:[#allocation45_spill] sm:$0xff] %v27109_v15  ;;  %v27130_v47 = vpack.i.bf16 %v27111_v18, %v27109_v15 }
 0x50b   : > { %31305 = vst [vmem:[#allocation86_spill] sm:$0xff] %v27100_v0  ;;  %20696 = vrot.lane.b32.xlu1 %v20695_v21, %s21048_s29 }
 0x50c   : > { %v27103_v30 = vsel %vm11845_vm10, %v20624_v43, %v20628_v4  ;;  %v27106_v8 = vsel %vm11845_vm10, %v20628_v4, %v20629_v39 }
 0x50d   : > { %31306 = vst [vmem:[#allocation14_spill] sm:$0xff] %v27103_v30  ;;  %31307 = vst [vmem:[#allocation95_spill] sm:$0xff] %v27106_v8  ;;  %v27113_v7 = vpop.permute.xlu1 %20631  ;;  %v27117_v40 = vpack.i.bf16 %v27106_v8, %v27103_v30  ;;  %v20637_v4 = vpop.permute.xlu0 %20636 }
 0x50e   : > { %v20639_v21 = vunpack.i.h.bf16 %v20637_v4  ;;  %v20638_v27 = vunpack.i.l.bf16 %v20637_v4 }
 0x50f   : > { %31310 = vst [vmem:[#allocation47_spill] sm:$0xff] %v27117_v40  ;;  %20706 = vrot.lane.b32.xlu0 %v27117_v40, %s21048_s29  ;;  %20701 = vrot.lane.b32.xlu1 %v27100_v0, %s21048_s29 }
 0x510   : > { %v27133_v38 = vsel %vm11845_vm10, %v20629_v39, %v20639_v21  ;;  %v27136_v43 = vsel %vm11845_vm10, %v20623_v46, %v20638_v27  ;;  %v27139_v32 = vsel %vm11845_vm10, %v20638_v27, %v20613_v13 }
 0x511   : > { %31311 = vst [vmem:[#allocation4_spill] sm:$0xff] %v27139_v32  ;;  %v27141_v4 = vpop.permute.xlu1 %11811  ;;  %v27143_v26 = vpop.permute.xlu0 %11825 }
 0x512   : > { %v27161_v30 = vsel %vm11845_vm10, %v11810_v42, %v27141_v4  ;;  %v20614_v42 = vunpack.i.h.bf16 %v27063_v45 }
 0x513   : > { %11829 = vrot.lane.b32.xlu0 %v27023_v59, %s21046_s28  ;;  %20711 = vrot.lane.b32.xlu1 %v27130_v47, %s21047_s27  ;;  %31312 = vst [vmem:[#allocation46_spill] sm:$0xff] %v27161_v30  ;;  %v27172_v59 = vsel %vm11845_vm10, %v27073_v11, %v27094_v37 }
 0x514   : > { %31313 = vst [vmem:[#allocation48_spill] sm:$0xff] %v27172_v59 }
 0x515   : > { %v27155_v27 = vpop.permute.xlu1 %11823  ;;  %v27157_v46 = vpop.permute.xlu0 %20646 }
 0x517   : > { %12129 = vrot.lane.b32.xlu1 %v27161_v30, %s21048_s29 }
 0x519   : > { %v27165_v52 = vpop.permute.xlu1 %20641  ;;  %v27167_v39 = vpop.permute.xlu0 %11813 }
 0x51b   : > { %12135 = vrot.lane.b32.xlu1 %v27172_v59, %s21048_s29 }
 0x51d   : > { %v27176_v8 = vpop.permute.xlu1 %11831  ;;  %v20652_v18 = vpop.permute.xlu0 %20651 }
 0x51e   : > { %v20654_v15 = vunpack.i.h.bf16 %v20652_v18  ;;  %v20653_v25 = vunpack.i.l.bf16 %v20652_v18  ;;  %v27194_v18 = vsel %vm11845_vm10, %v20613_v13, %v20614_v42 }
 0x51f   : > { %20726 = vrot.lane.b32.xlu1 %v31314_v63, %s21046_s28  ;;  %31317 = vst [vmem:[#allocation38_spill] sm:$0xff] %v27194_v18 }
 0x520   : > { %v27184_v55 = vsel %vm11845_vm10, %v20639_v21, %v20654_v15  ;;  %v27187_v30 = vsel %vm11845_vm10, %v20614_v42, %v20653_v25 }
 0x521   : > { %31315 = vst [vmem:[#allocation50_spill] sm:$0xff] %v27184_v55  ;;  %31316 = vst [vmem:[#allocation51_spill] sm:$0xff] %v27187_v30  ;;  %v20662_v2 = vpop.permute.xlu1 %20661  ;;  %v27189_v12 = vpop.permute.xlu0 %20656  ;;  %v20715_v45 = vpack.i.bf16 %v27184_v55, %v27139_v32  ;;  %v27211_v13 = vpack.i.bf16 %v27187_v30, %v27194_v18 }
 0x522   : > { %v20664_v59 = vunpack.i.h.bf16 %v20662_v2  ;;  %v20663_v40 = vunpack.i.l.bf16 %v20662_v2  ;;  %v31320_v2 = vpack.i.bf16 %v27033_v56, %v27028_v29  ;;  %v27230_v56 = vsel %vm11845_vm10, %v27167_v39, %v27073_v11 }
 0x523   : > { %20716 = vrot.lane.b32.xlu0 %v20715_v45, %s21048_s29  ;;  %31321 = vst [vmem:[#allocation37_spill] sm:$0xff] %v27211_v13  ;;  %31323 = vst [vmem:[#allocation52_spill] sm:$0xff] %v27230_v56  ;;  %v31325_v29 = vpack.i.bf16 %v26995_v60, %v26984_v49  ;;  %v20649_v60 = vunpack.i.h.bf16 %v27157_v46 }
 0x524   : > { %v27199_v63 = vsel %vm11845_vm10, %v20654_v15, %v20663_v40  ;;  %v27202_v3 = vsel %vm11845_vm10, %v20663_v40, %v20664_v59  ;;  %20736 = vrot.lane.b32.xlu1 %v31320_v2, %s21046_s28  ;;  %v31324_v2 = vpack.i.bf16 %v27041_v53, %v26986_v41 }
 0x525   : > { %31318 = vst [vmem:[#allocation17_spill] sm:$0xff] %v27199_v63  ;;  %31319 = vst [vmem:[#allocation16_spill] sm:$0xff] %v27202_v3  ;;  %v27213_v21 = vpop.permute.xlu1 %11819  ;;  %v27217_v15 = vpack.i.bf16 %v27202_v3, %v27199_v63  ;;  %v27223_v45 = vpop.permute.xlu0 %11833  ;;  %v31333_v63 = vpack.i.bf16 %v26922_v28, %v26896_v6  ;;  %v31336_v6 = vpack.i.bf16 %v26916_v10, %v26914_v58  ;;  %v20634_v58 = vunpack.i.h.bf16 %v27113_v7 }
 0x526   : > { %v31337_v28 = vpack.i.bf16 %v26902_v50, %v26926_v57  ;;  %v20633_v10 = vunpack.i.l.bf16 %v27113_v7 }
 0x527   : > { %31322 = vst [vmem:[#allocation39_spill] sm:$0xff] %v27217_v15  ;;  %20721 = vrot.lane.b32.xlu0 %v31324_v2, %s21046_s28 }
 0x528   : > { %12133 = vrot.lane.b32.xlu1 %v27230_v56, %s21048_s29 }
 0x529   : > { %v20677_v40 = vpop.permute.xlu1 %20676  ;;  %v20667_v42 = vpop.permute.xlu0 %20666 }
 0x52a   : > { %v20669_v14 = vunpack.i.h.bf16 %v20667_v42  ;;  %v20668_v18 = vunpack.i.l.bf16 %v20667_v42  ;;  %v20679_v2 = vunpack.i.h.bf16 %v20677_v40 }
 0x52b   : > { %20731 = vrot.lane.b32.xlu0 %v31325_v29, %s21046_s28 }
 0x52c   : > { %20741 = vrot.lane.b32.xlu1 %v27211_v13, %s21048_s29  ;;  %v27245_v11 = vsel %vm11845_vm10, %v20653_v25, %v20668_v18  ;;  %v27248_v41 = vsel %vm11845_vm10, %v20664_v59, %v20669_v14  ;;  %v20648_v25 = vunpack.i.l.bf16 %v27157_v46 }
 0x52d   : > { %31326 = vst [vmem:[#allocation58_spill] sm:$0xff] %v27245_v11  ;;  %31327 = vst [vmem:[#allocation54_spill] sm:$0xff] %v27248_v41  ;;  %v20682_v53 = vpop.permute.xlu1 %20681 }
 0x52e   : > { %v20684_v30 = vunpack.i.h.bf16 %v20682_v53  ;;  %v20683_v59 = vunpack.i.l.bf16 %v20682_v53  ;;  %v27275_v46 = vsel %vm11845_vm10, %v20648_v25, %v20649_v60 }
 0x52f   : > { %11841 = vrot.lane.b32.xlu0 %v27011_v48, %s21046_s28  ;;  %31330 = vst [vmem:[#allocation7_spill] sm:$0xff] %v27275_v46 }
 0x530   : > { %v27251_v3 = vsel %vm11845_vm10, %v20679_v2, %v20684_v30  ;;  %11843 = vrot.lane.b32.xlu1 %v27051_v35, %s21046_s28  ;;  %v27272_v35 = vsel %vm11845_vm10, %v27094_v37, %v27213_v21  ;;  %v27292_v37 = vsel %vm11845_vm10, %v20683_v59, %v20648_v25 }
 0x531   : > { %31328 = vst [vmem:[#allocation75_spill] sm:$0xff] %v27251_v3  ;;  %v27257_v49 = vpop.permute.xlu1 %11827  ;;  %31329 = vst [vmem:[#allocation60_spill] sm:$0xff] %v27272_v35 }
 0x532   : > { %31334 = vst [vmem:[#allocation2_spill] sm:$0xff] %v27292_v37 }
 0x533   : > { %20746 = vrot.lane.b32.xlu0 %v27217_v15, %s21048_s29  ;;  %v27329_v15 = vsel %vm11845_vm10, %v20668_v18, %v20633_v10 }
 0x534   : > { %11837 = vrot.lane.b32.xlu1 %v27038_v44, %s21046_s28  ;;  %31340 = vst [vmem:[#allocation93_spill] sm:$0xff] %v27329_v15 }
 0x535   : > { %v27265_v42 = vpop.permute.xlu1 %20686 }
 0x536   : > { %v20689_v48 = vunpack.i.h.bf16 %v27265_v42  ;;  %v29951_v29 = vunpack.i.l.bf16 %v27265_v42 }
 0x537   : > { %12137 = vrot.lane.b32.xlu0 %v27272_v35, %s21048_s29 }
 0x538   : > { %v27280_v44 = vsel %vm11845_vm10, %v20649_v60, %v29951_v29  ;;  %v27283_v53 = vsel %vm11845_vm10, %v20684_v30, %v20689_v48  ;;  %20756 = vrot.lane.b32.xlu1 %v31333_v63, %s21046_s28  ;;  %v27315_v63 = vsel %vm11845_vm10, %v27155_v27, %v27143_v26  ;;  %v20678_v30 = vunpack.i.l.bf16 %v20677_v40 }
 0x539   : > { %31331 = vst [vmem:[#allocation8_spill] sm:$0xff] %v27280_v44  ;;  %31332 = vst [vmem:[#allocation81_spill] sm:$0xff] %v27283_v53  ;;  %v27298_v60 = vpack.i.bf16 %v27280_v44, %v27275_v46 }
 0x53a   : > { %31338 = vst [vmem:[#allocation11_spill] sm:$0xff] %v27315_v63 }
 0x53b   : > { %31335 = vst [vmem:[#allocation49_spill] sm:$0xff] %v27298_v60  ;;  %11839 = vrot.lane.b32.xlu0 %v27009_v36, %s21046_s28 }
 0x53f   : > { %20751 = vrot.lane.b32.xlu0 %v31336_v6, %s21046_s28 }
 0x543   : > { %20761 = vrot.lane.b32.xlu0 %v31337_v28, %s21046_s28  ;;  %v27326_v28 = vsel %vm11845_vm10, %v20633_v10, %v20634_v58 }
 0x544   : > { %31339 = vst [vmem:[#allocation55_spill] sm:$0xff] %v27326_v28 }
 0x547   : > { %12143 = vrot.lane.b32.xlu0 %v27315_v63, %s21048_s29 }
 0x55f   : > { %v27319_v25 = vpop.permute.xlu0 %12127 }
 0x563   : > { %v27321_v36 = vpop.permute.xlu0 %11821 }
 0x567   : > { %v20672_v6 = vpop.permute.xlu0 %20671 }
 0x568   : > { %v20674_v50 = vunpack.i.h.bf16 %v20672_v6  ;;  %v20673_v57 = vunpack.i.l.bf16 %v20672_v6 }
 0x56a   : > { %v27332_v29 = vsel %vm11845_vm10, %v20634_v58, %v20673_v57  ;;  %v27335_v63 = vsel %vm11845_vm10, %v20673_v57, %v20683_v59  ;;  %v27338_v35 = vsel %vm11845_vm10, %v20669_v14, %v20674_v50  ;;  %v27341_v7 = vsel %vm11845_vm10, %v20674_v50, %v20678_v30 }
 0x56b   : > { %31341 = vst [vmem:[#allocation59_spill] sm:$0xff] %v27332_v29  ;;  %31342 = vst [vmem:[#allocation27_spill] sm:$0xff] %v27335_v63  ;;  %v27343_v40 = vpop.permute.xlu0 %20691  ;;  %v20765_v6 = vpack.i.bf16 %v27338_v35, %v27329_v15  ;;  %v27349_v18 = vpack.i.bf16 %v27332_v29, %v27326_v28  ;;  %v27354_v59 = vsel %vm11845_vm10, %v20678_v30, %v20679_v2 }
 0x56c   : > { %31343 = vst [vmem:[#allocation73_spill] sm:$0xff] %v27338_v35  ;;  %31344 = vst [vmem:[#allocation61_spill] sm:$0xff] %v27341_v7  ;;  %v29957_v14 = vunpack.i.h.bf16 %v27343_v40  ;;  %v20693_v10 = vunpack.i.l.bf16 %v27343_v40  ;;  %v27363_v50 = vpack.i.bf16 %v27354_v59, %v27341_v7  ;;  %v27402_v2 = vsel %vm11845_vm10, %v27143_v26, %v27257_v49 }
 0x56d   : > { %31345 = vst [vmem:[#allocation9_spill] sm:$0xff] %v27349_v18  ;;  %31346 = vst [vmem:[#allocation77_spill] sm:$0xff] %v27354_v59  ;;  %20766 = vrot.lane.b32.xlu1 %v20765_v6, %s21048_s29  ;;  %20771 = vrot.lane.b32.xlu0 %v27349_v18, %s21048_s29  ;;  %v27419_v26 = vsel %vm11845_vm10, %v27321_v36, %v27155_v27 }
 0x56e   : > { %31347 = vst [vmem:[#allocation23_spill] sm:$0xff] %v27363_v50  ;;  %v27370_v30 = vsel %vm11845_vm10, %v20689_v48, %v20693_v10  ;;  %v27375_v6 = vsel %vm11845_vm10, %v20693_v10, %v29957_v14  ;;  %v27397_v10 = vpop.permute.xlu1 %11835  ;;  %31351 = vst [vmem:[#allocation62_spill] sm:$0xff] %v27402_v2 }
 0x56f   : > { %31348 = vst [vmem:[#allocation13_spill] sm:$0xff] %v27370_v30  ;;  %31349 = vst [vmem:[#allocation15_spill] sm:$0xff] %v27375_v6  ;;  %v27381_v18 = vpack.i.bf16 %v27375_v6, %v27370_v30  ;;  %v31358_v6 = vpack.i.bf16 %v26944_v24, %v26905_v5  ;;  %v27455_v5 = vsel %vm11845_vm10, %v27176_v8, %v27223_v45 }
 0x570   : > { %31355 = vst [vmem:[#allocation42_spill] sm:$0xff] %v27419_v26  ;;  %31361 = vst [vmem:[#allocation66_spill] sm:$0xff] %v27455_v5  ;;  %v27462_v24 = vsel %vm11845_vm10, %v27223_v45, %v27397_v10 }
 0x571   : > { %31350 = vst [vmem:[#allocation57_spill] sm:$0xff] %v27381_v18  ;;  %11797 = vrot.lane.b32.xlu1 %v26932_v33, %s21046_s28  ;;  %11795 = vrot.lane.b32.xlu0 %v26930_v20, %s21046_s28  ;;  %v31352_v20 = vpack.i.bf16 %v26939_v54, %v26899_v1  ;;  %31362 = vst [vmem:[#allocation67_spill] sm:$0xff] %v27462_v24 }
 0x575   : > { %20776 = vrot.lane.b32.xlu1 %v27363_v50, %s21048_s29  ;;  %11799 = vrot.lane.b32.xlu0 %v26908_v51, %s21046_s28  ;;  %v27410_v33 = vpop.permute.xlu0 %12125  ;;  %v20790_v51 = vpack.i.bf16 %v27283_v53, %v27292_v37 }
 0x576   : > { %31353 = vst [vmem:[#allocation94_spill] sm:$0xff] %v27410_v33  ;;  %v12218_v45 = vsel %vm12163_vm11, %v27410_v33, %v27319_v25 }
 0x579   : > { %12145 = vrot.lane.b32.xlu1 %v27402_v2, %s21048_s29  ;;  %20781 = vrot.lane.b32.xlu0 %v31352_v20, %s21046_s28 }
 0x57d   : > { %v27412_v48 = vpop.permute.xlu1 %20696  ;;  %12141 = vrot.lane.b32.xlu1 %v27419_v26, %s21048_s29  ;;  %20791 = vrot.lane.b32.xlu0 %v20790_v51, %s21048_s29 }
 0x57e   : > { %31354 = vst [vmem:[#allocation98_spill] sm:$0xff] %v27412_v48  ;;  %v29962_v1 = vunpack.i.h.bf16 %v27412_v48  ;;  %v31359_v27 = vunpack.i.l.bf16 %v27412_v48 }
 0x581   : > { %v27424_v58 = vpop.permute.xlu0 %20706  ;;  %v27429_v57 = vpop.permute.xlu1 %20701  ;;  %20786 = vrot.lane.b32.xlu1 %v31358_v6, %s21046_s28  ;;  %20796 = vrot.lane.b32.xlu0 %v27298_v60, %s21048_s29  ;;  %v27504_v6 = vunpack.i.l.bf16 %v27189_v12 }
 0x582   : > { %31356 = vst [vmem:[#allocation63_spill] sm:$0xff] %v27424_v58  ;;  %v29966_v54 = vunpack.i.h.bf16 %v27424_v58  ;;  %v20708_v20 = vunpack.i.l.bf16 %v27424_v58  ;;  %31357 = vst [vmem:[#allocation64_spill] sm:$0xff] %v27429_v57  ;;  %v20703_v44 = vunpack.i.l.bf16 %v27429_v57  ;;  %v31360_v59 = vunpack.i.h.bf16 %v27429_v57 }
 0x584   : > { %v12194_v51 = vsel %vm12163_vm11, %v29962_v1, %v20708_v20  ;;  %v12195_v14 = vsel %vm12163_vm11, %v20708_v20, %v29966_v54  ;;  %v12170_v29 = vsel %vm12163_vm11, %v31359_v27, %v20703_v44  ;;  %v12171_v1 = vsel %vm12163_vm11, %v20703_v44, %v31360_v59 }
 0x585   : > { %v20712_v46 = vpop.permute.xlu1 %20711  ;;  %v18755_v30 = vpack.c.bf16 %v12195_v14, %v12171_v1  ;;  %v18757_v28 = vpack.c.bf16 %v12194_v51, %v12170_v29  ;;  %12151 = vrot.lane.b32.xlu1 %v27455_v5, %s21048_s29  ;;  %12153 = vrot.lane.b32.xlu0 %v27462_v24, %s21048_s29  ;;  %v27472_v59 = vunpack.i.l.bf16 %v27165_v52  ;;  %v27489_v14 = vunpack.i.h.bf16 %v27165_v52 }
 0x586   : > { %v31368_v54 = vunpack.i.l.bf16 %v27265_v42  ;;  %v27526_v7 = vunpack.i.l.bf16 %v20712_v46  ;;  %v27539_v58 = vunpack.i.h.bf16 %v20712_v46 }
 0x587   : > { %18756 = vmatprep.subr.bf16.mxu1 %v18755_v30 }
 0x588   : > { %18758 = vmatpush1.bf16.msra.mxu1 %v18757_v28 }
 0x589   : > { %v27466_v29 = vpop.permute.xlu1 %12129  ;;  %20801 = vrot.lane.b32.xlu1 %v27381_v18, %s21048_s29  ;;  %11803 = vrot.lane.b32.xlu0 %v26951_v17, %s21046_s28 }
 0x58a   : > { %31363 = vst [vmem:[#allocation96_spill] sm:$0xff] %v27466_v29  ;;  %v12219_v44 = vsel %vm12163_vm11, %v27319_v25, %v27466_v29  ;;  %v27491_v25 = vpop.permute.xlu0 %11829 }
 0x58b   : > { %17702 = vmatprep.subr.msk.mxu1 %vm12299_vm14, %v12219_v44  ;;  %v27500_v17 = vsel %vm11845_vm10, %v27491_v25, %v27176_v8  ;;  %v27514_v8 = vunpack.i.h.bf16 %v27189_v12  ;;  %v31366_v44 = vunpack.i.h.bf16 %v27343_v40 }
 0x58c   : > { %17703 = vmatpush1.msk.msra.mxu1 %vm12299_vm14, %v12218_v45  ;;  %31364 = vst [vmem:[#allocation100_spill] sm:$0xff] %v27500_v17 }
 0x58d   : > { %v27483_v28 = vpop.permute.xlu1 %12135  ;;  %17704 = vmatmul.mubr.msk.f32.vlgmr.msra.gmra.mrb[36].mxu1 %vm12286_vm3, %v27472_v59  ;;  %11801 = vrot.lane.b32.xlu1 %v26911_v61, %s21046_s28  ;;  %s21049_s28 = smov 16  }
 0x58e   : > { %12723 = vmatprep.mubr.f32.mxu1 %v30218_v22 }
 0x591   : > { %v20727_v30 = vpop.permute.xlu1 %20726  ;;  %17705 = vmatmul.mubr.msk.f32.gmra.mrb[38].mxu1 %vm12286_vm3, %v27489_v14  ;;  %12149 = vrot.lane.b32.xlu1 %v27500_v17, %s21048_s29 }
 0x592   : > { %12729 = vmatprep.mubr.f32.mxu1 %v30218_v22  ;;  %v20729_v27 = vunpack.i.h.bf16 %v20727_v30  ;;  %v20728_v51 = vunpack.i.l.bf16 %v20727_v30 }
 0x594   : > { %v11893_v42 = vsel %vm11845_vm10, %v20728_v51, %v20729_v27 }
 0x595   : > { %v27508_v52 = vpop.permute.xlu0 %20716  ;;  %17706 = vmatmul.mubr.msk.f32.gmra.mrb[40].mxu1 %vm12286_vm3, %v27504_v6 }
 0x596   : > { %31365 = vst [vmem:[#allocation41_spill] sm:$0xff] %v27508_v52  ;;  %v20737_v61 = vpop.permute.xlu1 %20736  ;;  %12735 = vmatprep.mubr.f32.mxu1 %v30218_v22 }
 0x597   : > { %v20739_v1 = vunpack.i.h.bf16 %v20737_v61  ;;  %v20738_v20 = vunpack.i.l.bf16 %v20737_v61 }
 0x599   : > { %v27519_v45 = vsel %vm11845_vm10, %v31366_v44, %v20739_v1  ;;  %v27524_v29 = vsel %vm11845_vm10, %v31368_v54, %v20738_v20  ;;  %v20722_v61 = vpop.permute.xlu0 %20721  ;;  %17707 = vmatmul.mubr.msk.f32.gmra.mrb[42].mxu1 %vm12286_vm3, %v27514_v8 }
 0x59a   : > { %31367 = vst [vmem:[#allocation43_spill] sm:$0xff] %v27519_v45  ;;  %31369 = vst [vmem:[#allocation68_spill] sm:$0xff] %v27524_v29  ;;  %v27528_v57 = vpop.permute.xlu1 %12133  ;;  %v20724_v30 = vunpack.i.h.bf16 %v20722_v61  ;;  %v20723_v44 = vunpack.i.l.bf16 %v20722_v61  ;;  %12741 = vmatprep.mubr.f32.mxu1 %v30218_v22  ;;  %v11975_v61 = vsel %vm11973_vm4, %v11893_v42, 0.0 }
 0x59b   : > { %31370 = vst [vmem:[#allocation97_spill] sm:$0xff] %v27528_v57 }
 0x59c   : > { %v11869_v54 = vsel %vm11845_vm10, %v20723_v44, %v20724_v30 }
 0x59d   : > { %v20732_v33 = vpop.permute.xlu0 %20731  ;;  %17708 = vmatmul.mubr.msk.f32.gmra.mrb[44].mxu1 %vm12286_vm3, %v27526_v7  ;;  %v27545_v12 = vpack.c.bf16 %v11893_v42, %v11869_v54  ;;  %v11974_v27 = vsel %vm11973_vm4, %v11869_v54, 0.0 }
 0x59e   : > { %v27541_v48 = vpop.permute.xlu1 %20741  ;;  %v20734_v40 = vunpack.i.h.bf16 %v20732_v33  ;;  %v20733_v24 = vunpack.i.l.bf16 %v20732_v33  ;;  %12747 = vmatprep.mubr.f32.mxu1 %v30218_v22 }
 0x59f   : > { %31371 = vst [vmem:[#allocation69_spill] sm:$0xff] %v27541_v48  ;;  %31372 = vst [vmem:[#allocation101_spill] sm:$0xff] %v27545_v12 }
 0x5a0   : > { %v27551_v30 = vsel %vm11845_vm10, %v20738_v20, %v20733_v24  ;;  %v27554_v46 = vsel %vm11845_vm10, %v20733_v24, %v20723_v44  ;;  %v27557_v18 = vsel %vm11845_vm10, %v20739_v1, %v20734_v40  ;;  %v27560_v5 = vsel %vm11845_vm10, %v20734_v40, %v20728_v51 }
 0x5a1   : > { %31373 = vst [vmem:[#allocation70_spill] sm:$0xff] %v27551_v30  ;;  %31374 = vst [vmem:[#allocation99_spill] sm:$0xff] %v27554_v46  ;;  %v11842_v12 = vpop.permute.xlu0 %11841  ;;  %v27563_v17 = vpack.i.bf16 %v11975_v61, %v27560_v5  ;;  %v27566_v42 = vpack.i.bf16 %v11974_v27, %v27554_v46  ;;  %17709 = vmatmul.mubr.msk.f32.gmra.mrb[46].mxu1 %vm12286_vm3, %v27539_v58  ;;  %v20743_v40 = vunpack.i.l.bf16 %v27541_v48  ;;  %v29991_v27 = vunpack.i.h.bf16 %v27508_v52 }
 0x5a2   : > { %31375 = vst [vmem:[#allocation71_spill] sm:$0xff] %v27557_v18  ;;  %31376 = vst [vmem:[#allocation102_spill] sm:$0xff] %v27560_v5  ;;  %v11844_v33 = vpop.permute.xlu1 %11843  ;;  %12919 = vmatprep.mubr.f32.mxu1 %v30218_v22  ;;  %v20810_v61 = vpack.i.bf16 %v27557_v18, %v27551_v30  ;;  %v29993_v1 = vunpack.i.l.bf16 %v27508_v52 }
 0x5a3   : > { %31377 = vst [vmem:[#allocation74_spill] sm:$0xff] %v27563_v17  ;;  %31378 = vst [vmem:[#allocation103_spill] sm:$0xff] %v27566_v42  ;;  %20816 = vrot.lane.b32.xlu1 %v27563_v17, %s21048_s29  ;;  %20806 = vrot.lane.b32.xlu0 %v27566_v42, %s21048_s29  ;;  %v11917_v46 = vsel %vm11845_vm10, %v11842_v12, %v11844_v33  ;;  %v31380_v17 = vunpack.i.h.bf16 %v27541_v48 }
 0x5a4   : > { %v12174_v44 = vsel %vm12163_vm11, %v29993_v1, %v20743_v40  ;;  %v27612_v60 = vsel %vm11973_vm4, %v11917_v46, 0.0 }
 0x5a5   : > { %v27585_v54 = vpop.permute.xlu0 %20746  ;;  %v12175_v42 = vsel %vm12163_vm11, %v20743_v40, %v31380_v17  ;;  %31382 = vst [vmem:[#allocation21_spill] sm:$0xff] %v27612_v60 }
 0x5a6   : > { %31379 = vst [vmem:[#allocation18_spill] sm:$0xff] %v27585_v54  ;;  %v27591_v24 = vpop.permute.xlu1 %11837  ;;  %v29992_v20 = vunpack.i.h.bf16 %v27585_v54  ;;  %v20748_v51 = vunpack.i.l.bf16 %v27585_v54 }
 0x5a7   : > { %20811 = vrot.lane.b32.xlu0 %v20810_v61, %s21048_s29 }
 0x5a8   : > { %v12198_v5 = vsel %vm12163_vm11, %v29991_v27, %v20748_v51  ;;  %v12199_v18 = vsel %vm12163_vm11, %v20748_v51, %v29992_v20 }
 0x5a9   : > { %v27609_v30 = vpop.permute.xlu0 %12137  ;;  %v18763_v33 = vpack.c.bf16 %v12199_v18, %v12175_v42  ;;  %v18765_v61 = vpack.c.bf16 %v12198_v5, %v12174_v44  ;;  %v12222_v5 = vsel %vm12163_vm11, %v27528_v57, %v27483_v28 }
 0x5aa   : > { %31381 = vst [vmem:[#allocation22_spill] sm:$0xff] %v27609_v30  ;;  %v27616_v27 = vpop.permute.xlu1 %20756  ;;  %v12223_v17 = vsel %vm12163_vm11, %v27483_v28, %v27609_v30 }
 0x5ab   : > { %12161 = vrot.lane.b32.xlu0 %v27612_v60, %s21048_s29  ;;  %18764 = vmatprep.subr.bf16.mxu1 %v18763_v33  ;;  %v27629_v46 = vunpack.i.h.bf16 %v27616_v27  ;;  %v29994_v51 = vunpack.i.l.bf16 %v27616_v27 }
 0x5ac   : > { %18766 = vmatpush1.bf16.msra.mxu1 %v18765_v61 }
 0x5ad   : > { %v11840_v40 = vpop.permute.xlu0 %11839  ;;  %17718 = vmatprep.subr.msk.mxu1 %vm12299_vm14, %v12223_v17  ;;  %v11971_v33 = vsel %vm11845_vm10, 0.0, %v27629_v46 }
 0x5ae   : > { %v27623_v18 = vsel %vm11845_vm10, %v11840_v40, %v11842_v12  ;;  %v27641_v28 = vsel %vm11845_vm10, %v27591_v24, %v11840_v40 }
 0x5af   : > { %31383 = vst [vmem:[#allocation24_spill] sm:$0xff] %v27623_v18  ;;  %12159 = vrot.lane.b32.xlu1 %v27623_v18, %s21048_s29  ;;  %31384 = vst [vmem:[#allocation32_spill] sm:$0xff] %v27641_v28 }
 0x5b0   : > { %17719 = vmatpush1.msk.msra.mxu1 %vm12299_vm14, %v12222_v5 }
 0x5b1   : > { %v20752_v42 = vpop.permute.xlu0 %20751  ;;  %17720 = vmatmul.mubr.msk.f32.vlgmr.msra.gmra.mrb[48].mxu1 %vm12286_vm3, %v27472_v59 }
 0x5b2   : > { %v20754_v12 = vunpack.i.h.bf16 %v20752_v42  ;;  %v27637_v44 = vunpack.i.l.bf16 %v20752_v42  ;;  %12925 = vmatprep.mubr.f32.mxu1 %v30218_v22 }
 0x5b3   : > { %12157 = vrot.lane.b32.xlu1 %v27641_v28, %s21048_s29 }
 0x5b4   : > { %v27651_v61 = vsel %vm11845_vm10, %v20754_v12, %v29994_v51  ;;  %v27655_v17 = vsel %vm11845_vm10, %v27637_v44, %v20754_v12  ;;  %v11970_v40 = vsel %vm11845_vm10, 0.0, %v27637_v44 }
 0x5b5   : > { %31385 = vst [vmem:[#allocation31_spill] sm:$0xff] %v27651_v61  ;;  %v27661_v42 = vpop.permute.xlu0 %20761  ;;  %17721 = vmatmul.mubr.msk.f32.gmra.mrb[50].mxu1 %vm12286_vm3, %v27489_v14  ;;  %v27667_v20 = vpack.i.bf16 %v27651_v61, %v27655_v17  ;;  %v27669_v1 = vpack.i.bf16 %v11971_v33, %v11970_v40 }
 0x5b6   : > { %v29997_v12 = vunpack.i.h.bf16 %v27661_v42  ;;  %v20763_v51 = vunpack.i.l.bf16 %v27661_v42  ;;  %12931 = vmatprep.mubr.f32.mxu1 %v30218_v22 }
 0x5b7   : > { %20821 = vrot.lane.b32.xlu0 %v27667_v20, %s21048_s29 }
 0x5b8   : > { %v27678_v5 = vsel %vm11845_vm10, %v27629_v46, %v20763_v51  ;;  %v27683_v30 = vsel %vm11845_vm10, %v20763_v51, %v29997_v12 }
 0x5b9   : > { %31386 = vst [vmem:[#allocation20_spill] sm:$0xff] %v27683_v30  ;;  %17722 = vmatmul.mubr.msk.f32.gmra.mrb[52].mxu1 %vm12286_vm3, %v27504_v6  ;;  %v27689_v33 = vpack.i.bf16 %v27683_v30, %v27678_v5  ;;  %v12144_v51 = vpop.permute.xlu0 %12143 }
 0x5ba   : > { %12937 = vmatprep.mubr.f32.mxu1 %v30218_v22 }
 0x5bb   : > { %20826 = vrot.lane.b32.xlu1 %v27689_v33, %s21048_s29  ;;  %20831 = vrot.lane.b32.xlu0 %v27669_v1, %s21048_s29 }
 0x5bd   : > { %17723 = vmatmul.mubr.msk.f32.gmra.mrb[54].mxu1 %vm12286_vm3, %v27514_v8 }
 0x5be   : > { %12943 = vmatprep.mubr.f32.mxu1 %v30218_v22 }
 0x5c1   : > { %17724 = vmatmul.mubr.msk.f32.gmra.mrb[56].mxu1 %vm12286_vm3, %v27526_v7 }
 0x5c2   : > { %12949 = vmatprep.mubr.f32.mxu1 %v30218_v22 }
 0x5c5   : > { %17725 = vmatmul.mubr.msk.f32.gmra.mrb[58].mxu1 %vm12286_vm3, %v27539_v58 }
 0x5c6   : > { %13121 = vmatprep.mubr.f32.mxu1 %v30218_v22 }
 0x5df   : > { %v27709_v54 = vpop.permute.xlu1 %20766  ;;  %v27711_v40 = vpop.permute.xlu0 %20771 }
 0x5e0   : > { %31387 = vst [vmem:[#allocation19_spill] sm:$0xff] %v27709_v54  ;;  %31388 = vst [vmem:[#allocation36_spill] sm:$0xff] %v27711_v40  ;;  %v20773_v18 = vunpack.i.l.bf16 %v27711_v40  ;;  %v31390_v52 = vunpack.i.l.bf16 %v27709_v54  ;;  %v31392_v35 = vunpack.i.h.bf16 %v27711_v40 }
 0x5e2   : > { %v12178_v28 = vsel %vm12163_vm11, %v31390_v52, %v20773_v18  ;;  %v12179_v15 = vsel %vm12163_vm11, %v20773_v18, %v31392_v35  ;;  %v31398_v18 = vunpack.i.h.bf16 %v27061_v31 }
 0x5e3   : > { %v11798_v12 = vpop.permute.xlu1 %11797  ;;  %v11796_v48 = vpop.permute.xlu0 %11795 }
 0x5e4   : > { %v27714_v57 = vsel %vm11845_vm10, %v11796_v48, %v11798_v12  ;;  %v27727_v37 = vsel %vm11845_vm10, 0.0, %v11796_v48  ;;  %v31391_v48 = vunpack.i.h.bf16 %v27709_v54 }
 0x5e5   : > { %12115 = vrot.lane.b32.xlu1 %v27714_v57, %s21048_s29 }
 0x5e7   : > { %v27722_v53 = vpop.permute.xlu1 %20776  ;;  %v27724_v2 = vpop.permute.xlu0 %11799 }
 0x5e8   : > { %31389 = vst [vmem:[#allocation35_spill] sm:$0xff] %v27722_v53  ;;  %v20778_v26 = vunpack.i.l.bf16 %v27722_v53  ;;  %v27733_v60 = vsel %vm11845_vm10, %v11798_v12, %v27724_v2  ;;  %v31393_v12 = vunpack.i.h.bf16 %v27722_v53 }
 0x5e9   : > { %12113 = vrot.lane.b32.xlu1 %v27727_v37, %s21048_s29  ;;  %12117 = vrot.lane.b32.xlu0 %v27733_v60, %s21048_s29 }
 0x5ea   : > { %v12202_v50 = vsel %vm12163_vm11, %v31391_v48, %v20778_v26  ;;  %v12203_v56 = vsel %vm12163_vm11, %v20778_v26, %v31393_v12  ;;  %v31395_v48 = vunpack.i.l.bf16 %v27616_v27 }
 0x5eb   : > { %v18773_v13 = vpack.c.bf16 %v12202_v50, %v12178_v28  ;;  %v27751_v55 = vpop.permute.xlu1 %12145  ;;  %v20782_v32 = vpop.permute.xlu0 %20781  ;;  %v18771_v61 = vpack.c.bf16 %v12203_v56, %v12179_v15 }
 0x5ec   : > { %31394 = vst [vmem:[#allocation30_spill] sm:$0xff] %v27751_v55  ;;  %v20784_v30 = vunpack.i.h.bf16 %v20782_v32  ;;  %v20783_v16 = vunpack.i.l.bf16 %v20782_v32  ;;  %v12227_v52 = vsel %vm12163_vm11, %v12144_v51, %v27751_v55 }
 0x5ed   : > { %18772 = vmatprep.subr.bf16.mxu1 %v18771_v61  ;;  %v31399_v61 = vunpack.i.h.bf16 %v27661_v42 }
 0x5ee   : > { %v27758_v40 = vsel %vm11845_vm10, %v31395_v48, %v20783_v16  ;;  %v27761_v35 = vsel %vm11845_vm10, %v20783_v16, %v20784_v30  ;;  %18774 = vmatpush1.bf16.msra.mxu1 %v18773_v13 }
 0x5ef   : > { %31396 = vst [vmem:[#allocation29_spill] sm:$0xff] %v27761_v35  ;;  %v27763_v50 = vpop.permute.xlu1 %12141  ;;  %v27765_v26 = vpop.permute.xlu0 %20791  ;;  %17734 = vmatprep.subr.msk.mxu1 %vm12299_vm14, %v12227_v52  ;;  %v27770_v32 = vpack.i.bf16 %v27761_v35, %v27758_v40  ;;  %v31401_v52 = vunpack.i.l.bf16 %v27061_v31 }
 0x5f0   : > { %31397 = vst [vmem:[#allocation79_spill] sm:$0xff] %v27763_v50  ;;  %v12226_v15 = vsel %vm12163_vm11, %v27763_v50, %v12144_v51 }
 0x5f1   : > { %20836 = vrot.lane.b32.xlu0 %v27770_v32, %s21048_s29  ;;  %v27798_v48 = vsel %vm11845_vm10, %v20784_v30, %v31401_v52  ;;  %v30043_v52 = vunpack.i.l.bf16 %v27765_v26 }
 0x5f2   : > { %17735 = vmatpush1.msk.msra.mxu1 %vm12299_vm14, %v12226_v15 }
 0x5f3   : > { %v20787_v16 = vpop.permute.xlu1 %20786  ;;  %v27777_v13 = vpop.permute.xlu0 %20796  ;;  %17736 = vmatmul.mubr.msk.f32.vlgmr.msra.gmra.mrb[60].mxu1 %vm12286_vm3, %v27472_v59 }
 0x5f4   : > { %v20789_v56 = vunpack.i.h.bf16 %v20787_v16  ;;  %v20788_v27 = vunpack.i.l.bf16 %v20787_v16  ;;  %13127 = vmatprep.mubr.f32.mxu1 %v30218_v22  ;;  %v31402_v53 = vunpack.i.h.bf16 %v27777_v13 }
 0x5f6   : > { %v27785_v28 = vsel %vm11845_vm10, %v20789_v56, %v31398_v18  ;;  %v27790_v51 = vsel %vm11845_vm10, %v31399_v61, %v20788_v27  ;;  %v27793_v12 = vsel %vm11845_vm10, %v20788_v27, %v20789_v56  ;;  %v20798_v27 = vunpack.i.l.bf16 %v27777_v13 }
 0x5f7   : > { %31400 = vst [vmem:[#allocation83_spill] sm:$0xff] %v27793_v12  ;;  %v12152_v15 = vpop.permute.xlu1 %12151  ;;  %17737 = vmatmul.mubr.msk.f32.gmra.mrb[62].mxu1 %vm12286_vm3, %v27489_v14  ;;  %v27804_v16 = vpack.i.bf16 %v27793_v12, %v27790_v51  ;;  %v27811_v31 = vpop.permute.xlu0 %12153  ;;  %v30044_v61 = vunpack.i.h.bf16 %v27765_v26 }
 0x5f8   : > { %13133 = vmatprep.mubr.f32.mxu1 %v30218_v22  ;;  %v12182_v30 = vsel %vm12163_vm11, %v30043_v52, %v20798_v27  ;;  %v12183_v50 = vsel %vm12163_vm11, %v20798_v27, %v31402_v53 }
 0x5f9   : > { %20841 = vrot.lane.b32.xlu1 %v27804_v16, %s21048_s29 }
 0x5fb   : > { %v27817_v18 = vpop.permute.xlu1 %20801  ;;  %17738 = vmatmul.mubr.msk.f32.gmra.mrb[64].mxu1 %vm12286_vm3, %v27504_v6  ;;  %v11804_v12 = vpop.permute.xlu0 %11803 }
 0x5fc   : > { %v30045_v56 = vunpack.i.h.bf16 %v27817_v18  ;;  %v20803_v42 = vunpack.i.l.bf16 %v27817_v18  ;;  %13139 = vmatprep.mubr.f32.mxu1 %v30218_v22 }
 0x5fe   : > { %v12206_v55 = vsel %vm12163_vm11, %v30044_v61, %v20803_v42  ;;  %v12207_v54 = vsel %vm12163_vm11, %v20803_v42, %v30045_v56  ;;  %v31448_v56 = vld [vmem:[#allocation23_spill] sm:$0xff] }
 0x5ff   : > { %v18781_v35 = vpack.c.bf16 %v12206_v55, %v12182_v30  ;;  %v11802_v0 = vpop.permute.xlu1 %11801  ;;  %17739 = vmatmul.mubr.msk.f32.gmra.mrb[66].mxu1 %vm12286_vm3, %v27514_v8  ;;  %v18779_v62 = vpack.c.bf16 %v12207_v54, %v12183_v50  ;;  %v12231_v55 = vsel %vm12163_vm11, %v12152_v15, %v27811_v31  ;;  %v31409_v30 = vpack.i.bf16 %v27519_v45, %v27524_v29 }
 0x600   : > { %v27842_v52 = vsel %vm11845_vm10, %v27724_v2, %v11802_v0  ;;  %v27845_v61 = vsel %vm11845_vm10, %v11802_v0, %v11804_v12  ;;  %13145 = vmatprep.mubr.f32.mxu1 %v30218_v22  ;;  %v20845_v2 = vpack.i.bf16 %v27785_v28, %v27798_v48  ;;  %v27860_v0 = vsel %vm11845_vm10, %v11804_v12, %v27065_v23 }
 0x601   : > { %12121 = vrot.lane.b32.xlu1 %v27845_v61, %s21048_s29  ;;  %12119 = vrot.lane.b32.xlu0 %v27842_v52, %s21048_s29  ;;  %v27877_v23 = vsel %vm11845_vm10, %v27141_v4, %v27167_v39  ;;  %v27893_v4 = vsel %vm11845_vm10, %v27213_v21, %v27321_v36  ;;  %v27904_v39 = vsel %vm11845_vm10, %v27257_v49, %v27491_v25 }
 0x602   : > { %18780 = vmatprep.subr.bf16.mxu1 %v18779_v62  ;;  %31403 = vst [vmem:[#allocation34_spill] sm:$0xff] %v27877_v23  ;;  %v31404_v62 = vpack.i.bf16 %v27133_v38, %v27136_v43  ;;  %31405 = vst [vmem:[#allocation33_spill] sm:$0xff] %v27893_v4  ;;  %v31407_v21 = vpack.i.bf16 %v27251_v3, %v27335_v63  ;;  %v27916_v12 = vsel %vm11845_vm10, %v27397_v10, %v27591_v24 }
 0x603   : > { %18782 = vmatpush1.bf16.msra.mxu1 %v18781_v35  ;;  %v27854_v53 = vpop.permute.xlu1 %12149  ;;  %v20855_v35 = vpack.i.bf16 %v27248_v41, %v27245_v11  ;;  %31406 = vst [vmem:[#allocation89_spill] sm:$0xff] %v27904_v39  ;;  %31408 = vst [vmem:[#allocation87_spill] sm:$0xff] %v27916_v12 }
 0x604   : > { %v12230_v54 = vsel %vm12163_vm11, %v27854_v53, %v12152_v15  ;;  %17740 = vmatmul.mubr.msk.f32.gmra.mrb[68].mxu1 %vm12286_vm3, %v27526_v7  ;;  %17750 = vmatprep.subr.msk.mxu1 %vm12299_vm14, %v12231_v55 }
 0x605   : > { %12123 = vrot.lane.b32.xlu1 %v27860_v0, %s21048_s29  ;;  %20846 = vrot.lane.b32.xlu0 %v20845_v2, %s21048_s29 }
 0x606   : > { %13151 = vmatprep.mubr.f32.mxu1 %v30218_v22 }
 0x607   : > { %17751 = vmatpush1.msk.msra.mxu1 %vm12299_vm14, %v12230_v54 }
 0x608   : > { %17741 = vmatmul.mubr.msk.f32.gmra.mrb[70].mxu1 %vm12286_vm3, %v27539_v58 }
 0x609   : > { %12131 = vrot.lane.b32.xlu1 %v27877_v23, %s21048_s29  ;;  %20851 = vrot.lane.b32.xlu0 %v31404_v62, %s21048_s29 }
 0x60a   : > { %13323 = vmatprep.mubr.f32.mxu1 %v30218_v22 }
 0x60c   : > { %17752 = vmatmul.mubr.msk.f32.vlgmr.msra.gmra.mrb[72].mxu1 %vm12286_vm3, %v27472_v59 }
 0x60d   : > { %12139 = vrot.lane.b32.xlu1 %v27893_v4, %s21048_s29  ;;  %20856 = vrot.lane.b32.xlu0 %v20855_v35, %s21048_s29 }
 0x60e   : > { %13329 = vmatprep.mubr.f32.mxu1 %v30218_v22 }
 0x610   : > { %17753 = vmatmul.mubr.msk.f32.gmra.mrb[74].mxu1 %vm12286_vm3, %v27489_v14 }
 0x611   : > { %12147 = vrot.lane.b32.xlu1 %v27904_v39, %s21048_s29  ;;  %20861 = vrot.lane.b32.xlu0 %v31407_v21, %s21048_s29 }
 0x612   : > { %13335 = vmatprep.mubr.f32.mxu1 %v30218_v22 }
 0x614   : > { %17754 = vmatmul.mubr.msk.f32.gmra.mrb[76].mxu1 %vm12286_vm3, %v27504_v6 }
 0x615   : > { %v20817_v36 = vpop.permute.xlu1 %20816  ;;  %v20807_v50 = vpop.permute.xlu0 %20806  ;;  %12155 = vrot.lane.b32.xlu1 %v27916_v12, %s21048_s29  ;;  %20866 = vrot.lane.b32.xlu0 %v31409_v30, %s21048_s29 }
 0x616   : > { %v20819_v15 = vunpack.i.h.bf16 %v20817_v36  ;;  %v20818_v49 = vunpack.i.l.bf16 %v20817_v36  ;;  %v20809_v25 = vunpack.i.h.bf16 %v20807_v50  ;;  %v20808_v42 = vunpack.i.l.bf16 %v20807_v50  ;;  %13341 = vmatprep.mubr.f32.mxu1 %v30218_v22 }
 0x618   : > { %v27926_v27 = vpack.c.bf16 %v20819_v15, %v20809_v25  ;;  %v12187_v10 = vsel %vm12163_vm11, %v20808_v42, %v20809_v25  ;;  %v12211_v24 = vsel %vm12163_vm11, %v20818_v49, %v20819_v15  ;;  %17755 = vmatmul.mubr.msk.f32.gmra.mrb[78].mxu1 %vm12286_vm3, %v27514_v8 }
 0x619   : > { %v27931_v55 = vpop.permute.xlu0 %20811  ;;  %v18787_v2 = vpack.c.bf16 %v12211_v24, %v12187_v10  ;;  %20876 = vrot.lane.b32.xlu1 %v27689_v33, %s21049_s28  ;;  %20871 = vrot.lane.b32.xlu0 %v27667_v20, %s21049_s28  ;;  %v20910_v24 = vpack.i.bf16 %v27080_v9, %v27798_v48 }
 0x61a   : > { %v30046_v54 = vunpack.i.h.bf16 %v27931_v55  ;;  %v30047_v62 = vunpack.i.l.bf16 %v27931_v55  ;;  %13347 = vmatprep.mubr.f32.mxu1 %v30218_v22 }
 0x61b   : > { %18788 = vmatprep.subr.bf16.mxu1 %v18787_v2 }
 0x61c   : > { %v12210_v35 = vsel %vm12163_vm11, %v30046_v54, %v20818_v49  ;;  %v12186_v21 = vsel %vm12163_vm11, %v30047_v62, %v20808_v42  ;;  %17756 = vmatmul.mubr.msk.f32.gmra.mrb[80].mxu1 %vm12286_vm3, %v27526_v7  ;;  %v31410_v49 = vpack.c.bf16 %v27678_v5, %v27655_v17  ;;  %v31411_v42 = vpack.c.bf16 %v27629_v46, %v27637_v44 }
 0x61d   : > { %v18789_v36 = vpack.c.bf16 %v12210_v35, %v12186_v21  ;;  %15143 = vrot.lane.b32.xlu1 %v27714_v57, %s21049_s28  ;;  %20881 = vrot.lane.b32.xlu0 %v27669_v1, %s21049_s28  ;;  %v27955_v20 = vpop.permute.xlu0 %12161  ;;  %v18800_v17 = vpack.c.bf16 %v27790_v51, %v27758_v40  ;;  %v31413_v21 = vld [vmem:[#allocation86_spill] sm:$0xff] }
 0x61e   : > { %13353 = vmatprep.mubr.f32.mxu1 %v30218_v22 }
 0x61f   : > { %18790 = vmatpush1.bf16.msra.mxu1 %v18789_v36  ;;  %v31414_v36 = vld [vmem:[#allocation26_spill] sm:$0xff] }
 0x620   : > { %17757 = vmatmul.mubr.msk.f32.gmra.mrb[82].mxu1 %vm12286_vm3, %v27539_v58 }
 0x621   : > { %v12160_v33 = vpop.permute.xlu1 %12159  ;;  %15141 = vrot.lane.b32.xlu1 %v27727_v37, %s21049_s28  ;;  %15145 = vrot.lane.b32.xlu0 %v27733_v60, %s21049_s28 }
 0x622   : > { %v12235_v50 = vsel %vm12163_vm11, %v12160_v33, %v27955_v20  ;;  %13525 = vmatprep.mubr.f32.mxu1 %v30218_v22 }
 0x623   : > { %17766 = vmatprep.subr.msk.mxu1 %vm12299_vm14, %v12235_v50  ;;  %v31416_v50 = vld [vmem:[#allocation47_spill] sm:$0xff] }
 0x625   : > { %v27968_v1 = vpop.permute.xlu1 %12157  ;;  %20891 = vrot.lane.b32.xlu1 %v27017_v34, %s21050_s30  ;;  %20886 = vrot.lane.b32.xlu0 %v26991_v19, %s21050_s30 }
 0x626   : > { %v12234_v15 = vsel %vm12163_vm11, %v27968_v1, %v12160_v33  ;;  %v31415_v33 = vld [vmem:[#allocation12_spill] sm:$0xff] }
 0x627   : > { %17767 = vmatpush1.msk.msra.mxu1 %vm12299_vm14, %v12234_v15  ;;  %v31417_v15 = vld [vmem:[#allocation80_spill] sm:$0xff] }
 0x628   : > { %17768 = vmatmul.mubr.msk.f32.vlgmr.msra.gmra.mrb[84].mxu1 %vm12286_vm3, %v27472_v59  ;;  %18796 = vmatprep.subr.bf16.mxu1 %v31410_v49  ;;  %v31418_v49 = vld [vmem:[#allocation20_spill] sm:$0xff] }
 0x629   : > { %v27980_v25 = vpop.permute.xlu0 %20821  ;;  %18799 = vmatpush1.bf16.msk.msra.mxu1 %vm18798_vm6, %v31411_v42  ;;  %13531 = vmatprep.mubr.f32.mxu1 %v30218_v22  ;;  %v31419_v42 = vld [vmem:[#allocation31_spill] sm:$0xff] }
 0x62a   : > { %17785 = vmatprep.subr.msk.mxu1 %vm12299_vm14, %v27714_v57  ;;  %20901 = vrot.lane.b32.xlu1 %v27804_v16, %s21049_s28  ;;  %v20824_v19 = vunpack.i.h.bf16 %v27980_v25  ;;  %v20823_v34 = vunpack.i.l.bf16 %v27980_v25  ;;  %v31459_v25 = vld [vmem:[#allocation70_spill] sm:$0xff] }
 0x62b   : > { %20896 = vrot.lane.b32.xlu0 %v27770_v32, %s21049_s28 }
 0x62c   : > { %17769 = vmatmul.mubr.msk.f32.gmra.mrb[86].mxu1 %vm12286_vm3, %v27489_v14  ;;  %v12165_v40 = vsel %vm12163_vm11, %v20823_v34, %v20824_v19 }
 0x62d   : > { %v27996_v46 = vpop.permute.xlu1 %20826  ;;  %v20832_v44 = vpop.permute.xlu0 %20831  ;;  %17786 = vmatpush1.msk.msra.mxu1 %vm12299_vm14, %v27727_v37  ;;  %13537 = vmatprep.mubr.f32.mxu1 %v30218_v22 }
 0x62e   : > { %v30048_v57 = vunpack.i.h.bf16 %v27996_v46  ;;  %v20828_v5 = vunpack.i.l.bf16 %v27996_v46  ;;  %v20834_v16 = vunpack.i.h.bf16 %v20832_v44  ;;  %v20833_v30 = vunpack.i.l.bf16 %v20832_v44  ;;  %18801 = vmatprep.subr.bf16.mxu1 %v18800_v17  ;;  %15147 = vrot.lane.b32.xlu1 %v27842_v52, %s21049_s28  ;;  %v31421_v44 = vld [vmem:[#allocation4_spill] sm:$0xff] }
 0x62f   : > { %20906 = vrot.lane.b32.xlu0 %v27130_v47, %s21050_s30  ;;  %v31412_v47 = vld [vmem:[#allocation6_spill] sm:$0xff]  ;;  %v31422_v17 = vpack.i.bf16 %v31421_v44, %v27136_v43 }
 0x630   : > { %v12188_v32 = vsel %vm12163_vm11, %v20834_v16, %v20828_v5  ;;  %v12164_v10 = vsel %vm12163_vm11, %v20833_v30, %v20823_v34  ;;  %v12189_v37 = vsel %vm12163_vm11, %v20828_v5, %v30048_v57  ;;  %17770 = vmatmul.mubr.msk.f32.gmra.mrb[88].mxu1 %vm12286_vm3, %v27504_v6  ;;  %v20915_v35 = vpack.i.bf16 %v31412_v47, %v27785_v28  ;;  %v31423_v5 = vld [vmem:[#allocation46_spill] sm:$0xff]  ;;  %v31424_v16 = vld [vmem:[#allocation5_spill] sm:$0xff] }
 0x631   : > { %v18745_v51 = vpack.c.bf16 %v12188_v32, %v12164_v10  ;;  %v18743_v2 = vpack.c.bf16 %v12189_v37, %v12165_v40  ;;  %13543 = vmatprep.mubr.f32.mxu1 %v30218_v22  ;;  %v31420_v34 = vpack.c.bf16 %v31418_v49, %v31419_v42  ;;  %v31425_v30 = vpack.c.bf16 %v27785_v28, %v27798_v48  ;;  %v31428_v10 = vld [vmem:[#allocation53_spill] sm:$0xff]  ;;  %v31430_v40 = vld [vmem:[#allocation52_spill] sm:$0xff]  ;;  %v31433_v37 = vld [vmem:[#allocation39_spill] sm:$0xff] }
 0x632   : > { %20911 = vrot.lane.b32.xlu1 %v20910_v24, %s21049_s28  ;;  %v31431_v28 = vld [vmem:[#allocation56_spill] sm:$0xff]  ;;  %v31435_v24 = vld [vmem:[#allocation93_spill] sm:$0xff] }
 0x633   : > { %18744 = vmatprep.subr.bf16.mxu0 %v18743_v2  ;;  %15149 = vrot.lane.b32.xlu0 %v27845_v61, %s21049_s28  ;;  %v31432_v48 = vld [vmem:[#allocation48_spill] sm:$0xff]  ;;  %v20950_v2 = vpack.i.bf16 %v31435_v24, %v27245_v11  ;;  %v31497_v11 = vld [vmem:[#allocation13_spill] sm:$0xff] }
 0x634   : > { %18746 = vmatpush1.bf16.msra.mxu0 %v18745_v51  ;;  %17771 = vmatmul.mubr.msk.f32.gmra.mrb[90].mxu1 %vm12286_vm3, %v27514_v8  ;;  %v31434_v51 = vld [vmem:[#allocation45_spill] sm:$0xff] }
 0x635   : > { %13549 = vmatprep.mubr.f32.mxu1 %v30218_v22 }
 0x636   : > { %15151 = vrot.lane.b32.xlu1 %v27860_v0, %s21049_s28 }
 0x637   : > { %20916 = vrot.lane.b32.xlu0 %v20915_v35, %s21049_s28  ;;  %v31436_v35 = vld [vmem:[#allocation60_spill] sm:$0xff] }
 0x638   : > { %17772 = vmatmul.mubr.msk.f32.gmra.mrb[92].mxu1 %vm12286_vm3, %v27526_v7 }
 0x639   : > { %13555 = vmatprep.mubr.f32.mxu1 %v30218_v22 }
 0x63a   : > { %20921 = vrot.lane.b32.xlu1 %v31413_v21, %s21049_s28  ;;  %v31437_v21 = vld [vmem:[#allocation3_spill] sm:$0xff] }
 0x63b   : > { %15153 = vrot.lane.b32.xlu0 %v31414_v36, %s21049_s28 }
 0x63c   : > { %17773 = vmatmul.mubr.msk.f32.gmra.mrb[94].mxu1 %vm12286_vm3, %v27539_v58 }
 0x63d   : > { %13783 = vmatprep.mubr.f32.mxu1 %v30218_v22 }
 0x63e   : > { %15155 = vrot.lane.b32.xlu1 %v31415_v33, %s21049_s28 }
 0x63f   : > { %20926 = vrot.lane.b32.xlu0 %v31416_v50, %s21049_s28  ;;  %v31438_v50 = vld [vmem:[#allocation73_spill] sm:$0xff] }
 0x640   : > { %17787 = vmatmul.mubr.msk.f32.vlgmr.msra.gmra.mrb[96].mxu1 %vm12286_vm3, %v31417_v15  ;;  %v20955_v49 = vpack.i.bf16 %v31438_v50, %v27248_v41 }
 0x641   : > { %18803 = vmatpush1.bf16.msra.mxu1 %v31420_v34  ;;  %13789 = vmatprep.mubr.f32.mxu1 %v30218_v22  ;;  %v31439_v34 = vld [vmem:[#allocation83_spill] sm:$0xff] }
 0x642   : > { %17793 = vmatprep.subr.msk.mxu1 %vm12299_vm14, %v27842_v52  ;;  %20931 = vrot.lane.b32.xlu1 %v31422_v17, %s21049_s28  ;;  %v31426_v52 = vld [vmem:[#allocation50_spill] sm:$0xff]  ;;  %v31440_v17 = vld [vmem:[#allocation29_spill] sm:$0xff] }
 0x643   : > { %15157 = vrot.lane.b32.xlu0 %v31423_v5, %s21049_s28  ;;  %v31427_v32 = vpack.i.bf16 %v31426_v52, %v27133_v38 }
 0x644   : > { %17788 = vmatmul.mubr.msk.f32.gmra.mrb[98].mxu1 %vm12286_vm3, %v31424_v16 }
 0x645   : > { %17794 = vmatpush1.msk.msra.mxu1 %vm12299_vm14, %v27733_v60  ;;  %13795 = vmatprep.mubr.f32.mxu1 %v30218_v22  ;;  %v31429_v60 = vld [vmem:[#allocation37_spill] sm:$0xff] }
 0x646   : > { %18805 = vmatprep.subr.bf16.mxu1 %v31425_v30  ;;  %15159 = vrot.lane.b32.xlu1 %v27877_v23, %s21049_s28  ;;  %v31441_v30 = vpack.c.bf16 %v31439_v34, %v31440_v17  ;;  %v31444_v34 = vld [vmem:[#allocation14_spill] sm:$0xff]  ;;  %v31445_v17 = vld [vmem:[#allocation92_spill] sm:$0xff] }
 0x647   : > { %20936 = vrot.lane.b32.xlu0 %v31427_v32, %s21049_s28  ;;  %v31442_v32 = vld [vmem:[#allocation9_spill] sm:$0xff] }
 0x648   : > { %17789 = vmatmul.mubr.msk.f32.gmra.mrb[100].mxu1 %vm12286_vm3, %v31428_v10 }
 0x649   : > { %13801 = vmatprep.mubr.f32.mxu1 %v30218_v22 }
 0x64a   : > { %20941 = vrot.lane.b32.xlu1 %v31429_v60, %s21049_s28  ;;  %v31443_v60 = vld [vmem:[#allocation42_spill] sm:$0xff] }
 0x64b   : > { %15161 = vrot.lane.b32.xlu0 %v31430_v40, %s21049_s28 }
 0x64c   : > { %17790 = vmatmul.mubr.msk.f32.gmra.mrb[102].mxu1 %vm12286_vm3, %v31431_v28 }
 0x64d   : > { %13807 = vmatprep.mubr.f32.mxu1 %v30218_v22 }
 0x64e   : > { %15163 = vrot.lane.b32.xlu1 %v31432_v48, %s21049_s28 }
 0x64f   : > { %20946 = vrot.lane.b32.xlu0 %v31433_v37, %s21049_s28 }
 0x650   : > { %17791 = vmatmul.mubr.msk.f32.gmra.mrb[104].mxu1 %vm12286_vm3, %v31434_v51 }
 0x651   : > { %13813 = vmatprep.mubr.f32.mxu1 %v30218_v22 }
 0x652   : > { %20951 = vrot.lane.b32.xlu1 %v20950_v2, %s21049_s28 }
 0x653   : > { %15165 = vrot.lane.b32.xlu0 %v31436_v35, %s21049_s28 }
 0x654   : > { %17792 = vmatmul.mubr.msk.f32.gmra.mrb[106].mxu1 %vm12286_vm3, %v31437_v21 }
 0x655   : > { %13884 = vmatprep.mubr.f32.mxu1 %v30218_v22 }
 0x656   : > { %15167 = vrot.lane.b32.xlu1 %v27893_v4, %s21049_s28 }
 0x657   : > { %20956 = vrot.lane.b32.xlu0 %v20955_v49, %s21049_s28  ;;  %v12116_v42 = vpop.permute.xlu1 %12115 }
 0x658   : > { %17795 = vmatmul.mubr.msk.f32.vlgmr.msra.gmra.mrb[108].mxu1 %vm12286_vm3, %v31417_v15 }
 0x659   : > { %18807 = vmatpush1.bf16.msra.mxu1 %v31441_v30  ;;  %13890 = vmatprep.mubr.f32.mxu1 %v30218_v22  ;;  %v31446_v30 = vpack.c.bf16 %v31444_v34, %v31445_v17  ;;  %v31454_v34 = vld [vmem:[#allocation49_spill] sm:$0xff] }
 0x65a   : > { %17801 = vmatprep.subr.msk.mxu1 %vm12299_vm14, %v27860_v0  ;;  %20961 = vrot.lane.b32.xlu1 %v31442_v32, %s21049_s28  ;;  %v31447_v32 = vld [vmem:[#allocation11_spill] sm:$0xff] }
 0x65b   : > { %15169 = vrot.lane.b32.xlu0 %v31443_v60, %s21049_s28  ;;  %v12114_v37 = vpop.permute.xlu1 %12113  ;;  %v28118_v2 = vpop.permute.xlu0 %12117 }
 0x65c   : > { %17796 = vmatmul.mubr.msk.f32.gmra.mrb[110].mxu1 %vm12286_vm3, %v31424_v16  ;;  %v12212_v49 = vsel %vm12163_vm11, %v12114_v37, %v12116_v42  ;;  %v12213_v0 = vsel %vm12163_vm11, %v12116_v42, %v28118_v2  ;;  %v31452_v37 = vld [vmem:[#allocation81_spill] sm:$0xff] }
 0x65d   : > { %17802 = vmatpush1.msk.msra.mxu1 %vm12299_vm14, %v27845_v61  ;;  %13896 = vmatprep.mubr.f32.mxu1 %v30218_v22  ;;  %v31449_v61 = vld [vmem:[#allocation2_spill] sm:$0xff] }
 0x65e   : > { %18809 = vmatprep.subr.bf16.mxu1 %v31446_v30  ;;  %15171 = vrot.lane.b32.xlu1 %v31447_v32, %s21049_s28  ;;  %v31450_v42 = vpack.i.bf16 %v31449_v61, %v27335_v63 }
 0x65f   : > { %20966 = vrot.lane.b32.xlu0 %v31448_v56, %s21049_s28  ;;  %17678 = vmatprep.subr.msk.mxu0 %vm12299_vm14, %v12213_v0  ;;  %v31451_v56 = vld [vmem:[#allocation62_spill] sm:$0xff] }
 0x660   : > { %17679 = vmatpush1.msk.msra.mxu0 %vm12299_vm14, %v12212_v49  ;;  %17797 = vmatmul.mubr.msk.f32.gmra.mrb[112].mxu1 %vm12286_vm3, %v31428_v10  ;;  %v31453_v49 = vpack.i.bf16 %v31452_v37, %v27251_v3 }
 0x661   : > { %17680 = vmatmul.mubr.msk.f32.vlgmr.msra.gmra.mrb[48].mxu0 %vm12286_vm3, %v27472_v59  ;;  %13902 = vmatprep.mubr.f32.mxu1 %v30218_v22 }
 0x662   : > { %20971 = vrot.lane.b32.xlu1 %v31450_v42, %s21049_s28  ;;  %12420 = vmatprep.mubr.f32.mxu0 %v30218_v22  ;;  %v31455_v42 = vld [vmem:[#allocation100_spill] sm:$0xff] }
 0x663   : > { %15173 = vrot.lane.b32.xlu0 %v31451_v56, %s21049_s28  ;;  %v20837_v0 = vpop.permute.xlu0 %20836  ;;  %v31457_v56 = vunpack.i.h.bf16 %v27996_v46 }
 0x664   : > { %17798 = vmatmul.mubr.msk.f32.gmra.mrb[114].mxu1 %vm12286_vm3, %v31431_v28  ;;  %v20839_v17 = vunpack.i.h.bf16 %v20837_v0  ;;  %v20838_v30 = vunpack.i.l.bf16 %v20837_v0  ;;  %v18810_v0 = vpack.c.bf16 %v31412_v47, %v27080_v9  ;;  %v31463_v47 = vld [vmem:[#allocation38_spill] sm:$0xff] }
 0x665   : > { %17681 = vmatmul.mubr.msk.f32.gmra.mrb[50].mxu0 %vm12286_vm3, %v27489_v14  ;;  %13908 = vmatprep.mubr.f32.mxu1 %v30218_v22 }
 0x666   : > { %15175 = vrot.lane.b32.xlu1 %v27904_v39, %s21049_s28  ;;  %12426 = vmatprep.mubr.f32.mxu0 %v30218_v22  ;;  %v12166_v57 = vsel %vm12163_vm11, %v20824_v19, %v20838_v30  ;;  %v31458_v39 = vld [vmem:[#allocation57_spill] sm:$0xff]  ;;  %v12167_v63 = vsel %vm12163_vm11, %v20838_v30, %v20839_v17  ;;  %v31461_v19 = vld [vmem:[#allocation67_spill] sm:$0xff] }
 0x667   : > { %20976 = vrot.lane.b32.xlu0 %v31453_v49, %s21049_s28 }
 0x668   : > { %17799 = vmatmul.mubr.msk.f32.gmra.mrb[116].mxu1 %vm12286_vm3, %v31434_v51 }
 0x669   : > { %17682 = vmatmul.mubr.msk.f32.gmra.mrb[52].mxu0 %vm12286_vm3, %v27504_v6  ;;  %13914 = vmatprep.mubr.f32.mxu1 %v30218_v22 }
 0x66a   : > { %20981 = vrot.lane.b32.xlu1 %v31454_v34, %s21049_s28  ;;  %12432 = vmatprep.mubr.f32.mxu0 %v30218_v22  ;;  %v31456_v34 = vld [vmem:[#allocation66_spill] sm:$0xff] }
 0x66b   : > { %15177 = vrot.lane.b32.xlu0 %v31455_v42, %s21049_s28  ;;  %v20842_v49 = vpop.permute.xlu1 %20841 }
 0x66c   : > { %17800 = vmatmul.mubr.msk.f32.gmra.mrb[118].mxu1 %vm12286_vm3, %v31437_v21  ;;  %v20844_v54 = vunpack.i.h.bf16 %v20842_v49  ;;  %v20843_v62 = vunpack.i.l.bf16 %v20842_v49 }
 0x66d   : > { %17683 = vmatmul.mubr.msk.f32.gmra.mrb[54].mxu0 %vm12286_vm3, %v27514_v8  ;;  %13985 = vmatprep.mubr.f32.mxu1 %v30218_v22 }
 0x66e   : > { %15179 = vrot.lane.b32.xlu1 %v31456_v34, %s21049_s28  ;;  %12438 = vmatprep.mubr.f32.mxu0 %v30218_v22  ;;  %v12190_v49 = vsel %vm12163_vm11, %v31457_v56, %v20843_v62  ;;  %v12191_v3 = vsel %vm12163_vm11, %v20843_v62, %v20844_v54 }
 0x66f   : > { %20986 = vrot.lane.b32.xlu0 %v31458_v39, %s21049_s28  ;;  %v18749_v35 = vpack.c.bf16 %v12190_v49, %v12166_v57  ;;  %v18747_v9 = vpack.c.bf16 %v12191_v3, %v12167_v63  ;;  %v31460_v39 = vpack.i.bf16 %v31459_v25, %v27524_v29  ;;  %v31462_v57 = vld [vmem:[#allocation17_spill] sm:$0xff]  ;;  %v31485_v29 = vld [vmem:[#allocation55_spill] sm:$0xff] }
 0x670   : > { %17803 = vmatmul.mubr.msk.f32.vlgmr.msra.gmra.mrb[120].mxu1 %vm12286_vm3, %v31417_v15 }
 0x671   : > { %18811 = vmatpush1.bf16.msra.mxu1 %v18810_v0  ;;  %17684 = vmatmul.mubr.msk.f32.gmra.mrb[56].mxu0 %vm12286_vm3, %v27526_v7 }
 0x672   : > { %17809 = vmatprep.subr.msk.mxu1 %vm12299_vm14, %v31415_v33  ;;  %20991 = vrot.lane.b32.xlu1 %v31460_v39, %s21049_s28  ;;  %v31464_v33 = vpack.c.bf16 %v31462_v57, %v31463_v47  ;;  %v31467_v39 = vld [vmem:[#allocation103_spill] sm:$0xff]  ;;  %v31470_v57 = vld [vmem:[#allocation32_spill] sm:$0xff] }
 0x673   : > { %15181 = vrot.lane.b32.xlu0 %v31461_v19, %s21049_s28  ;;  %18748 = vmatprep.subr.bf16.mxu0 %v18747_v9  ;;  %v12122_v3 = vpop.permute.xlu1 %12121  ;;  %v12120_v63 = vpop.permute.xlu0 %12119  ;;  %v31473_v19 = vld [vmem:[#allocation74_spill] sm:$0xff] }
 0x674   : > { %13991 = vmatprep.mubr.f32.mxu1 %v30218_v22  ;;  %12444 = vmatprep.mubr.f32.mxu0 %v30218_v22  ;;  %v12215_v62 = vsel %vm12163_vm11, %v12120_v63, %v12122_v3  ;;  %v12214_v46 = vsel %vm12163_vm11, %v28118_v2, %v12120_v63  ;;  %v31468_v63 = vld [vmem:[#allocation98_spill] sm:$0xff] }
 0x675   : > { %18750 = vmatpush1.bf16.msra.mxu0 %v18749_v35  ;;  %17804 = vmatmul.mubr.msk.f32.gmra.mrb[122].mxu1 %vm12286_vm3, %v31424_v16  ;;  %v31465_v35 = vld [vmem:[#allocation71_spill] sm:$0xff] }
 0x676   : > { %17810 = vmatpush1.msk.msra.mxu1 %vm12299_vm14, %v31414_v36  ;;  %17685 = vmatmul.mubr.msk.f32.gmra.mrb[58].mxu0 %vm12286_vm3, %v27539_v58  ;;  %v31466_v56 = vpack.i.bf16 %v31465_v35, %v27519_v45 }
 0x677   : > { %18817 = vmatprep.subr.bf16.mxu1 %v31464_v33  ;;  %15183 = vrot.lane.b32.xlu1 %v27916_v12, %s21049_s28  ;;  %v12124_v36 = vpop.permute.xlu1 %12123  ;;  %v20847_v30 = vpop.permute.xlu0 %20846  ;;  %v31484_v12 = vld [vmem:[#allocation61_spill] sm:$0xff] }
 0x678   : > { %20996 = vrot.lane.b32.xlu0 %v31466_v56, %s21049_s28  ;;  %17686 = vmatprep.subr.msk.mxu0 %vm12299_vm14, %v12215_v62  ;;  %v20849_v2 = vunpack.i.h.bf16 %v20847_v30  ;;  %v20848_v0 = vunpack.i.l.bf16 %v20847_v30  ;;  %v31469_v62 = vunpack.i.l.bf16 %v31468_v63  ;;  %v31486_v45 = vpack.c.bf16 %v31484_v12, %v31485_v29 }
 0x679   : > { %13997 = vmatprep.mubr.f32.mxu1 %v30218_v22  ;;  %17687 = vmatpush1.msk.msra.mxu0 %vm12299_vm14, %v12214_v46 }
 0x67a   : > { %12515 = vmatprep.mubr.f32.mxu0 %v30218_v22  ;;  %17805 = vmatmul.mubr.msk.f32.gmra.mrb[124].mxu1 %vm12286_vm3, %v31428_v10  ;;  %v12192_v49 = vsel %vm12163_vm11, %v20844_v54, %v20849_v2  ;;  %v12168_v9 = vsel %vm12163_vm11, %v20839_v17, %v20848_v0  ;;  %v12169_v46 = vsel %vm12163_vm11, %v20848_v0, %v31469_v62  ;;  %v31471_v17 = vunpack.i.h.bf16 %v31468_v63  ;;  %v31472_v62 = vld [vmem:[#allocation24_spill] sm:$0xff] }
 0x67b   : > { %17688 = vmatmul.mubr.msk.f32.vlgmr.msra.gmra.mrb[60].mxu0 %vm12286_vm3, %v27472_v59  ;;  %21001 = vrot.lane.b32.xlu1 %v31467_v39, %s21049_s28  ;;  %v28239_v47 = vpop.permute.xlu1 %12131  ;;  %v20852_v54 = vpop.permute.xlu0 %20851  ;;  %v18753_v56 = vpack.c.bf16 %v12192_v49, %v12168_v9  ;;  %v31474_v49 = vld [vmem:[#allocation94_spill] sm:$0xff] }
 0x67c   : > { %15185 = vrot.lane.b32.xlu0 %v31470_v57, %s21049_s28  ;;  %14003 = vmatprep.mubr.f32.mxu1 %v30218_v22  ;;  %v12193_v33 = vsel %vm12163_vm11, %v20849_v2, %v31471_v17  ;;  %v20854_v30 = vunpack.i.h.bf16 %v20852_v54  ;;  %v20853_v0 = vunpack.i.l.bf16 %v20852_v54  ;;  %v12217_v9 = vsel %vm12163_vm11, %v12124_v36, %v31474_v49 }
 0x67d   : > { %12521 = vmatprep.mubr.f32.mxu0 %v30218_v22  ;;  %v18751_v39 = vpack.c.bf16 %v12193_v33, %v12169_v46  ;;  %v31475_v46 = vld [vmem:[#allocation41_spill] sm:$0xff] }
 0x67e   : > { %17806 = vmatmul.mubr.msk.f32.gmra.mrb[126].mxu1 %vm12286_vm3, %v31431_v28  ;;  %v31476_v54 = vunpack.i.l.bf16 %v31475_v46  ;;  %v31477_v17 = vunpack.i.h.bf16 %v31475_v46 }
 0x67f   : > { %17689 = vmatmul.mubr.msk.f32.gmra.mrb[62].mxu0 %vm12286_vm3, %v27489_v14  ;;  %15187 = vrot.lane.b32.xlu1 %v31472_v62, %s21049_s28  ;;  %v28253_v2 = vpop.permute.xlu1 %12139  ;;  %v28255_v63 = vpop.permute.xlu0 %20856 }
 0x680   : > { %21006 = vrot.lane.b32.xlu0 %v31473_v19, %s21049_s28  ;;  %18752 = vmatprep.subr.bf16.mxu0 %v18751_v39  ;;  %v12173_v19 = vsel %vm12163_vm11, %v20853_v0, %v31476_v54  ;;  %v12197_v33 = vsel %vm12163_vm11, %v20854_v30, %v31477_v17  ;;  %v12216_v54 = vsel %vm12163_vm11, %v12122_v3, %v12124_v36 }
 0x681   : > { %14009 = vmatprep.mubr.f32.mxu1 %v30218_v22  ;;  %12527 = vmatprep.mubr.f32.mxu0 %v30218_v22  ;;  %v18759_v46 = vpack.c.bf16 %v12197_v33, %v12173_v19  ;;  %v31479_v36 = vpack.c.bf16 %v31426_v52, %v31421_v44  ;;  %v31480_v33 = vld [vmem:[#allocation63_spill] sm:$0xff] }
 0x682   : > { %18754 = vmatpush1.bf16.msra.mxu0 %v18753_v56  ;;  %17807 = vmatmul.mubr.msk.f32.gmra.mrb[128].mxu1 %vm12286_vm3, %v31434_v51  ;;  %v31478_v56 = vld [vmem:[#allocation21_spill] sm:$0xff]  ;;  %v31481_v44 = vunpack.i.h.bf16 %v31480_v33 }
 0x683   : > { %17690 = vmatmul.mubr.msk.f32.gmra.mrb[64].mxu0 %vm12286_vm3, %v27504_v6  ;;  %17694 = vmatprep.subr.msk.mxu0 %vm12299_vm14, %v12217_v9  ;;  %v28276_v39 = vpop.permute.xlu1 %12147  ;;  %v28278_v49 = vpop.permute.xlu0 %20861 }
 0x684   : > { %15089 = vrot.lane.b32.xlu1 %v30218_v22, %s21049_s28  ;;  %15189 = vrot.lane.b32.xlu0 %v31478_v56, %s21049_s28  ;;  %v12196_v52 = vsel %vm12163_vm11, %v31481_v44, %v20854_v30  ;;  %v20858_v56 = vunpack.i.l.bf16 %v28255_v63  ;;  %v20863_v41 = vunpack.i.l.bf16 %v28278_v49 }
 0x685   : > { %14015 = vmatprep.mubr.f32.mxu1 %v30218_v22  ;;  %12533 = vmatprep.mubr.f32.mxu0 %v30218_v22 }
 0x686   : > { %17695 = vmatpush1.msk.msra.mxu0 %vm12299_vm14, %v12216_v54  ;;  %17808 = vmatmul.mubr.msk.f32.gmra.mrb[130].mxu1 %vm12286_vm3, %v31437_v21  ;;  %v31482_v54 = vld [vmem:[#allocation64_spill] sm:$0xff] }
 0x687   : > { %17691 = vmatmul.mubr.msk.f32.gmra.mrb[66].mxu0 %vm12286_vm3, %v27514_v8  ;;  %18760 = vmatprep.subr.bf16.mxu0 %v18759_v46  ;;  %v28290_v9 = vpop.permute.xlu1 %12155  ;;  %v28292_v3 = vpop.permute.xlu0 %20866  ;;  %v31483_v46 = vunpack.i.h.bf16 %v31482_v54 }
 0x688   : > { %14086 = vmatprep.mubr.f32.mxu1 %v30218_v22  ;;  %12539 = vmatprep.mubr.f32.mxu0 %v30218_v22 }
 0x68a   : > { %17811 = vmatmul.mubr.msk.f32.vlgmr.msra.gmra.mrb[36].mxu1 %vm12286_vm3, %v31417_v15 }
 0x68b   : > { %18819 = vmatpush1.bf16.msra.mxu1 %v31479_v36  ;;  %17692 = vmatmul.mubr.msk.f32.gmra.mrb[68].mxu0 %vm12286_vm3, %v27526_v7  ;;  %v28304_v19 = vpop.permute.xlu1 %20876  ;;  %v28306_v17 = vpop.permute.xlu0 %20871  ;;  %v12172_v36 = vsel %vm12163_vm11, %v31483_v46, %v20853_v0  ;;  %v31487_v0 = vld [vmem:[#allocation97_spill] sm:$0xff] }
 0x68c   : > { %17825 = vmatprep.subr.msk.mxu1 %vm12299_vm14, %v31432_v48  ;;  %14092 = vmatprep.mubr.f32.mxu1 %v30218_v22  ;;  %v20859_v48 = vunpack.i.h.bf16 %v28255_v63  ;;  %v12221_v29 = vsel %vm12163_vm11, %v28239_v47, %v31487_v0  ;;  %v31488_v63 = vld [vmem:[#allocation19_spill] sm:$0xff] }
 0x68d   : > { %12545 = vmatprep.mubr.f32.mxu0 %v30218_v22  ;;  %v31489_v44 = vunpack.i.l.bf16 %v31488_v63  ;;  %v31490_v54 = vunpack.i.h.bf16 %v31488_v63 }
 0x68e   : > { %17812 = vmatmul.mubr.msk.f32.gmra.mrb[38].mxu1 %vm12286_vm3, %v31424_v16 }
 0x68f   : > { %17826 = vmatpush1.msk.msra.mxu1 %vm12299_vm14, %v31430_v40  ;;  %17693 = vmatmul.mubr.msk.f32.gmra.mrb[70].mxu0 %vm12286_vm3, %v27539_v58  ;;  %v28327_v30 = vpop.permute.xlu1 %15143  ;;  %v28329_v33 = vpop.permute.xlu0 %20881  ;;  %v18761_v40 = vpack.c.bf16 %v12196_v52, %v12172_v36  ;;  %v12177_v52 = vsel %vm12163_vm11, %v20858_v56, %v31489_v44  ;;  %v12201_v46 = vsel %vm12163_vm11, %v20859_v48, %v31490_v54  ;;  %v31491_v36 = vld [vmem:[#allocation96_spill] sm:$0xff] }
 0x690   : > { %18825 = vmatprep.subr.bf16.mxu1 %v31486_v45  ;;  %14098 = vmatprep.mubr.f32.mxu1 %v30218_v22  ;;  %v18767_v0 = vpack.c.bf16 %v12201_v46, %v12177_v52  ;;  %v18826_v54 = vpack.c.bf16 %v31438_v50, %v31435_v24  ;;  %v31493_v24 = vld [vmem:[#allocation69_spill] sm:$0xff] }
 0x691   : > { %12616 = vmatprep.mubr.f32.mxu0 %v30218_v22  ;;  %v31494_v50 = vunpack.i.h.bf16 %v31493_v24 }
 0x692   : > { %17813 = vmatmul.mubr.msk.f32.gmra.mrb[40].mxu1 %vm12286_vm3, %v31428_v10 }
 0x693   : > { %17696 = vmatmul.mubr.msk.f32.vlgmr.msra.gmra.mrb[72].mxu0 %vm12286_vm3, %v27472_v59  ;;  %14104 = vmatprep.mubr.f32.mxu1 %v30218_v22  ;;  %v28341_v45 = vpop.permute.xlu1 %15141  ;;  %v28343_v12 = vpop.permute.xlu0 %15145 }
 0x694   : > { %18762 = vmatpush1.bf16.msra.mxu0 %v18761_v40  ;;  %12622 = vmatprep.mubr.f32.mxu0 %v30218_v22  ;;  %v12220_v40 = vsel %vm12163_vm11, %v31491_v36, %v28239_v47 }
 0x695   : > { %17710 = vmatprep.subr.msk.mxu0 %vm12299_vm14, %v12221_v29 }
 0x696   : > { %17814 = vmatmul.mubr.msk.f32.gmra.mrb[42].mxu1 %vm12286_vm3, %v31431_v28 }
 0x697   : > { %17697 = vmatmul.mubr.msk.f32.gmra.mrb[74].mxu0 %vm12286_vm3, %v27489_v14  ;;  %14110 = vmatprep.mubr.f32.mxu1 %v30218_v22  ;;  %v28362_v63 = vpop.permute.xlu1 %20891  ;;  %v28364_v29 = vpop.permute.xlu0 %20886 }
 0x698   : > { %17711 = vmatpush1.msk.msra.mxu0 %vm12299_vm14, %v12220_v40  ;;  %12628 = vmatprep.mubr.f32.mxu0 %v30218_v22 }
 0x699   : > { %18768 = vmatprep.subr.bf16.mxu0 %v18767_v0  ;;  %v12176_v0 = vsel %vm12163_vm11, %v31494_v50, %v20858_v56 }
 0x69a   : > { %17815 = vmatmul.mubr.msk.f32.gmra.mrb[44].mxu1 %vm12286_vm3, %v31434_v51 }
 0x69b   : > { %17698 = vmatmul.mubr.msk.f32.gmra.mrb[76].mxu0 %vm12286_vm3, %v27504_v6  ;;  %14116 = vmatprep.mubr.f32.mxu1 %v30218_v22 }
 0x69c   : > { %12634 = vmatprep.mubr.f32.mxu0 %v30218_v22  ;;  %v28372_v47 = vpop.permute.xlu1 %20901 }
 0x69d   : > { %v28374_v44 = vpop.permute.xlu0 %20896 }
 0x69e   : > { %17816 = vmatmul.mubr.msk.f32.gmra.mrb[46].mxu1 %vm12286_vm3, %v31437_v21 }
 0x69f   : > { %17699 = vmatmul.mubr.msk.f32.gmra.mrb[78].mxu0 %vm12286_vm3, %v27514_v8  ;;  %14288 = vmatprep.mubr.f32.mxu1 %v30218_v22 }
 0x6a0   : > { %12640 = vmatprep.mubr.f32.mxu0 %v30218_v22  ;;  %v28382_v52 = vpop.permute.xlu1 %15147 }
 0x6a1   : > { %v28386_v46 = vpop.permute.xlu0 %20906 }
 0x6a2   : > { %31492 = vst [vmem:[#allocation40_spill] sm:$0xff] %v28386_v46  ;;  %17827 = vmatmul.mubr.msk.f32.vlgmr.msra.gmra.mrb[48].mxu1 %vm12286_vm3, %v31417_v15  ;;  %v31498_v46 = vld [vmem:[#allocation7_spill] sm:$0xff] }
 0x6a3   : > { %18827 = vmatpush1.bf16.msra.mxu1 %v18826_v54  ;;  %17700 = vmatmul.mubr.msk.f32.gmra.mrb[80].mxu0 %vm12286_vm3, %v27526_v7  ;;  %v31495_v54 = vld [vmem:[#allocation18_spill] sm:$0xff]  ;;  %v31499_v23 = vpack.c.bf16 %v31497_v11, %v31498_v46  ;;  %v31502_v46 = vunpack.i.h.bf16 %v27765_v26 }
 0x6a4   : > { %17841 = vmatprep.subr.msk.mxu1 %vm12299_vm14, %v31447_v32  ;;  %14294 = vmatprep.mubr.f32.mxu1 %v30218_v22  ;;  %v28395_v36 = vpop.permute.xlu1 %20911  ;;  %v31496_v4 = vunpack.i.h.bf16 %v31495_v54  ;;  %v20864_v32 = vunpack.i.h.bf16 %v28278_v49  ;;  %v31500_v49 = vld [vmem:[#allocation79_spill] sm:$0xff] }
 0x6a5   : > { %12646 = vmatprep.mubr.f32.mxu0 %v30218_v22  ;;  %v28398_v40 = vpop.permute.xlu0 %15149  ;;  %v12225_v11 = vsel %vm12163_vm11, %v28253_v2, %v31500_v49 }
 0x6a6   : > { %17828 = vmatmul.mubr.msk.f32.gmra.mrb[50].mxu1 %vm12286_vm3, %v31424_v16  ;;  %v12200_v5 = vsel %vm12163_vm11, %v31496_v4, %v20859_v48  ;;  %v31501_v48 = vunpack.i.l.bf16 %v27765_v26  ;;  %v12205_v24 = vsel %vm12163_vm11, %v20864_v32, %v31502_v46 }
 0x6a7   : > { %17842 = vmatpush1.msk.msra.mxu1 %vm12299_vm14, %v31443_v60  ;;  %17701 = vmatmul.mubr.msk.f32.gmra.mrb[82].mxu0 %vm12286_vm3, %v27539_v58  ;;  %v18769_v60 = vpack.c.bf16 %v12200_v5, %v12176_v0  ;;  %v31503_v0 = vld [vmem:[#allocation22_spill] sm:$0xff] }
 0x6a8   : > { %18833 = vmatprep.subr.bf16.mxu1 %v31499_v23  ;;  %14300 = vmatprep.mubr.f32.mxu1 %v30218_v22  ;;  %v28418_v56 = vpop.permute.xlu1 %15151  ;;  %v12181_v5 = vsel %vm12163_vm11, %v20863_v41, %v31501_v48  ;;  %v12224_v54 = vsel %vm12163_vm11, %v31503_v0, %v28253_v2  ;;  %v31509_v48 = vpack.c.bf16 %v31452_v37, %v31449_v61  ;;  %v30074_v37 = vunpack.i.h.bf16 %v28292_v3 }
 0x6a9   : > { %12818 = vmatprep.mubr.f32.mxu0 %v30218_v22  ;;  %v28421_v4 = vpop.permute.xlu0 %20916 }
 0x6aa   : > { %17829 = vmatmul.mubr.msk.f32.gmra.mrb[52].mxu1 %vm12286_vm3, %v31428_v10 }
 0x6ab   : > { %17712 = vmatmul.mubr.msk.f32.vlgmr.msra.gmra.mrb[84].mxu0 %vm12286_vm3, %v27472_v59  ;;  %14306 = vmatprep.mubr.f32.mxu1 %v30218_v22 }
 0x6ac   : > { %18770 = vmatpush1.bf16.msra.mxu0 %v18769_v60  ;;  %12824 = vmatprep.mubr.f32.mxu0 %v30218_v22  ;;  %v28432_v23 = vpop.permute.xlu1 %20921  ;;  %v18775_v60 = vpack.c.bf16 %v12205_v24, %v12181_v5 }
 0x6ad   : > { %17726 = vmatprep.subr.msk.mxu0 %vm12299_vm14, %v12225_v11  ;;  %v28441_v50 = vpop.permute.xlu0 %15153  ;;  %v30063_v0 = vunpack.i.h.bf16 %v28432_v23 }
 0x6ae   : > { %17830 = vmatmul.mubr.msk.f32.gmra.mrb[54].mxu1 %vm12286_vm3, %v31431_v28 }
 0x6af   : > { %17713 = vmatmul.mubr.msk.f32.gmra.mrb[86].mxu0 %vm12286_vm3, %v27489_v14  ;;  %14312 = vmatprep.mubr.f32.mxu1 %v30218_v22 }
 0x6b0   : > { %17727 = vmatpush1.msk.msra.mxu0 %vm12299_vm14, %v12224_v54  ;;  %12830 = vmatprep.mubr.f32.mxu0 %v30218_v22  ;;  %v28453_v26 = vpop.permute.xlu1 %15155 }
 0x6b1   : > { %31504 = vst [vmem:[#allocation78_spill] sm:$0xff] %v28453_v26  ;;  %18776 = vmatprep.subr.bf16.mxu0 %v18775_v60  ;;  %v28455_v49 = vpop.permute.xlu0 %20926 }
 0x6b2   : > { %17831 = vmatmul.mubr.msk.f32.gmra.mrb[56].mxu1 %vm12286_vm3, %v31434_v51  ;;  %v30064_v54 = vunpack.i.h.bf16 %v28455_v49 }
 0x6b3   : > { %17714 = vmatmul.mubr.msk.f32.gmra.mrb[88].mxu0 %vm12286_vm3, %v27504_v6  ;;  %14318 = vmatprep.mubr.f32.mxu1 %v30218_v22 }
 0x6b4   : > { %12836 = vmatprep.mubr.f32.mxu0 %v30218_v22  ;;  %v28463_v2 = vpop.permute.xlu1 %20931 }
 0x6b5   : > { %31505 = vst [vmem:[#allocation82_spill] sm:$0xff] %v28463_v2  ;;  %v28465_v11 = vpop.permute.xlu0 %15157 }
 0x6b6   : > { %31506 = vst [vmem:[#allocation76_spill] sm:$0xff] %v28465_v11  ;;  %17832 = vmatmul.mubr.msk.f32.gmra.mrb[58].mxu1 %vm12286_vm3, %v31437_v21 }
 0x6b7   : > { %17715 = vmatmul.mubr.msk.f32.gmra.mrb[90].mxu0 %vm12286_vm3, %v27514_v8  ;;  %14490 = vmatprep.mubr.f32.mxu1 %v30218_v22 }
 0x6b8   : > { %12842 = vmatprep.mubr.f32.mxu0 %v30218_v22  ;;  %v15160_v5 = vpop.permute.xlu1 %15159 }
 0x6b9   : > { %v28476_v46 = vsel %vm15191_vm7, %v28465_v11, %v15160_v5  ;;  %v28478_v24 = vpop.permute.xlu0 %20936 }
 0x6ba   : > { %31507 = vst [vmem:[#allocation90_spill] sm:$0xff] %v28476_v46  ;;  %31508 = vst [vmem:[#allocation88_spill] sm:$0xff] %v28478_v24  ;;  %17843 = vmatmul.mubr.msk.f32.vlgmr.msra.gmra.mrb[60].mxu1 %vm12286_vm3, %v31417_v15  ;;  %v30062_v60 = vunpack.i.l.bf16 %v28478_v24  ;;  %v31510_v46 = vunpack.i.l.bf16 %v28463_v2 }
 0x6bb   : > { %18835 = vmatpush1.bf16.msra.mxu1 %v31509_v48  ;;  %17716 = vmatmul.mubr.msk.f32.gmra.mrb[92].mxu0 %vm12286_vm3, %v27526_v7 }
 0x6bc   : > { %v28495_v26 = vsel %vm15191_vm7, %v30063_v0, %v31510_v46  ;;  %v28502_v11 = vsel %vm15191_vm7, %v30064_v54, %v30062_v60  ;;  %17857 = vmatprep.subr.msk.mxu1 %vm12299_vm14, %v31456_v34  ;;  %14496 = vmatprep.mubr.f32.mxu1 %v30218_v22  ;;  %v28507_v61 = vpop.permute.xlu1 %20941  ;;  %v31514_v60 = vld [vmem:[#allocation35_spill] sm:$0xff]  ;;  %v31516_v54 = vld [vmem:[#allocation36_spill] sm:$0xff] }
 0x6bd   : > { %31511 = vst [vmem:[#allocation25_spill] sm:$0xff] %v28495_v26  ;;  %31512 = vst [vmem:[#allocation85_spill] sm:$0xff] %v28502_v11  ;;  %12848 = vmatprep.mubr.f32.mxu0 %v30218_v22  ;;  %v28512_v48 = vpop.permute.xlu0 %15161  ;;  %v31515_v34 = vunpack.i.h.bf16 %v31514_v60  ;;  %v31517_v2 = vunpack.i.h.bf16 %v31516_v54  ;;  %v30071_v26 = vunpack.i.l.bf16 %v28292_v3  ;;  %v31521_v54 = vunpack.i.l.bf16 %v27931_v55 }
 0x6be   : > { %17844 = vmatmul.mubr.msk.f32.gmra.mrb[62].mxu1 %vm12286_vm3, %v31424_v16  ;;  %v28518_v46 = vsel %vm15191_vm7, %v15160_v5, %v28512_v48  ;;  %v31518_v5 = vld [vmem:[#allocation102_spill] sm:$0xff] }
 0x6bf   : > { %31513 = vst [vmem:[#allocation28_spill] sm:$0xff] %v28518_v46  ;;  %v12204_v0 = vsel %vm12163_vm11, %v31515_v34, %v20864_v32  ;;  %v12180_v24 = vsel %vm12163_vm11, %v31517_v2, %v20863_v41  ;;  %17858 = vmatpush1.msk.msra.mxu1 %vm12299_vm14, %v31455_v42  ;;  %17717 = vmatmul.mubr.msk.f32.gmra.mrb[94].mxu0 %vm12286_vm3, %v27539_v58  ;;  %v31519_v46 = vld [vmem:[#allocation99_spill] sm:$0xff] }
 0x6c0   : > { %v31520_v11 = vpack.c.bf16 %v31518_v5, %v31519_v46  ;;  %14502 = vmatprep.mubr.f32.mxu1 %v30218_v22  ;;  %v28536_v32 = vpop.permute.xlu1 %15163  ;;  %13020 = vmatprep.mubr.f32.mxu0 %v30218_v22  ;;  %v18777_v42 = vpack.c.bf16 %v12204_v0, %v12180_v24  ;;  %v12229_v2 = vsel %vm12163_vm11, %v28276_v39, %v27854_v53  ;;  %v31522_v0 = vunpack.i.h.bf16 %v27931_v55  ;;  %v31523_v46 = vld [vmem:[#allocation30_spill] sm:$0xff] }
 0x6c1   : > { %v28539_v41 = vpop.permute.xlu0 %20946  ;;  %v12185_v24 = vsel %vm12163_vm11, %v30071_v26, %v31521_v54  ;;  %v12228_v34 = vsel %vm12163_vm11, %v31523_v46, %v28276_v39  ;;  %v30073_v54 = vunpack.i.h.bf16 %v28507_v61 }
 0x6c2   : > { %18841 = vmatprep.subr.bf16.mxu1 %v31520_v11  ;;  %17845 = vmatmul.mubr.msk.f32.gmra.mrb[64].mxu1 %vm12286_vm3, %v31428_v10  ;;  %v12209_v60 = vsel %vm12163_vm11, %v30074_v37, %v31522_v0  ;;  %v30079_v37 = vunpack.i.h.bf16 %v28306_v17 }
 0x6c3   : > { %17728 = vmatmul.mubr.msk.f32.vlgmr.msra.gmra.mrb[96].mxu0 %vm12286_vm3, %v27472_v59  ;;  %14508 = vmatprep.mubr.f32.mxu1 %v30218_v22  ;;  %v18783_v5 = vpack.c.bf16 %v12209_v60, %v12185_v24  ;;  %v30076_v24 = vunpack.i.h.bf16 %v28539_v41 }
 0x6c4   : > { %18778 = vmatpush1.bf16.msra.mxu0 %v18777_v42  ;;  %13026 = vmatprep.mubr.f32.mxu0 %v30218_v22  ;;  %v28550_v11 = vpop.permute.xlu1 %20951 }
 0x6c5   : > { %17742 = vmatprep.subr.msk.mxu0 %vm12299_vm14, %v12229_v2  ;;  %v28563_v53 = vpop.permute.xlu0 %15165  ;;  %v30072_v55 = vunpack.i.l.bf16 %v28550_v11 }
 0x6c6   : > { %17846 = vmatmul.mubr.msk.f32.gmra.mrb[66].mxu1 %vm12286_vm3, %v31431_v28 }
 0x6c7   : > { %17729 = vmatmul.mubr.msk.f32.gmra.mrb[98].mxu0 %vm12286_vm3, %v27489_v14  ;;  %14514 = vmatprep.mubr.f32.mxu1 %v30218_v22  ;;  %v28598_v60 = vsel %vm15191_vm7, %v30073_v54, %v30072_v55  ;;  %v31528_v54 = vpack.c.bf16 %v31465_v35, %v31459_v25 }
 0x6c8   : > { %17743 = vmatpush1.msk.msra.mxu0 %vm12299_vm14, %v12228_v34  ;;  %13032 = vmatprep.mubr.f32.mxu0 %v30218_v22  ;;  %v28576_v42 = vpop.permute.xlu1 %15167  ;;  %31526 = vst [vmem:[#allocation65_spill] sm:$0xff] %v28598_v60  ;;  %v31530_v60 = vunpack.i.l.bf16 %v28304_v19 }
 0x6c9   : > { %31524 = vst [vmem:[#allocation84_spill] sm:$0xff] %v28576_v42  ;;  %18784 = vmatprep.subr.bf16.mxu0 %v18783_v5  ;;  %v28581_v2 = vsel %vm15191_vm7, %v28563_v53, %v28576_v42  ;;  %v28583_v39 = vpop.permute.xlu0 %20956 }
 0x6ca   : > { %31525 = vst [vmem:[#allocation72_spill] sm:$0xff] %v28581_v2  ;;  %17847 = vmatmul.mubr.msk.f32.gmra.mrb[68].mxu1 %vm12286_vm3, %v31434_v51  ;;  %v30075_v0 = vunpack.i.l.bf16 %v28583_v39  ;;  %v31529_v2 = vunpack.i.h.bf16 %v28304_v19 }
 0x6cb   : > { %17730 = vmatmul.mubr.msk.f32.gmra.mrb[100].mxu0 %vm12286_vm3, %v27504_v6  ;;  %14520 = vmatprep.mubr.f32.mxu1 %v30218_v22 }
 0x6cc   : > { %v28605_v46 = vsel %vm15191_vm7, %v30076_v24, %v30075_v0  ;;  %13038 = vmatprep.mubr.f32.mxu0 %v30218_v22  ;;  %v28608_v34 = vpop.permute.xlu1 %20961  ;;  %v30080_v0 = vunpack.i.l.bf16 %v28306_v17 }
 0x6cd   : > { %31527 = vst [vmem:[#allocation44_spill] sm:$0xff] %v28605_v46  ;;  %v28612_v26 = vpop.permute.xlu0 %15169  ;;  %v15218_v46 = vsel %vm15191_vm7, %v31530_v60, %v31529_v2  ;;  %v31535_v60 = vunpack.i.h.bf16 %v27777_v13 }
 0x6ce   : > { %17848 = vmatmul.mubr.msk.f32.gmra.mrb[70].mxu1 %vm12286_vm3, %v31437_v21  ;;  %v15193_v55 = vsel %vm15191_vm7, %v30080_v0, %v30079_v37  ;;  %v31532_v37 = vunpack.i.h.bf16 %v28292_v3  ;;  %v31533_v0 = vunpack.i.h.bf16 %v27817_v18 }
 0x6cf   : > { %17731 = vmatmul.mubr.msk.f32.gmra.mrb[102].mxu0 %vm12286_vm3, %v27514_v8  ;;  %14692 = vmatprep.mubr.f32.mxu1 %v30218_v22 }
 0x6d0   : > { %13044 = vmatprep.mubr.f32.mxu0 %v30218_v22  ;;  %v28624_v5 = vpop.permute.xlu1 %15171  ;;  %v12208_v2 = vsel %vm12163_vm11, %v31533_v0, %v31532_v37  ;;  %v30084_v37 = vunpack.i.h.bf16 %v28608_v34 }
 0x6d1   : > { %v28626_v24 = vpop.permute.xlu0 %20966 }
 0x6d2   : > { %17859 = vmatmul.mubr.msk.f32.vlgmr.msra.gmra.mrb[72].mxu1 %vm12286_vm3, %v31417_v15  ;;  %v30085_v0 = vunpack.i.h.bf16 %v28626_v24 }
 0x6d3   : > { %18843 = vmatpush1.bf16.msra.mxu1 %v31528_v54  ;;  %17732 = vmatmul.mubr.msk.f32.gmra.mrb[104].mxu0 %vm12286_vm3, %v27526_v7  ;;  %v18850_v54 = vpack.c.bf16 %v15218_v46, %v15193_v55 }
 0x6d4   : > { %17873 = vmatprep.subr.msk.mxu1 %vm12299_vm14, %v31472_v62  ;;  %14698 = vmatprep.mubr.f32.mxu1 %v30218_v22  ;;  %v28648_v25 = vpop.permute.xlu1 %20971  ;;  %v31534_v62 = vunpack.i.l.bf16 %v28292_v3 }
 0x6d5   : > { %31531 = vst [vmem:[#allocation91_spill] sm:$0xff] %v28648_v25  ;;  %13050 = vmatprep.mubr.f32.mxu0 %v30218_v22  ;;  %v28651_v35 = vpop.permute.xlu0 %15173  ;;  %v30082_v55 = vunpack.i.l.bf16 %v28648_v25  ;;  %v31547_v25 = vunpack.i.h.bf16 %v28374_v44 }
 0x6d6   : > { %17860 = vmatmul.mubr.msk.f32.gmra.mrb[74].mxu1 %vm12286_vm3, %v31424_v16  ;;  %v12184_v42 = vsel %vm12163_vm11, %v31535_v60, %v31534_v62 }
 0x6d7   : > { %17874 = vmatpush1.msk.msra.mxu1 %vm12299_vm14, %v31470_v57  ;;  %17733 = vmatmul.mubr.msk.f32.gmra.mrb[106].mxu0 %vm12286_vm3, %v27539_v58  ;;  %v18785_v57 = vpack.c.bf16 %v12208_v2, %v12184_v42  ;;  %v28697_v42 = vsel %vm15191_vm7, %v30084_v37, %v30082_v55  ;;  %v12232_v55 = vsel %vm12163_vm11, %v27811_v31, %v28290_v9 }
 0x6d8   : > { %18851 = vmatprep.subr.bf16.mxu1 %v18850_v54  ;;  %14704 = vmatprep.mubr.f32.mxu1 %v30218_v22  ;;  %v28671_v18 = vpop.permute.xlu1 %15175  ;;  %v12233_v54 = vsel %vm12163_vm11, %v28290_v9, %v27968_v1  ;;  %31538 = vst [vmem:[#allocation26_spill] sm:$0xff] %v28697_v42  ;;  %v20884_v1 = vunpack.i.h.bf16 %v28329_v33  ;;  %v20903_v42 = vunpack.i.l.bf16 %v28372_v47 }
 0x6d9   : > { %31536 = vst [vmem:[#allocation6_spill] sm:$0xff] %v28671_v18  ;;  %13222 = vmatprep.mubr.f32.mxu0 %v30218_v22  ;;  %v28677_v13 = vsel %vm15191_vm7, %v28651_v35, %v28671_v18  ;;  %v28679_v3 = vpop.permute.xlu0 %20976  ;;  %v20898_v18 = vunpack.i.l.bf16 %v28374_v44 }
 0x6da   : > { %31537 = vst [vmem:[#allocation86_spill] sm:$0xff] %v28677_v13  ;;  %17861 = vmatmul.mubr.msk.f32.gmra.mrb[76].mxu1 %vm12286_vm3, %v31428_v10  ;;  %v30083_v46 = vunpack.i.l.bf16 %v28679_v3 }
 0x6db   : > { %17744 = vmatmul.mubr.msk.f32.vlgmr.msra.gmra.mrb[108].mxu0 %vm12286_vm3, %v27472_v59  ;;  %14710 = vmatprep.mubr.f32.mxu1 %v30218_v22 }
 0x6dc   : > { %v28704_v2 = vsel %vm15191_vm7, %v30085_v0, %v30083_v46  ;;  %18786 = vmatpush1.bf16.msra.mxu0 %v18785_v57  ;;  %13228 = vmatprep.mubr.f32.mxu0 %v30218_v22  ;;  %v28707_v62 = vpop.permute.xlu1 %20981  ;;  %v20883_v46 = vunpack.i.l.bf16 %v28329_v33  ;;  %v31543_v33 = vunpack.i.l.bf16 %v28306_v17 }
 0x6dd   : > { %31539 = vst [vmem:[#allocation12_spill] sm:$0xff] %v28704_v2  ;;  %17758 = vmatprep.subr.msk.mxu0 %vm12299_vm14, %v12233_v54  ;;  %v28712_v60 = vpop.permute.xlu0 %15177 }
 0x6de   : > { %31540 = vst [vmem:[#allocation47_spill] sm:$0xff] %v28712_v60  ;;  %17862 = vmatmul.mubr.msk.f32.gmra.mrb[78].mxu1 %vm12286_vm3, %v31431_v28  ;;  %v15192_v0 = vsel %vm15191_vm7, %v20883_v46, %v31543_v33  ;;  %v15243_v33 = vsel %vm15191_vm7, %v28327_v30, %v28343_v12  ;;  %v30096_v46 = vunpack.i.h.bf16 %v28707_v62 }
 0x6df   : > { %17745 = vmatmul.mubr.msk.f32.gmra.mrb[110].mxu0 %vm12286_vm3, %v27489_v14  ;;  %14716 = vmatprep.mubr.f32.mxu1 %v30218_v22 }
 0x6e0   : > { %17759 = vmatpush1.msk.msra.mxu0 %vm12299_vm14, %v12232_v55  ;;  %13234 = vmatprep.mubr.f32.mxu0 %v30218_v22  ;;  %v28724_v57 = vpop.permute.xlu1 %15179  ;;  %v31542_v55 = vunpack.i.l.bf16 %v28304_v19 }
 0x6e1   : > { %31541 = vst [vmem:[#allocation80_spill] sm:$0xff] %v28724_v57  ;;  %18792 = vmatprep.subr.bf16.mxu0 %v27926_v27  ;;  %v28727_v54 = vpop.permute.xlu0 %20986 }
 0x6e2   : > { %17863 = vmatmul.mubr.msk.f32.gmra.mrb[80].mxu1 %vm12286_vm3, %v31434_v51  ;;  %v15217_v37 = vsel %vm15191_vm7, %v20884_v1, %v31542_v55 }
 0x6e3   : > { %17746 = vmatmul.mubr.msk.f32.gmra.mrb[112].mxu0 %vm12286_vm3, %v27504_v6  ;;  %14722 = vmatprep.mubr.f32.mxu1 %v30218_v22  ;;  %v18852_v1 = vpack.c.bf16 %v15217_v37, %v15192_v0  ;;  %v31546_v37 = vunpack.i.h.bf16 %v28372_v47 }
 0x6e4   : > { %13240 = vmatprep.mubr.f32.mxu0 %v30218_v22  ;;  %v28737_v31 = vpop.permute.xlu1 %20991 }
 0x6e5   : > { %v28739_v9 = vpop.permute.xlu0 %15181  ;;  %v15220_v0 = vsel %vm15191_vm7, %v20903_v42, %v31546_v37  ;;  %v31548_v37 = vunpack.i.l.bf16 %v28737_v31 }
 0x6e6   : > { %17864 = vmatmul.mubr.msk.f32.gmra.mrb[82].mxu1 %vm12286_vm3, %v31437_v21 }
 0x6e7   : > { %17747 = vmatmul.mubr.msk.f32.gmra.mrb[114].mxu0 %vm12286_vm3, %v27514_v8  ;;  %14894 = vmatprep.mubr.f32.mxu1 %v30218_v22  ;;  %v28790_v60 = vsel %vm15191_vm7, %v30096_v46, %v31548_v37  ;;  %v31598_v46 = vld [vmem:[#allocation21_spill] sm:$0xff] }
 0x6e8   : > { %13246 = vmatprep.mubr.f32.mxu0 %v30218_v22 }
 0x6e9   : > { %v28758_v55 = vpop.permute.xlu1 %15183 }
 0x6ea   : > { %31544 = vst [vmem:[#allocation20_spill] sm:$0xff] %v28758_v55  ;;  %17875 = vmatmul.mubr.msk.f32.vlgmr.msra.gmra.mrb[84].mxu1 %vm12286_vm3, %v31417_v15  ;;  %v28768_v2 = vsel %vm15191_vm7, %v28739_v9, %v28758_v55  ;;  %v28770_v13 = vpop.permute.xlu0 %20996 }
 0x6eb   : > { %31545 = vst [vmem:[#allocation31_spill] sm:$0xff] %v28768_v2  ;;  %18853 = vmatpush1.bf16.msra.mxu1 %v18852_v1  ;;  %v30094_v57 = vunpack.i.l.bf16 %v28770_v13  ;;  %17748 = vmatmul.mubr.msk.f32.gmra.mrb[116].mxu0 %vm12286_vm3, %v27526_v7  ;;  %v15195_v2 = vsel %vm15191_vm7, %v20898_v18, %v31547_v25  ;;  %v31549_v1 = vunpack.i.h.bf16 %v28727_v54  ;;  %v15242_v25 = vsel %vm15191_vm7, %v28341_v45, %v28327_v30 }
 0x6ec   : > { %17890 = vmatprep.subr.msk.mxu1 %vm12299_vm14, %v15243_v33  ;;  %14900 = vmatprep.mubr.f32.mxu1 %v30218_v22  ;;  %v18854_v37 = vpack.c.bf16 %v15220_v0, %v15195_v2  ;;  %v31550_v30 = vpack.c.bf16 %v27133_v38, %v27136_v43  ;;  %v31552_v43 = vunpack.i.h.bf16 %v28306_v17  ;;  %v20919_v2 = vunpack.i.h.bf16 %v28421_v4 }
 0x6ed   : > { %v28797_v55 = vsel %vm15191_vm7, %v31549_v1, %v30094_v57  ;;  %13252 = vmatprep.mubr.f32.mxu0 %v30218_v22  ;;  %v20918_v0 = vunpack.i.l.bf16 %v28421_v4  ;;  %v20913_v17 = vunpack.i.l.bf16 %v28395_v36  ;;  %v15245_v1 = vsel %vm15191_vm7, %v28382_v52, %v28398_v40 }
 0x6ee   : > { %17876 = vmatmul.mubr.msk.f32.gmra.mrb[86].mxu1 %vm12286_vm3, %v31424_v16  ;;  %v15194_v45 = vsel %vm15191_vm7, %v31552_v43, %v20898_v18  ;;  %v28858_v18 = vunpack.i.h.bf16 %v28364_v29 }
 0x6ef   : > { %17891 = vmatpush1.msk.msra.mxu1 %vm12299_vm14, %v15242_v25  ;;  %17749 = vmatmul.mubr.msk.f32.gmra.mrb[118].mxu0 %vm12286_vm3, %v27539_v58  ;;  %v15222_v25 = vsel %vm15191_vm7, %v20918_v0, %v20919_v2 }
 0x6f0   : > { %18855 = vmatprep.subr.bf16.mxu1 %v18854_v37  ;;  %14906 = vmatprep.mubr.f32.mxu1 %v30218_v22  ;;  %v28877_v37 = vunpack.i.l.bf16 %v28362_v63 }
 0x6f1   : > { %13424 = vmatprep.mubr.f32.mxu0 %v30218_v22 }
 0x6f2   : > { %17877 = vmatmul.mubr.msk.f32.gmra.mrb[88].mxu1 %vm12286_vm3, %v31428_v10 }
 0x6f3   : > { %17760 = vmatmul.mubr.msk.f32.vlgmr.msra.gmra.mrb[120].mxu0 %vm12286_vm3, %v27472_v59  ;;  %14912 = vmatprep.mubr.f32.mxu1 %v30218_v22 }
 0x6f4   : > { %18794 = vmatpush3.bf16.msra.mxu0 %v27926_v27  ;;  %13430 = vmatprep.mubr.f32.mxu0 %v30218_v22  ;;  %v28839_v27 = vunpack.i.l.bf16 %v28364_v29 }
 0x6f5   : > { %18170 = vmatprep.subr.msk.mxu0 %vm12299_vm14, %v27955_v20 }
 0x6f6   : > { %17878 = vmatmul.mubr.msk.f32.gmra.mrb[90].mxu1 %vm12286_vm3, %v31431_v28 }
 0x6f7   : > { %17761 = vmatmul.mubr.msk.f32.gmra.mrb[122].mxu0 %vm12286_vm3, %v27489_v14  ;;  %14918 = vmatprep.mubr.f32.mxu1 %v30218_v22 }
 0x6f8   : > { %18171 = vmatpush3.msk.msra.mxu0 %vm12299_vm14, %v27955_v20  ;;  %13436 = vmatprep.mubr.f32.mxu0 %v30218_v22  ;;  %v31551_v20 = vunpack.i.h.bf16 %v28304_v19 }
 0x6f9   : > { %18813 = vmatprep.subr.bf16.mxu0 %v31550_v30  ;;  %v15244_v30 = vsel %vm15191_vm7, %v28343_v12, %v28382_v52  ;;  %v31553_v12 = vld [vmem:[#allocation95_spill] sm:$0xff]  ;;  %v31554_v52 = vld [vmem:[#allocation10_spill] sm:$0xff] }
 0x6fa   : > { %17879 = vmatmul.mubr.msk.f32.gmra.mrb[92].mxu1 %vm12286_vm3, %v31434_v51  ;;  %v15219_v38 = vsel %vm15191_vm7, %v31551_v20, %v20903_v42  ;;  %v20914_v42 = vunpack.i.h.bf16 %v28395_v36  ;;  %v31555_v43 = vpack.c.bf16 %v31553_v12, %v31554_v52  ;;  %v31564_v12 = vld [vmem:[#allocation51_spill] sm:$0xff] }
 0x6fb   : > { %17762 = vmatmul.mubr.msk.f32.gmra.mrb[124].mxu0 %vm12286_vm3, %v27504_v6  ;;  %14924 = vmatprep.mubr.f32.mxu1 %v30218_v22  ;;  %v18856_v19 = vpack.c.bf16 %v15219_v38, %v15194_v45  ;;  %v28891_v38 = vunpack.i.h.bf16 %v28362_v63  ;;  %v31557_v63 = vld [vmem:[#allocation40_spill] sm:$0xff] }
 0x6fc   : > { %13442 = vmatprep.mubr.f32.mxu0 %v30218_v22  ;;  %v15197_v29 = vsel %vm15191_vm7, %v20913_v17, %v20914_v42  ;;  %v28906_v45 = vunpack.i.l.bf16 %v31557_v63 }
 0x6fd   : > { %v18858_v20 = vpack.c.bf16 %v15222_v25, %v15197_v29  ;;  %v31560_v25 = vld [vmem:[#allocation46_spill] sm:$0xff] }
 0x6fe   : > { %17880 = vmatmul.mubr.msk.f32.gmra.mrb[94].mxu1 %vm12286_vm3, %v31437_v21 }
 0x6ff   : > { %17763 = vmatmul.mubr.msk.f32.gmra.mrb[126].mxu0 %vm12286_vm3, %v27514_v8  ;;  %15443 = vmatprep.mubr.f32.mxu1 %v30218_v22 }
 0x700   : > { %13448 = vmatprep.mubr.f32.mxu0 %v30218_v22 }
 0x702   : > { %17892 = vmatmul.mubr.msk.f32.vlgmr.msra.gmra.mrb[96].mxu1 %vm12286_vm3, %v28839_v27 }
 0x703   : > { %18857 = vmatpush1.bf16.msra.mxu1 %v18856_v19  ;;  %17764 = vmatmul.mubr.msk.f32.gmra.mrb[128].mxu0 %vm12286_vm3, %v27526_v7  ;;  %v31559_v19 = vld [vmem:[#allocation54_spill] sm:$0xff] }
 0x704   : > { %17898 = vmatprep.subr.msk.mxu1 %vm12299_vm14, %v15245_v1  ;;  %15449 = vmatprep.mubr.f32.mxu1 %v30218_v22 }
 0x705   : > { %13454 = vmatprep.mubr.f32.mxu0 %v30218_v22 }
 0x706   : > { %17893 = vmatmul.mubr.msk.f32.gmra.mrb[98].mxu1 %vm12286_vm3, %v28858_v18 }
 0x707   : > { %17899 = vmatpush1.msk.msra.mxu1 %vm12299_vm14, %v15244_v30  ;;  %17765 = vmatmul.mubr.msk.f32.gmra.mrb[130].mxu0 %vm12286_vm3, %v27539_v58 }
 0x708   : > { %18859 = vmatprep.subr.bf16.mxu1 %v18858_v20  ;;  %18172 = vmatprep.mubr.msk.f32.mxu0 %vm12286_vm3, %v27472_v59  ;;  %v31556_v59 = vld [vmem:[#allocation34_spill] sm:$0xff]  ;;  %v31563_v20 = vld [vmem:[#allocation16_spill] sm:$0xff] }
 0x709   : > { %15455 = vmatprep.mubr.f32.mxu1 %v30218_v22  ;;  %v31565_v52 = vpack.c.bf16 %v31563_v20, %v31564_v12  ;;  %v31577_v12 = vld [vmem:[#allocation76_spill] sm:$0xff] }
 0x70a   : > { %17894 = vmatmul.mubr.msk.f32.gmra.mrb[100].mxu1 %vm12286_vm3, %v28877_v37 }
 0x70b   : > { %18173 = vmatmul.mubr.msk.f32.vlgmr.msra.gmra.mrb[132].mxu0 %vm12286_vm3, %v27489_v14  ;;  %15461 = vmatprep.mubr.f32.mxu1 %v30218_v22  ;;  %v31558_v14 = vld [vmem:[#allocation58_spill] sm:$0xff] }
 0x70c   : > { %18815 = vmatpush1.bf16.msra.mxu0 %v31555_v43  ;;  %18175 = vmatprep.mubr.msk.f32.mxu0 %vm12286_vm3, %v27504_v6  ;;  %v18820_v1 = vpack.c.bf16 %v31559_v19, %v31558_v14  ;;  %v28920_v6 = vunpack.i.h.bf16 %v31557_v63  ;;  %v31566_v43 = vld [vmem:[#allocation33_spill] sm:$0xff]  ;;  %v31568_v63 = vld [vmem:[#allocation60_spill] sm:$0xff]  ;;  %v31569_v14 = vld [vmem:[#allocation75_spill] sm:$0xff] }
 0x70d   : > { %17817 = vmatprep.subr.msk.mxu0 %vm12299_vm14, %v31556_v59  ;;  %v31570_v19 = vld [vmem:[#allocation27_spill] sm:$0xff] }
 0x70e   : > { %17895 = vmatmul.mubr.msk.f32.gmra.mrb[102].mxu1 %vm12286_vm3, %v28891_v38 }
 0x70f   : > { %18176 = vmatmul.mubr.msk.f32.gmra.mrb[134].mxu0 %vm12286_vm3, %v27514_v8  ;;  %15467 = vmatprep.mubr.f32.mxu1 %v30218_v22  ;;  %v31561_v8 = vunpack.i.h.bf16 %v28372_v47 }
 0x710   : > { %17818 = vmatpush1.msk.msra.mxu0 %vm12299_vm14, %v31560_v25  ;;  %18178 = vmatprep.mubr.msk.f32.mxu0 %vm12286_vm3, %v27526_v7  ;;  %v20928_v7 = vunpack.i.l.bf16 %v28455_v49  ;;  %v31572_v25 = vunpack.i.h.bf16 %v28432_v23 }
 0x711   : > { %18821 = vmatprep.subr.bf16.mxu0 %v18820_v1  ;;  %v15221_v29 = vsel %vm15191_vm7, %v31561_v8, %v20918_v0  ;;  %v20923_v0 = vunpack.i.l.bf16 %v28432_v23  ;;  %v31571_v1 = vpack.c.bf16 %v31569_v14, %v31570_v19  ;;  %v31584_v14 = vunpack.i.h.bf16 %v28507_v61 }
 0x712   : > { %17896 = vmatmul.mubr.msk.f32.gmra.mrb[104].mxu1 %vm12286_vm3, %v28906_v45 }
 0x713   : > { %18179 = vmatmul.mubr.msk.f32.gmra.mrb[136].mxu0 %vm12286_vm3, %v27539_v58  ;;  %15473 = vmatprep.mubr.f32.mxu1 %v30218_v22  ;;  %v31562_v58 = vunpack.i.h.bf16 %v28374_v44  ;;  %v15247_v44 = vsel %vm15191_vm7, %v28418_v56, %v28441_v50  ;;  %v15199_v8 = vsel %vm15191_vm7, %v20923_v0, %v31572_v25  ;;  %v15198_v23 = vsel %vm15191_vm7, %v20914_v42, %v20923_v0  ;;  %v31580_v0 = vld [vmem:[#allocation62_spill] sm:$0xff] }
 0x714   : > { %14187 = vmatprep.mubr.f32.mxu0 %v30218_v22  ;;  %v31579_v42 = vunpack.i.h.bf16 %v28539_v41 }
 0x715   : > { %v15196_v30 = vsel %vm15191_vm7, %v31562_v58, %v20913_v17  ;;  %v31567_v17 = vunpack.i.h.bf16 %v28455_v49  ;;  %v15246_v49 = vsel %vm15191_vm7, %v28398_v40, %v28418_v56  ;;  %v15223_v40 = vsel %vm15191_vm7, %v20919_v2, %v20928_v7  ;;  %v31573_v58 = vld [vmem:[#allocation77_spill] sm:$0xff] }
 0x716   : > { %17897 = vmatmul.mubr.msk.f32.gmra.mrb[106].mxu1 %vm12286_vm3, %v28920_v6  ;;  %v18860_v47 = vpack.c.bf16 %v15221_v29, %v15196_v30  ;;  %v20948_v56 = vunpack.i.l.bf16 %v28539_v41  ;;  %v31574_v30 = vld [vmem:[#allocation59_spill] sm:$0xff]  ;;  %v18864_v4 = vpack.c.bf16 %v15223_v40, %v15198_v23  ;;  %v20943_v2 = vunpack.i.l.bf16 %v28507_v61  ;;  %v31585_v40 = vld [vmem:[#allocation88_spill] sm:$0xff] }
 0x717   : > { %17819 = vmatmul.mubr.msk.f32.vlgmr.msra.gmra.mrb[84].mxu0 %vm12286_vm3, %v31417_v15  ;;  %15544 = vmatprep.mubr.f32.mxu1 %v30218_v22  ;;  %v15224_v59 = vsel %vm15191_vm7, %v20928_v7, %v31567_v17  ;;  %v31575_v20 = vpack.c.bf16 %v31573_v58, %v31574_v30  ;;  %v31576_v7 = vld [vmem:[#allocation89_spill] sm:$0xff]  ;;  %v31582_v17 = vld [vmem:[#allocation68_spill] sm:$0xff]  ;;  %v20939_v23 = vunpack.i.h.bf16 %v31585_v40 }
 0x718   : > { %18823 = vmatpush1.bf16.msra.mxu0 %v31565_v52  ;;  %14193 = vmatprep.mubr.f32.mxu0 %v30218_v22  ;;  %v18862_v29 = vpack.c.bf16 %v15224_v59, %v15199_v8  ;;  %v31578_v52 = vld [vmem:[#allocation78_spill] sm:$0xff]  ;;  %v15203_v41 = vsel %vm15191_vm7, %v20943_v2, %v31584_v14  ;;  %v15253_v14 = vsel %vm15191_vm7, %v28536_v32, %v28563_v53  ;;  %v31596_v53 = vunpack.i.h.bf16 %v28608_v34 }
 0x719   : > { %17833 = vmatprep.subr.msk.mxu0 %vm12299_vm14, %v31566_v43  ;;  %v15249_v36 = vsel %vm15191_vm7, %v31578_v52, %v31577_v12  ;;  %v15248_v19 = vsel %vm15191_vm7, %v28441_v50, %v31578_v52  ;;  %v20968_v12 = vunpack.i.l.bf16 %v28626_v24 }
 0x71a   : > { %17900 = vmatmul.mubr.msk.f32.vlgmr.msra.gmra.mrb[108].mxu1 %vm12286_vm3, %v28839_v27 }
 0x71b   : > { %18861 = vmatpush1.bf16.msra.mxu1 %v18860_v47  ;;  %17820 = vmatmul.mubr.msk.f32.gmra.mrb[86].mxu0 %vm12286_vm3, %v31424_v16  ;;  %v15228_v47 = vsel %vm15191_vm7, %v20948_v56, %v31579_v42  ;;  %v31588_v42 = vld [vmem:[#allocation8_spill] sm:$0xff] }
 0x71c   : > { %17834 = vmatpush1.msk.msra.mxu0 %vm12299_vm14, %v31568_v63  ;;  %17906 = vmatprep.subr.msk.mxu1 %vm12299_vm14, %v15247_v44  ;;  %v31581_v44 = vld [vmem:[#allocation43_spill] sm:$0xff] }
 0x71d   : > { %18829 = vmatprep.subr.bf16.mxu0 %v31571_v1  ;;  %15550 = vmatprep.mubr.f32.mxu1 %v30218_v22  ;;  %v31583_v59 = vpack.c.bf16 %v31581_v44, %v31582_v17  ;;  %v18870_v1 = vpack.c.bf16 %v15228_v47, %v15203_v41  ;;  %v31590_v44 = vld [vmem:[#allocation87_spill] sm:$0xff]  ;;  %v31593_v41 = vunpack.i.h.bf16 %v28626_v24  ;;  %v15252_v24 = vsel %vm15191_vm7, %v28512_v48, %v28536_v32 }
 0x71e   : > { %14199 = vmatprep.mubr.f32.mxu0 %v30218_v22  ;;  %17901 = vmatmul.mubr.msk.f32.gmra.mrb[110].mxu1 %vm12286_vm3, %v28858_v18 }
 0x71f   : > { %17907 = vmatpush1.msk.msra.mxu1 %vm12299_vm14, %v15246_v49  ;;  %17821 = vmatmul.mubr.msk.f32.gmra.mrb[88].mxu0 %vm12286_vm3, %v31428_v10 }
 0x720   : > { %18863 = vmatprep.subr.bf16.mxu1 %v18862_v29  ;;  %15556 = vmatprep.mubr.f32.mxu1 %v30218_v22 }
 0x721   : > { %14205 = vmatprep.mubr.f32.mxu0 %v30218_v22 }
 0x722   : > { %17902 = vmatmul.mubr.msk.f32.gmra.mrb[112].mxu1 %vm12286_vm3, %v28877_v37 }
 0x723   : > { %17822 = vmatmul.mubr.msk.f32.gmra.mrb[90].mxu0 %vm12286_vm3, %v31431_v28  ;;  %15562 = vmatprep.mubr.f32.mxu1 %v30218_v22 }
 0x724   : > { %14211 = vmatprep.mubr.f32.mxu0 %v30218_v22 }
 0x726   : > { %17903 = vmatmul.mubr.msk.f32.gmra.mrb[114].mxu1 %vm12286_vm3, %v28891_v38 }
 0x727   : > { %17823 = vmatmul.mubr.msk.f32.gmra.mrb[92].mxu0 %vm12286_vm3, %v31434_v51  ;;  %15568 = vmatprep.mubr.f32.mxu1 %v30218_v22 }
 0x728   : > { %14217 = vmatprep.mubr.f32.mxu0 %v30218_v22 }
 0x72a   : > { %17904 = vmatmul.mubr.msk.f32.gmra.mrb[116].mxu1 %vm12286_vm3, %v28906_v45 }
 0x72b   : > { %17824 = vmatmul.mubr.msk.f32.gmra.mrb[94].mxu0 %vm12286_vm3, %v31437_v21  ;;  %15574 = vmatprep.mubr.f32.mxu1 %v30218_v22 }
 0x72c   : > { %14389 = vmatprep.mubr.f32.mxu0 %v30218_v22 }
 0x72e   : > { %17905 = vmatmul.mubr.msk.f32.gmra.mrb[118].mxu1 %vm12286_vm3, %v28920_v6 }
 0x72f   : > { %17835 = vmatmul.mubr.msk.f32.vlgmr.msra.gmra.mrb[96].mxu0 %vm12286_vm3, %v31417_v15  ;;  %15645 = vmatprep.mubr.f32.mxu1 %v30218_v22 }
 0x730   : > { %18831 = vmatpush1.bf16.msra.mxu0 %v31575_v20  ;;  %14395 = vmatprep.mubr.f32.mxu0 %v30218_v22  ;;  %v31586_v20 = vld [vmem:[#allocation82_spill] sm:$0xff] }
 0x731   : > { %17849 = vmatprep.subr.msk.mxu0 %vm12299_vm14, %v31576_v7  ;;  %v15227_v7 = vsel %vm15191_vm7, %v20939_v23, %v20948_v56 }
 0x732   : > { %17908 = vmatmul.mubr.msk.f32.vlgmr.msra.gmra.mrb[120].mxu1 %vm12286_vm3, %v28839_v27 }
 0x733   : > { %18865 = vmatpush1.bf16.msra.mxu1 %v18864_v4  ;;  %17836 = vmatmul.mubr.msk.f32.gmra.mrb[98].mxu0 %vm12286_vm3, %v31424_v16  ;;  %v30097_v4 = vunpack.i.h.bf16 %v31586_v20 }
 0x734   : > { %17850 = vmatpush1.msk.msra.mxu0 %vm12299_vm14, %v31580_v0  ;;  %17914 = vmatprep.subr.msk.mxu1 %vm12299_vm14, %v15249_v36  ;;  %v29028_v43 = vpop.f32.mrb[48].mxu0  ;;  %v31587_v36 = vld [vmem:[#allocation15_spill] sm:$0xff]  ;;  %v20963_v0 = vunpack.i.l.bf16 %v28608_v34 }
 0x735   : > { %18837 = vmatprep.subr.bf16.mxu0 %v31583_v59  ;;  %15651 = vmatprep.mubr.f32.mxu1 %v30218_v22  ;;  %v29034_v63 = vpop.f32.mrb[49].mxu0  ;;  %v15202_v52 = vsel %vm15191_vm7, %v30097_v4, %v20943_v2  ;;  %v31589_v47 = vpack.c.bf16 %v31587_v36, %v31588_v42  ;;  %v31600_v2 = vunpack.i.l.bf16 %v31586_v20 }
 0x736   : > { %14401 = vmatprep.mubr.f32.mxu0 %v30218_v22  ;;  %17909 = vmatmul.mubr.msk.f32.gmra.mrb[122].mxu1 %vm12286_vm3, %v28858_v18  ;;  %v18872_v56 = vpack.c.bf16 %v15227_v7, %v15202_v52  ;;  %v31595_v7 = vld [vmem:[#allocation101_spill] sm:$0xff]  ;;  %v15207_v52 = vsel %vm15191_vm7, %v20963_v0, %v31596_v53 }
 0x737   : > { %17915 = vmatpush1.msk.msra.mxu1 %vm12299_vm14, %v15248_v19  ;;  %17837 = vmatmul.mubr.msk.f32.gmra.mrb[100].mxu0 %vm12286_vm3, %v31428_v10  ;;  %v15232_v19 = vsel %vm15191_vm7, %v20968_v12, %v31593_v41  ;;  %v30095_v41 = vunpack.i.h.bf16 %v28583_v39 }
 0x738   : > { %18871 = vmatprep.subr.bf16.mxu1 %v18870_v1  ;;  %15657 = vmatprep.mubr.f32.mxu1 %v30218_v22  ;;  %v29049_v61 = vpop.f32.mrb[50].mxu0  ;;  %v31594_v1 = vld [vmem:[#allocation67_spill] sm:$0xff]  ;;  %v18878_v42 = vpack.c.bf16 %v15232_v19, %v15207_v52  ;;  %v30098_v19 = vunpack.i.h.bf16 %v28550_v11  ;;  %v20988_v52 = vunpack.i.l.bf16 %v28727_v54 }
 0x739   : > { %14407 = vmatprep.mubr.f32.mxu0 %v30218_v22  ;;  %v29052_v25 = vpop.f32.mrb[51].mxu0 }
 0x73a   : > { %17910 = vmatmul.mubr.msk.f32.gmra.mrb[124].mxu1 %vm12286_vm3, %v28877_v37 }
 0x73b   : > { %17838 = vmatmul.mubr.msk.f32.gmra.mrb[102].mxu0 %vm12286_vm3, %v31431_v28  ;;  %15663 = vmatprep.mubr.f32.mxu1 %v30218_v22 }
 0x73c   : > { %v29059_v50 = vpop.f32.mrb[52].mxu0  ;;  %14413 = vmatprep.mubr.f32.mxu0 %v30218_v22 }
 0x73d   : > { %v29062_v8 = vpop.f32.mrb[53].mxu0 }
 0x73e   : > { %17911 = vmatmul.mubr.msk.f32.gmra.mrb[126].mxu1 %vm12286_vm3, %v28891_v38 }
 0x73f   : > { %17839 = vmatmul.mubr.msk.f32.gmra.mrb[104].mxu0 %vm12286_vm3, %v31434_v51  ;;  %15669 = vmatprep.mubr.f32.mxu1 %v30218_v22 }
 0x740   : > { %v29069_v49 = vpop.f32.mrb[54].mxu0  ;;  %14419 = vmatprep.mubr.f32.mxu0 %v30218_v22 }
 0x741   : > { %v29072_v29 = vpop.f32.mrb[55].mxu0 }
 0x742   : > { %17912 = vmatmul.mubr.msk.f32.gmra.mrb[128].mxu1 %vm12286_vm3, %v28906_v45 }
 0x743   : > { %17840 = vmatmul.mubr.msk.f32.gmra.mrb[106].mxu0 %vm12286_vm3, %v31437_v21  ;;  %15675 = vmatprep.mubr.f32.mxu1 %v30218_v22 }
 0x744   : > { %v29080_v58 = vpop.f32.mrb[56].mxu0  ;;  %14591 = vmatprep.mubr.f32.mxu0 %v30218_v22 }
 0x745   : > { %v29083_v30 = vpop.f32.mrb[57].mxu0 }
 0x746   : > { %17913 = vmatmul.mubr.msk.f32.gmra.mrb[130].mxu1 %vm12286_vm3, %v28920_v6 }
 0x747   : > { %17851 = vmatmul.mubr.msk.f32.vlgmr.msra.gmra.mrb[108].mxu0 %vm12286_vm3, %v31417_v15  ;;  %15746 = vmatprep.mubr.f32.mxu1 %v30218_v22 }
 0x748   : > { %18839 = vmatpush1.bf16.msra.mxu0 %v31589_v47  ;;  %14597 = vmatprep.mubr.f32.mxu0 %v30218_v22 }
 0x749   : > { %17865 = vmatprep.subr.msk.mxu0 %vm12299_vm14, %v31590_v44  ;;  %v29105_v17 = vpop.f32.mrb[58].mxu0 }
 0x74a   : > { %17916 = vmatmul.mubr.msk.f32.vlgmr.msra.gmra.mrb[36].mxu1 %vm12286_vm3, %v28839_v27  ;;  %v29109_v59 = vpop.f32.mrb[59].mxu0 }
 0x74b   : > { %18873 = vmatpush1.bf16.msra.mxu1 %v18872_v56  ;;  %17852 = vmatmul.mubr.msk.f32.gmra.mrb[110].mxu0 %vm12286_vm3, %v31424_v16 }
 0x74c   : > { %17866 = vmatpush1.msk.msra.mxu0 %vm12299_vm14, %v31594_v1  ;;  %17930 = vmatprep.subr.msk.mxu1 %vm12299_vm14, %v15253_v14  ;;  %v15231_v1 = vsel %vm15191_vm7, %v30095_v41, %v20968_v12  ;;  %v31597_v12 = vunpack.i.l.bf16 %v31585_v40  ;;  %v20983_v41 = vunpack.i.l.bf16 %v28707_v62  ;;  %v15257_v40 = vsel %vm15191_vm7, %v28624_v5, %v28651_v35 }
 0x74d   : > { %18846 = vmatprep.subr.msk.bf16.mxu0 %vm29113_vm13, %v31595_v7  ;;  %15752 = vmatprep.mubr.f32.mxu1 %v30218_v22  ;;  %v31602_v35 = vunpack.i.h.bf16 %v28707_v62 }
 0x74e   : > { %v29138_v36 = vpop.f32.mrb[60].mxu0  ;;  %14603 = vmatprep.mubr.f32.mxu0 %v30218_v22  ;;  %17917 = vmatmul.mubr.msk.f32.gmra.mrb[38].mxu1 %vm12286_vm3, %v28858_v18  ;;  %v15226_v33 = vsel %vm15191_vm7, %v31597_v12, %v20939_v23 }
 0x74f   : > { %17931 = vmatpush1.msk.msra.mxu1 %vm12299_vm14, %v15252_v24  ;;  %v29144_v47 = vpop.f32.mrb[61].mxu0  ;;  %17853 = vmatmul.mubr.msk.f32.gmra.mrb[112].mxu0 %vm12286_vm3, %v31428_v10 }
 0x750   : > { %18879 = vmatprep.subr.bf16.mxu1 %v18878_v42  ;;  %15758 = vmatprep.mubr.f32.mxu1 %v30218_v22  ;;  %v15206_v42 = vsel %vm15191_vm7, %v30098_v19, %v20963_v0  ;;  %v31599_v0 = vunpack.i.h.bf16 %v31586_v20 }
 0x751   : > { %14609 = vmatprep.mubr.f32.mxu0 %v30218_v22  ;;  %v18880_v57 = vpack.c.bf16 %v15231_v1, %v15206_v42  ;;  %v31601_v42 = vunpack.i.h.bf16 %v28727_v54 }
 0x752   : > { %v29150_v48 = vpop.f32.mrb[62].mxu0  ;;  %17918 = vmatmul.mubr.msk.f32.gmra.mrb[40].mxu1 %vm12286_vm3, %v28877_v37 }
 0x753   : > { %v29154_v32 = vpop.f32.mrb[63].mxu0  ;;  %17854 = vmatmul.mubr.msk.f32.gmra.mrb[114].mxu0 %vm12286_vm3, %v31431_v28  ;;  %15764 = vmatprep.mubr.f32.mxu1 %v30218_v22  ;;  %v15236_v12 = vsel %vm15191_vm7, %v20988_v52, %v31601_v42  ;;  %v20979_v42 = vunpack.i.h.bf16 %v28679_v3 }
 0x754   : > { %14615 = vmatprep.mubr.f32.mxu0 %v30218_v22 }
 0x756   : > { %v29160_v34 = vpop.f32.mrb[64].mxu0  ;;  %17919 = vmatmul.mubr.msk.f32.gmra.mrb[42].mxu1 %vm12286_vm3, %v28891_v38 }
 0x757   : > { %v29164_v56 = vpop.f32.mrb[65].mxu0  ;;  %17855 = vmatmul.mubr.msk.f32.gmra.mrb[116].mxu0 %vm12286_vm3, %v31434_v51  ;;  %15770 = vmatprep.mubr.f32.mxu1 %v30218_v22 }
 0x758   : > { %14621 = vmatprep.mubr.f32.mxu0 %v30218_v22 }
 0x75a   : > { %v29170_v44 = vpop.f32.mrb[66].mxu0  ;;  %17920 = vmatmul.mubr.msk.f32.gmra.mrb[44].mxu1 %vm12286_vm3, %v28906_v45 }
 0x75b   : > { %v29174_v14 = vpop.f32.mrb[67].mxu0  ;;  %17856 = vmatmul.mubr.msk.f32.gmra.mrb[118].mxu0 %vm12286_vm3, %v31437_v21  ;;  %15776 = vmatprep.mubr.f32.mxu1 %v30218_v22 }
 0x75c   : > { %14793 = vmatprep.mubr.f32.mxu0 %v30218_v22 }
 0x75e   : > { %v29185_v53 = vpop.f32.mrb[68].mxu0  ;;  %17921 = vmatmul.mubr.msk.f32.gmra.mrb[46].mxu1 %vm12286_vm3, %v28920_v6 }
 0x75f   : > { %v29190_v24 = vpop.f32.mrb[69].mxu0  ;;  %17867 = vmatmul.mubr.msk.f32.vlgmr.msra.gmra.mrb[120].mxu0 %vm12286_vm3, %v31417_v15  ;;  %15948 = vmatprep.mubr.f32.mxu1 %v30218_v22 }
 0x760   : > { %18849 = vmatpush3.bf16.msk.msra.mxu0 %vm29113_vm13, %v31595_v7  ;;  %14799 = vmatprep.mubr.f32.mxu0 %v30218_v22  ;;  %v15201_v7 = vsel %vm15191_vm7, %v31600_v2, %v31599_v0  ;;  %v29261_v0 = vpop.permute.xlu0 %15185 }
 0x761   : > { %18185 = vmatprep.subr.msk.mxu0 %vm12299_vm14, %v31598_v46  ;;  %v18866_v1 = vpack.c.bf16 %v15226_v33, %v15201_v7  ;;  %v15256_v33 = vsel %vm15191_vm7, %v28612_v26, %v28624_v5 }
 0x762   : > { %v29210_v4 = vpop.f32.mrb[70].mxu0  ;;  %17932 = vmatmul.mubr.msk.f32.vlgmr.msra.gmra.mrb[48].mxu1 %vm12286_vm3, %v28839_v27 }
 0x763   : > { %18881 = vmatpush1.bf16.msra.mxu1 %v18880_v57  ;;  %v29222_v23 = vpop.f32.mrb[71].mxu0  ;;  %17868 = vmatmul.mubr.msk.f32.gmra.mrb[122].mxu0 %vm12286_vm3, %v31424_v16  ;;  %v15211_v57 = vsel %vm15191_vm7, %v20983_v41, %v31602_v35  ;;  %v31611_v35 = vld [vmem:[#allocation91_spill] sm:$0xff] }
 0x764   : > { %18186 = vmatpush3.msk.msra.mxu0 %vm12299_vm14, %v31598_v46  ;;  %17946 = vmatprep.subr.msk.mxu1 %vm12299_vm14, %v15257_v40  ;;  %v18886_v54 = vpack.c.bf16 %v15236_v12, %v15211_v57  ;;  %v29283_v12 = vpop.permute.xlu0 %21006  ;;  %v20974_v57 = vunpack.i.h.bf16 %v31611_v35 }
 0x765   : > { %18867 = vmatprep.subr.bf16.mxu0 %v18866_v1  ;;  %15954 = vmatprep.mubr.f32.mxu1 %v30218_v22 }
 0x766   : > { %v29239_v20 = vpop.f32.mrb[72].mxu0  ;;  %14805 = vmatprep.mubr.f32.mxu0 %v30218_v22  ;;  %17933 = vmatmul.mubr.msk.f32.gmra.mrb[50].mxu1 %vm12286_vm3, %v28858_v18 }
 0x767   : > { %31603 = vst [vmem:[#allocation4_spill] sm:$0xff] %v29239_v20  ;;  %17947 = vmatpush1.msk.msra.mxu1 %vm12299_vm14, %v15256_v33  ;;  %v29245_v46 = vpop.f32.mrb[73].mxu0  ;;  %17869 = vmatmul.mubr.msk.f32.gmra.mrb[124].mxu0 %vm12286_vm3, %v31428_v10  ;;  %v15235_v33 = vsel %vm15191_vm7, %v20979_v42, %v20988_v52  ;;  %v31614_v52 = vld [vmem:[#allocation85_spill] sm:$0xff]  ;;  %v31619_v20 = vld [vmem:[#allocation28_spill] sm:$0xff] }
 0x768   : > { %31604 = vst [vmem:[#allocation5_spill] sm:$0xff] %v29245_v46  ;;  %18887 = vmatprep.subr.bf16.mxu1 %v18886_v54  ;;  %15960 = vmatprep.mubr.f32.mxu1 %v30218_v22  ;;  %v29289_v54 = vpop.permute.xlu1 %21001 }
 0x769   : > { %14811 = vmatprep.mubr.f32.mxu0 %v30218_v22  ;;  %v21003_v46 = vunpack.i.l.bf16 %v29289_v54 }
 0x76a   : > { %v29251_v5 = vpop.f32.mrb[74].mxu0  ;;  %17934 = vmatmul.mubr.msk.f32.gmra.mrb[52].mxu1 %vm12286_vm3, %v28877_v37 }
 0x76b   : > { %31605 = vst [vmem:[#allocation50_spill] sm:$0xff] %v29251_v5  ;;  %v29255_v62 = vpop.f32.mrb[75].mxu0  ;;  %17870 = vmatmul.mubr.msk.f32.gmra.mrb[126].mxu0 %vm12286_vm3, %v31431_v28  ;;  %15966 = vmatprep.mubr.f32.mxu1 %v30218_v22 }
 0x76c   : > { %31606 = vst [vmem:[#allocation53_spill] sm:$0xff] %v29255_v62  ;;  %14817 = vmatprep.mubr.f32.mxu0 %v30218_v22 }
 0x76e   : > { %v29263_v2 = vpop.f32.mrb[76].mxu0  ;;  %17935 = vmatmul.mubr.msk.f32.gmra.mrb[54].mxu1 %vm12286_vm3, %v28891_v38 }
 0x76f   : > { %31607 = vst [vmem:[#allocation37_spill] sm:$0xff] %v29263_v2  ;;  %v29267_v7 = vpop.f32.mrb[77].mxu0  ;;  %17871 = vmatmul.mubr.msk.f32.gmra.mrb[128].mxu0 %vm12286_vm3, %v31434_v51  ;;  %15972 = vmatprep.mubr.f32.mxu1 %v30218_v22  ;;  %v31615_v2 = vld [vmem:[#allocation25_spill] sm:$0xff] }
 0x770   : > { %31608 = vst [vmem:[#allocation52_spill] sm:$0xff] %v29267_v7  ;;  %14823 = vmatprep.mubr.f32.mxu0 %v30218_v22  ;;  %v31616_v62 = vpack.c.bf16 %v31614_v52, %v31615_v2  ;;  %v31624_v52 = vld [vmem:[#allocation90_spill] sm:$0xff] }
 0x772   : > { %v29273_v40 = vpop.f32.mrb[78].mxu0  ;;  %17936 = vmatmul.mubr.msk.f32.gmra.mrb[56].mxu1 %vm12286_vm3, %v28906_v45 }
 0x773   : > { %31609 = vst [vmem:[#allocation56_spill] sm:$0xff] %v29273_v40  ;;  %v29277_v1 = vpop.f32.mrb[79].mxu0  ;;  %17872 = vmatmul.mubr.msk.f32.gmra.mrb[130].mxu0 %vm12286_vm3, %v31437_v21  ;;  %15978 = vmatprep.mubr.f32.mxu1 %v30218_v22  ;;  %v21008_v40 = vunpack.i.l.bf16 %v29283_v12 }
 0x774   : > { %31610 = vst [vmem:[#allocation48_spill] sm:$0xff] %v29277_v1  ;;  %18187 = vmatprep.mubr.msk.f32.mxu0 %vm12286_vm3, %v31417_v15  ;;  %v15210_v15 = vsel %vm15191_vm7, %v20974_v57, %v20983_v41  ;;  %v31617_v1 = vunpack.i.h.bf16 %v28583_v39 }
 0x775   : > { %v18888_v5 = vpack.c.bf16 %v15235_v33, %v15210_v15  ;;  %v31623_v33 = vunpack.i.h.bf16 %v29283_v12 }
 0x776   : > { %v29291_v19 = vpop.f32.mrb[80].mxu0  ;;  %17937 = vmatmul.mubr.msk.f32.gmra.mrb[58].mxu1 %vm12286_vm3, %v28920_v6 }
 0x777   : > { %31612 = vst [vmem:[#allocation39_spill] sm:$0xff] %v29291_v19  ;;  %v29297_v7 = vpop.f32.mrb[81].mxu0  ;;  %18188 = vmatmul.mubr.msk.f32.vlgmr.msra.gmra.mrb[132].mxu0 %vm12286_vm3, %v31424_v16  ;;  %16150 = vmatprep.mubr.f32.mxu1 %v30218_v22  ;;  %v31618_v19 = vunpack.i.l.bf16 %v28583_v39  ;;  %v21004_v16 = vunpack.i.h.bf16 %v29289_v54  ;;  %v15240_v15 = vsel %vm15191_vm7, %v21008_v40, %v31623_v33  ;;  %v31632_v33 = vld [vmem:[#allocation72_spill] sm:$0xff] }
 0x778   : > { %31613 = vst [vmem:[#allocation45_spill] sm:$0xff] %v29297_v7  ;;  %18869 = vmatpush1.bf16.msra.mxu0 %v31616_v62  ;;  %18190 = vmatprep.mubr.msk.f32.mxu0 %vm12286_vm3, %v31428_v10  ;;  %v31620_v10 = vunpack.i.h.bf16 %v28550_v11  ;;  %v31621_v62 = vunpack.i.l.bf16 %v28550_v11 }
 0x779   : > { %v15230_v7 = vsel %vm15191_vm7, %v31618_v19, %v31617_v1  ;;  %17922 = vmatprep.subr.msk.mxu0 %vm12299_vm14, %v31619_v20  ;;  %v31622_v19 = vld [vmem:[#allocation80_spill] sm:$0xff]  ;;  %v15215_v11 = vsel %vm15191_vm7, %v21003_v46, %v21004_v16 }
 0x77a   : > { %v29317_v41 = vpop.f32.mrb[82].mxu0  ;;  %17948 = vmatmul.mubr.msk.f32.vlgmr.msra.gmra.mrb[60].mxu1 %vm12286_vm3, %v28839_v27  ;;  %v15205_v39 = vsel %vm15191_vm7, %v31621_v62, %v31620_v10  ;;  %v15261_v2 = vsel %vm15191_vm7, %v31622_v19, %v28739_v9  ;;  %v31625_v9 = vld [vmem:[#allocation47_spill] sm:$0xff]  ;;  %v31627_v10 = vld [vmem:[#allocation44_spill] sm:$0xff]  ;;  %v31628_v62 = vld [vmem:[#allocation65_spill] sm:$0xff] }
 0x77b   : > { %18889 = vmatpush1.bf16.msra.mxu1 %v18888_v5  ;;  %v29329_v1 = vpop.f32.mrb[83].mxu0  ;;  %18191 = vmatmul.mubr.msk.f32.gmra.mrb[134].mxu0 %vm12286_vm3, %v31431_v28  ;;  %v18874_v20 = vpack.c.bf16 %v15230_v7, %v15205_v39  ;;  %v15260_v28 = vsel %vm15191_vm7, %v31625_v9, %v31622_v19  ;;  %v18894_v5 = vpack.c.bf16 %v15240_v15, %v15215_v11  ;;  %v31630_v39 = vunpack.i.l.bf16 %v28679_v3  ;;  %v29397_v15 = vpop.permute.xlu0 %15189 }
 0x77c   : > { %17923 = vmatpush1.msk.msra.mxu0 %vm12299_vm14, %v31624_v52  ;;  %17962 = vmatprep.subr.msk.mxu1 %vm12299_vm14, %v15261_v2  ;;  %v31631_v2 = vunpack.i.l.bf16 %v31611_v35  ;;  %v20999_v3 = vunpack.i.h.bf16 %v28770_v13  ;;  %v15188_v11 = vpop.permute.xlu1 %15187 }
 0x77d   : > { %18875 = vmatprep.subr.bf16.mxu0 %v18874_v20  ;;  %16156 = vmatprep.mubr.f32.mxu1 %v30218_v22  ;;  %v15234_v19 = vsel %vm15191_vm7, %v31630_v39, %v20979_v42  ;;  %v20994_v42 = vunpack.i.h.bf16 %v28737_v31  ;;  %v31638_v39 = vunpack.i.l.bf16 %v28737_v31  ;;  %v31640_v31 = vld [vmem:[#allocation20_spill] sm:$0xff] }
 0x77e   : > { %18193 = vmatprep.mubr.msk.f32.mxu0 %vm12286_vm3, %v31434_v51  ;;  %17949 = vmatmul.mubr.msk.f32.gmra.mrb[62].mxu1 %vm12286_vm3, %v28858_v18  ;;  %v31626_v51 = vld [vmem:[#allocation84_spill] sm:$0xff]  ;;  %v15209_v20 = vsel %vm15191_vm7, %v31631_v2, %v20974_v57  ;;  %v15239_v35 = vsel %vm15191_vm7, %v20999_v3, %v21008_v40  ;;  %v15265_v40 = vsel %vm15191_vm7, %v15188_v11, %v29397_v15  ;;  %v31639_v2 = vld [vmem:[#allocation86_spill] sm:$0xff] }
 0x77f   : > { %17963 = vmatpush1.msk.msra.mxu1 %vm12299_vm14, %v15260_v28  ;;  %18194 = vmatmul.mubr.msk.f32.gmra.mrb[136].mxu0 %vm12286_vm3, %v31437_v21  ;;  %v15255_v7 = vsel %vm15191_vm7, %v31626_v51, %v28612_v26  ;;  %v31629_v21 = vpack.c.bf16 %v31627_v10, %v31628_v62  ;;  %v18882_v26 = vpack.c.bf16 %v15234_v19, %v15209_v20  ;;  %v31633_v28 = vld [vmem:[#allocation6_spill] sm:$0xff]  ;;  %v31634_v51 = vld [vmem:[#allocation12_spill] sm:$0xff]  ;;  %v31637_v62 = vunpack.i.l.bf16 %v28770_v13 }
 0x780   : > { %18895 = vmatprep.subr.bf16.mxu1 %v18894_v5  ;;  %16162 = vmatprep.mubr.f32.mxu1 %v30218_v22  ;;  %v15214_v57 = vsel %vm15191_vm7, %v20994_v42, %v21003_v46  ;;  %v15264_v46 = vsel %vm15191_vm7, %v29261_v0, %v15188_v11  ;;  %v15259_v5 = vsel %vm15191_vm7, %v31633_v28, %v31625_v9  ;;  %v15090_v13 = vpop.permute.xlu1 %15089 }
 0x781   : > { %15847 = vmatprep.mubr.f32.mxu0 %v30218_v22  ;;  %v18896_v52 = vpack.c.bf16 %v15239_v35, %v15214_v57  ;;  %v15213_v19 = vsel %vm15191_vm7, %v31638_v39, %v20994_v42  ;;  %v15263_v20 = vsel %vm15191_vm7, %v31640_v31, %v29261_v0  ;;  %v31642_v42 = vpack.c.bf16 %v28797_v55, %v28790_v60  ;;  %v31644_v31 = vld [vmem:[#allocation4_spill] sm:$0xff] }
 0x782   : > { %17950 = vmatmul.mubr.msk.f32.gmra.mrb[64].mxu1 %vm12286_vm3, %v28877_v37  ;;  %v15266_v60 = vsel %vm15191_vm7, %v29397_v15, %v15090_v13 }
 0x783   : > { %17924 = vmatmul.mubr.msk.f32.vlgmr.msra.gmra.mrb[84].mxu0 %vm12286_vm3, %v28839_v27  ;;  %16168 = vmatprep.mubr.f32.mxu1 %v30218_v22 }
 0x784   : > { %18877 = vmatpush1.bf16.msra.mxu0 %v31629_v21  ;;  %15853 = vmatprep.mubr.f32.mxu0 %v30218_v22  ;;  %v15238_v21 = vsel %vm15191_vm7, %v31637_v62, %v20999_v3 }
 0x785   : > { %17938 = vmatprep.subr.msk.mxu0 %vm12299_vm14, %v15255_v7  ;;  %v31635_v7 = vld [vmem:[#allocation26_spill] sm:$0xff]  ;;  %v18890_v9 = vpack.c.bf16 %v15238_v21, %v15213_v19 }
 0x786   : > { %17951 = vmatmul.mubr.msk.f32.gmra.mrb[66].mxu1 %vm12286_vm3, %v28891_v38  ;;  %v31636_v10 = vpack.c.bf16 %v31634_v51, %v31635_v7 }
 0x787   : > { %17925 = vmatmul.mubr.msk.f32.gmra.mrb[86].mxu0 %vm12286_vm3, %v28858_v18  ;;  %16174 = vmatprep.mubr.f32.mxu1 %v30218_v22 }
 0x788   : > { %17939 = vmatpush1.msk.msra.mxu0 %vm12299_vm14, %v31632_v33  ;;  %15859 = vmatprep.mubr.f32.mxu0 %v30218_v22  ;;  %v31641_v33 = vunpack.i.h.bf16 %v29283_v12  ;;  %v31643_v12 = vld [vmem:[#allocation31_spill] sm:$0xff] }
 0x789   : > { %18883 = vmatprep.subr.bf16.mxu0 %v18882_v26  ;;  %v15216_v26 = vsel %vm15191_vm7, %v21004_v16, %v15090_v13 }
 0x78a   : > { %17952 = vmatmul.mubr.msk.f32.gmra.mrb[68].mxu1 %vm12286_vm3, %v28906_v45  ;;  %v15241_v3 = vsel %vm15191_vm7, %v31641_v33, %v15090_v13 }
 0x78b   : > { %17926 = vmatmul.mubr.msk.f32.gmra.mrb[88].mxu0 %vm12286_vm3, %v28877_v37  ;;  %16180 = vmatprep.mubr.f32.mxu1 %v30218_v22  ;;  %v18898_v0 = vpack.c.bf16 %v15241_v3, %v15216_v26  ;;  %v31645_v26 = vld [vmem:[#allocation5_spill] sm:$0xff]  ;;  %v31646_v3 = vld [vmem:[#allocation50_spill] sm:$0xff] }
 0x78c   : > { %15865 = vmatprep.mubr.f32.mxu0 %v30218_v22 }
 0x78e   : > { %17953 = vmatmul.mubr.msk.f32.gmra.mrb[70].mxu1 %vm12286_vm3, %v28920_v6 }
 0x78f   : > { %17927 = vmatmul.mubr.msk.f32.gmra.mrb[90].mxu0 %vm12286_vm3, %v28891_v38  ;;  %16352 = vmatprep.mubr.f32.mxu1 %v30218_v22 }
 0x790   : > { %15871 = vmatprep.mubr.f32.mxu0 %v30218_v22 }
 0x792   : > { %17964 = vmatmul.mubr.msk.f32.vlgmr.msra.gmra.mrb[72].mxu1 %vm12286_vm3, %v28839_v27 }
 0x793   : > { %18897 = vmatpush1.bf16.msra.mxu1 %v18896_v52  ;;  %17928 = vmatmul.mubr.msk.f32.gmra.mrb[92].mxu0 %vm12286_vm3, %v28906_v45 }
 0x794   : > { %17978 = vmatprep.subr.msk.mxu1 %vm12299_vm14, %v15265_v40  ;;  %16358 = vmatprep.mubr.f32.mxu1 %v30218_v22 }
 0x795   : > { %15877 = vmatprep.mubr.f32.mxu0 %v30218_v22 }
 0x796   : > { %17965 = vmatmul.mubr.msk.f32.gmra.mrb[74].mxu1 %vm12286_vm3, %v28858_v18 }
 0x797   : > { %17979 = vmatpush1.msk.msra.mxu1 %vm12299_vm14, %v15264_v46  ;;  %17929 = vmatmul.mubr.msk.f32.gmra.mrb[94].mxu0 %vm12286_vm3, %v28920_v6 }
 0x798   : > { %16364 = vmatprep.mubr.f32.mxu1 %v30218_v22  ;;  %16049 = vmatprep.mubr.f32.mxu0 %v30218_v22 }
 0x79a   : > { %17966 = vmatmul.mubr.msk.f32.gmra.mrb[76].mxu1 %vm12286_vm3, %v28877_v37 }
 0x79b   : > { %17940 = vmatmul.mubr.msk.f32.vlgmr.msra.gmra.mrb[96].mxu0 %vm12286_vm3, %v28839_v27  ;;  %16370 = vmatprep.mubr.f32.mxu1 %v30218_v22 }
 0x79c   : > { %18885 = vmatpush1.bf16.msra.mxu0 %v31636_v10  ;;  %16055 = vmatprep.mubr.f32.mxu0 %v30218_v22 }
 0x79d   : > { %17954 = vmatprep.subr.msk.mxu0 %vm12299_vm14, %v15259_v5 }
 0x79e   : > { %17967 = vmatmul.mubr.msk.f32.gmra.mrb[78].mxu1 %vm12286_vm3, %v28891_v38 }
 0x79f   : > { %17941 = vmatmul.mubr.msk.f32.gmra.mrb[98].mxu0 %vm12286_vm3, %v28858_v18  ;;  %16376 = vmatprep.mubr.f32.mxu1 %v30218_v22 }
 0x7a0   : > { %17955 = vmatpush1.msk.msra.mxu0 %vm12299_vm14, %v31639_v2  ;;  %16061 = vmatprep.mubr.f32.mxu0 %v30218_v22 }
 0x7a1   : > { %18891 = vmatprep.subr.bf16.mxu0 %v18890_v9 }
 0x7a2   : > { %17968 = vmatmul.mubr.msk.f32.gmra.mrb[80].mxu1 %vm12286_vm3, %v28906_v45 }
 0x7a3   : > { %17942 = vmatmul.mubr.msk.f32.gmra.mrb[100].mxu0 %vm12286_vm3, %v28877_v37  ;;  %16382 = vmatprep.mubr.f32.mxu1 %v30218_v22 }
 0x7a4   : > { %16067 = vmatprep.mubr.f32.mxu0 %v30218_v22 }
 0x7a6   : > { %17969 = vmatmul.mubr.msk.f32.gmra.mrb[82].mxu1 %vm12286_vm3, %v28920_v6 }
 0x7a7   : > { %17943 = vmatmul.mubr.msk.f32.gmra.mrb[102].mxu0 %vm12286_vm3, %v28891_v38  ;;  %16554 = vmatprep.mubr.f32.mxu1 %v30218_v22 }
 0x7a8   : > { %16073 = vmatprep.mubr.f32.mxu0 %v30218_v22 }
 0x7aa   : > { %17980 = vmatmul.mubr.msk.f32.vlgmr.msra.gmra.mrb[84].mxu1 %vm12286_vm3, %v28839_v27 }
 0x7ab   : > { %17944 = vmatmul.mubr.msk.f32.gmra.mrb[104].mxu0 %vm12286_vm3, %v28906_v45  ;;  %16560 = vmatprep.mubr.f32.mxu1 %v30218_v22 }
 0x7ac   : > { %16079 = vmatprep.mubr.f32.mxu0 %v30218_v22 }
 0x7ae   : > { %17981 = vmatmul.mubr.msk.f32.gmra.mrb[86].mxu1 %vm12286_vm3, %v28858_v18 }
 0x7af   : > { %17945 = vmatmul.mubr.msk.f32.gmra.mrb[106].mxu0 %vm12286_vm3, %v28920_v6  ;;  %16566 = vmatprep.mubr.f32.mxu1 %v30218_v22 }
 0x7b0   : > { %16251 = vmatprep.mubr.f32.mxu0 %v30218_v22 }
 0x7b2   : > { %17982 = vmatmul.mubr.msk.f32.gmra.mrb[88].mxu1 %vm12286_vm3, %v28877_v37 }
 0x7b3   : > { %17956 = vmatmul.mubr.msk.f32.vlgmr.msra.gmra.mrb[108].mxu0 %vm12286_vm3, %v28839_v27  ;;  %16572 = vmatprep.mubr.f32.mxu1 %v30218_v22 }
 0x7b4   : > { %18893 = vmatpush1.bf16.msra.mxu0 %v31642_v42  ;;  %16257 = vmatprep.mubr.f32.mxu0 %v30218_v22 }
 0x7b5   : > { %17970 = vmatprep.subr.msk.mxu0 %vm12299_vm14, %v15263_v20 }
 0x7b6   : > { %17983 = vmatmul.mubr.msk.f32.gmra.mrb[90].mxu1 %vm12286_vm3, %v28891_v38 }
 0x7b7   : > { %17957 = vmatmul.mubr.msk.f32.gmra.mrb[110].mxu0 %vm12286_vm3, %v28858_v18  ;;  %16578 = vmatprep.mubr.f32.mxu1 %v30218_v22 }
 0x7b8   : > { %17971 = vmatpush1.msk.msra.mxu0 %vm12299_vm14, %v31643_v12  ;;  %16263 = vmatprep.mubr.f32.mxu0 %v30218_v22 }
 0x7b9   : > { %18899 = vmatprep.subr.bf16.mxu0 %v18898_v0 }
 0x7ba   : > { %17984 = vmatmul.mubr.msk.f32.gmra.mrb[92].mxu1 %vm12286_vm3, %v28906_v45 }
 0x7bb   : > { %17958 = vmatmul.mubr.msk.f32.gmra.mrb[112].mxu0 %vm12286_vm3, %v28877_v37  ;;  %16584 = vmatprep.mubr.f32.mxu1 %v30218_v22 }
 0x7bc   : > { %16269 = vmatprep.mubr.f32.mxu0 %v30218_v22 }
 0x7be   : > { %17985 = vmatmul.mubr.msk.f32.gmra.mrb[94].mxu1 %vm12286_vm3, %v28920_v6 }
 0x7bf   : > { %17959 = vmatmul.mubr.msk.f32.gmra.mrb[114].mxu0 %vm12286_vm3, %v28891_v38 }
 0x7c0   : > { %16275 = vmatprep.mubr.f32.mxu0 %v30218_v22 }
 0x7c3   : > { %17960 = vmatmul.mubr.msk.f32.gmra.mrb[116].mxu0 %vm12286_vm3, %v28906_v45 }
 0x7c4   : > { %16281 = vmatprep.mubr.f32.mxu0 %v30218_v22 }
 0x7c7   : > { %17961 = vmatmul.mubr.msk.f32.gmra.mrb[118].mxu0 %vm12286_vm3, %v28920_v6 }
 0x7c8   : > { %16453 = vmatprep.mubr.f32.mxu0 %v30218_v22 }
 0x7cb   : > { %17972 = vmatmul.mubr.msk.f32.vlgmr.msra.gmra.mrb[120].mxu0 %vm12286_vm3, %v28839_v27 }
 0x7cc   : > { %18901 = vmatpush3.bf16.msra.mxu0 %v18898_v0  ;;  %16459 = vmatprep.mubr.f32.mxu0 %v30218_v22  ;;  %v31647_v0 = vld [vmem:[#allocation53_spill] sm:$0xff] }
 0x7cd   : > { %18200 = vmatprep.subr.msk.mxu0 %vm12299_vm14, %v15266_v60 }
 0x7cf   : > { %17973 = vmatmul.mubr.msk.f32.gmra.mrb[122].mxu0 %vm12286_vm3, %v28858_v18 }
 0x7d0   : > { %18201 = vmatpush3.msk.msra.mxu0 %vm12299_vm14, %v15266_v60  ;;  %16465 = vmatprep.mubr.f32.mxu0 %v30218_v22  ;;  %v31648_v60 = vld [vmem:[#allocation37_spill] sm:$0xff] }
 0x7d3   : > { %17974 = vmatmul.mubr.msk.f32.gmra.mrb[124].mxu0 %vm12286_vm3, %v28877_v37 }
 0x7d4   : > { %16471 = vmatprep.mubr.f32.mxu0 %v30218_v22 }
 0x7d5   : > { %v15445_v55 = vpop.f32.mrb[96].mxu1 }
 0x7d6   : > { %v18908_v54 = vadd.f32 %v15445_v55, %v29028_v43  ;;  %v15447_v16 = vpop.f32.mrb[97].mxu1 }
 0x7d7   : > { %v18909_v35 = vadd.f32 %v15447_v16, %v29034_v63  ;;  %17975 = vmatmul.mubr.msk.f32.gmra.mrb[126].mxu0 %vm12286_vm3, %v28891_v38  ;;  %v31649_v16 = vld [vmem:[#allocation52_spill] sm:$0xff] }
 0x7d8   : > { %16836 = vst [vmem:[%s29530_s8] sm:$0xff] %v18908_v54  ;;  %16477 = vmatprep.mubr.f32.mxu0 %v30218_v22 }
 0x7d9   : > { %16837 = vst [vmem:[%s29530_s8 + $0x8] sm:$0xff] %v18909_v35  ;;  %v15451_v57 = vpop.f32.mrb[98].mxu1 }
 0x7da   : > { %v18910_v15 = vadd.f32 %v15451_v57, %v29049_v61  ;;  %v15453_v52 = vpop.f32.mrb[99].mxu1 }
 0x7db   : > { %v18911_v11 = vadd.f32 %v15453_v52, %v29052_v25  ;;  %17976 = vmatmul.mubr.msk.f32.gmra.mrb[128].mxu0 %vm12286_vm3, %v28906_v45 }
 0x7dc   : > { %16862 = vst [vmem:[%s29530_s8 + $0xc8] sm:$0xff] %v18910_v15  ;;  %16483 = vmatprep.mubr.f32.mxu0 %v30218_v22  ;;  %v31650_v15 = vld [vmem:[#allocation56_spill] sm:$0xff] }
 0x7dd   : > { %16863 = vst [vmem:[%s29530_s8 + $0xd0] sm:$0xff] %v18911_v11  ;;  %v15457_v43 = vpop.f32.mrb[100].mxu1 }
 0x7de   : > { %v18912_v63 = vadd.f32 %v15457_v43, %v29059_v50  ;;  %v15459_v40 = vpop.f32.mrb[101].mxu1  ;;  %v31651_v43 = vld [vmem:[#allocation48_spill] sm:$0xff] }
 0x7df   : > { %v18913_v46 = vadd.f32 %v15459_v40, %v29062_v8  ;;  %17977 = vmatmul.mubr.msk.f32.gmra.mrb[130].mxu0 %vm12286_vm3, %v28920_v6 }
 0x7e0   : > { %16887 = vst [vmem:[%s29530_s8 + $0x190] sm:$0xff] %v18912_v63  ;;  %18202 = vmatprep.mubr.msk.f32.mxu0 %vm12286_vm3, %v28839_v27 }
 0x7e1   : > { %16888 = vst [vmem:[%s29530_s8 + $0x198] sm:$0xff] %v18913_v46  ;;  %v15463_v61 = vpop.f32.mrb[102].mxu1  ;;  %v31652_v46 = vld [vmem:[#allocation39_spill] sm:$0xff] }
 0x7e2   : > { %v18914_v22 = vadd.f32 %v15463_v61, %v29069_v49  ;;  %v15465_v25 = vpop.f32.mrb[103].mxu1 }
 0x7e3   : > { %v18915_v28 = vadd.f32 %v15465_v25, %v29072_v29  ;;  %18203 = vmatmul.mubr.msk.f32.vlgmr.msra.gmra.mrb[132].mxu0 %vm12286_vm3, %v28858_v18  ;;  %v31653_v25 = vld [vmem:[#allocation45_spill] sm:$0xff] }
 0x7e4   : > { %16912 = vst [vmem:[%s29530_s8 + $0x258] sm:$0xff] %v18914_v22  ;;  %18205 = vmatprep.mubr.msk.f32.mxu0 %vm12286_vm3, %v28877_v37 }
 0x7e5   : > { %16913 = vst [vmem:[%s29530_s8 + $0x260] sm:$0xff] %v18915_v28  ;;  %v15469_v50 = vpop.f32.mrb[104].mxu1 }
 0x7e6   : > { %v18916_v27 = vadd.f32 %v15469_v50, %v29080_v58  ;;  %v15471_v8 = vpop.f32.mrb[105].mxu1 }
 0x7e7   : > { %v18917_v5 = vadd.f32 %v15471_v8, %v29083_v30  ;;  %18206 = vmatmul.mubr.msk.f32.gmra.mrb[134].mxu0 %vm12286_vm3, %v28891_v38 }
 0x7e8   : > { %16937 = vst [vmem:[%s29530_s8 + $0x320] sm:$0xff] %v18916_v27  ;;  %18208 = vmatprep.mubr.msk.f32.mxu0 %vm12286_vm3, %v28906_v45 }
 0x7e9   : > { %16938 = vst [vmem:[%s29530_s8 + $0x328] sm:$0xff] %v18917_v5  ;;  %v15475_v18 = vpop.f32.mrb[106].mxu1 }
 0x7ea   : > { %v18918_v37 = vadd.f32 %v15475_v18, %v29105_v17  ;;  %v15477_v49 = vpop.f32.mrb[107].mxu1 }
 0x7eb   : > { %v18919_v29 = vadd.f32 %v15477_v49, %v29109_v59  ;;  %18209 = vmatmul.mubr.msk.f32.gmra.mrb[136].mxu0 %vm12286_vm3, %v28920_v6 }
 0x7ec   : > { %16962 = vst [vmem:[%s29530_s8 + $0x3e8] sm:$0xff] %v18918_v37 }
 0x7ed   : > { %16963 = vst [vmem:[%s29530_s8 + $0x3f0] sm:$0xff] %v18919_v29  ;;  %v15546_v38 = vpop.f32.mrb[108].mxu1 }
 0x7ee   : > { %v18920_v58 = vadd.f32 %v15546_v38, %v29138_v36  ;;  %v15548_v45 = vpop.f32.mrb[109].mxu1 }
 0x7ef   : > { %v18921_v30 = vadd.f32 %v15548_v45, %v29144_v47 }
 0x7f0   : > { %16838 = vst [vmem:[%s29530_s8 + $0x10] sm:$0xff] %v18920_v58 }
 0x7f1   : > { %16839 = vst [vmem:[%s29530_s8 + $0x18] sm:$0xff] %v18921_v30  ;;  %v15552_v17 = vpop.f32.mrb[110].mxu1 }
 0x7f2   : > { %v18922_v51 = vadd.f32 %v15552_v17, %v29150_v48  ;;  %v15554_v59 = vpop.f32.mrb[111].mxu1 }
 0x7f3   : > { %v18923_v6 = vadd.f32 %v15554_v59, %v29154_v32 }
 0x7f4   : > { %16864 = vst [vmem:[%s29530_s8 + $0xd8] sm:$0xff] %v18922_v51 }
 0x7f5   : > { %16865 = vst [vmem:[%s29530_s8 + $0xe0] sm:$0xff] %v18923_v6  ;;  %v15558_v7 = vpop.f32.mrb[112].mxu1 }
 0x7f6   : > { %v18924_v36 = vadd.f32 %v15558_v7, %v29160_v34  ;;  %v15560_v10 = vpop.f32.mrb[113].mxu1 }
 0x7f7   : > { %v18925_v47 = vadd.f32 %v15560_v10, %v29164_v56 }
 0x7f8   : > { %16889 = vst [vmem:[%s29530_s8 + $0x1a0] sm:$0xff] %v18924_v36 }
 0x7f9   : > { %16890 = vst [vmem:[%s29530_s8 + $0x1a8] sm:$0xff] %v18925_v47  ;;  %v15564_v62 = vpop.f32.mrb[114].mxu1 }
 0x7fa   : > { %v18926_v48 = vadd.f32 %v15564_v62, %v29170_v44  ;;  %v15566_v21 = vpop.f32.mrb[115].mxu1 }
 0x7fb   : > { %v18927_v32 = vadd.f32 %v15566_v21, %v29174_v14 }
 0x7fc   : > { %16914 = vst [vmem:[%s29530_s8 + $0x268] sm:$0xff] %v18926_v48 }
 0x7fd   : > { %16915 = vst [vmem:[%s29530_s8 + $0x270] sm:$0xff] %v18927_v32  ;;  %v15570_v39 = vpop.f32.mrb[116].mxu1 }
 0x7fe   : > { %v18928_v34 = vadd.f32 %v15570_v39, %v29185_v53  ;;  %v15572_v19 = vpop.f32.mrb[117].mxu1 }
 0x7ff   : > { %v18929_v56 = vadd.f32 %v15572_v19, %v29190_v24 }
 0x800   : > { %16939 = vst [vmem:[%s29530_s8 + $0x330] sm:$0xff] %v18928_v34 }
 0x801   : > { %16940 = vst [vmem:[%s29530_s8 + $0x338] sm:$0xff] %v18929_v56  ;;  %v15576_v9 = vpop.f32.mrb[118].mxu1 }
 0x802   : > { %v18930_v44 = vadd.f32 %v15576_v9, %v29210_v4  ;;  %v15578_v2 = vpop.f32.mrb[119].mxu1 }
 0x803   : > { %v18931_v14 = vadd.f32 %v15578_v2, %v29222_v23 }
 0x804   : > { %16964 = vst [vmem:[%s29530_s8 + $0x3f8] sm:$0xff] %v18930_v44 }
 0x805   : > { %16965 = vst [vmem:[%s29530_s8 + $0x400] sm:$0xff] %v18931_v14  ;;  %v15647_v13 = vpop.f32.mrb[120].mxu1 }
 0x806   : > { %v18932_v53 = vadd.f32 %v15647_v13, %v31644_v31  ;;  %v15649_v20 = vpop.f32.mrb[121].mxu1 }
 0x807   : > { %v18933_v24 = vadd.f32 %v15649_v20, %v31645_v26 }
 0x808   : > { %16840 = vst [vmem:[%s29530_s8 + $0x20] sm:$0xff] %v18932_v53 }
 0x809   : > { %16841 = vst [vmem:[%s29530_s8 + $0x28] sm:$0xff] %v18933_v24  ;;  %v15653_v33 = vpop.f32.mrb[122].mxu1 }
 0x80a   : > { %v18934_v4 = vadd.f32 %v15653_v33, %v31646_v3  ;;  %v15655_v42 = vpop.f32.mrb[123].mxu1 }
 0x80b   : > { %v18935_v23 = vadd.f32 %v15655_v42, %v31647_v0 }
 0x80c   : > { %16866 = vst [vmem:[%s29530_s8 + $0xe8] sm:$0xff] %v18934_v4 }
 0x80d   : > { %16867 = vst [vmem:[%s29530_s8 + $0xf0] sm:$0xff] %v18935_v23  ;;  %v15659_v12 = vpop.f32.mrb[124].mxu1 }
 0x80e   : > { %v18936_v55 = vadd.f32 %v15659_v12, %v31648_v60  ;;  %v15661_v54 = vpop.f32.mrb[125].mxu1 }
 0x80f   : > { %v18937_v35 = vadd.f32 %v15661_v54, %v31649_v16 }
 0x810   : > { %16891 = vst [vmem:[%s29530_s8 + $0x1b0] sm:$0xff] %v18936_v55 }
 0x811   : > { %16892 = vst [vmem:[%s29530_s8 + $0x1b8] sm:$0xff] %v18937_v35  ;;  %v15665_v57 = vpop.f32.mrb[126].mxu1 }
 0x812   : > { %v18938_v52 = vadd.f32 %v15665_v57, %v31650_v15  ;;  %v15667_v11 = vpop.f32.mrb[127].mxu1 }
 0x813   : > { %v18939_v63 = vadd.f32 %v15667_v11, %v31651_v43 }
 0x814   : > { %16916 = vst [vmem:[%s29530_s8 + $0x278] sm:$0xff] %v18938_v52 }
 0x815   : > { %16917 = vst [vmem:[%s29530_s8 + $0x280] sm:$0xff] %v18939_v63  ;;  %v15671_v40 = vpop.f32.mrb[128].mxu1 }
 0x816   : > { %v18940_v61 = vadd.f32 %v15671_v40, %v31652_v46  ;;  %v15673_v22 = vpop.f32.mrb[129].mxu1 }
 0x817   : > { %v18941_v28 = vadd.f32 %v15673_v22, %v31653_v25 }
 0x818   : > { %16941 = vst [vmem:[%s29530_s8 + $0x340] sm:$0xff] %v18940_v61 }
 0x819   : > { %16942 = vst [vmem:[%s29530_s8 + $0x348] sm:$0xff] %v18941_v28  ;;  %v15677_v50 = vpop.f32.mrb[130].mxu1 }
 0x81a   : > { %v18942_v27 = vadd.f32 %v15677_v50, %v29317_v41  ;;  %v15679_v8 = vpop.f32.mrb[131].mxu1 }
 0x81b   : > { %v18943_v5 = vadd.f32 %v15679_v8, %v29329_v1 }
 0x81c   : > { %16966 = vst [vmem:[%s29530_s8 + $0x408] sm:$0xff] %v18942_v27 }
 0x81d   : > { %16967 = vst [vmem:[%s29530_s8 + $0x410] sm:$0xff] %v18943_v5  ;;  %v15748_v18 = vpop.f32.mrb[36].mxu1 }
 0x81e   : > { %16842 = vst [vmem:[%s29530_s8 + $0x30] sm:$0xff] %v15748_v18  ;;  %v15750_v37 = vpop.f32.mrb[37].mxu1 }
 0x81f   : > { %16843 = vst [vmem:[%s29530_s8 + $0x38] sm:$0xff] %v15750_v37 }
 0x821   : > { %v15754_v49 = vpop.f32.mrb[38].mxu1 }
 0x822   : > { %16868 = vst [vmem:[%s29530_s8 + $0xf8] sm:$0xff] %v15754_v49  ;;  %v15756_v29 = vpop.f32.mrb[39].mxu1 }
 0x823   : > { %16869 = vst [vmem:[%s29530_s8 + $0x100] sm:$0xff] %v15756_v29 }
 0x825   : > { %v15760_v41 = vpop.f32.mrb[40].mxu1 }
 0x826   : > { %16893 = vst [vmem:[%s29530_s8 + $0x1c0] sm:$0xff] %v15760_v41  ;;  %v15762_v1 = vpop.f32.mrb[41].mxu1 }
 0x827   : > { %16894 = vst [vmem:[%s29530_s8 + $0x1c8] sm:$0xff] %v15762_v1 }
 0x829   : > { %v15766_v38 = vpop.f32.mrb[42].mxu1 }
 0x82a   : > { %16918 = vst [vmem:[%s29530_s8 + $0x288] sm:$0xff] %v15766_v38  ;;  %v15768_v58 = vpop.f32.mrb[43].mxu1 }
 0x82b   : > { %16919 = vst [vmem:[%s29530_s8 + $0x290] sm:$0xff] %v15768_v58 }
 0x82d   : > { %v15772_v45 = vpop.f32.mrb[44].mxu1 }
 0x82e   : > { %16943 = vst [vmem:[%s29530_s8 + $0x350] sm:$0xff] %v15772_v45  ;;  %v15774_v30 = vpop.f32.mrb[45].mxu1 }
 0x82f   : > { %16944 = vst [vmem:[%s29530_s8 + $0x358] sm:$0xff] %v15774_v30 }
 0x831   : > { %v15778_v17 = vpop.f32.mrb[46].mxu1 }
 0x832   : > { %16968 = vst [vmem:[%s29530_s8 + $0x418] sm:$0xff] %v15778_v17  ;;  %v15780_v51 = vpop.f32.mrb[47].mxu1 }
 0x833   : > { %16969 = vst [vmem:[%s29530_s8 + $0x420] sm:$0xff] %v15780_v51 }
 0x835   : > { %v15950_v59 = vpop.f32.mrb[48].mxu1 }
 0x836   : > { %16846 = vst [vmem:[%s29530_s8 + $0x50] sm:$0xff] %v15950_v59  ;;  %v15952_v6 = vpop.f32.mrb[49].mxu1 }
 0x837   : > { %16847 = vst [vmem:[%s29530_s8 + $0x58] sm:$0xff] %v15952_v6 }
 0x839   : > { %v15956_v7 = vpop.f32.mrb[50].mxu1 }
 0x83a   : > { %16872 = vst [vmem:[%s29530_s8 + $0x118] sm:$0xff] %v15956_v7  ;;  %v15958_v36 = vpop.f32.mrb[51].mxu1 }
 0x83b   : > { %16873 = vst [vmem:[%s29530_s8 + $0x120] sm:$0xff] %v15958_v36 }
 0x83d   : > { %v15962_v10 = vpop.f32.mrb[52].mxu1 }
 0x83e   : > { %16897 = vst [vmem:[%s29530_s8 + $0x1e0] sm:$0xff] %v15962_v10  ;;  %v15964_v47 = vpop.f32.mrb[53].mxu1 }
 0x83f   : > { %16898 = vst [vmem:[%s29530_s8 + $0x1e8] sm:$0xff] %v15964_v47 }
 0x841   : > { %v15968_v62 = vpop.f32.mrb[54].mxu1 }
 0x842   : > { %16922 = vst [vmem:[%s29530_s8 + $0x2a8] sm:$0xff] %v15968_v62  ;;  %v15970_v48 = vpop.f32.mrb[55].mxu1 }
 0x843   : > { %16923 = vst [vmem:[%s29530_s8 + $0x2b0] sm:$0xff] %v15970_v48 }
 0x845   : > { %v15974_v21 = vpop.f32.mrb[56].mxu1 }
 0x846   : > { %16947 = vst [vmem:[%s29530_s8 + $0x370] sm:$0xff] %v15974_v21  ;;  %v15976_v32 = vpop.f32.mrb[57].mxu1 }
 0x847   : > { %16948 = vst [vmem:[%s29530_s8 + $0x378] sm:$0xff] %v15976_v32 }
 0x849   : > { %v15980_v39 = vpop.f32.mrb[58].mxu1 }
 0x84a   : > { %16972 = vst [vmem:[%s29530_s8 + $0x438] sm:$0xff] %v15980_v39  ;;  %v15982_v34 = vpop.f32.mrb[59].mxu1 }
 0x84b   : > { %16973 = vst [vmem:[%s29530_s8 + $0x440] sm:$0xff] %v15982_v34 }
 0x84d   : > { %v16152_v19 = vpop.f32.mrb[60].mxu1 }
 0x84e   : > { %16850 = vst [vmem:[%s29530_s8 + $0x70] sm:$0xff] %v16152_v19  ;;  %v16154_v56 = vpop.f32.mrb[61].mxu1 }
 0x84f   : > { %16851 = vst [vmem:[%s29530_s8 + $0x78] sm:$0xff] %v16154_v56 }
 0x851   : > { %v16158_v9 = vpop.f32.mrb[62].mxu1 }
 0x852   : > { %16876 = vst [vmem:[%s29530_s8 + $0x138] sm:$0xff] %v16158_v9  ;;  %v16160_v44 = vpop.f32.mrb[63].mxu1 }
 0x853   : > { %16877 = vst [vmem:[%s29530_s8 + $0x140] sm:$0xff] %v16160_v44 }
 0x855   : > { %v16164_v2 = vpop.f32.mrb[64].mxu1 }
 0x856   : > { %16901 = vst [vmem:[%s29530_s8 + $0x200] sm:$0xff] %v16164_v2  ;;  %v15849_v14 = vpop.f32.mrb[84].mxu0  ;;  %v16166_v13 = vpop.f32.mrb[65].mxu1 }
 0x857   : > { %16844 = vst [vmem:[%s29530_s8 + $0x40] sm:$0xff] %v15849_v14  ;;  %16902 = vst [vmem:[%s29530_s8 + $0x208] sm:$0xff] %v16166_v13  ;;  %v15851_v31 = vpop.f32.mrb[85].mxu0 }
 0x858   : > { %16845 = vst [vmem:[%s29530_s8 + $0x48] sm:$0xff] %v15851_v31 }
 0x859   : > { %v16170_v53 = vpop.f32.mrb[66].mxu1 }
 0x85a   : > { %16926 = vst [vmem:[%s29530_s8 + $0x2c8] sm:$0xff] %v16170_v53  ;;  %v15855_v20 = vpop.f32.mrb[86].mxu0  ;;  %v16172_v26 = vpop.f32.mrb[67].mxu1 }
 0x85b   : > { %16870 = vst [vmem:[%s29530_s8 + $0x108] sm:$0xff] %v15855_v20  ;;  %16927 = vst [vmem:[%s29530_s8 + $0x2d0] sm:$0xff] %v16172_v26  ;;  %v15857_v24 = vpop.f32.mrb[87].mxu0 }
 0x85c   : > { %16871 = vst [vmem:[%s29530_s8 + $0x110] sm:$0xff] %v15857_v24 }
 0x85d   : > { %v16176_v33 = vpop.f32.mrb[68].mxu1 }
 0x85e   : > { %16951 = vst [vmem:[%s29530_s8 + $0x390] sm:$0xff] %v16176_v33  ;;  %v15861_v3 = vpop.f32.mrb[88].mxu0  ;;  %v16178_v4 = vpop.f32.mrb[69].mxu1 }
 0x85f   : > { %16895 = vst [vmem:[%s29530_s8 + $0x1d0] sm:$0xff] %v15861_v3  ;;  %16952 = vst [vmem:[%s29530_s8 + $0x398] sm:$0xff] %v16178_v4  ;;  %v15863_v42 = vpop.f32.mrb[89].mxu0 }
 0x860   : > { %16896 = vst [vmem:[%s29530_s8 + $0x1d8] sm:$0xff] %v15863_v42 }
 0x861   : > { %v16182_v0 = vpop.f32.mrb[70].mxu1 }
 0x862   : > { %16976 = vst [vmem:[%s29530_s8 + $0x458] sm:$0xff] %v16182_v0  ;;  %v15867_v23 = vpop.f32.mrb[90].mxu0  ;;  %v16184_v12 = vpop.f32.mrb[71].mxu1 }
 0x863   : > { %16920 = vst [vmem:[%s29530_s8 + $0x298] sm:$0xff] %v15867_v23  ;;  %16977 = vst [vmem:[%s29530_s8 + $0x460] sm:$0xff] %v16184_v12  ;;  %v15869_v60 = vpop.f32.mrb[91].mxu0 }
 0x864   : > { %16921 = vst [vmem:[%s29530_s8 + $0x2a0] sm:$0xff] %v15869_v60 }
 0x865   : > { %v16354_v55 = vpop.f32.mrb[72].mxu1 }
 0x866   : > { %16854 = vst [vmem:[%s29530_s8 + $0x90] sm:$0xff] %v16354_v55  ;;  %v15873_v54 = vpop.f32.mrb[92].mxu0  ;;  %v16356_v16 = vpop.f32.mrb[73].mxu1 }
 0x867   : > { %16945 = vst [vmem:[%s29530_s8 + $0x360] sm:$0xff] %v15873_v54  ;;  %16855 = vst [vmem:[%s29530_s8 + $0x98] sm:$0xff] %v16356_v16  ;;  %v15875_v35 = vpop.f32.mrb[93].mxu0 }
 0x868   : > { %16946 = vst [vmem:[%s29530_s8 + $0x368] sm:$0xff] %v15875_v35 }
 0x869   : > { %v16360_v57 = vpop.f32.mrb[74].mxu1 }
 0x86a   : > { %16880 = vst [vmem:[%s29530_s8 + $0x158] sm:$0xff] %v16360_v57  ;;  %v15879_v15 = vpop.f32.mrb[94].mxu0  ;;  %v16362_v52 = vpop.f32.mrb[75].mxu1 }
 0x86b   : > { %16970 = vst [vmem:[%s29530_s8 + $0x428] sm:$0xff] %v15879_v15  ;;  %16881 = vst [vmem:[%s29530_s8 + $0x160] sm:$0xff] %v16362_v52  ;;  %v15881_v11 = vpop.f32.mrb[95].mxu0 }
 0x86c   : > { %16971 = vst [vmem:[%s29530_s8 + $0x430] sm:$0xff] %v15881_v11 }
 0x86d   : > { %v16366_v43 = vpop.f32.mrb[76].mxu1 }
 0x86e   : > { %16905 = vst [vmem:[%s29530_s8 + $0x220] sm:$0xff] %v16366_v43  ;;  %v16051_v63 = vpop.f32.mrb[96].mxu0  ;;  %v16368_v40 = vpop.f32.mrb[77].mxu1 }
 0x86f   : > { %16848 = vst [vmem:[%s29530_s8 + $0x60] sm:$0xff] %v16051_v63  ;;  %16906 = vst [vmem:[%s29530_s8 + $0x228] sm:$0xff] %v16368_v40  ;;  %v16053_v46 = vpop.f32.mrb[97].mxu0 }
 0x870   : > { %16849 = vst [vmem:[%s29530_s8 + $0x68] sm:$0xff] %v16053_v46 }
 0x871   : > { %v16372_v61 = vpop.f32.mrb[78].mxu1 }
 0x872   : > { %16930 = vst [vmem:[%s29530_s8 + $0x2e8] sm:$0xff] %v16372_v61  ;;  %v16057_v22 = vpop.f32.mrb[98].mxu0  ;;  %v16374_v25 = vpop.f32.mrb[79].mxu1 }
 0x873   : > { %16874 = vst [vmem:[%s29530_s8 + $0x128] sm:$0xff] %v16057_v22  ;;  %16931 = vst [vmem:[%s29530_s8 + $0x2f0] sm:$0xff] %v16374_v25  ;;  %v16059_v28 = vpop.f32.mrb[99].mxu0 }
 0x874   : > { %16875 = vst [vmem:[%s29530_s8 + $0x130] sm:$0xff] %v16059_v28 }
 0x875   : > { %v16378_v50 = vpop.f32.mrb[80].mxu1 }
 0x876   : > { %16955 = vst [vmem:[%s29530_s8 + $0x3b0] sm:$0xff] %v16378_v50  ;;  %v16063_v27 = vpop.f32.mrb[100].mxu0  ;;  %v16380_v8 = vpop.f32.mrb[81].mxu1 }
 0x877   : > { %16899 = vst [vmem:[%s29530_s8 + $0x1f0] sm:$0xff] %v16063_v27  ;;  %16956 = vst [vmem:[%s29530_s8 + $0x3b8] sm:$0xff] %v16380_v8  ;;  %v16065_v5 = vpop.f32.mrb[101].mxu0 }
 0x878   : > { %16900 = vst [vmem:[%s29530_s8 + $0x1f8] sm:$0xff] %v16065_v5 }
 0x879   : > { %v16384_v18 = vpop.f32.mrb[82].mxu1 }
 0x87a   : > { %16980 = vst [vmem:[%s29530_s8 + $0x478] sm:$0xff] %v16384_v18  ;;  %v16069_v37 = vpop.f32.mrb[102].mxu0  ;;  %v16386_v49 = vpop.f32.mrb[83].mxu1 }
 0x87b   : > { %16924 = vst [vmem:[%s29530_s8 + $0x2b8] sm:$0xff] %v16069_v37  ;;  %16981 = vst [vmem:[%s29530_s8 + $0x480] sm:$0xff] %v16386_v49  ;;  %v16071_v29 = vpop.f32.mrb[103].mxu0 }
 0x87c   : > { %16925 = vst [vmem:[%s29530_s8 + $0x2c0] sm:$0xff] %v16071_v29 }
 0x87d   : > { %v16556_v41 = vpop.f32.mrb[84].mxu1 }
 0x87e   : > { %16858 = vst [vmem:[%s29530_s8 + $0xb0] sm:$0xff] %v16556_v41  ;;  %v16075_v1 = vpop.f32.mrb[104].mxu0  ;;  %v16558_v38 = vpop.f32.mrb[85].mxu1 }
 0x87f   : > { %16949 = vst [vmem:[%s29530_s8 + $0x380] sm:$0xff] %v16075_v1  ;;  %16859 = vst [vmem:[%s29530_s8 + $0xb8] sm:$0xff] %v16558_v38  ;;  %v16077_v58 = vpop.f32.mrb[105].mxu0 }
 0x880   : > { %16950 = vst [vmem:[%s29530_s8 + $0x388] sm:$0xff] %v16077_v58 }
 0x881   : > { %v16562_v45 = vpop.f32.mrb[86].mxu1 }
 0x882   : > { %16884 = vst [vmem:[%s29530_s8 + $0x178] sm:$0xff] %v16562_v45  ;;  %v16081_v30 = vpop.f32.mrb[106].mxu0  ;;  %v16564_v17 = vpop.f32.mrb[87].mxu1 }
 0x883   : > { %16974 = vst [vmem:[%s29530_s8 + $0x448] sm:$0xff] %v16081_v30  ;;  %16885 = vst [vmem:[%s29530_s8 + $0x180] sm:$0xff] %v16564_v17  ;;  %v16083_v51 = vpop.f32.mrb[107].mxu0 }
 0x884   : > { %16975 = vst [vmem:[%s29530_s8 + $0x450] sm:$0xff] %v16083_v51 }
 0x885   : > { %v16568_v59 = vpop.f32.mrb[88].mxu1 }
 0x886   : > { %16909 = vst [vmem:[%s29530_s8 + $0x240] sm:$0xff] %v16568_v59  ;;  %v16253_v6 = vpop.f32.mrb[108].mxu0  ;;  %v16570_v7 = vpop.f32.mrb[89].mxu1 }
 0x887   : > { %16852 = vst [vmem:[%s29530_s8 + $0x80] sm:$0xff] %v16253_v6  ;;  %16910 = vst [vmem:[%s29530_s8 + $0x248] sm:$0xff] %v16570_v7  ;;  %v16255_v36 = vpop.f32.mrb[109].mxu0 }
 0x888   : > { %16853 = vst [vmem:[%s29530_s8 + $0x88] sm:$0xff] %v16255_v36 }
 0x889   : > { %v16574_v10 = vpop.f32.mrb[90].mxu1 }
 0x88a   : > { %16934 = vst [vmem:[%s29530_s8 + $0x308] sm:$0xff] %v16574_v10  ;;  %v16259_v47 = vpop.f32.mrb[110].mxu0  ;;  %v16576_v62 = vpop.f32.mrb[91].mxu1 }
 0x88b   : > { %16878 = vst [vmem:[%s29530_s8 + $0x148] sm:$0xff] %v16259_v47  ;;  %16935 = vst [vmem:[%s29530_s8 + $0x310] sm:$0xff] %v16576_v62  ;;  %v16261_v48 = vpop.f32.mrb[111].mxu0 }
 0x88c   : > { %16879 = vst [vmem:[%s29530_s8 + $0x150] sm:$0xff] %v16261_v48 }
 0x88d   : > { %v16580_v21 = vpop.f32.mrb[92].mxu1 }
 0x88e   : > { %16959 = vst [vmem:[%s29530_s8 + $0x3d0] sm:$0xff] %v16580_v21  ;;  %v16265_v32 = vpop.f32.mrb[112].mxu0  ;;  %v16582_v39 = vpop.f32.mrb[93].mxu1 }
 0x88f   : > { %16903 = vst [vmem:[%s29530_s8 + $0x210] sm:$0xff] %v16265_v32  ;;  %16960 = vst [vmem:[%s29530_s8 + $0x3d8] sm:$0xff] %v16582_v39  ;;  %v16267_v34 = vpop.f32.mrb[113].mxu0 }
 0x890   : > { %16904 = vst [vmem:[%s29530_s8 + $0x218] sm:$0xff] %v16267_v34 }
 0x891   : > { %v16586_v19 = vpop.f32.mrb[94].mxu1 }
 0x892   : > { %16984 = vst [vmem:[%s29530_s8 + $0x498] sm:$0xff] %v16586_v19  ;;  %v16271_v56 = vpop.f32.mrb[114].mxu0  ;;  %v16588_v9 = vpop.f32.mrb[95].mxu1 }
 0x893   : > { %16928 = vst [vmem:[%s29530_s8 + $0x2d8] sm:$0xff] %v16271_v56  ;;  %16985 = vst [vmem:[%s29530_s8 + $0x4a0] sm:$0xff] %v16588_v9  ;;  %v16273_v44 = vpop.f32.mrb[115].mxu0 }
 0x894   : > { %16929 = vst [vmem:[%s29530_s8 + $0x2e0] sm:$0xff] %v16273_v44 }
 0x896   : > { %v16277_v2 = vpop.f32.mrb[116].mxu0 }
 0x897   : > { %16953 = vst [vmem:[%s29530_s8 + $0x3a0] sm:$0xff] %v16277_v2  ;;  %v16279_v14 = vpop.f32.mrb[117].mxu0 }
 0x898   : > { %16954 = vst [vmem:[%s29530_s8 + $0x3a8] sm:$0xff] %v16279_v14 }
 0x89a   : > { %v16283_v13 = vpop.f32.mrb[118].mxu0 }
 0x89b   : > { %16978 = vst [vmem:[%s29530_s8 + $0x468] sm:$0xff] %v16283_v13  ;;  %v16285_v31 = vpop.f32.mrb[119].mxu0 }
 0x89c   : > { %16979 = vst [vmem:[%s29530_s8 + $0x470] sm:$0xff] %v16285_v31 }
 0x89e   : > { %v16455_v53 = vpop.f32.mrb[120].mxu0 }
 0x89f   : > { %16856 = vst [vmem:[%s29530_s8 + $0xa0] sm:$0xff] %v16455_v53  ;;  %v16457_v20 = vpop.f32.mrb[121].mxu0 }
 0x8a0   : > { %16857 = vst [vmem:[%s29530_s8 + $0xa8] sm:$0xff] %v16457_v20 }
 0x8a2   : > { %v16461_v26 = vpop.f32.mrb[122].mxu0 }
 0x8a3   : > { %16882 = vst [vmem:[%s29530_s8 + $0x168] sm:$0xff] %v16461_v26  ;;  %v16463_v24 = vpop.f32.mrb[123].mxu0 }
 0x8a4   : > { %16883 = vst [vmem:[%s29530_s8 + $0x170] sm:$0xff] %v16463_v24 }
 0x8a6   : > { %v16467_v33 = vpop.f32.mrb[124].mxu0 }
 0x8a7   : > { %16907 = vst [vmem:[%s29530_s8 + $0x230] sm:$0xff] %v16467_v33  ;;  %v16469_v3 = vpop.f32.mrb[125].mxu0 }
 0x8a8   : > { %16908 = vst [vmem:[%s29530_s8 + $0x238] sm:$0xff] %v16469_v3 }
 0x8aa   : > { %v16473_v4 = vpop.f32.mrb[126].mxu0 }
 0x8ab   : > { %16932 = vst [vmem:[%s29530_s8 + $0x2f8] sm:$0xff] %v16473_v4  ;;  %v16475_v42 = vpop.f32.mrb[127].mxu0 }
 0x8ac   : > { %16933 = vst [vmem:[%s29530_s8 + $0x300] sm:$0xff] %v16475_v42 }
 0x8ae   : > { %v16479_v0 = vpop.f32.mrb[128].mxu0 }
 0x8af   : > { %16957 = vst [vmem:[%s29530_s8 + $0x3c0] sm:$0xff] %v16479_v0  ;;  %v16481_v23 = vpop.f32.mrb[129].mxu0 }
 0x8b0   : > { %16958 = vst [vmem:[%s29530_s8 + $0x3c8] sm:$0xff] %v16481_v23 }
 0x8b2   : > { %v16485_v12 = vpop.f32.mrb[130].mxu0 }
 0x8b3   : > { %16982 = vst [vmem:[%s29530_s8 + $0x488] sm:$0xff] %v16485_v12  ;;  %v16487_v60 = vpop.f32.mrb[131].mxu0 }
 0x8b4   : > { %16983 = vst [vmem:[%s29530_s8 + $0x490] sm:$0xff] %v16487_v60 }
 0x8b6   : > { %v18204_v55 = vpop.f32.mrb[132].mxu0 }
 0x8b7   : > { %16886 = vst.msk [vmem:[%s29530_s8 + $0x188] sm:$0xff] %vm16860_vm5, %v18204_v55  ;;  %v16657_v54 = vpop.f32.mrb[133].mxu0 }
 0x8b8   : > { %16861 = vst.msk [vmem:[%s29530_s8 + $0xc0] sm:$0xff] %vm16860_vm5, %v16657_v54 }
 0x8ba   : > { %v18207_v16 = vpop.f32.mrb[134].mxu0 }
 0x8bb   : > { %16936 = vst.msk [vmem:[%s29530_s8 + $0x318] sm:$0xff] %vm16860_vm5, %v18207_v16  ;;  %v16667_v35 = vpop.f32.mrb[135].mxu0 }
 0x8bc   : > { %16911 = vst.msk [vmem:[%s29530_s8 + $0x250] sm:$0xff] %vm16860_vm5, %v16667_v35 }
 0x8be   : > { %v18210_v57 = vpop.f32.mrb[136].mxu0 }
 0x8bf   : > { %16986 = vst.msk [vmem:[%s29530_s8 + $0x4a8] sm:$0xff] %vm16860_vm5, %v18210_v57  ;;  %v16677_v15 = vpop.f32.mrb[137].mxu0 }
 0x8c0   : > { %16961 = vst.msk [vmem:[%s29530_s8 + $0x3e0] sm:$0xff] %vm16860_vm5, %v16677_v15 }
 0x8c1 PF: > { %s14_s15 = sadd.s32 1, %s21028_s15  }
 0x8c2   : > { %p11_p4 = scmp.ge.s32.totalorder %s14_s15, 4  }
 0x8c4   :  { %13 = sbr.rel (!%p11_p4) target bundleno = 1 (0x1), region = 69 }

</bundles_post_ra>
